<compile_context>
chip_gen: v6e
topology: v6e:2x2x1
jax: 0.10.0
libtpu: 0.0.40
codegen_flags: <defaults>
</compile_context>

<pallas_src>
import math
import functools

import jax
import jax.numpy as jnp
from jax.experimental import pallas as pl
from jax.experimental.pallas import tpu as pltpu

# Make the pure-JAX reference run in full f32 so it is comparable to the kernel.
jax.config.update("jax_default_matmul_precision", "highest")

_N_MAB = 5        # isab1.mab0, isab1.mab1, isab2.mab0, isab2.mab1, pma.mab
_W_PER_MAB = 6    # wq, bq, wkv, bkv, wo, bo


# ----------------------------------------------------------------------------
# One MAB block (pure jnp, runs inside the fused kernel):
#   O = LN1( H + relu(fc_o(H)) ),  H = LN0( Q' + MHA(Q', K', V') )
# ln=False here, so the LayerNorms are identity (matches the module defaults).
# ----------------------------------------------------------------------------
def _mab(qin, kin, wq, bq, wkv, bkv, wo, bo, *, num_heads, dim_V):
    # NOTE: the original SetTransformer scales by 1/sqrt(dim_V), NOT 1/sqrt(d_head).
    # This is intentional (matches the PyTorch code); do not "fix" it.
    scale = 1.0 / math.sqrt(dim_V)
    dh = dim_V // num_heads

    # Projections. K|V are fused into a single 2*dim_V-wide matmul.
    Q = jnp.dot(qin, wq, preferred_element_type=jnp.float32) + bq        # (Nq, dv)
    KV = jnp.dot(kin, wkv, preferred_element_type=jnp.float32) + bkv     # (Nk, 2*dv)
    K, V = KV[:, :dim_V], KV[:, dim_V:]

    # Head split: (N, H*dh) -> (H, N, dh).  Static lane slices stacked on a new
    # untiled leading axis; attention itself is head-batched (no per-head loop).
    def split(Z):
        return jnp.stack([Z[:, h * dh:(h + 1) * dh] for h in range(num_heads)], axis=0)

    Qh, Kh, Vh = split(Q), split(K), split(V)                            # (H, N, dh)

    S = jnp.einsum("hqd,hkd->hqk", Qh, Kh,
                   preferred_element_type=jnp.float32) * scale           # (H, Nq, Nk)
    S = S - jnp.max(S, axis=-1, keepdims=True)
    E = jnp.exp(S)
    A = E * pl.reciprocal(jnp.sum(E, axis=-1, keepdims=True), approx=True)
    Oh = Qh + jnp.einsum("hqk,hkd->hqd", A, Vh,
                         preferred_element_type=jnp.float32)             # (H, Nq, dh)

    O = jnp.concatenate([Oh[h] for h in range(num_heads)], axis=-1)      # (Nq, dv)
    Hff = jnp.dot(O, wo, preferred_element_type=jnp.float32) + bo
    return O + jnp.maximum(Hff, 0.0)   # ln=False -> LayerNorms are identity


# ----------------------------------------------------------------------------
# Fully fused forward kernel: ISAB -> ISAB -> PMA -> Linear for one batch element.
# ----------------------------------------------------------------------------
def _set_transformer_kernel(*refs, num_heads, dim_V):
    x_ref, i1_ref, i2_ref, s_ref = refs[:4]
    w_refs = refs[4:4 + _N_MAB * _W_PER_MAB]
    fcw_ref = refs[4 + _N_MAB * _W_PER_MAB]
    fcb_ref = refs[5 + _N_MAB * _W_PER_MAB]
    o_ref = refs[6 + _N_MAB * _W_PER_MAB]

    def mab(qin, kin, idx):
        ws = [w_refs[idx * _W_PER_MAB + j][...] for j in range(_W_PER_MAB)]
        return _mab(qin, kin, *ws, num_heads=num_heads, dim_V=dim_V)

    x = x_ref[0]                                   # (N, dim_input)

    # ISAB 1:  H = MAB(I1, x);  h = MAB(x, H)
    Hm = mab(i1_ref[0], x, 0)
    h = mab(x, Hm, 1)
    # ISAB 2
    Hm = mab(i2_ref[0], h, 2)
    h = mab(h, Hm, 3)
    # TODO(synk): nn.Dropout(p=0.5) layers in the decoder are identity here (inference mode).
    # PMA
    p = mab(s_ref[0], h, 4)                        # (num_outputs, dim_V)
    # Final Linear.  fc_w / fc_b are pre-padded to 128 output lanes in the
    # wrapper so this store is lane-dense (unmasked vst).
    y = jnp.dot(p, fcw_ref[...], preferred_element_type=jnp.float32) + fcb_ref[...]
    o_ref[0] = y.astype(o_ref.dtype)


def set_transformer_pallas(X, params, num_heads):
    B, N, dim_input = X.shape
    dim_hidden = params["fc_w"].shape[0]
    dim_output = params["fc_w"].shape[1]
    num_outputs = params["pma"]["S"].shape[1]

    LANE = 128
    dout_pad = ((dim_output + LANE - 1) // LANE) * LANE
    fc_w = jnp.pad(params["fc_w"], ((0, 0), (0, dout_pad - dim_output)))
    fc_b = jnp.pad(params["fc_b"], ((0, 0), (0, dout_pad - dim_output)))

    def pack(p):
        # Fuse K and V projection weights into one (dk, 2*dv) matmul operand.
        return [p["wq"], p["bq"],
                jnp.concatenate([p["wk"], p["wv"]], axis=1),
                jnp.concatenate([p["bk"], p["bv"]], axis=1),
                p["wo"], p["bo"]]

    weights = (pack(params["isab1"]["mab0"]) + pack(params["isab1"]["mab1"])
               + pack(params["isab2"]["mab0"]) + pack(params["isab2"]["mab1"])
               + pack(params["pma"]["mab"]))

    # I / S are passed as (1, ., dim_hidden) with a constant index_map — no
    # broadcast_to materialization, one VMEM-resident copy across grid steps.
    inputs = ([X, params["isab1"]["I"], params["isab2"]["I"], params["pma"]["S"]]
              + weights + [fc_w, fc_b])

    def const_spec(a):
        zeros = (0,) * a.ndim
        return pl.BlockSpec(a.shape, lambda b, z=zeros: z)

    in_specs = ([pl.BlockSpec((1, N, dim_input), lambda b: (b, 0, 0))]
                + [const_spec(a) for a in inputs[1:]])

    out = pl.pallas_call(
        functools.partial(_set_transformer_kernel, num_heads=num_heads, dim_V=dim_hidden),
        grid=(B,),
        in_specs=in_specs,
        out_specs=pl.BlockSpec((1, num_outputs, dout_pad), lambda b: (b, 0, 0)),
        out_shape=jax.ShapeDtypeStruct((B, num_outputs, dout_pad), jnp.float32),
        compiler_params=pltpu.CompilerParams(dimension_semantics=("parallel",)),
    )(*inputs)

    # Strip the lane padding and mirror the PyTorch .squeeze().
    return jnp.squeeze(out[:, :, :dim_output])


# ----------------------------------------------------------------------------
# Pure-JAX reference (mirrors the PyTorch MAB exactly) for correctness check.
# ----------------------------------------------------------------------------
def mab_ref(Qin, Kin, p, num_heads):
    dv = p["wq"].shape[1]
    Q = Qin @ p["wq"] + p["bq"][0]
    K = Kin @ p["wk"] + p["bk"][0]
    V = Kin @ p["wv"] + p["bv"][0]
    Qh = jnp.concatenate(jnp.split(Q, num_heads, axis=2), axis=0)
    Kh = jnp.concatenate(jnp.split(K, num_heads, axis=2), axis=0)
    Vh = jnp.concatenate(jnp.split(V, num_heads, axis=2), axis=0)
    A = jax.nn.softmax(jnp.einsum("bqd,bkd->bqk", Qh, Kh) / math.sqrt(dv), axis=2)
    O = Qh + jnp.einsum("bqk,bkd->bqd", A, Vh)
    O = jnp.concatenate(jnp.split(O, num_heads, axis=0), axis=2)
    return O + jax.nn.relu(O @ p["wo"] + p["bo"][0])


def set_transformer_ref(X, params, num_heads):
    def isab_r(X, p):
        B = X.shape[0]
        I = jnp.broadcast_to(p["I"], (B,) + p["I"].shape[1:])
        Hm = mab_ref(I, X, p["mab0"], num_heads)
        return mab_ref(X, Hm, p["mab1"], num_heads)

    h = isab_r(X, params["isab1"])
    h = isab_r(h, params["isab2"])
    B = h.shape[0]
    S = jnp.broadcast_to(params["pma"]["S"], (B,) + params["pma"]["S"].shape[1:])
    h = mab_ref(S, h, params["pma"]["mab"], num_heads)
    h = h @ params["fc_w"] + params["fc_b"][0]
    return jnp.squeeze(h)


# ----------------------------------------------------------------------------
# Deterministic parameter initialization (synthetic, matches module shapes).
# ----------------------------------------------------------------------------
def xavier_uniform(key, shape):
    fan_in, fan_out = shape[-2], shape[-1]
    a = math.sqrt(6.0 / (fan_in + fan_out))
    return jax.random.uniform(key, shape, jnp.float32, -a, a)


def init_linear(key, din, dout):
    k1, k2 = jax.random.split(key)
    bound = 1.0 / math.sqrt(din)
    w = jax.random.uniform(k1, (din, dout), jnp.float32, -bound, bound)   # stored (in, out)
    b = jax.random.uniform(k2, (1, dout), jnp.float32, -bound, bound)
    return w, b


def init_mab(key, dim_Q, dim_K, dim_V):
    ks = jax.random.split(key, 4)
    wq, bq = init_linear(ks[0], dim_Q, dim_V)
    wk, bk = init_linear(ks[1], dim_K, dim_V)
    wv, bv = init_linear(ks[2], dim_K, dim_V)
    wo, bo = init_linear(ks[3], dim_V, dim_V)
    return dict(wq=wq, bq=bq, wk=wk, bk=bk, wv=wv, bv=bv, wo=wo, bo=bo)


if __name__ == "__main__":
    # Small shapes consistent with the module (defaults scaled down).
    B, N = 2, 16
    dim_input, dim_hidden, num_heads = 3, 32, 4
    num_inds, num_outputs, dim_output = 8, 1, 40

    key = jax.random.PRNGKey(0)
    keys = jax.random.split(key, 10)
    params = {
        "isab1": {
            "I":    xavier_uniform(keys[0], (1, num_inds, dim_hidden)),
            "mab0": init_mab(keys[1], dim_hidden, dim_input, dim_hidden),
            "mab1": init_mab(keys[2], dim_input, dim_hidden, dim_hidden),
        },
        "isab2": {
            "I":    xavier_uniform(keys[3], (1, num_inds, dim_hidden)),
            "mab0": init_mab(keys[4], dim_hidden, dim_hidden, dim_hidden),
            "mab1": init_mab(keys[5], dim_hidden, dim_hidden, dim_hidden),
        },
        "pma": {
            "S":   xavier_uniform(keys[6], (1, num_outputs, dim_hidden)),
            "mab": init_mab(keys[7], dim_hidden, dim_hidden, dim_hidden),
        },
    }
    params["fc_w"], params["fc_b"] = init_linear(keys[8], dim_hidden, dim_output)

    X = jax.random.normal(keys[9], (B, N, dim_input), jnp.float32)

    out = set_transformer_pallas(X, params, num_heads)
    out = jax.block_until_ready(out)

    ref = set_transformer_ref(X, params, num_heads)
    assert out.shape == (B, dim_output), out.shape
    assert bool(jnp.all(jnp.isfinite(out)))
    assert bool(jnp.allclose(out, ref, atol=1e-2, rtol=1e-2)), float(jnp.max(jnp.abs(out - ref)))

    print("KERNEL_OK")
</pallas_src>

<mosaic_0001>
module attributes {stable_mosaic.version = 11 : i64} {
  func.func @_set_transformer_kernel(%arg0: i32, %arg1: memref<1x16x3xf32, #tpu.memory_space<vmem>>, %arg2: memref<1x8x32xf32, #tpu.memory_space<vmem>>, %arg3: memref<1x8x32xf32, #tpu.memory_space<vmem>>, %arg4: memref<1x1x32xf32, #tpu.memory_space<vmem>>, %arg5: memref<32x32xf32, #tpu.memory_space<vmem>>, %arg6: memref<1x32xf32, #tpu.memory_space<vmem>>, %arg7: memref<3x64xf32, #tpu.memory_space<vmem>>, %arg8: memref<1x64xf32, #tpu.memory_space<vmem>>, %arg9: memref<32x32xf32, #tpu.memory_space<vmem>>, %arg10: memref<1x32xf32, #tpu.memory_space<vmem>>, %arg11: memref<3x32xf32, #tpu.memory_space<vmem>>, %arg12: memref<1x32xf32, #tpu.memory_space<vmem>>, %arg13: memref<32x64xf32, #tpu.memory_space<vmem>>, %arg14: memref<1x64xf32, #tpu.memory_space<vmem>>, %arg15: memref<32x32xf32, #tpu.memory_space<vmem>>, %arg16: memref<1x32xf32, #tpu.memory_space<vmem>>, %arg17: memref<32x32xf32, #tpu.memory_space<vmem>>, %arg18: memref<1x32xf32, #tpu.memory_space<vmem>>, %arg19: memref<32x64xf32, #tpu.memory_space<vmem>>, %arg20: memref<1x64xf32, #tpu.memory_space<vmem>>, %arg21: memref<32x32xf32, #tpu.memory_space<vmem>>, %arg22: memref<1x32xf32, #tpu.memory_space<vmem>>, %arg23: memref<32x32xf32, #tpu.memory_space<vmem>>, %arg24: memref<1x32xf32, #tpu.memory_space<vmem>>, %arg25: memref<32x64xf32, #tpu.memory_space<vmem>>, %arg26: memref<1x64xf32, #tpu.memory_space<vmem>>, %arg27: memref<32x32xf32, #tpu.memory_space<vmem>>, %arg28: memref<1x32xf32, #tpu.memory_space<vmem>>, %arg29: memref<32x32xf32, #tpu.memory_space<vmem>>, %arg30: memref<1x32xf32, #tpu.memory_space<vmem>>, %arg31: memref<32x64xf32, #tpu.memory_space<vmem>>, %arg32: memref<1x64xf32, #tpu.memory_space<vmem>>, %arg33: memref<32x32xf32, #tpu.memory_space<vmem>>, %arg34: memref<1x32xf32, #tpu.memory_space<vmem>>, %arg35: memref<32x128xf32, #tpu.memory_space<vmem>>, %arg36: memref<1x128xf32, #tpu.memory_space<vmem>>, %arg37: memref<1x1x128xf32, #tpu.memory_space<vmem>>) attributes {dimension_semantics = [#tpu.dimension_semantics<parallel>], iteration_bounds = array<i64: 2>, scalar_prefetch = 0 : i64, scratch_operands = 0 : i64, tpu.core_type = #tpu.core_type<tc>, window_params = [{transform_indices = @transform_0, window_bounds = array<i64: 1, 16, 3>}, {pipeline_mode = #tpu.pipeline_mode<synchronous>, transform_indices = @transform_1, window_bounds = array<i64: 1, 8, 32>}, {pipeline_mode = #tpu.pipeline_mode<synchronous>, transform_indices = @transform_2, window_bounds = array<i64: 1, 8, 32>}, {pipeline_mode = #tpu.pipeline_mode<synchronous>, transform_indices = @transform_3, window_bounds = array<i64: 1, 1, 32>}, {pipeline_mode = #tpu.pipeline_mode<synchronous>, transform_indices = @transform_4, window_bounds = array<i64: 32, 32>}, {pipeline_mode = #tpu.pipeline_mode<synchronous>, transform_indices = @transform_5, window_bounds = array<i64: 1, 32>}, {pipeline_mode = #tpu.pipeline_mode<synchronous>, transform_indices = @transform_6, window_bounds = array<i64: 3, 64>}, {pipeline_mode = #tpu.pipeline_mode<synchronous>, transform_indices = @transform_7, window_bounds = array<i64: 1, 64>}, {pipeline_mode = #tpu.pipeline_mode<synchronous>, transform_indices = @transform_8, window_bounds = array<i64: 32, 32>}, {pipeline_mode = #tpu.pipeline_mode<synchronous>, transform_indices = @transform_9, window_bounds = array<i64: 1, 32>}, {pipeline_mode = #tpu.pipeline_mode<synchronous>, transform_indices = @transform_10, window_bounds = array<i64: 3, 32>}, {pipeline_mode = #tpu.pipeline_mode<synchronous>, transform_indices = @transform_11, window_bounds = array<i64: 1, 32>}, {pipeline_mode = #tpu.pipeline_mode<synchronous>, transform_indices = @transform_12, window_bounds = array<i64: 32, 64>}, {pipeline_mode = #tpu.pipeline_mode<synchronous>, transform_indices = @transform_13, window_bounds = array<i64: 1, 64>}, {pipeline_mode = #tpu.pipeline_mode<synchronous>, transform_indices = @transform_14, window_bounds = array<i64: 32, 32>}, {pipeline_mode = #tpu.pipeline_mode<synchronous>, transform_indices = @transform_15, window_bounds = array<i64: 1, 32>}, {pipeline_mode = #tpu.pipeline_mode<synchronous>, transform_indices = @transform_16, window_bounds = array<i64: 32, 32>}, {pipeline_mode = #tpu.pipeline_mode<synchronous>, transform_indices = @transform_17, window_bounds = array<i64: 1, 32>}, {pipeline_mode = #tpu.pipeline_mode<synchronous>, transform_indices = @transform_18, window_bounds = array<i64: 32, 64>}, {pipeline_mode = #tpu.pipeline_mode<synchronous>, transform_indices = @transform_19, window_bounds = array<i64: 1, 64>}, {pipeline_mode = #tpu.pipeline_mode<synchronous>, transform_indices = @transform_20, window_bounds = array<i64: 32, 32>}, {pipeline_mode = #tpu.pipeline_mode<synchronous>, transform_indices = @transform_21, window_bounds = array<i64: 1, 32>}, {pipeline_mode = #tpu.pipeline_mode<synchronous>, transform_indices = @transform_22, window_bounds = array<i64: 32, 32>}, {pipeline_mode = #tpu.pipeline_mode<synchronous>, transform_indices = @transform_23, window_bounds = array<i64: 1, 32>}, {pipeline_mode = #tpu.pipeline_mode<synchronous>, transform_indices = @transform_24, window_bounds = array<i64: 32, 64>}, {pipeline_mode = #tpu.pipeline_mode<synchronous>, transform_indices = @transform_25, window_bounds = array<i64: 1, 64>}, {pipeline_mode = #tpu.pipeline_mode<synchronous>, transform_indices = @transform_26, window_bounds = array<i64: 32, 32>}, {pipeline_mode = #tpu.pipeline_mode<synchronous>, transform_indices = @transform_27, window_bounds = array<i64: 1, 32>}, {pipeline_mode = #tpu.pipeline_mode<synchronous>, transform_indices = @transform_28, window_bounds = array<i64: 32, 32>}, {pipeline_mode = #tpu.pipeline_mode<synchronous>, transform_indices = @transform_29, window_bounds = array<i64: 1, 32>}, {pipeline_mode = #tpu.pipeline_mode<synchronous>, transform_indices = @transform_30, window_bounds = array<i64: 32, 64>}, {pipeline_mode = #tpu.pipeline_mode<synchronous>, transform_indices = @transform_31, window_bounds = array<i64: 1, 64>}, {pipeline_mode = #tpu.pipeline_mode<synchronous>, transform_indices = @transform_32, window_bounds = array<i64: 32, 32>}, {pipeline_mode = #tpu.pipeline_mode<synchronous>, transform_indices = @transform_33, window_bounds = array<i64: 1, 32>}, {pipeline_mode = #tpu.pipeline_mode<synchronous>, transform_indices = @transform_34, window_bounds = array<i64: 32, 128>}, {pipeline_mode = #tpu.pipeline_mode<synchronous>, transform_indices = @transform_35, window_bounds = array<i64: 1, 128>}, {transform_indices = @transform_36, window_bounds = array<i64: 1, 1, 128>}]} {
    %c0 = arith.constant 0 : index
    %c0_0 = arith.constant 0 : index
    %c0_1 = arith.constant 0 : index
    %0 = vector.load %arg1[%c0, %c0_0, %c0_1] : memref<1x16x3xf32, #tpu.memory_space<vmem>>, vector<1x16x3xf32>
    %1 = vector.shape_cast %0 : vector<1x16x3xf32> to vector<16x3xf32>
    %c0_2 = arith.constant 0 : index
    %c0_3 = arith.constant 0 : index
    %c0_4 = arith.constant 0 : index
    %2 = vector.load %arg2[%c0_2, %c0_3, %c0_4] : memref<1x8x32xf32, #tpu.memory_space<vmem>>, vector<1x8x32xf32>
    %3 = vector.shape_cast %2 : vector<1x8x32xf32> to vector<8x32xf32>
    %c0_5 = arith.constant 0 : index
    %c0_6 = arith.constant 0 : index
    %4 = vector.load %arg5[%c0_5, %c0_6] : memref<32x32xf32, #tpu.memory_space<vmem>>, vector<32x32xf32>
    %c0_7 = arith.constant 0 : index
    %c0_8 = arith.constant 0 : index
    %5 = vector.load %arg6[%c0_7, %c0_8] : memref<1x32xf32, #tpu.memory_space<vmem>>, vector<1x32xf32>
    %c0_9 = arith.constant 0 : index
    %c0_10 = arith.constant 0 : index
    %6 = vector.load %arg7[%c0_9, %c0_10] : memref<3x64xf32, #tpu.memory_space<vmem>>, vector<3x64xf32>
    %c0_11 = arith.constant 0 : index
    %c0_12 = arith.constant 0 : index
    %7 = vector.load %arg8[%c0_11, %c0_12] : memref<1x64xf32, #tpu.memory_space<vmem>>, vector<1x64xf32>
    %c0_13 = arith.constant 0 : index
    %c0_14 = arith.constant 0 : index
    %8 = vector.load %arg9[%c0_13, %c0_14] : memref<32x32xf32, #tpu.memory_space<vmem>>, vector<32x32xf32>
    %c0_15 = arith.constant 0 : index
    %c0_16 = arith.constant 0 : index
    %9 = vector.load %arg10[%c0_15, %c0_16] : memref<1x32xf32, #tpu.memory_space<vmem>>, vector<1x32xf32>
    %cst = arith.constant dense<0.000000e+00> : vector<8x32xf32>
    %10 = tpu.matmul %3, %4, %cst {dimension_numbers = #tpu.dot_dimension_numbers<[1], [0], [0], [1], [0, 0, 1, 1], [], []>, precision = #tpu.contract_precision<fp32>} : vector<8x32xf32>, vector<32x32xf32>, vector<8x32xf32> -> vector<8x32xf32>
    %11 = vector.broadcast %5 : vector<1x32xf32> to vector<8x32xf32>
    %12 = arith.addf %10, %11 : vector<8x32xf32>
    %cst_17 = arith.constant dense<0.000000e+00> : vector<16x64xf32>
    %13 = tpu.matmul %1, %6, %cst_17 {dimension_numbers = #tpu.dot_dimension_numbers<[1], [0], [0], [1], [0, 0, 1, 1], [], []>, precision = #tpu.contract_precision<fp32>} : vector<16x3xf32>, vector<3x64xf32>, vector<16x64xf32> -> vector<16x64xf32>
    %14 = vector.broadcast %7 : vector<1x64xf32> to vector<16x64xf32>
    %15 = arith.addf %13, %14 : vector<16x64xf32>
    %16 = vector.extract_strided_slice %15 {offsets = [0, 0], sizes = [16, 32], strides = [1, 1]} : vector<16x64xf32> to vector<16x32xf32>
    %17 = vector.extract_strided_slice %15 {offsets = [0, 32], sizes = [16, 32], strides = [1, 1]} : vector<16x64xf32> to vector<16x32xf32>
    %18 = vector.extract_strided_slice %12 {offsets = [0, 0], sizes = [8, 8], strides = [1, 1]} : vector<8x32xf32> to vector<8x8xf32>
    %19 = vector.extract_strided_slice %12 {offsets = [0, 8], sizes = [8, 8], strides = [1, 1]} : vector<8x32xf32> to vector<8x8xf32>
    %20 = vector.extract_strided_slice %12 {offsets = [0, 16], sizes = [8, 8], strides = [1, 1]} : vector<8x32xf32> to vector<8x8xf32>
    %21 = vector.extract_strided_slice %12 {offsets = [0, 24], sizes = [8, 8], strides = [1, 1]} : vector<8x32xf32> to vector<8x8xf32>
    %22 = vector.shape_cast %18 : vector<8x8xf32> to vector<1x8x8xf32>
    %23 = vector.shape_cast %19 : vector<8x8xf32> to vector<1x8x8xf32>
    %24 = vector.shape_cast %20 : vector<8x8xf32> to vector<1x8x8xf32>
    %25 = vector.shape_cast %21 : vector<8x8xf32> to vector<1x8x8xf32>
    %26 = tpu.concatenate %22, %23, %24, %25 in 0 : vector<1x8x8xf32>, vector<1x8x8xf32>, vector<1x8x8xf32>, vector<1x8x8xf32> -> vector<4x8x8xf32>
    %27 = vector.extract_strided_slice %16 {offsets = [0, 0], sizes = [16, 8], strides = [1, 1]} : vector<16x32xf32> to vector<16x8xf32>
    %28 = vector.extract_strided_slice %16 {offsets = [0, 8], sizes = [16, 8], strides = [1, 1]} : vector<16x32xf32> to vector<16x8xf32>
    %29 = vector.extract_strided_slice %16 {offsets = [0, 16], sizes = [16, 8], strides = [1, 1]} : vector<16x32xf32> to vector<16x8xf32>
    %30 = vector.extract_strided_slice %16 {offsets = [0, 24], sizes = [16, 8], strides = [1, 1]} : vector<16x32xf32> to vector<16x8xf32>
    %31 = vector.shape_cast %27 : vector<16x8xf32> to vector<1x16x8xf32>
    %32 = vector.shape_cast %28 : vector<16x8xf32> to vector<1x16x8xf32>
    %33 = vector.shape_cast %29 : vector<16x8xf32> to vector<1x16x8xf32>
    %34 = vector.shape_cast %30 : vector<16x8xf32> to vector<1x16x8xf32>
    %35 = tpu.concatenate %31, %32, %33, %34 in 0 : vector<1x16x8xf32>, vector<1x16x8xf32>, vector<1x16x8xf32>, vector<1x16x8xf32> -> vector<4x16x8xf32>
    %36 = vector.extract_strided_slice %17 {offsets = [0, 0], sizes = [16, 8], strides = [1, 1]} : vector<16x32xf32> to vector<16x8xf32>
    %37 = vector.extract_strided_slice %17 {offsets = [0, 8], sizes = [16, 8], strides = [1, 1]} : vector<16x32xf32> to vector<16x8xf32>
    %38 = vector.extract_strided_slice %17 {offsets = [0, 16], sizes = [16, 8], strides = [1, 1]} : vector<16x32xf32> to vector<16x8xf32>
    %39 = vector.extract_strided_slice %17 {offsets = [0, 24], sizes = [16, 8], strides = [1, 1]} : vector<16x32xf32> to vector<16x8xf32>
    %40 = vector.shape_cast %36 : vector<16x8xf32> to vector<1x16x8xf32>
    %41 = vector.shape_cast %37 : vector<16x8xf32> to vector<1x16x8xf32>
    %42 = vector.shape_cast %38 : vector<16x8xf32> to vector<1x16x8xf32>
    %43 = vector.shape_cast %39 : vector<16x8xf32> to vector<1x16x8xf32>
    %44 = tpu.concatenate %40, %41, %42, %43 in 0 : vector<1x16x8xf32>, vector<1x16x8xf32>, vector<1x16x8xf32>, vector<1x16x8xf32> -> vector<4x16x8xf32>
    "tpu.trace_start"() <{level = 10 : i32, message = "hqd,hkd->hqk"}> : () -> ()
    %cst_18 = arith.constant dense<0.000000e+00> : vector<4x8x16xf32>
    %45 = tpu.matmul %26, %35, %cst_18 {dimension_numbers = #tpu.dot_dimension_numbers<[2], [2], [1], [1], [0, 0, 0, 1, 1, 1], [0], [0]>, precision = #tpu.contract_precision<fp32>} : vector<4x8x8xf32>, vector<4x16x8xf32>, vector<4x8x16xf32> -> vector<4x8x16xf32>
    "tpu.trace_stop"() : () -> ()
    %cst_19 = arith.constant 0.176776692 : f32
    %46 = vector.broadcast %cst_19 : f32 to vector<4x8x16xf32>
    %47 = arith.mulf %45, %46 : vector<4x8x16xf32>
    %cst_20 = arith.constant dense<0xFF800000> : vector<4x8xf32>
    %48 = vector.multi_reduction <maximumf>, %47, %cst_20 [2] : vector<4x8x16xf32> to vector<4x8xf32>
    %49 = vector.shape_cast %48 : vector<4x8xf32> to vector<4x8x1xf32>
    %50 = vector.broadcast %49 : vector<4x8x1xf32> to vector<4x8x16xf32>
    %51 = arith.subf %47, %50 : vector<4x8x16xf32>
    %52 = math.exp %51 : vector<4x8x16xf32>
    %cst_21 = arith.constant dense<0.000000e+00> : vector<4x8xf32>
    %53 = vector.multi_reduction <add>, %52, %cst_21 [2] : vector<4x8x16xf32> to vector<4x8xf32>
    %54 = vector.shape_cast %53 : vector<4x8xf32> to vector<4x8x1xf32>
    %55 = tpu.reciprocal %54 {approx = true} : vector<4x8x1xf32> -> vector<4x8x1xf32>
    %56 = vector.broadcast %55 : vector<4x8x1xf32> to vector<4x8x16xf32>
    %57 = arith.mulf %52, %56 : vector<4x8x16xf32>
    "tpu.trace_start"() <{level = 10 : i32, message = "hqk,hkd->hqd"}> : () -> ()
    %cst_22 = arith.constant dense<0.000000e+00> : vector<4x8x8xf32>
    %58 = tpu.matmul %57, %44, %cst_22 {dimension_numbers = #tpu.dot_dimension_numbers<[2], [1], [1], [2], [0, 0, 0, 1, 1, 2], [0], [0]>, precision = #tpu.contract_precision<fp32>} : vector<4x8x16xf32>, vector<4x16x8xf32>, vector<4x8x8xf32> -> vector<4x8x8xf32>
    "tpu.trace_stop"() : () -> ()
    %59 = arith.addf %26, %58 : vector<4x8x8xf32>
    %60 = vector.extract_strided_slice %59 {offsets = [0, 0, 0], sizes = [1, 8, 8], strides = [1, 1, 1]} : vector<4x8x8xf32> to vector<1x8x8xf32>
    %61 = vector.shape_cast %60 : vector<1x8x8xf32> to vector<8x8xf32>
    %62 = vector.extract_strided_slice %59 {offsets = [1, 0, 0], sizes = [1, 8, 8], strides = [1, 1, 1]} : vector<4x8x8xf32> to vector<1x8x8xf32>
    %63 = vector.shape_cast %62 : vector<1x8x8xf32> to vector<8x8xf32>
    %64 = vector.extract_strided_slice %59 {offsets = [2, 0, 0], sizes = [1, 8, 8], strides = [1, 1, 1]} : vector<4x8x8xf32> to vector<1x8x8xf32>
    %65 = vector.shape_cast %64 : vector<1x8x8xf32> to vector<8x8xf32>
    %66 = vector.extract_strided_slice %59 {offsets = [3, 0, 0], sizes = [1, 8, 8], strides = [1, 1, 1]} : vector<4x8x8xf32> to vector<1x8x8xf32>
    %67 = vector.shape_cast %66 : vector<1x8x8xf32> to vector<8x8xf32>
    %68 = tpu.concatenate %61, %63, %65, %67 in 1 : vector<8x8xf32>, vector<8x8xf32>, vector<8x8xf32>, vector<8x8xf32> -> vector<8x32xf32>
    %cst_23 = arith.constant dense<0.000000e+00> : vector<8x32xf32>
    %69 = tpu.matmul %68, %8, %cst_23 {dimension_numbers = #tpu.dot_dimension_numbers<[1], [0], [0], [1], [0, 0, 1, 1], [], []>, precision = #tpu.contract_precision<fp32>} : vector<8x32xf32>, vector<32x32xf32>, vector<8x32xf32> -> vector<8x32xf32>
    %70 = vector.broadcast %9 : vector<1x32xf32> to vector<8x32xf32>
    %71 = arith.addf %69, %70 : vector<8x32xf32>
    %cst_24 = arith.constant 0.000000e+00 : f32
    %72 = vector.broadcast %cst_24 : f32 to vector<8x32xf32>
    %73 = arith.maximumf %71, %72 : vector<8x32xf32>
    %74 = arith.addf %68, %73 : vector<8x32xf32>
    %c0_25 = arith.constant 0 : index
    %c0_26 = arith.constant 0 : index
    %75 = vector.load %arg11[%c0_25, %c0_26] : memref<3x32xf32, #tpu.memory_space<vmem>>, vector<3x32xf32>
    %c0_27 = arith.constant 0 : index
    %c0_28 = arith.constant 0 : index
    %76 = vector.load %arg12[%c0_27, %c0_28] : memref<1x32xf32, #tpu.memory_space<vmem>>, vector<1x32xf32>
    %c0_29 = arith.constant 0 : index
    %c0_30 = arith.constant 0 : index
    %77 = vector.load %arg13[%c0_29, %c0_30] : memref<32x64xf32, #tpu.memory_space<vmem>>, vector<32x64xf32>
    %c0_31 = arith.constant 0 : index
    %c0_32 = arith.constant 0 : index
    %78 = vector.load %arg14[%c0_31, %c0_32] : memref<1x64xf32, #tpu.memory_space<vmem>>, vector<1x64xf32>
    %c0_33 = arith.constant 0 : index
    %c0_34 = arith.constant 0 : index
    %79 = vector.load %arg15[%c0_33, %c0_34] : memref<32x32xf32, #tpu.memory_space<vmem>>, vector<32x32xf32>
    %c0_35 = arith.constant 0 : index
    %c0_36 = arith.constant 0 : index
    %80 = vector.load %arg16[%c0_35, %c0_36] : memref<1x32xf32, #tpu.memory_space<vmem>>, vector<1x32xf32>
    %cst_37 = arith.constant dense<0.000000e+00> : vector<16x32xf32>
    %81 = tpu.matmul %1, %75, %cst_37 {dimension_numbers = #tpu.dot_dimension_numbers<[1], [0], [0], [1], [0, 0, 1, 1], [], []>, precision = #tpu.contract_precision<fp32>} : vector<16x3xf32>, vector<3x32xf32>, vector<16x32xf32> -> vector<16x32xf32>
    %82 = vector.broadcast %76 : vector<1x32xf32> to vector<16x32xf32>
    %83 = arith.addf %81, %82 : vector<16x32xf32>
    %cst_38 = arith.constant dense<0.000000e+00> : vector<8x64xf32>
    %84 = tpu.matmul %74, %77, %cst_38 {dimension_numbers = #tpu.dot_dimension_numbers<[1], [0], [0], [1], [0, 0, 1, 1], [], []>, precision = #tpu.contract_precision<fp32>} : vector<8x32xf32>, vector<32x64xf32>, vector<8x64xf32> -> vector<8x64xf32>
    %85 = vector.broadcast %78 : vector<1x64xf32> to vector<8x64xf32>
    %86 = arith.addf %84, %85 : vector<8x64xf32>
    %87 = vector.extract_strided_slice %86 {offsets = [0, 0], sizes = [8, 32], strides = [1, 1]} : vector<8x64xf32> to vector<8x32xf32>
    %88 = vector.extract_strided_slice %86 {offsets = [0, 32], sizes = [8, 32], strides = [1, 1]} : vector<8x64xf32> to vector<8x32xf32>
    %89 = vector.extract_strided_slice %83 {offsets = [0, 0], sizes = [16, 8], strides = [1, 1]} : vector<16x32xf32> to vector<16x8xf32>
    %90 = vector.extract_strided_slice %83 {offsets = [0, 8], sizes = [16, 8], strides = [1, 1]} : vector<16x32xf32> to vector<16x8xf32>
    %91 = vector.extract_strided_slice %83 {offsets = [0, 16], sizes = [16, 8], strides = [1, 1]} : vector<16x32xf32> to vector<16x8xf32>
    %92 = vector.extract_strided_slice %83 {offsets = [0, 24], sizes = [16, 8], strides = [1, 1]} : vector<16x32xf32> to vector<16x8xf32>
    %93 = vector.shape_cast %89 : vector<16x8xf32> to vector<1x16x8xf32>
    %94 = vector.shape_cast %90 : vector<16x8xf32> to vector<1x16x8xf32>
    %95 = vector.shape_cast %91 : vector<16x8xf32> to vector<1x16x8xf32>
    %96 = vector.shape_cast %92 : vector<16x8xf32> to vector<1x16x8xf32>
    %97 = tpu.concatenate %93, %94, %95, %96 in 0 : vector<1x16x8xf32>, vector<1x16x8xf32>, vector<1x16x8xf32>, vector<1x16x8xf32> -> vector<4x16x8xf32>
    %98 = vector.extract_strided_slice %87 {offsets = [0, 0], sizes = [8, 8], strides = [1, 1]} : vector<8x32xf32> to vector<8x8xf32>
    %99 = vector.extract_strided_slice %87 {offsets = [0, 8], sizes = [8, 8], strides = [1, 1]} : vector<8x32xf32> to vector<8x8xf32>
    %100 = vector.extract_strided_slice %87 {offsets = [0, 16], sizes = [8, 8], strides = [1, 1]} : vector<8x32xf32> to vector<8x8xf32>
    %101 = vector.extract_strided_slice %87 {offsets = [0, 24], sizes = [8, 8], strides = [1, 1]} : vector<8x32xf32> to vector<8x8xf32>
    %102 = vector.shape_cast %98 : vector<8x8xf32> to vector<1x8x8xf32>
    %103 = vector.shape_cast %99 : vector<8x8xf32> to vector<1x8x8xf32>
    %104 = vector.shape_cast %100 : vector<8x8xf32> to vector<1x8x8xf32>
    %105 = vector.shape_cast %101 : vector<8x8xf32> to vector<1x8x8xf32>
    %106 = tpu.concatenate %102, %103, %104, %105 in 0 : vector<1x8x8xf32>, vector<1x8x8xf32>, vector<1x8x8xf32>, vector<1x8x8xf32> -> vector<4x8x8xf32>
    %107 = vector.extract_strided_slice %88 {offsets = [0, 0], sizes = [8, 8], strides = [1, 1]} : vector<8x32xf32> to vector<8x8xf32>
    %108 = vector.extract_strided_slice %88 {offsets = [0, 8], sizes = [8, 8], strides = [1, 1]} : vector<8x32xf32> to vector<8x8xf32>
    %109 = vector.extract_strided_slice %88 {offsets = [0, 16], sizes = [8, 8], strides = [1, 1]} : vector<8x32xf32> to vector<8x8xf32>
    %110 = vector.extract_strided_slice %88 {offsets = [0, 24], sizes = [8, 8], strides = [1, 1]} : vector<8x32xf32> to vector<8x8xf32>
    %111 = vector.shape_cast %107 : vector<8x8xf32> to vector<1x8x8xf32>
    %112 = vector.shape_cast %108 : vector<8x8xf32> to vector<1x8x8xf32>
    %113 = vector.shape_cast %109 : vector<8x8xf32> to vector<1x8x8xf32>
    %114 = vector.shape_cast %110 : vector<8x8xf32> to vector<1x8x8xf32>
    %115 = tpu.concatenate %111, %112, %113, %114 in 0 : vector<1x8x8xf32>, vector<1x8x8xf32>, vector<1x8x8xf32>, vector<1x8x8xf32> -> vector<4x8x8xf32>
    "tpu.trace_start"() <{level = 10 : i32, message = "hqd,hkd->hqk"}> : () -> ()
    %cst_39 = arith.constant dense<0.000000e+00> : vector<4x16x8xf32>
    %116 = tpu.matmul %97, %106, %cst_39 {dimension_numbers = #tpu.dot_dimension_numbers<[2], [2], [1], [1], [0, 0, 0, 1, 1, 1], [0], [0]>, precision = #tpu.contract_precision<fp32>} : vector<4x16x8xf32>, vector<4x8x8xf32>, vector<4x16x8xf32> -> vector<4x16x8xf32>
    "tpu.trace_stop"() : () -> ()
    %cst_40 = arith.constant 0.176776692 : f32
    %117 = vector.broadcast %cst_40 : f32 to vector<4x16x8xf32>
    %118 = arith.mulf %116, %117 : vector<4x16x8xf32>
    %cst_41 = arith.constant dense<0xFF800000> : vector<4x16xf32>
    %119 = vector.multi_reduction <maximumf>, %118, %cst_41 [2] : vector<4x16x8xf32> to vector<4x16xf32>
    %120 = vector.shape_cast %119 : vector<4x16xf32> to vector<4x16x1xf32>
    %121 = vector.broadcast %120 : vector<4x16x1xf32> to vector<4x16x8xf32>
    %122 = arith.subf %118, %121 : vector<4x16x8xf32>
    %123 = math.exp %122 : vector<4x16x8xf32>
    %cst_42 = arith.constant dense<0.000000e+00> : vector<4x16xf32>
    %124 = vector.multi_reduction <add>, %123, %cst_42 [2] : vector<4x16x8xf32> to vector<4x16xf32>
    %125 = vector.shape_cast %124 : vector<4x16xf32> to vector<4x16x1xf32>
    %126 = tpu.reciprocal %125 {approx = true} : vector<4x16x1xf32> -> vector<4x16x1xf32>
    %127 = vector.broadcast %126 : vector<4x16x1xf32> to vector<4x16x8xf32>
    %128 = arith.mulf %123, %127 : vector<4x16x8xf32>
    "tpu.trace_start"() <{level = 10 : i32, message = "hqk,hkd->hqd"}> : () -> ()
    %cst_43 = arith.constant dense<0.000000e+00> : vector<4x16x8xf32>
    %129 = tpu.matmul %128, %115, %cst_43 {dimension_numbers = #tpu.dot_dimension_numbers<[2], [1], [1], [2], [0, 0, 0, 1, 1, 2], [0], [0]>, precision = #tpu.contract_precision<fp32>} : vector<4x16x8xf32>, vector<4x8x8xf32>, vector<4x16x8xf32> -> vector<4x16x8xf32>
    "tpu.trace_stop"() : () -> ()
    %130 = arith.addf %97, %129 : vector<4x16x8xf32>
    %131 = vector.extract_strided_slice %130 {offsets = [0, 0, 0], sizes = [1, 16, 8], strides = [1, 1, 1]} : vector<4x16x8xf32> to vector<1x16x8xf32>
    %132 = vector.shape_cast %131 : vector<1x16x8xf32> to vector<16x8xf32>
    %133 = vector.extract_strided_slice %130 {offsets = [1, 0, 0], sizes = [1, 16, 8], strides = [1, 1, 1]} : vector<4x16x8xf32> to vector<1x16x8xf32>
    %134 = vector.shape_cast %133 : vector<1x16x8xf32> to vector<16x8xf32>
    %135 = vector.extract_strided_slice %130 {offsets = [2, 0, 0], sizes = [1, 16, 8], strides = [1, 1, 1]} : vector<4x16x8xf32> to vector<1x16x8xf32>
    %136 = vector.shape_cast %135 : vector<1x16x8xf32> to vector<16x8xf32>
    %137 = vector.extract_strided_slice %130 {offsets = [3, 0, 0], sizes = [1, 16, 8], strides = [1, 1, 1]} : vector<4x16x8xf32> to vector<1x16x8xf32>
    %138 = vector.shape_cast %137 : vector<1x16x8xf32> to vector<16x8xf32>
    %139 = tpu.concatenate %132, %134, %136, %138 in 1 : vector<16x8xf32>, vector<16x8xf32>, vector<16x8xf32>, vector<16x8xf32> -> vector<16x32xf32>
    %cst_44 = arith.constant dense<0.000000e+00> : vector<16x32xf32>
    %140 = tpu.matmul %139, %79, %cst_44 {dimension_numbers = #tpu.dot_dimension_numbers<[1], [0], [0], [1], [0, 0, 1, 1], [], []>, precision = #tpu.contract_precision<fp32>} : vector<16x32xf32>, vector<32x32xf32>, vector<16x32xf32> -> vector<16x32xf32>
    %141 = vector.broadcast %80 : vector<1x32xf32> to vector<16x32xf32>
    %142 = arith.addf %140, %141 : vector<16x32xf32>
    %cst_45 = arith.constant 0.000000e+00 : f32
    %143 = vector.broadcast %cst_45 : f32 to vector<16x32xf32>
    %144 = arith.maximumf %142, %143 : vector<16x32xf32>
    %145 = arith.addf %139, %144 : vector<16x32xf32>
    %c0_46 = arith.constant 0 : index
    %c0_47 = arith.constant 0 : index
    %c0_48 = arith.constant 0 : index
    %146 = vector.load %arg3[%c0_46, %c0_47, %c0_48] : memref<1x8x32xf32, #tpu.memory_space<vmem>>, vector<1x8x32xf32>
    %147 = vector.shape_cast %146 : vector<1x8x32xf32> to vector<8x32xf32>
    %c0_49 = arith.constant 0 : index
    %c0_50 = arith.constant 0 : index
    %148 = vector.load %arg17[%c0_49, %c0_50] : memref<32x32xf32, #tpu.memory_space<vmem>>, vector<32x32xf32>
    %c0_51 = arith.constant 0 : index
    %c0_52 = arith.constant 0 : index
    %149 = vector.load %arg18[%c0_51, %c0_52] : memref<1x32xf32, #tpu.memory_space<vmem>>, vector<1x32xf32>
    %c0_53 = arith.constant 0 : index
    %c0_54 = arith.constant 0 : index
    %150 = vector.load %arg19[%c0_53, %c0_54] : memref<32x64xf32, #tpu.memory_space<vmem>>, vector<32x64xf32>
    %c0_55 = arith.constant 0 : index
    %c0_56 = arith.constant 0 : index
    %151 = vector.load %arg20[%c0_55, %c0_56] : memref<1x64xf32, #tpu.memory_space<vmem>>, vector<1x64xf32>
    %c0_57 = arith.constant 0 : index
    %c0_58 = arith.constant 0 : index
    %152 = vector.load %arg21[%c0_57, %c0_58] : memref<32x32xf32, #tpu.memory_space<vmem>>, vector<32x32xf32>
    %c0_59 = arith.constant 0 : index
    %c0_60 = arith.constant 0 : index
    %153 = vector.load %arg22[%c0_59, %c0_60] : memref<1x32xf32, #tpu.memory_space<vmem>>, vector<1x32xf32>
    %cst_61 = arith.constant dense<0.000000e+00> : vector<8x32xf32>
    %154 = tpu.matmul %147, %148, %cst_61 {dimension_numbers = #tpu.dot_dimension_numbers<[1], [0], [0], [1], [0, 0, 1, 1], [], []>, precision = #tpu.contract_precision<fp32>} : vector<8x32xf32>, vector<32x32xf32>, vector<8x32xf32> -> vector<8x32xf32>
    %155 = vector.broadcast %149 : vector<1x32xf32> to vector<8x32xf32>
    %156 = arith.addf %154, %155 : vector<8x32xf32>
    %cst_62 = arith.constant dense<0.000000e+00> : vector<16x64xf32>
    %157 = tpu.matmul %145, %150, %cst_62 {dimension_numbers = #tpu.dot_dimension_numbers<[1], [0], [0], [1], [0, 0, 1, 1], [], []>, precision = #tpu.contract_precision<fp32>} : vector<16x32xf32>, vector<32x64xf32>, vector<16x64xf32> -> vector<16x64xf32>
    %158 = vector.broadcast %151 : vector<1x64xf32> to vector<16x64xf32>
    %159 = arith.addf %157, %158 : vector<16x64xf32>
    %160 = vector.extract_strided_slice %159 {offsets = [0, 0], sizes = [16, 32], strides = [1, 1]} : vector<16x64xf32> to vector<16x32xf32>
    %161 = vector.extract_strided_slice %159 {offsets = [0, 32], sizes = [16, 32], strides = [1, 1]} : vector<16x64xf32> to vector<16x32xf32>
    %162 = vector.extract_strided_slice %156 {offsets = [0, 0], sizes = [8, 8], strides = [1, 1]} : vector<8x32xf32> to vector<8x8xf32>
    %163 = vector.extract_strided_slice %156 {offsets = [0, 8], sizes = [8, 8], strides = [1, 1]} : vector<8x32xf32> to vector<8x8xf32>
    %164 = vector.extract_strided_slice %156 {offsets = [0, 16], sizes = [8, 8], strides = [1, 1]} : vector<8x32xf32> to vector<8x8xf32>
    %165 = vector.extract_strided_slice %156 {offsets = [0, 24], sizes = [8, 8], strides = [1, 1]} : vector<8x32xf32> to vector<8x8xf32>
    %166 = vector.shape_cast %162 : vector<8x8xf32> to vector<1x8x8xf32>
    %167 = vector.shape_cast %163 : vector<8x8xf32> to vector<1x8x8xf32>
    %168 = vector.shape_cast %164 : vector<8x8xf32> to vector<1x8x8xf32>
    %169 = vector.shape_cast %165 : vector<8x8xf32> to vector<1x8x8xf32>
    %170 = tpu.concatenate %166, %167, %168, %169 in 0 : vector<1x8x8xf32>, vector<1x8x8xf32>, vector<1x8x8xf32>, vector<1x8x8xf32> -> vector<4x8x8xf32>
    %171 = vector.extract_strided_slice %160 {offsets = [0, 0], sizes = [16, 8], strides = [1, 1]} : vector<16x32xf32> to vector<16x8xf32>
    %172 = vector.extract_strided_slice %160 {offsets = [0, 8], sizes = [16, 8], strides = [1, 1]} : vector<16x32xf32> to vector<16x8xf32>
    %173 = vector.extract_strided_slice %160 {offsets = [0, 16], sizes = [16, 8], strides = [1, 1]} : vector<16x32xf32> to vector<16x8xf32>
    %174 = vector.extract_strided_slice %160 {offsets = [0, 24], sizes = [16, 8], strides = [1, 1]} : vector<16x32xf32> to vector<16x8xf32>
    %175 = vector.shape_cast %171 : vector<16x8xf32> to vector<1x16x8xf32>
    %176 = vector.shape_cast %172 : vector<16x8xf32> to vector<1x16x8xf32>
    %177 = vector.shape_cast %173 : vector<16x8xf32> to vector<1x16x8xf32>
    %178 = vector.shape_cast %174 : vector<16x8xf32> to vector<1x16x8xf32>
    %179 = tpu.concatenate %175, %176, %177, %178 in 0 : vector<1x16x8xf32>, vector<1x16x8xf32>, vector<1x16x8xf32>, vector<1x16x8xf32> -> vector<4x16x8xf32>
    %180 = vector.extract_strided_slice %161 {offsets = [0, 0], sizes = [16, 8], strides = [1, 1]} : vector<16x32xf32> to vector<16x8xf32>
    %181 = vector.extract_strided_slice %161 {offsets = [0, 8], sizes = [16, 8], strides = [1, 1]} : vector<16x32xf32> to vector<16x8xf32>
    %182 = vector.extract_strided_slice %161 {offsets = [0, 16], sizes = [16, 8], strides = [1, 1]} : vector<16x32xf32> to vector<16x8xf32>
    %183 = vector.extract_strided_slice %161 {offsets = [0, 24], sizes = [16, 8], strides = [1, 1]} : vector<16x32xf32> to vector<16x8xf32>
    %184 = vector.shape_cast %180 : vector<16x8xf32> to vector<1x16x8xf32>
    %185 = vector.shape_cast %181 : vector<16x8xf32> to vector<1x16x8xf32>
    %186 = vector.shape_cast %182 : vector<16x8xf32> to vector<1x16x8xf32>
    %187 = vector.shape_cast %183 : vector<16x8xf32> to vector<1x16x8xf32>
    %188 = tpu.concatenate %184, %185, %186, %187 in 0 : vector<1x16x8xf32>, vector<1x16x8xf32>, vector<1x16x8xf32>, vector<1x16x8xf32> -> vector<4x16x8xf32>
    "tpu.trace_start"() <{level = 10 : i32, message = "hqd,hkd->hqk"}> : () -> ()
    %cst_63 = arith.constant dense<0.000000e+00> : vector<4x8x16xf32>
    %189 = tpu.matmul %170, %179, %cst_63 {dimension_numbers = #tpu.dot_dimension_numbers<[2], [2], [1], [1], [0, 0, 0, 1, 1, 1], [0], [0]>, precision = #tpu.contract_precision<fp32>} : vector<4x8x8xf32>, vector<4x16x8xf32>, vector<4x8x16xf32> -> vector<4x8x16xf32>
    "tpu.trace_stop"() : () -> ()
    %cst_64 = arith.constant 0.176776692 : f32
    %190 = vector.broadcast %cst_64 : f32 to vector<4x8x16xf32>
    %191 = arith.mulf %189, %190 : vector<4x8x16xf32>
    %cst_65 = arith.constant dense<0xFF800000> : vector<4x8xf32>
    %192 = vector.multi_reduction <maximumf>, %191, %cst_65 [2] : vector<4x8x16xf32> to vector<4x8xf32>
    %193 = vector.shape_cast %192 : vector<4x8xf32> to vector<4x8x1xf32>
    %194 = vector.broadcast %193 : vector<4x8x1xf32> to vector<4x8x16xf32>
    %195 = arith.subf %191, %194 : vector<4x8x16xf32>
    %196 = math.exp %195 : vector<4x8x16xf32>
    %cst_66 = arith.constant dense<0.000000e+00> : vector<4x8xf32>
    %197 = vector.multi_reduction <add>, %196, %cst_66 [2] : vector<4x8x16xf32> to vector<4x8xf32>
    %198 = vector.shape_cast %197 : vector<4x8xf32> to vector<4x8x1xf32>
    %199 = tpu.reciprocal %198 {approx = true} : vector<4x8x1xf32> -> vector<4x8x1xf32>
    %200 = vector.broadcast %199 : vector<4x8x1xf32> to vector<4x8x16xf32>
    %201 = arith.mulf %196, %200 : vector<4x8x16xf32>
    "tpu.trace_start"() <{level = 10 : i32, message = "hqk,hkd->hqd"}> : () -> ()
    %cst_67 = arith.constant dense<0.000000e+00> : vector<4x8x8xf32>
    %202 = tpu.matmul %201, %188, %cst_67 {dimension_numbers = #tpu.dot_dimension_numbers<[2], [1], [1], [2], [0, 0, 0, 1, 1, 2], [0], [0]>, precision = #tpu.contract_precision<fp32>} : vector<4x8x16xf32>, vector<4x16x8xf32>, vector<4x8x8xf32> -> vector<4x8x8xf32>
    "tpu.trace_stop"() : () -> ()
    %203 = arith.addf %170, %202 : vector<4x8x8xf32>
    %204 = vector.extract_strided_slice %203 {offsets = [0, 0, 0], sizes = [1, 8, 8], strides = [1, 1, 1]} : vector<4x8x8xf32> to vector<1x8x8xf32>
    %205 = vector.shape_cast %204 : vector<1x8x8xf32> to vector<8x8xf32>
    %206 = vector.extract_strided_slice %203 {offsets = [1, 0, 0], sizes = [1, 8, 8], strides = [1, 1, 1]} : vector<4x8x8xf32> to vector<1x8x8xf32>
    %207 = vector.shape_cast %206 : vector<1x8x8xf32> to vector<8x8xf32>
    %208 = vector.extract_strided_slice %203 {offsets = [2, 0, 0], sizes = [1, 8, 8], strides = [1, 1, 1]} : vector<4x8x8xf32> to vector<1x8x8xf32>
    %209 = vector.shape_cast %208 : vector<1x8x8xf32> to vector<8x8xf32>
    %210 = vector.extract_strided_slice %203 {offsets = [3, 0, 0], sizes = [1, 8, 8], strides = [1, 1, 1]} : vector<4x8x8xf32> to vector<1x8x8xf32>
    %211 = vector.shape_cast %210 : vector<1x8x8xf32> to vector<8x8xf32>
    %212 = tpu.concatenate %205, %207, %209, %211 in 1 : vector<8x8xf32>, vector<8x8xf32>, vector<8x8xf32>, vector<8x8xf32> -> vector<8x32xf32>
    %cst_68 = arith.constant dense<0.000000e+00> : vector<8x32xf32>
    %213 = tpu.matmul %212, %152, %cst_68 {dimension_numbers = #tpu.dot_dimension_numbers<[1], [0], [0], [1], [0, 0, 1, 1], [], []>, precision = #tpu.contract_precision<fp32>} : vector<8x32xf32>, vector<32x32xf32>, vector<8x32xf32> -> vector<8x32xf32>
    %214 = vector.broadcast %153 : vector<1x32xf32> to vector<8x32xf32>
    %215 = arith.addf %213, %214 : vector<8x32xf32>
    %cst_69 = arith.constant 0.000000e+00 : f32
    %216 = vector.broadcast %cst_69 : f32 to vector<8x32xf32>
    %217 = arith.maximumf %215, %216 : vector<8x32xf32>
    %218 = arith.addf %212, %217 : vector<8x32xf32>
    %c0_70 = arith.constant 0 : index
    %c0_71 = arith.constant 0 : index
    %219 = vector.load %arg23[%c0_70, %c0_71] : memref<32x32xf32, #tpu.memory_space<vmem>>, vector<32x32xf32>
    %c0_72 = arith.constant 0 : index
    %c0_73 = arith.constant 0 : index
    %220 = vector.load %arg24[%c0_72, %c0_73] : memref<1x32xf32, #tpu.memory_space<vmem>>, vector<1x32xf32>
    %c0_74 = arith.constant 0 : index
    %c0_75 = arith.constant 0 : index
    %221 = vector.load %arg25[%c0_74, %c0_75] : memref<32x64xf32, #tpu.memory_space<vmem>>, vector<32x64xf32>
    %c0_76 = arith.constant 0 : index
    %c0_77 = arith.constant 0 : index
    %222 = vector.load %arg26[%c0_76, %c0_77] : memref<1x64xf32, #tpu.memory_space<vmem>>, vector<1x64xf32>
    %c0_78 = arith.constant 0 : index
    %c0_79 = arith.constant 0 : index
    %223 = vector.load %arg27[%c0_78, %c0_79] : memref<32x32xf32, #tpu.memory_space<vmem>>, vector<32x32xf32>
    %c0_80 = arith.constant 0 : index
    %c0_81 = arith.constant 0 : index
    %224 = vector.load %arg28[%c0_80, %c0_81] : memref<1x32xf32, #tpu.memory_space<vmem>>, vector<1x32xf32>
    %cst_82 = arith.constant dense<0.000000e+00> : vector<16x32xf32>
    %225 = tpu.matmul %145, %219, %cst_82 {dimension_numbers = #tpu.dot_dimension_numbers<[1], [0], [0], [1], [0, 0, 1, 1], [], []>, precision = #tpu.contract_precision<fp32>} : vector<16x32xf32>, vector<32x32xf32>, vector<16x32xf32> -> vector<16x32xf32>
    %226 = vector.broadcast %220 : vector<1x32xf32> to vector<16x32xf32>
    %227 = arith.addf %225, %226 : vector<16x32xf32>
    %cst_83 = arith.constant dense<0.000000e+00> : vector<8x64xf32>
    %228 = tpu.matmul %218, %221, %cst_83 {dimension_numbers = #tpu.dot_dimension_numbers<[1], [0], [0], [1], [0, 0, 1, 1], [], []>, precision = #tpu.contract_precision<fp32>} : vector<8x32xf32>, vector<32x64xf32>, vector<8x64xf32> -> vector<8x64xf32>
    %229 = vector.broadcast %222 : vector<1x64xf32> to vector<8x64xf32>
    %230 = arith.addf %228, %229 : vector<8x64xf32>
    %231 = vector.extract_strided_slice %230 {offsets = [0, 0], sizes = [8, 32], strides = [1, 1]} : vector<8x64xf32> to vector<8x32xf32>
    %232 = vector.extract_strided_slice %230 {offsets = [0, 32], sizes = [8, 32], strides = [1, 1]} : vector<8x64xf32> to vector<8x32xf32>
    %233 = vector.extract_strided_slice %227 {offsets = [0, 0], sizes = [16, 8], strides = [1, 1]} : vector<16x32xf32> to vector<16x8xf32>
    %234 = vector.extract_strided_slice %227 {offsets = [0, 8], sizes = [16, 8], strides = [1, 1]} : vector<16x32xf32> to vector<16x8xf32>
    %235 = vector.extract_strided_slice %227 {offsets = [0, 16], sizes = [16, 8], strides = [1, 1]} : vector<16x32xf32> to vector<16x8xf32>
    %236 = vector.extract_strided_slice %227 {offsets = [0, 24], sizes = [16, 8], strides = [1, 1]} : vector<16x32xf32> to vector<16x8xf32>
    %237 = vector.shape_cast %233 : vector<16x8xf32> to vector<1x16x8xf32>
    %238 = vector.shape_cast %234 : vector<16x8xf32> to vector<1x16x8xf32>
    %239 = vector.shape_cast %235 : vector<16x8xf32> to vector<1x16x8xf32>
    %240 = vector.shape_cast %236 : vector<16x8xf32> to vector<1x16x8xf32>
    %241 = tpu.concatenate %237, %238, %239, %240 in 0 : vector<1x16x8xf32>, vector<1x16x8xf32>, vector<1x16x8xf32>, vector<1x16x8xf32> -> vector<4x16x8xf32>
    %242 = vector.extract_strided_slice %231 {offsets = [0, 0], sizes = [8, 8], strides = [1, 1]} : vector<8x32xf32> to vector<8x8xf32>
    %243 = vector.extract_strided_slice %231 {offsets = [0, 8], sizes = [8, 8], strides = [1, 1]} : vector<8x32xf32> to vector<8x8xf32>
    %244 = vector.extract_strided_slice %231 {offsets = [0, 16], sizes = [8, 8], strides = [1, 1]} : vector<8x32xf32> to vector<8x8xf32>
    %245 = vector.extract_strided_slice %231 {offsets = [0, 24], sizes = [8, 8], strides = [1, 1]} : vector<8x32xf32> to vector<8x8xf32>
    %246 = vector.shape_cast %242 : vector<8x8xf32> to vector<1x8x8xf32>
    %247 = vector.shape_cast %243 : vector<8x8xf32> to vector<1x8x8xf32>
    %248 = vector.shape_cast %244 : vector<8x8xf32> to vector<1x8x8xf32>
    %249 = vector.shape_cast %245 : vector<8x8xf32> to vector<1x8x8xf32>
    %250 = tpu.concatenate %246, %247, %248, %249 in 0 : vector<1x8x8xf32>, vector<1x8x8xf32>, vector<1x8x8xf32>, vector<1x8x8xf32> -> vector<4x8x8xf32>
    %251 = vector.extract_strided_slice %232 {offsets = [0, 0], sizes = [8, 8], strides = [1, 1]} : vector<8x32xf32> to vector<8x8xf32>
    %252 = vector.extract_strided_slice %232 {offsets = [0, 8], sizes = [8, 8], strides = [1, 1]} : vector<8x32xf32> to vector<8x8xf32>
    %253 = vector.extract_strided_slice %232 {offsets = [0, 16], sizes = [8, 8], strides = [1, 1]} : vector<8x32xf32> to vector<8x8xf32>
    %254 = vector.extract_strided_slice %232 {offsets = [0, 24], sizes = [8, 8], strides = [1, 1]} : vector<8x32xf32> to vector<8x8xf32>
    %255 = vector.shape_cast %251 : vector<8x8xf32> to vector<1x8x8xf32>
    %256 = vector.shape_cast %252 : vector<8x8xf32> to vector<1x8x8xf32>
    %257 = vector.shape_cast %253 : vector<8x8xf32> to vector<1x8x8xf32>
    %258 = vector.shape_cast %254 : vector<8x8xf32> to vector<1x8x8xf32>
    %259 = tpu.concatenate %255, %256, %257, %258 in 0 : vector<1x8x8xf32>, vector<1x8x8xf32>, vector<1x8x8xf32>, vector<1x8x8xf32> -> vector<4x8x8xf32>
    "tpu.trace_start"() <{level = 10 : i32, message = "hqd,hkd->hqk"}> : () -> ()
    %cst_84 = arith.constant dense<0.000000e+00> : vector<4x16x8xf32>
    %260 = tpu.matmul %241, %250, %cst_84 {dimension_numbers = #tpu.dot_dimension_numbers<[2], [2], [1], [1], [0, 0, 0, 1, 1, 1], [0], [0]>, precision = #tpu.contract_precision<fp32>} : vector<4x16x8xf32>, vector<4x8x8xf32>, vector<4x16x8xf32> -> vector<4x16x8xf32>
    "tpu.trace_stop"() : () -> ()
    %cst_85 = arith.constant 0.176776692 : f32
    %261 = vector.broadcast %cst_85 : f32 to vector<4x16x8xf32>
    %262 = arith.mulf %260, %261 : vector<4x16x8xf32>
    %cst_86 = arith.constant dense<0xFF800000> : vector<4x16xf32>
    %263 = vector.multi_reduction <maximumf>, %262, %cst_86 [2] : vector<4x16x8xf32> to vector<4x16xf32>
    %264 = vector.shape_cast %263 : vector<4x16xf32> to vector<4x16x1xf32>
    %265 = vector.broadcast %264 : vector<4x16x1xf32> to vector<4x16x8xf32>
    %266 = arith.subf %262, %265 : vector<4x16x8xf32>
    %267 = math.exp %266 : vector<4x16x8xf32>
    %cst_87 = arith.constant dense<0.000000e+00> : vector<4x16xf32>
    %268 = vector.multi_reduction <add>, %267, %cst_87 [2] : vector<4x16x8xf32> to vector<4x16xf32>
    %269 = vector.shape_cast %268 : vector<4x16xf32> to vector<4x16x1xf32>
    %270 = tpu.reciprocal %269 {approx = true} : vector<4x16x1xf32> -> vector<4x16x1xf32>
    %271 = vector.broadcast %270 : vector<4x16x1xf32> to vector<4x16x8xf32>
    %272 = arith.mulf %267, %271 : vector<4x16x8xf32>
    "tpu.trace_start"() <{level = 10 : i32, message = "hqk,hkd->hqd"}> : () -> ()
    %cst_88 = arith.constant dense<0.000000e+00> : vector<4x16x8xf32>
    %273 = tpu.matmul %272, %259, %cst_88 {dimension_numbers = #tpu.dot_dimension_numbers<[2], [1], [1], [2], [0, 0, 0, 1, 1, 2], [0], [0]>, precision = #tpu.contract_precision<fp32>} : vector<4x16x8xf32>, vector<4x8x8xf32>, vector<4x16x8xf32> -> vector<4x16x8xf32>
    "tpu.trace_stop"() : () -> ()
    %274 = arith.addf %241, %273 : vector<4x16x8xf32>
    %275 = vector.extract_strided_slice %274 {offsets = [0, 0, 0], sizes = [1, 16, 8], strides = [1, 1, 1]} : vector<4x16x8xf32> to vector<1x16x8xf32>
    %276 = vector.shape_cast %275 : vector<1x16x8xf32> to vector<16x8xf32>
    %277 = vector.extract_strided_slice %274 {offsets = [1, 0, 0], sizes = [1, 16, 8], strides = [1, 1, 1]} : vector<4x16x8xf32> to vector<1x16x8xf32>
    %278 = vector.shape_cast %277 : vector<1x16x8xf32> to vector<16x8xf32>
    %279 = vector.extract_strided_slice %274 {offsets = [2, 0, 0], sizes = [1, 16, 8], strides = [1, 1, 1]} : vector<4x16x8xf32> to vector<1x16x8xf32>
    %280 = vector.shape_cast %279 : vector<1x16x8xf32> to vector<16x8xf32>
    %281 = vector.extract_strided_slice %274 {offsets = [3, 0, 0], sizes = [1, 16, 8], strides = [1, 1, 1]} : vector<4x16x8xf32> to vector<1x16x8xf32>
    %282 = vector.shape_cast %281 : vector<1x16x8xf32> to vector<16x8xf32>
    %283 = tpu.concatenate %276, %278, %280, %282 in 1 : vector<16x8xf32>, vector<16x8xf32>, vector<16x8xf32>, vector<16x8xf32> -> vector<16x32xf32>
    %cst_89 = arith.constant dense<0.000000e+00> : vector<16x32xf32>
    %284 = tpu.matmul %283, %223, %cst_89 {dimension_numbers = #tpu.dot_dimension_numbers<[1], [0], [0], [1], [0, 0, 1, 1], [], []>, precision = #tpu.contract_precision<fp32>} : vector<16x32xf32>, vector<32x32xf32>, vector<16x32xf32> -> vector<16x32xf32>
    %285 = vector.broadcast %224 : vector<1x32xf32> to vector<16x32xf32>
    %286 = arith.addf %284, %285 : vector<16x32xf32>
    %cst_90 = arith.constant 0.000000e+00 : f32
    %287 = vector.broadcast %cst_90 : f32 to vector<16x32xf32>
    %288 = arith.maximumf %286, %287 : vector<16x32xf32>
    %289 = arith.addf %283, %288 : vector<16x32xf32>
    %c0_91 = arith.constant 0 : index
    %c0_92 = arith.constant 0 : index
    %c0_93 = arith.constant 0 : index
    %290 = vector.load %arg4[%c0_91, %c0_92, %c0_93] : memref<1x1x32xf32, #tpu.memory_space<vmem>>, vector<1x1x32xf32>
    %291 = vector.shape_cast %290 : vector<1x1x32xf32> to vector<1x32xf32>
    %c0_94 = arith.constant 0 : index
    %c0_95 = arith.constant 0 : index
    %292 = vector.load %arg29[%c0_94, %c0_95] : memref<32x32xf32, #tpu.memory_space<vmem>>, vector<32x32xf32>
    %c0_96 = arith.constant 0 : index
    %c0_97 = arith.constant 0 : index
    %293 = vector.load %arg30[%c0_96, %c0_97] : memref<1x32xf32, #tpu.memory_space<vmem>>, vector<1x32xf32>
    %c0_98 = arith.constant 0 : index
    %c0_99 = arith.constant 0 : index
    %294 = vector.load %arg31[%c0_98, %c0_99] : memref<32x64xf32, #tpu.memory_space<vmem>>, vector<32x64xf32>
    %c0_100 = arith.constant 0 : index
    %c0_101 = arith.constant 0 : index
    %295 = vector.load %arg32[%c0_100, %c0_101] : memref<1x64xf32, #tpu.memory_space<vmem>>, vector<1x64xf32>
    %c0_102 = arith.constant 0 : index
    %c0_103 = arith.constant 0 : index
    %296 = vector.load %arg33[%c0_102, %c0_103] : memref<32x32xf32, #tpu.memory_space<vmem>>, vector<32x32xf32>
    %c0_104 = arith.constant 0 : index
    %c0_105 = arith.constant 0 : index
    %297 = vector.load %arg34[%c0_104, %c0_105] : memref<1x32xf32, #tpu.memory_space<vmem>>, vector<1x32xf32>
    %cst_106 = arith.constant dense<0.000000e+00> : vector<1x32xf32>
    %298 = tpu.matmul %291, %292, %cst_106 {dimension_numbers = #tpu.dot_dimension_numbers<[1], [0], [0], [1], [0, 0, 1, 1], [], []>, precision = #tpu.contract_precision<fp32>} : vector<1x32xf32>, vector<32x32xf32>, vector<1x32xf32> -> vector<1x32xf32>
    %299 = arith.addf %298, %293 : vector<1x32xf32>
    %cst_107 = arith.constant dense<0.000000e+00> : vector<16x64xf32>
    %300 = tpu.matmul %289, %294, %cst_107 {dimension_numbers = #tpu.dot_dimension_numbers<[1], [0], [0], [1], [0, 0, 1, 1], [], []>, precision = #tpu.contract_precision<fp32>} : vector<16x32xf32>, vector<32x64xf32>, vector<16x64xf32> -> vector<16x64xf32>
    %301 = vector.broadcast %295 : vector<1x64xf32> to vector<16x64xf32>
    %302 = arith.addf %300, %301 : vector<16x64xf32>
    %303 = vector.extract_strided_slice %302 {offsets = [0, 0], sizes = [16, 32], strides = [1, 1]} : vector<16x64xf32> to vector<16x32xf32>
    %304 = vector.extract_strided_slice %302 {offsets = [0, 32], sizes = [16, 32], strides = [1, 1]} : vector<16x64xf32> to vector<16x32xf32>
    %305 = vector.extract_strided_slice %299 {offsets = [0, 0], sizes = [1, 8], strides = [1, 1]} : vector<1x32xf32> to vector<1x8xf32>
    %306 = vector.extract_strided_slice %299 {offsets = [0, 8], sizes = [1, 8], strides = [1, 1]} : vector<1x32xf32> to vector<1x8xf32>
    %307 = vector.extract_strided_slice %299 {offsets = [0, 16], sizes = [1, 8], strides = [1, 1]} : vector<1x32xf32> to vector<1x8xf32>
    %308 = vector.extract_strided_slice %299 {offsets = [0, 24], sizes = [1, 8], strides = [1, 1]} : vector<1x32xf32> to vector<1x8xf32>
    %309 = vector.shape_cast %305 : vector<1x8xf32> to vector<1x1x8xf32>
    %310 = vector.shape_cast %306 : vector<1x8xf32> to vector<1x1x8xf32>
    %311 = vector.shape_cast %307 : vector<1x8xf32> to vector<1x1x8xf32>
    %312 = vector.shape_cast %308 : vector<1x8xf32> to vector<1x1x8xf32>
    %313 = tpu.concatenate %309, %310, %311, %312 in 0 : vector<1x1x8xf32>, vector<1x1x8xf32>, vector<1x1x8xf32>, vector<1x1x8xf32> -> vector<4x1x8xf32>
    %314 = vector.extract_strided_slice %303 {offsets = [0, 0], sizes = [16, 8], strides = [1, 1]} : vector<16x32xf32> to vector<16x8xf32>
    %315 = vector.extract_strided_slice %303 {offsets = [0, 8], sizes = [16, 8], strides = [1, 1]} : vector<16x32xf32> to vector<16x8xf32>
    %316 = vector.extract_strided_slice %303 {offsets = [0, 16], sizes = [16, 8], strides = [1, 1]} : vector<16x32xf32> to vector<16x8xf32>
    %317 = vector.extract_strided_slice %303 {offsets = [0, 24], sizes = [16, 8], strides = [1, 1]} : vector<16x32xf32> to vector<16x8xf32>
    %318 = vector.shape_cast %314 : vector<16x8xf32> to vector<1x16x8xf32>
    %319 = vector.shape_cast %315 : vector<16x8xf32> to vector<1x16x8xf32>
    %320 = vector.shape_cast %316 : vector<16x8xf32> to vector<1x16x8xf32>
    %321 = vector.shape_cast %317 : vector<16x8xf32> to vector<1x16x8xf32>
    %322 = tpu.concatenate %318, %319, %320, %321 in 0 : vector<1x16x8xf32>, vector<1x16x8xf32>, vector<1x16x8xf32>, vector<1x16x8xf32> -> vector<4x16x8xf32>
    %323 = vector.extract_strided_slice %304 {offsets = [0, 0], sizes = [16, 8], strides = [1, 1]} : vector<16x32xf32> to vector<16x8xf32>
    %324 = vector.extract_strided_slice %304 {offsets = [0, 8], sizes = [16, 8], strides = [1, 1]} : vector<16x32xf32> to vector<16x8xf32>
    %325 = vector.extract_strided_slice %304 {offsets = [0, 16], sizes = [16, 8], strides = [1, 1]} : vector<16x32xf32> to vector<16x8xf32>
    %326 = vector.extract_strided_slice %304 {offsets = [0, 24], sizes = [16, 8], strides = [1, 1]} : vector<16x32xf32> to vector<16x8xf32>
    %327 = vector.shape_cast %323 : vector<16x8xf32> to vector<1x16x8xf32>
    %328 = vector.shape_cast %324 : vector<16x8xf32> to vector<1x16x8xf32>
    %329 = vector.shape_cast %325 : vector<16x8xf32> to vector<1x16x8xf32>
    %330 = vector.shape_cast %326 : vector<16x8xf32> to vector<1x16x8xf32>
    %331 = tpu.concatenate %327, %328, %329, %330 in 0 : vector<1x16x8xf32>, vector<1x16x8xf32>, vector<1x16x8xf32>, vector<1x16x8xf32> -> vector<4x16x8xf32>
    "tpu.trace_start"() <{level = 10 : i32, message = "hqd,hkd->hqk"}> : () -> ()
    %cst_108 = arith.constant dense<0.000000e+00> : vector<4x1x16xf32>
    %332 = tpu.matmul %313, %322, %cst_108 {dimension_numbers = #tpu.dot_dimension_numbers<[2], [2], [1], [1], [0, 0, 0, 1, 1, 1], [0], [0]>, precision = #tpu.contract_precision<fp32>} : vector<4x1x8xf32>, vector<4x16x8xf32>, vector<4x1x16xf32> -> vector<4x1x16xf32>
    "tpu.trace_stop"() : () -> ()
    %cst_109 = arith.constant 0.176776692 : f32
    %333 = vector.broadcast %cst_109 : f32 to vector<4x1x16xf32>
    %334 = arith.mulf %332, %333 : vector<4x1x16xf32>
    %cst_110 = arith.constant dense<0xFF800000> : vector<4x1xf32>
    %335 = vector.multi_reduction <maximumf>, %334, %cst_110 [2] : vector<4x1x16xf32> to vector<4x1xf32>
    %336 = vector.shape_cast %335 : vector<4x1xf32> to vector<4x1x1xf32>
    %337 = vector.broadcast %336 : vector<4x1x1xf32> to vector<4x1x16xf32>
    %338 = arith.subf %334, %337 : vector<4x1x16xf32>
    %339 = math.exp %338 : vector<4x1x16xf32>
    %cst_111 = arith.constant dense<0.000000e+00> : vector<4x1xf32>
    %340 = vector.multi_reduction <add>, %339, %cst_111 [2] : vector<4x1x16xf32> to vector<4x1xf32>
    %341 = vector.shape_cast %340 : vector<4x1xf32> to vector<4x1x1xf32>
    %342 = tpu.reciprocal %341 {approx = true} : vector<4x1x1xf32> -> vector<4x1x1xf32>
    %343 = vector.broadcast %342 : vector<4x1x1xf32> to vector<4x1x16xf32>
    %344 = arith.mulf %339, %343 : vector<4x1x16xf32>
    "tpu.trace_start"() <{level = 10 : i32, message = "hqk,hkd->hqd"}> : () -> ()
    %cst_112 = arith.constant dense<0.000000e+00> : vector<4x1x8xf32>
    %345 = tpu.matmul %344, %331, %cst_112 {dimension_numbers = #tpu.dot_dimension_numbers<[2], [1], [1], [2], [0, 0, 0, 1, 1, 2], [0], [0]>, precision = #tpu.contract_precision<fp32>} : vector<4x1x16xf32>, vector<4x16x8xf32>, vector<4x1x8xf32> -> vector<4x1x8xf32>
    "tpu.trace_stop"() : () -> ()
    %346 = arith.addf %313, %345 : vector<4x1x8xf32>
    %347 = vector.extract_strided_slice %346 {offsets = [0, 0, 0], sizes = [1, 1, 8], strides = [1, 1, 1]} : vector<4x1x8xf32> to vector<1x1x8xf32>
    %348 = vector.shape_cast %347 : vector<1x1x8xf32> to vector<1x8xf32>
    %349 = vector.extract_strided_slice %346 {offsets = [1, 0, 0], sizes = [1, 1, 8], strides = [1, 1, 1]} : vector<4x1x8xf32> to vector<1x1x8xf32>
    %350 = vector.shape_cast %349 : vector<1x1x8xf32> to vector<1x8xf32>
    %351 = vector.extract_strided_slice %346 {offsets = [2, 0, 0], sizes = [1, 1, 8], strides = [1, 1, 1]} : vector<4x1x8xf32> to vector<1x1x8xf32>
    %352 = vector.shape_cast %351 : vector<1x1x8xf32> to vector<1x8xf32>
    %353 = vector.extract_strided_slice %346 {offsets = [3, 0, 0], sizes = [1, 1, 8], strides = [1, 1, 1]} : vector<4x1x8xf32> to vector<1x1x8xf32>
    %354 = vector.shape_cast %353 : vector<1x1x8xf32> to vector<1x8xf32>
    %355 = tpu.concatenate %348, %350, %352, %354 in 1 : vector<1x8xf32>, vector<1x8xf32>, vector<1x8xf32>, vector<1x8xf32> -> vector<1x32xf32>
    %cst_113 = arith.constant dense<0.000000e+00> : vector<1x32xf32>
    %356 = tpu.matmul %355, %296, %cst_113 {dimension_numbers = #tpu.dot_dimension_numbers<[1], [0], [0], [1], [0, 0, 1, 1], [], []>, precision = #tpu.contract_precision<fp32>} : vector<1x32xf32>, vector<32x32xf32>, vector<1x32xf32> -> vector<1x32xf32>
    %357 = arith.addf %356, %297 : vector<1x32xf32>
    %cst_114 = arith.constant 0.000000e+00 : f32
    %358 = vector.broadcast %cst_114 : f32 to vector<1x32xf32>
    %359 = arith.maximumf %357, %358 : vector<1x32xf32>
    %360 = arith.addf %355, %359 : vector<1x32xf32>
    %c0_115 = arith.constant 0 : index
    %c0_116 = arith.constant 0 : index
    %361 = vector.load %arg35[%c0_115, %c0_116] : memref<32x128xf32, #tpu.memory_space<vmem>>, vector<32x128xf32>
    %cst_117 = arith.constant dense<0.000000e+00> : vector<1x128xf32>
    %362 = tpu.matmul %360, %361, %cst_117 {dimension_numbers = #tpu.dot_dimension_numbers<[1], [0], [0], [1], [0, 0, 1, 1], [], []>, precision = #tpu.contract_precision<fp32>} : vector<1x32xf32>, vector<32x128xf32>, vector<1x128xf32> -> vector<1x128xf32>
    %c0_118 = arith.constant 0 : index
    %c0_119 = arith.constant 0 : index
    %363 = vector.load %arg36[%c0_118, %c0_119] : memref<1x128xf32, #tpu.memory_space<vmem>>, vector<1x128xf32>
    %364 = arith.addf %362, %363 : vector<1x128xf32>
    %c0_120 = arith.constant 0 : index
    %c0_121 = arith.constant 0 : index
    %c0_122 = arith.constant 0 : index
    %365 = vector.load %arg37[%c0_120, %c0_121, %c0_122] : memref<1x1x128xf32, #tpu.memory_space<vmem>>, vector<1x1x128xf32>
    %366 = vector.shape_cast %365 : vector<1x1x128xf32> to vector<1x128xf32>
    %367 = vector.shape_cast %364 : vector<1x128xf32> to vector<1x1x128xf32>
    tpu.vector_store %arg37[%c0_120, %c0_121, %c0_122], %367 {strides = array<i32>} : memref<1x1x128xf32, #tpu.memory_space<vmem>>, vector<1x1x128xf32>,
    return
  }
  func.func @transform_0(%arg0: i32) -> (i32, i32, i32) {
    %c0_i32 = arith.constant 0 : i32
    %c0_i32_0 = arith.constant 0 : i32
    %c0_i32_1 = arith.constant 0 : i32
    return %arg0, %c0_i32, %c0_i32_0 : i32, i32, i32
  }
  func.func @transform_1(%arg0: i32) -> (i32, i32, i32) {
    %c0_i32 = arith.constant 0 : i32
    %c0_i32_0 = arith.constant 0 : i32
    %c0_i32_1 = arith.constant 0 : i32
    %c0_i32_2 = arith.constant 0 : i32
    return %c0_i32, %c0_i32_0, %c0_i32_1 : i32, i32, i32
  }
  func.func @transform_2(%arg0: i32) -> (i32, i32, i32) {
    %c0_i32 = arith.constant 0 : i32
    %c0_i32_0 = arith.constant 0 : i32
    %c0_i32_1 = arith.constant 0 : i32
    %c0_i32_2 = arith.constant 0 : i32
    return %c0_i32, %c0_i32_0, %c0_i32_1 : i32, i32, i32
  }
  func.func @transform_3(%arg0: i32) -> (i32, i32, i32) {
    %c0_i32 = arith.constant 0 : i32
    %c0_i32_0 = arith.constant 0 : i32
    %c0_i32_1 = arith.constant 0 : i32
    %c0_i32_2 = arith.constant 0 : i32
    return %c0_i32, %c0_i32_0, %c0_i32_1 : i32, i32, i32
  }
  func.func @transform_4(%arg0: i32) -> (i32, i32) {
    %c0_i32 = arith.constant 0 : i32
    %c0_i32_0 = arith.constant 0 : i32
    %c0_i32_1 = arith.constant 0 : i32
    return %c0_i32, %c0_i32_0 : i32, i32
  }
  func.func @transform_5(%arg0: i32) -> (i32, i32) {
    %c0_i32 = arith.constant 0 : i32
    %c0_i32_0 = arith.constant 0 : i32
    %c0_i32_1 = arith.constant 0 : i32
    return %c0_i32, %c0_i32_0 : i32, i32
  }
  func.func @transform_6(%arg0: i32) -> (i32, i32) {
    %c0_i32 = arith.constant 0 : i32
    %c0_i32_0 = arith.constant 0 : i32
    %c0_i32_1 = arith.constant 0 : i32
    return %c0_i32, %c0_i32_0 : i32, i32
  }
  func.func @transform_7(%arg0: i32) -> (i32, i32) {
    %c0_i32 = arith.constant 0 : i32
    %c0_i32_0 = arith.constant 0 : i32
    %c0_i32_1 = arith.constant 0 : i32
    return %c0_i32, %c0_i32_0 : i32, i32
  }
  func.func @transform_8(%arg0: i32) -> (i32, i32) {
    %c0_i32 = arith.constant 0 : i32
    %c0_i32_0 = arith.constant 0 : i32
    %c0_i32_1 = arith.constant 0 : i32
    return %c0_i32, %c0_i32_0 : i32, i32
  }
  func.func @transform_9(%arg0: i32) -> (i32, i32) {
    %c0_i32 = arith.constant 0 : i32
    %c0_i32_0 = arith.constant 0 : i32
    %c0_i32_1 = arith.constant 0 : i32
    return %c0_i32, %c0_i32_0 : i32, i32
  }
  func.func @transform_10(%arg0: i32) -> (i32, i32) {
    %c0_i32 = arith.constant 0 : i32
    %c0_i32_0 = arith.constant 0 : i32
    %c0_i32_1 = arith.constant 0 : i32
    return %c0_i32, %c0_i32_0 : i32, i32
  }
  func.func @transform_11(%arg0: i32) -> (i32, i32) {
    %c0_i32 = arith.constant 0 : i32
    %c0_i32_0 = arith.constant 0 : i32
    %c0_i32_1 = arith.constant 0 : i32
    return %c0_i32, %c0_i32_0 : i32, i32
  }
  func.func @transform_12(%arg0: i32) -> (i32, i32) {
    %c0_i32 = arith.constant 0 : i32
    %c0_i32_0 = arith.constant 0 : i32
    %c0_i32_1 = arith.constant 0 : i32
    return %c0_i32, %c0_i32_0 : i32, i32
  }
  func.func @transform_13(%arg0: i32) -> (i32, i32) {
    %c0_i32 = arith.constant 0 : i32
    %c0_i32_0 = arith.constant 0 : i32
    %c0_i32_1 = arith.constant 0 : i32
    return %c0_i32, %c0_i32_0 : i32, i32
  }
  func.func @transform_14(%arg0: i32) -> (i32, i32) {
    %c0_i32 = arith.constant 0 : i32
    %c0_i32_0 = arith.constant 0 : i32
    %c0_i32_1 = arith.constant 0 : i32
    return %c0_i32, %c0_i32_0 : i32, i32
  }
  func.func @transform_15(%arg0: i32) -> (i32, i32) {
    %c0_i32 = arith.constant 0 : i32
    %c0_i32_0 = arith.constant 0 : i32
    %c0_i32_1 = arith.constant 0 : i32
    return %c0_i32, %c0_i32_0 : i32, i32
  }
  func.func @transform_16(%arg0: i32) -> (i32, i32) {
    %c0_i32 = arith.constant 0 : i32
    %c0_i32_0 = arith.constant 0 : i32
    %c0_i32_1 = arith.constant 0 : i32
    return %c0_i32, %c0_i32_0 : i32, i32
  }
  func.func @transform_17(%arg0: i32) -> (i32, i32) {
    %c0_i32 = arith.constant 0 : i32
    %c0_i32_0 = arith.constant 0 : i32
    %c0_i32_1 = arith.constant 0 : i32
    return %c0_i32, %c0_i32_0 : i32, i32
  }
  func.func @transform_18(%arg0: i32) -> (i32, i32) {
    %c0_i32 = arith.constant 0 : i32
    %c0_i32_0 = arith.constant 0 : i32
    %c0_i32_1 = arith.constant 0 : i32
    return %c0_i32, %c0_i32_0 : i32, i32
  }
  func.func @transform_19(%arg0: i32) -> (i32, i32) {
    %c0_i32 = arith.constant 0 : i32
    %c0_i32_0 = arith.constant 0 : i32
    %c0_i32_1 = arith.constant 0 : i32
    return %c0_i32, %c0_i32_0 : i32, i32
  }
  func.func @transform_20(%arg0: i32) -> (i32, i32) {
    %c0_i32 = arith.constant 0 : i32
    %c0_i32_0 = arith.constant 0 : i32
    %c0_i32_1 = arith.constant 0 : i32
    return %c0_i32, %c0_i32_0 : i32, i32
  }
  func.func @transform_21(%arg0: i32) -> (i32, i32) {
    %c0_i32 = arith.constant 0 : i32
    %c0_i32_0 = arith.constant 0 : i32
    %c0_i32_1 = arith.constant 0 : i32
    return %c0_i32, %c0_i32_0 : i32, i32
  }
  func.func @transform_22(%arg0: i32) -> (i32, i32) {
    %c0_i32 = arith.constant 0 : i32
    %c0_i32_0 = arith.constant 0 : i32
    %c0_i32_1 = arith.constant 0 : i32
    return %c0_i32, %c0_i32_0 : i32, i32
  }
  func.func @transform_23(%arg0: i32) -> (i32, i32) {
    %c0_i32 = arith.constant 0 : i32
    %c0_i32_0 = arith.constant 0 : i32
    %c0_i32_1 = arith.constant 0 : i32
    return %c0_i32, %c0_i32_0 : i32, i32
  }
  func.func @transform_24(%arg0: i32) -> (i32, i32) {
    %c0_i32 = arith.constant 0 : i32
    %c0_i32_0 = arith.constant 0 : i32
    %c0_i32_1 = arith.constant 0 : i32
    return %c0_i32, %c0_i32_0 : i32, i32
  }
  func.func @transform_25(%arg0: i32) -> (i32, i32) {
    %c0_i32 = arith.constant 0 : i32
    %c0_i32_0 = arith.constant 0 : i32
    %c0_i32_1 = arith.constant 0 : i32
    return %c0_i32, %c0_i32_0 : i32, i32
  }
  func.func @transform_26(%arg0: i32) -> (i32, i32) {
    %c0_i32 = arith.constant 0 : i32
    %c0_i32_0 = arith.constant 0 : i32
    %c0_i32_1 = arith.constant 0 : i32
    return %c0_i32, %c0_i32_0 : i32, i32
  }
  func.func @transform_27(%arg0: i32) -> (i32, i32) {
    %c0_i32 = arith.constant 0 : i32
    %c0_i32_0 = arith.constant 0 : i32
    %c0_i32_1 = arith.constant 0 : i32
    return %c0_i32, %c0_i32_0 : i32, i32
  }
  func.func @transform_28(%arg0: i32) -> (i32, i32) {
    %c0_i32 = arith.constant 0 : i32
    %c0_i32_0 = arith.constant 0 : i32
    %c0_i32_1 = arith.constant 0 : i32
    return %c0_i32, %c0_i32_0 : i32, i32
  }
  func.func @transform_29(%arg0: i32) -> (i32, i32) {
    %c0_i32 = arith.constant 0 : i32
    %c0_i32_0 = arith.constant 0 : i32
    %c0_i32_1 = arith.constant 0 : i32
    return %c0_i32, %c0_i32_0 : i32, i32
  }
  func.func @transform_30(%arg0: i32) -> (i32, i32) {
    %c0_i32 = arith.constant 0 : i32
    %c0_i32_0 = arith.constant 0 : i32
    %c0_i32_1 = arith.constant 0 : i32
    return %c0_i32, %c0_i32_0 : i32, i32
  }
  func.func @transform_31(%arg0: i32) -> (i32, i32) {
    %c0_i32 = arith.constant 0 : i32
    %c0_i32_0 = arith.constant 0 : i32
    %c0_i32_1 = arith.constant 0 : i32
    return %c0_i32, %c0_i32_0 : i32, i32
  }
  func.func @transform_32(%arg0: i32) -> (i32, i32) {
    %c0_i32 = arith.constant 0 : i32
    %c0_i32_0 = arith.constant 0 : i32
    %c0_i32_1 = arith.constant 0 : i32
    return %c0_i32, %c0_i32_0 : i32, i32
  }
  func.func @transform_33(%arg0: i32) -> (i32, i32) {
    %c0_i32 = arith.constant 0 : i32
    %c0_i32_0 = arith.constant 0 : i32
    %c0_i32_1 = arith.constant 0 : i32
    return %c0_i32, %c0_i32_0 : i32, i32
  }
  func.func @transform_34(%arg0: i32) -> (i32, i32) {
    %c0_i32 = arith.constant 0 : i32
    %c0_i32_0 = arith.constant 0 : i32
    %c0_i32_1 = arith.constant 0 : i32
    return %c0_i32, %c0_i32_0 : i32, i32
  }
  func.func @transform_35(%arg0: i32) -> (i32, i32) {
    %c0_i32 = arith.constant 0 : i32
    %c0_i32_0 = arith.constant 0 : i32
    %c0_i32_1 = arith.constant 0 : i32
    return %c0_i32, %c0_i32_0 : i32, i32
  }
  func.func @transform_36(%arg0: i32) -> (i32, i32, i32) {
    %c0_i32 = arith.constant 0 : i32
    %c0_i32_0 = arith.constant 0 : i32
    %c0_i32_1 = arith.constant 0 : i32
    return %arg0, %c0_i32, %c0_i32_0 : i32, i32, i32
  }
}

</mosaic_0001>

<bundles_post_ra>
// kernel: tpu_custom_call.1
= control target key start
LH: loop header
LB: loop body
LE: loop exit
PB: predicated region body
PF: predicated region fallthrough
CT: control target
= control target key end

     0   :  { %s35012_s6 = smov 1   ;;  %s35013_s10 = smov 2   ;;  %s38853_s0 = inlined_call_operand.smem [shape: u32[37], index: -1, kind: input, shape index: {}] }
   0x1   :  { %s35098_s5 = sld [smem:[%s38853_s0]]   ;;  %s35014_s14 = smov 3  }
   0x2   :  { %s35103_s9 = sld [smem:[%s38853_s0 + %s35012_s6]]   ;;  %s35015_s18 = smov 4  }
   0x3   :  { %s35108_s13 = sld [smem:[%s38853_s0 + %s35013_s10]]   ;;  %s35016_s22 = smov 5  }
   0x4   :  { %s35113_s17 = sld [smem:[%s38853_s0 + %s35014_s14]]   ;;  %s35017_s26 = smov 6  }
   0x5   :  { %s35118_s21 = sld [smem:[%s38853_s0 + %s35015_s18]]   ;;  %s35018_s30 = smov 7  }
   0x6   :  { %s35123_s25 = sld [smem:[%s38853_s0 + %s35016_s22]]   ;;  %s35019_s4 = smov 8  }
   0x7   :  { %38869 = sst [smem:[#allocation67_spill]] %s35098_s5  ;;  %s35020_s10 = smov 9  }
   0x8   :  { %38870 = sst [smem:[#allocation68_spill]] %s35103_s9  ;;  %s35021_s15 = smov 10  }
   0x9   :  { %38871 = sst [smem:[#allocation69_spill]] %s35108_s13  ;;  %s35022_s20 = smov 11  }
   0xa   :  { %38872 = sst [smem:[#allocation70_spill]] %s35113_s17  ;;  %s35024_s1 = smov 13  }
   0xb   :  { %38873 = sst [smem:[#allocation71_spill]] %s35118_s21  ;;  %s35025_s7 = smov 14  }
   0xc   :  { %38874 = sst [smem:[#allocation72_spill]] %s35123_s25  ;;  %s35027_s22 = smov 16  }
   0xd   :  { %s35128_s29 = sld [smem:[%s38853_s0 + %s35017_s26]]   ;;  %s35023_s26 = smov 12  }
   0xe   :  { %s35133_s3 = sld [smem:[%s38853_s0 + %s35018_s30]]   ;;  %s35028_s28 = smov 17  }
   0xf   :  { %s35138_s8 = sld [smem:[%s38853_s0 + %s35019_s4]]  }
  0x10   :  { %s35143_s14 = sld [smem:[%s38853_s0 + %s35020_s10]]  }
  0x11   :  { %s35148_s19 = sld [smem:[%s38853_s0 + %s35021_s15]]   ;;  %s35026_s15 = smov 15  }
  0x12   :  { %s35153_s24 = sld [smem:[%s38853_s0 + %s35022_s20]]  }
  0x13   :  { %38875 = sst [smem:[#allocation73_spill]] %s35128_s29 }
  0x14   :  { %38876 = sst [smem:[#allocation74_spill]] %s35133_s3 }
  0x15   :  { %38877 = sst [smem:[#allocation75_spill]] %s35138_s8 }
  0x16   :  { %s35158_s30 = sld [smem:[%s38853_s0 + %s35023_s26]]  }
  0x17   :  { %38878 = sst [smem:[#allocation76_spill]] %s35148_s19 }
  0x18   :  { %s35163_s6 = sld [smem:[%s38853_s0 + %s35024_s1]]  }
  0x19   :  { %s35168_s12 = sld [smem:[%s38853_s0 + %s35025_s7]]   ;;  %s35029_s7 = smov 18  }
  0x1a   :  { %s35173_s20 = sld [smem:[%s38853_s0 + %s35026_s15]]   ;;  %s35030_s15 = smov 19  }
  0x1b   :  { %s35178_s27 = sld [smem:[%s38853_s0 + %s35027_s22]]   ;;  %s35031_s22 = smov 20  }
  0x1c   :  { %38879 = sst [smem:[#allocation77_spill]] %s35158_s30 }
  0x1d   :  { %s35183_s4 = sld [smem:[%s38853_s0 + %s35028_s28]]   ;;  %s35032_s28 = smov 21  }
  0x1e   :  { %38880 = sst [smem:[#allocation78_spill]] %s35163_s6 }
  0x1f   :  { %38881 = sst [smem:[#allocation79_spill]] %s35168_s12 }
  0x20   :  { %s35188_s5 = sld [smem:[%s38853_s0 + %s35029_s7]]   ;;  %s35033_s7 = smov 22  }
  0x21   :  { %38882 = sst [smem:[#allocation80_spill]] %s35178_s27 }
  0x22   :  { %s35193_s21 = sld [smem:[%s38853_s0 + %s35030_s15]]   ;;  %s35034_s15 = smov 23  }
  0x23   :  { %38883 = sst [smem:[#allocation81_spill]] %s35183_s4 }
  0x24   :  { %s35198_s27 = sld [smem:[%s38853_s0 + %s35031_s22]]   ;;  %s35035_s22 = smov 24  }
  0x25   :  { %s35203_s4 = sld [smem:[%s38853_s0 + %s35032_s28]]   ;;  %s35036_s28 = smov 25  }
  0x26   :  { %38884 = sst [smem:[#allocation82_spill]] %s35188_s5 }
  0x27   :  { %s35208_s12 = sld [smem:[%s38853_s0 + %s35033_s7]]   ;;  %s35037_s7 = smov 26  }
  0x28   :  { %38885 = sst [smem:[#allocation83_spill]] %s35193_s21 }
  0x29   :  { %s35213_s21 = sld [smem:[%s38853_s0 + %s35034_s15]]   ;;  %s35038_s15 = smov 27  }
  0x2a   :  { %s35218_s30 = sld [smem:[%s38853_s0 + %s35035_s22]]   ;;  %s35039_s22 = smov 28  }
  0x2b   :  { %38886 = sst [smem:[#allocation84_spill]] %s35203_s4 }
  0x2c   :  { %s35223_s4 = sld [smem:[%s38853_s0 + %s35036_s28]]   ;;  %s35040_s28 = smov 29  }
  0x2d   :  { %s35228_s19 = sld [smem:[%s38853_s0 + %s35037_s7]]   ;;  %s35041_s7 = smov 30  }
  0x2e   :  { %s35238_s8 = sld [smem:[%s38853_s0 + %s35039_s22]]   ;;  %s35043_s22 = smov 32  }
  0x2f   :  { %38887 = sst [smem:[#allocation85_spill]] %s35213_s21 }
  0x30   :  { %s35233_s21 = sld [smem:[%s38853_s0 + %s35038_s15]]   ;;  %s35042_s15 = smov 31  }
  0x31   :  { %s35248_s29 = sld [smem:[%s38853_s0 + %s35041_s7]]   ;;  %s35045_s7 = smov 34  }
  0x32   :  { %38888 = sst [smem:[#allocation86_spill]] %s35223_s4 }
  0x33   :  { %s35243_s4 = sld [smem:[%s38853_s0 + %s35040_s28]]   ;;  %s35044_s28 = smov 33  }
  0x34   :  { %38890 = sst [smem:[#allocation88_spill]] %s35238_s8 }
  0x35   :  { %s35258_s17 = sld [smem:[%s38853_s0 + %s35043_s22]]   ;;  %s35047_s22 = smov 36  }
  0x36   :  { %38889 = sst [smem:[#allocation87_spill]] %s35233_s21 }
  0x37   :  { %s35253_s21 = sld [smem:[%s38853_s0 + %s35042_s15]]   ;;  %s35046_s15 = smov 35  }
  0x38   :  { %s35268_s9 = sld [smem:[%s38853_s0 + %s35045_s7]]  }
  0x39   :  { %38891 = sst [smem:[#allocation89_spill]] %s35243_s4 }
  0x3a   :  { %s35263_s4 = sld [smem:[%s38853_s0 + %s35044_s28]]  }
  0x3b   :  { %38893 = sst [smem:[#allocation91_spill]] %s35258_s17 }
  0x3c   :  { %s35278_s17 = sld [smem:[%s38853_s0 + %s35047_s22]]  }
  0x3d   :  { %38892 = sst [smem:[#allocation90_spill]] %s35253_s21 }
  0x3e   :  { %s35273_s21 = sld [smem:[%s38853_s0 + %s35046_s15]]  }
  0x3f   :  { %78 = vsyncpa [#allocation3], 0 }
  0x40   :  { %79 = vsyncpa [#allocation6], 0 }
  0x41   :  { %80 = vsyncpa [#allocation9], 0 }
  0x42   :  { %81 = vsyncpa [#allocation12], 0 }
  0x43   :  { %82 = vsyncpa [#allocation15], 0 }
  0x44   :  { %83 = vsyncpa [#allocation18], 0 }
  0x45   :  { %84 = vsyncpa [#allocation21], 0 }
  0x46   :  { %85 = vsyncpa [#allocation24], 0 }
  0x47   :  { %86 = vsyncpa [#allocation27], 0 }
  0x48   :  { %87 = vsyncpa [#allocation30], 0 }
  0x49   :  { %88 = vsyncpa [#allocation33], 0 }
  0x4a   :  { %89 = vsyncpa [#allocation36], 0 }
  0x4b   :  { %90 = vsyncpa [#allocation39], 0 }
  0x4c   :  { %91 = vsyncpa [#allocation42], 0 }
  0x4d   :  { %92 = vsyncpa [#allocation45], 0 }
  0x4e   :  { %93 = vsyncpa [#allocation48], 0 }
  0x4f   :  { %94 = vsyncpa [#allocation4], 0 }
  0x50   :  { %96 = vsyncpa [#allocation4 + $0x1], 0  ;;  %s35280_s0 = smov 0   ;;  %s35282_s28 = smov 0  }
  0x51   :  { %s35284_s1 = smov 0   ;;  %s35286_s2 = smov 0  }
  0x52 LB: > { %38894 = sst [smem:[#allocation92_spill]] %s34998_s0  ;;  %s35301_s7 = sadd.s32 4294967295, %s35010_s2   ;;  %s35010_s2 = sphi %s35286_s2, %s38968_s2   ;;  %s35006_s1 = sphi %s35284_s1, %s38970_s1   ;;  %s35002_s28 = sphi %s35282_s28, %s38972_s28   ;;  %s34998_s0 = sphi %s35280_s0, %s38971_s0  }
  0x53   : > { %38895 = sst [smem:[#allocation93_spill]] %s35006_s1  ;;  %s29846_s10 = sadd.s32 4294967294, %s35010_s2  }
  0x54   : > { %s35305_s11 = sadd.s32 1, %s35010_s2   ;;  %s870_s15 = sadd.s32 1, %s35006_s1 }
  0x55   : > { %38896 = sst [smem:[#allocation94_spill]] %s35305_s11  ;;  %s867_s16 = ssub.s32 %s35010_s2, %s35305_s11 }
  0x56   : > { %p880_p0 = scmp.ne.s32.totalorder %s35006_s1, %s35002_s28  ;;  %p868_p1 = scmp.eq.s32.totalorder %s867_s16, 0 }
  0x57   : > { %p881_p2 = scmp.eq.s32.totalorder %s35301_s7, 1  ;;  %p886_p3 = scmp.ne.s32.totalorder %s35002_s28, %s34998_s0 }
  0x58   : > { %p887_p4 = scmp.eq.s32.totalorder %s29846_s10, 1  ;;  %p29847_p7 = scmp.ge.s32.totalorder %s35010_s2, 1 }
  0x59   : > { %s35316_s18 = scalar_select %p868_p1, %s35006_s1, %s870_s15  }
  0x5a   : > { %p35318_p5 = por %p881_p2, %p880_p0  ;;  %p35322_p6 = por %p887_p4, %p886_p3 }
  0x5b   : > { %38897 = sst [smem:[#allocation95_spill]] %s35316_s18  ;;  %p894_p8 = scmp.lt.s32.totalorder %s35010_s2, 3 }
  0x5c   : > { %s38898_s22 = scalar_select %p35318_p5, 1, 0 }
  0x5d   : > { %s38899_s23 = scalar_select %p35322_p6, 1, 0 }
  0x5e   : > { %p38862_p9 = scmp.eq.s32.totalorder %s35301_s7, 0  ;;  %p35329_p10 = pnand %p29847_p7, %p894_p8 }
  0x5f   : > { %38900 = sst [smem:[#allocation96_spill]] %s38899_s23  ;;  %s35048_s16 = smov [#allocation5]  }
  0x60   : > { %s38901_s26 = scalar_select %p35329_p10, 1, 0 }
  0x61   : > { %s918_s10 = sshll.u32 %s35048_s16, 4  ;;  %p33729_p11 = pneg %p35329_p10  ;;  %s919_s10 = int_to_ptr.vmem [resolvable:$true] %s918_s10 }
  0x62   : > { %s35049_s15 = smov [#allocation8]   ;;  %s35050_s11 = smov [#allocation11]  }
  0x63   : > { %s943_s18 = sshll.u32 %s35049_s15, 4  ;;  %p35337_p12 = pnand %p38862_p9, %p33729_p11  ;;  %s944_s18 = int_to_ptr.vmem [resolvable:$true] %s943_s18 }
  0x64   : > { %s965_s23 = sshll.u32 %s35050_s11, 4  ;;  %s34117_s16 = scalar_lea.vmem %s919_s10, 128  ;;  %s35341_s23 = int_to_ptr.vmem [resolvable:$true] %s965_s23 }
  0x65   : > { %p35345_p13 = pneg %p35337_p12  ;;  %p34118_p0 = scmp.ne.s32.totalorder %s919_s10, %s34117_s16 }
  0x66   : > { %p34125_p3 = scmp.lt.s32.totalorder %s919_s10, %s919_s10  ;;  %p34126_p4 = scmp.lt.s32.totalorder %s34117_s16, %s34117_s16 }
  0x67   : > { %p34120_p1 = pnand %p34118_p0, %p35345_p13 }
  0x68   : > { %p34127_p7 = por %p34126_p4, %p34125_p3 }
  0x69   : > { %p34121_p2 = pneg %p34120_p1 }
  0x6b   : > { %p34128_p8 = pnand %p34127_p7, %p34121_p2 }
  0x6d   : > { %34131 = shalt.err (!%p34128_p8)
}
  0x6e   : > { %s38904_s13 = sld [smem:[#allocation69_spill]]  ;;  %s34143_s11 = scalar_lea.vmem %s944_s18, 16 }
  0x6f   : > { %p34144_p11 = scmp.ne.s32.totalorder %s944_s18, %s34143_s11  ;;  %s34150_s15 = scalar_lea.vmem %s944_s18, 32 }
  0x70   : > { %p34151_p5 = scmp.lt.s32.totalorder %s944_s18, %s944_s18  ;;  %p34152_p10 = scmp.lt.s32.totalorder %s34150_s15, %s34143_s11 }
  0x71   : > { %p34146_p9 = pnand %p34144_p11, %p35345_p13 }
  0x72   : > { %p34153_p0 = por %p34152_p10, %p34151_p5 }
  0x73   : > { %p34147_p6 = pneg %p34146_p9 }
  0x74   : > { %33735 = dma.hbm_to_vmem [thread:$0]  (!%p35337_p12), %s38904_s13, 128, %s919_s10, [#allocation6]  }
  0x75   : > { %p34154_p1 = pnand %p34153_p0, %p34147_p6 }
  0x77   : > { %34157 = shalt.err (!%p34154_p1)
}
  0x78   : > { %s38905_s25 = sld [smem:[#allocation72_spill]]  ;;  %s34169_s10 = scalar_lea.vmem %s35341_s23, 16 }
  0x79   : > { %p34170_p2 = scmp.ne.s32.totalorder %s35341_s23, %s34169_s10  ;;  %s34176_s16 = scalar_lea.vmem %s35341_s23, 32 }
  0x7a   : > { %p34177_p4 = scmp.lt.s32.totalorder %s35341_s23, %s35341_s23  ;;  %p34178_p5 = scmp.lt.s32.totalorder %s34176_s16, %s34169_s10 }
  0x7b   : > { %p34172_p3 = pnand %p34170_p2, %p35345_p13 }
  0x7c   : > { %p34179_p6 = por %p34178_p5, %p34177_p4 }
  0x7d   : > { %p34173_p9 = pneg %p34172_p3 }
  0x7e   : > { %33741 = dma.hbm_to_vmem [thread:$0]  (!%p35337_p12), %s38905_s25, 16, %s944_s18, [#allocation9]  }
  0x7f   : > { %p34180_p10 = pnand %p34179_p6, %p34173_p9 }
  0x81   : > { %34183 = shalt.err (!%p34180_p10)
}
  0x82   : > { %s38906_s3 = sld [smem:[#allocation74_spill]]  ;;  %s35051_s11 = smov [#allocation14]  }
  0x83   : > { %s989_s18 = sshll.u32 %s35051_s11, 4  ;;  %s35052_s15 = smov [#allocation17]   ;;  %s990_s18 = int_to_ptr.vmem [resolvable:$true] %s989_s18 }
  0x84   : > { %s1011_s13 = sshll.u32 %s35052_s15, 4  ;;  %s34195_s25 = scalar_lea.vmem %s990_s18, 16  ;;  %s1012_s13 = int_to_ptr.vmem [resolvable:$true] %s1011_s13 }
  0x85   : > { %p34196_p7 = scmp.ne.s32.totalorder %s990_s18, %s34195_s25  ;;  %s34202_s10 = scalar_lea.vmem %s990_s18, 32 }
  0x86   : > { %p34203_p0 = scmp.lt.s32.totalorder %s990_s18, %s990_s18  ;;  %p34204_p1 = scmp.lt.s32.totalorder %s34202_s10, %s34195_s25 }
  0x87   : > { %p34198_p8 = pnand %p34196_p7, %p35345_p13 }
  0x88   : > { %33747 = dma.hbm_to_vmem [thread:$0]  (!%p35337_p12), %s38906_s3, 16, %s35341_s23, [#allocation12]  }
  0x89   : > { %p34199_p11 = pneg %p34198_p8  ;;  %p34205_p2 = por %p34204_p1, %p34203_p0 }
  0x8b   : > { %p34206_p3 = pnand %p34205_p2, %p34199_p11 }
  0x8d   : > { %34209 = shalt.err (!%p34206_p3)
}
  0x8e   : > { %33753 = dma.hbm_to_vmem [thread:$0]  (!%p35337_p12), %s35143_s14, 16, %s990_s18, [#allocation15]  }
  0x8f   : > { %s34221_s23 = scalar_lea.vmem %s1012_s13, 16  ;;  %s34228_s16 = scalar_lea.vmem %s1012_s13, 32 }
  0x90   : > { %p34222_p9 = scmp.ne.s32.totalorder %s1012_s13, %s34221_s23  ;;  %p34229_p6 = scmp.lt.s32.totalorder %s1012_s13, %s1012_s13 }
  0x91   : > { %p34230_p10 = scmp.lt.s32.totalorder %s34228_s16, %s34221_s23 }
  0x92   : > { %p34224_p4 = pnand %p34222_p9, %p35345_p13 }
  0x93   : > { %p34231_p7 = por %p34230_p10, %p34229_p6 }
  0x94   : > { %p34225_p5 = pneg %p34224_p4 }
  0x96   : > { %p34232_p8 = pnand %p34231_p7, %p34225_p5 }
  0x98   : > { %34235 = shalt.err (!%p34232_p8)
}
  0x99   : > { %33759 = dma.hbm_to_vmem [thread:$0]  (!%p35337_p12), %s35153_s24, 16, %s1012_s13, [#allocation18]  }
  0x9a   : > { %s35053_s25 = smov [#allocation20]   ;;  %s35054_s18 = smov [#allocation23]  }
  0x9b   : > { %s1035_s11 = sshll.u32 %s35053_s25, 4  ;;  %s1059_s15 = sshll.u32 %s35054_s18, 4  ;;  %s1036_s11 = int_to_ptr.vmem [resolvable:$true] %s1035_s11  ;;  %s1060_s15 = int_to_ptr.vmem [resolvable:$true] %s1059_s15 }
  0x9c   : > { %s34247_s10 = scalar_lea.vmem %s1036_s11, 16  ;;  %s34254_s3 = scalar_lea.vmem %s1036_s11, 32 }
  0x9d   : > { %p34248_p11 = scmp.ne.s32.totalorder %s1036_s11, %s34247_s10  ;;  %p34255_p2 = scmp.lt.s32.totalorder %s1036_s11, %s1036_s11 }
  0x9e   : > { %p34256_p3 = scmp.lt.s32.totalorder %s34254_s3, %s34247_s10 }
  0x9f   : > { %p34250_p0 = pnand %p34248_p11, %p35345_p13 }
  0xa0   : > { %p34257_p9 = por %p34256_p3, %p34255_p2 }
  0xa1   : > { %p34251_p1 = pneg %p34250_p0 }
  0xa3   : > { %p34258_p4 = pnand %p34257_p9, %p34251_p1 }
  0xa5   : > { %34261 = shalt.err (!%p34258_p4)
}
  0xa6   : > { %s38907_s6 = sld [smem:[#allocation78_spill]]  ;;  %s34273_s13 = scalar_lea.vmem %s1060_s15, 16 }
  0xa7   : > { %p34274_p5 = scmp.ne.s32.totalorder %s1060_s15, %s34273_s13  ;;  %s34280_s23 = scalar_lea.vmem %s1060_s15, 32 }
  0xa8   : > { %p34281_p7 = scmp.lt.s32.totalorder %s1060_s15, %s1060_s15  ;;  %p34282_p8 = scmp.lt.s32.totalorder %s34280_s23, %s34273_s13 }
  0xa9   : > { %p34276_p6 = pnand %p34274_p5, %p35345_p13 }
  0xaa   : > { %p34283_p11 = por %p34282_p8, %p34281_p7 }
  0xab   : > { %p34277_p10 = pneg %p34276_p6 }
  0xac   : > { %33765 = dma.hbm_to_vmem [thread:$0]  (!%p35337_p12), %s38907_s6, 16, %s1036_s11, [#allocation21]  }
  0xad   : > { %p34284_p0 = pnand %p34283_p11, %p34277_p10 }
  0xaf   : > { %34287 = shalt.err (!%p34284_p0)
}
  0xb0   : > { %33771 = dma.hbm_to_vmem [thread:$0]  (!%p35337_p12), %s35173_s20, 16, %s1060_s15, [#allocation24]  }
  0xb1   : > { %s35055_s3 = smov [#allocation26]   ;;  %s35056_s25 = smov [#allocation29]  }
  0xb2   : > { %s1083_s16 = sshll.u32 %s35055_s3, 4  ;;  %s1107_s11 = sshll.u32 %s35056_s25, 4  ;;  %s1084_s16 = int_to_ptr.vmem [resolvable:$true] %s1083_s16  ;;  %s1108_s11 = int_to_ptr.vmem [resolvable:$true] %s1107_s11 }
  0xb3   : > { %s34299_s18 = scalar_lea.vmem %s1084_s16, 512  ;;  %p34307_p9 = scmp.lt.s32.totalorder %s1084_s16, %s1084_s16 }
  0xb4   : > { %p34300_p1 = scmp.ne.s32.totalorder %s1084_s16, %s34299_s18  ;;  %p34308_p4 = scmp.lt.s32.totalorder %s34299_s18, %s34299_s18 }
  0xb6   : > { %p34302_p2 = pnand %p34300_p1, %p35345_p13  ;;  %p34309_p5 = por %p34308_p4, %p34307_p9 }
  0xb8   : > { %p34303_p3 = pneg %p34302_p2 }
  0xba   : > { %p34310_p6 = pnand %p34309_p5, %p34303_p3 }
  0xbc   : > { %34313 = shalt.err (!%p34310_p6)
}
  0xbd   : > { %s38865_s10 = smov 128   ;;  %s38908_s5 = sld [smem:[#allocation82_spill]] }
  0xbe   : > { %s38867_s15 = smov 8   ;;  %s34325_s13 = scalar_lea.vmem %s1108_s11, 512 }
  0xbf   : > { %p34326_p10 = scmp.ne.s32.totalorder %s1108_s11, %s34325_s13  ;;  %p34333_p11 = scmp.lt.s32.totalorder %s1108_s11, %s1108_s11 }
  0xc0   : > { %p34334_p0 = scmp.lt.s32.totalorder %s34325_s13, %s34325_s13 }
  0xc1   : > { %p34328_p7 = pnand %p34326_p10, %p35345_p13 }
  0xc2   : > { %p34335_p1 = por %p34334_p0, %p34333_p11 }
  0xc3   : > { %33777 = dma.hbm_to_vmem [thread:$0]  (!%p35337_p12), %s38908_s5, 512, %s1084_s16, [#allocation27], %s38865_s10, %s38865_s10, %s38867_s15  }
  0xc4   : > { %p34329_p8 = pneg %p34328_p7 }
  0xc6   : > { %p34336_p2 = pnand %p34335_p1, %p34329_p8 }
  0xc8   : > { %34339 = shalt.err (!%p34336_p2)
}
  0xc9   : > { %33783 = dma.hbm_to_vmem [thread:$0]  (!%p35337_p12), %s35198_s27, 512, %s1108_s11, [#allocation30], %s38865_s10, %s38865_s10, %s38867_s15  }
  0xca   : > { %s35059_s23 = smov [#allocation32]   ;;  %s35060_s16 = smov [#allocation35]  }
  0xcb   : > { %s1131_s3 = sshll.u32 %s35059_s23, 4  ;;  %s1155_s25 = sshll.u32 %s35060_s16, 4  ;;  %s1132_s3 = int_to_ptr.vmem [resolvable:$true] %s1131_s3  ;;  %s1156_s25 = int_to_ptr.vmem [resolvable:$true] %s1155_s25 }
  0xcc   : > { %s34351_s18 = scalar_lea.vmem %s1132_s3, 512  ;;  %p34359_p5 = scmp.lt.s32.totalorder %s1132_s3, %s1132_s3 }
  0xcd   : > { %p34352_p3 = scmp.ne.s32.totalorder %s1132_s3, %s34351_s18  ;;  %p34360_p6 = scmp.lt.s32.totalorder %s34351_s18, %s34351_s18 }
  0xcf   : > { %p34354_p9 = pnand %p34352_p3, %p35345_p13  ;;  %p34361_p10 = por %p34360_p6, %p34359_p5 }
  0xd1   : > { %p34355_p4 = pneg %p34354_p9 }
  0xd3   : > { %p34362_p7 = pnand %p34361_p10, %p34355_p4 }
  0xd5   : > { %34365 = shalt.err (!%p34362_p7)
}
  0xd6   : > { %33789 = dma.hbm_to_vmem [thread:$0]  (!%p35337_p12), %s35208_s12, 512, %s1132_s3, [#allocation33], %s38865_s10, %s38865_s10, %s38867_s15  }
  0xd7   : > { %s34377_s11 = scalar_lea.vmem %s1156_s25, 512  ;;  %p34385_p1 = scmp.lt.s32.totalorder %s1156_s25, %s1156_s25 }
  0xd8   : > { %p34378_p8 = scmp.ne.s32.totalorder %s1156_s25, %s34377_s11  ;;  %p34386_p2 = scmp.lt.s32.totalorder %s34377_s11, %s34377_s11 }
  0xda   : > { %p34380_p11 = pnand %p34378_p8, %p35345_p13  ;;  %p34387_p3 = por %p34386_p2, %p34385_p1 }
  0xdc   : > { %p34381_p0 = pneg %p34380_p11 }
  0xde   : > { %p34388_p9 = pnand %p34387_p3, %p34381_p0 }
  0xe0   : > { %34391 = shalt.err (!%p34388_p9)
}
  0xe1   : > { %33795 = dma.hbm_to_vmem [thread:$0]  (!%p35337_p12), %s35218_s30, 512, %s1156_s25, [#allocation36], %s38865_s10, %s38865_s10, %s38867_s15  }
  0xe2   : > { %s35061_s13 = smov [#allocation38]   ;;  %s35062_s3 = smov [#allocation41]  }
  0xe3   : > { %s1179_s23 = sshll.u32 %s35061_s13, 4  ;;  %s1203_s16 = sshll.u32 %s35062_s3, 4  ;;  %s1180_s23 = int_to_ptr.vmem [resolvable:$true] %s1179_s23  ;;  %s1204_s16 = int_to_ptr.vmem [resolvable:$true] %s1203_s16 }
  0xe4   : > { %s34403_s18 = scalar_lea.vmem %s1180_s23, 512  ;;  %p34411_p10 = scmp.lt.s32.totalorder %s1180_s23, %s1180_s23 }
  0xe5   : > { %p34404_p4 = scmp.ne.s32.totalorder %s1180_s23, %s34403_s18  ;;  %p34412_p7 = scmp.lt.s32.totalorder %s34403_s18, %s34403_s18 }
  0xe7   : > { %p34406_p5 = pnand %p34404_p4, %p35345_p13  ;;  %p34413_p8 = por %p34412_p7, %p34411_p10 }
  0xe9   : > { %p34407_p6 = pneg %p34406_p5 }
  0xeb   : > { %p34414_p11 = pnand %p34413_p8, %p34407_p6 }
  0xed   : > { %34417 = shalt.err (!%p34414_p11)
}
  0xee   : > { %33801 = dma.hbm_to_vmem [thread:$0]  (!%p35337_p12), %s35228_s19, 512, %s1180_s23, [#allocation39], %s38865_s10, %s38865_s10, %s38867_s15  }
  0xef   : > { %s34429_s25 = scalar_lea.vmem %s1204_s16, 512  ;;  %p34437_p3 = scmp.lt.s32.totalorder %s1204_s16, %s1204_s16 }
  0xf0   : > { %p34430_p0 = scmp.ne.s32.totalorder %s1204_s16, %s34429_s25  ;;  %p34438_p9 = scmp.lt.s32.totalorder %s34429_s25, %s34429_s25 }
  0xf2   : > { %p34432_p1 = pnand %p34430_p0, %p35345_p13  ;;  %p34439_p4 = por %p34438_p9, %p34437_p3 }
  0xf4   : > { %p34433_p2 = pneg %p34432_p1 }
  0xf6   : > { %p34440_p5 = pnand %p34439_p4, %p34433_p2 }
  0xf8   : > { %34443 = shalt.err (!%p34440_p5)
}
  0xf9   : > { %s38909_s8 = sld [smem:[#allocation88_spill]]  ;;  %s35063_s11 = smov [#allocation44]  }
  0xfa   : > { %s1227_s13 = sshll.u32 %s35063_s11, 4  ;;  %s35064_s23 = smov [#allocation2]   ;;  %s1228_s13 = int_to_ptr.vmem [resolvable:$true] %s1227_s13 }
  0xfb   : > { %s907_s3 = sshll.u32 %s35064_s23, 4  ;;  %s34455_s18 = scalar_lea.vmem %s1228_s13, 512  ;;  %s908_s3 = int_to_ptr.vmem [resolvable:$true] %s907_s3 }
  0xfc   : > { %p34456_p6 = scmp.ne.s32.totalorder %s1228_s13, %s34455_s18  ;;  %p34463_p8 = scmp.lt.s32.totalorder %s1228_s13, %s1228_s13 }
  0xfd   : > { %p34464_p11 = scmp.lt.s32.totalorder %s34455_s18, %s34455_s18 }
  0xfe   : > { %p34458_p10 = pnand %p34456_p6, %p35345_p13 }
  0xff   : > { %33807 = dma.hbm_to_vmem [thread:$0]  (!%p35337_p12), %s38909_s8, 512, %s1204_s16, [#allocation42], %s38865_s10, %s38865_s10, %s38867_s15  }
 0x100   : > { %p34459_p7 = pneg %p34458_p10  ;;  %p34465_p0 = por %p34464_p11, %p34463_p8 }
 0x102   : > { %p34466_p1 = pnand %p34465_p0, %p34459_p7 }
 0x104   : > { %34469 = shalt.err (!%p34466_p1)
}
 0x105   : > { %33813 = dma.hbm_to_vmem [thread:$0]  (!%p35337_p12), %s35248_s29, 512, %s1228_s13, [#allocation45], %s38865_s10, %s38865_s10, %s38867_s15  }
 0x106   : > { %s34481_s16 = scalar_lea.vmem %s908_s3, 128  ;;  %p34489_p4 = scmp.lt.s32.totalorder %s908_s3, %s908_s3 }
 0x107   : > { %p34482_p2 = scmp.ne.s32.totalorder %s908_s3, %s34481_s16  ;;  %p34490_p5 = scmp.lt.s32.totalorder %s34481_s16, %s34481_s16 }
 0x109   : > { %p34484_p3 = pnand %p34482_p2, %p35345_p13  ;;  %p34491_p6 = por %p34490_p5, %p34489_p4 }
 0x10b   : > { %p34485_p9 = pneg %p34484_p3 }
 0x10d   : > { %p34492_p10 = pnand %p34491_p6, %p34485_p9 }
 0x10f   : > { %34495 = shalt.err (!%p34492_p10)
}
 0x110   : > { %s38910_s25 = sld [smem:[#allocation68_spill]]  ;;  %s35065_s11 = smov [#allocation7]  }
 0x111   : > { %s929_s23 = sshll.u32 %s35065_s11, 4  ;;  %s35066_s13 = smov [#allocation10]   ;;  %s930_s23 = int_to_ptr.vmem [resolvable:$true] %s929_s23 }
 0x112   : > { %s954_s18 = sshll.u32 %s35066_s13, 4  ;;  %s34507_s10 = scalar_lea.vmem %s930_s23, 16  ;;  %s955_s18 = int_to_ptr.vmem [resolvable:$true] %s954_s18 }
 0x113   : > { %p34508_p7 = scmp.ne.s32.totalorder %s930_s23, %s34507_s10  ;;  %s34514_s15 = scalar_lea.vmem %s930_s23, 32 }
 0x114   : > { %p34515_p0 = scmp.lt.s32.totalorder %s930_s23, %s930_s23  ;;  %p34516_p1 = scmp.lt.s32.totalorder %s34514_s15, %s34507_s10 }
 0x115   : > { %p34510_p8 = pnand %p34508_p7, %p35345_p13 }
 0x116   : > { %33732 = dma.hbm_to_vmem [thread:$0]  (!%p35337_p12), %s38910_s25, 128, %s908_s3, [#allocation3]  }
 0x117   : > { %p34511_p11 = pneg %p34510_p8  ;;  %p34517_p2 = por %p34516_p1, %p34515_p0 }
 0x119   : > { %p34518_p3 = pnand %p34517_p2, %p34511_p11 }
 0x11b   : > { %34521 = shalt.err (!%p34518_p3)
}
 0x11c   : > { %s38911_s16 = sld [smem:[#allocation70_spill]]  ;;  %s34533_s3 = scalar_lea.vmem %s955_s18, 64 }
 0x11d   : > { %p34534_p9 = scmp.ne.s32.totalorder %s955_s18, %s34533_s3  ;;  %p34541_p6 = scmp.lt.s32.totalorder %s955_s18, %s955_s18 }
 0x11e   : > { %p34542_p10 = scmp.lt.s32.totalorder %s34533_s3, %s34533_s3 }
 0x11f   : > { %p34536_p4 = pnand %p34534_p9, %p35345_p13 }
 0x120   : > { %p34543_p7 = por %p34542_p10, %p34541_p6 }
 0x121   : > { %p34537_p5 = pneg %p34536_p4 }
 0x122   : > { %33738 = dma.hbm_to_vmem [thread:$0]  (!%p35337_p12), %s38911_s16, 16, %s930_s23, [#allocation6]  }
 0x123   : > { %p34544_p8 = pnand %p34543_p7, %p34537_p5 }
 0x125   : > { %34547 = shalt.err (!%p34544_p8)
}
 0x126   : > { %s38912_s10 = sld [smem:[#allocation73_spill]]  ;;  %s35067_s15 = smov [#allocation13]  }
 0x127   : > { %s975_s25 = sshll.u32 %s35067_s15, 4  ;;  %s35068_s11 = smov [#allocation16]   ;;  %s976_s25 = int_to_ptr.vmem [resolvable:$true] %s975_s25 }
 0x128   : > { %s1000_s23 = sshll.u32 %s35068_s11, 4  ;;  %s34559_s13 = scalar_lea.vmem %s976_s25, 512  ;;  %s1001_s23 = int_to_ptr.vmem [resolvable:$true] %s1000_s23 }
 0x129   : > { %p34560_p11 = scmp.ne.s32.totalorder %s976_s25, %s34559_s13  ;;  %p34567_p2 = scmp.lt.s32.totalorder %s976_s25, %s976_s25 }
 0x12a   : > { %p34568_p3 = scmp.lt.s32.totalorder %s34559_s13, %s34559_s13 }
 0x12b   : > { %p34562_p0 = pnand %p34560_p11, %p35345_p13 }
 0x12c   : > { %33744 = dma.hbm_to_vmem [thread:$0]  (!%p35337_p12), %s38912_s10, 64, %s955_s18, [#allocation9]  }
 0x12d   : > { %p34563_p1 = pneg %p34562_p0  ;;  %p34569_p9 = por %p34568_p3, %p34567_p2 }
 0x12f   : > { %p34570_p4 = pnand %p34569_p9, %p34563_p1 }
 0x131   : > { %34573 = shalt.err (!%p34570_p4)
}
 0x132   : > { %s38913_s16 = smov 8   ;;  %s38914_s3 = smov 128  }
 0x133   : > { %s38915_s18 = sld [smem:[#allocation75_spill]]  ;;  %s34585_s10 = scalar_lea.vmem %s1001_s23, 64 }
 0x134   : > { %p34586_p5 = scmp.ne.s32.totalorder %s1001_s23, %s34585_s10  ;;  %p34593_p7 = scmp.lt.s32.totalorder %s1001_s23, %s1001_s23 }
 0x135   : > { %p34594_p8 = scmp.lt.s32.totalorder %s34585_s10, %s34585_s10 }
 0x136   : > { %p34588_p6 = pnand %p34586_p5, %p35345_p13 }
 0x137   : > { %p34595_p11 = por %p34594_p8, %p34593_p7 }
 0x138   : > { %p34589_p10 = pneg %p34588_p6 }
 0x139   : > { %33750 = dma.hbm_to_vmem [thread:$0]  (!%p35337_p12), %s38915_s18, 512, %s976_s25, [#allocation12], %s38914_s3, %s38914_s3, %s38913_s16  }
 0x13a   : > { %p34596_p0 = pnand %p34595_p11, %p34589_p10 }
 0x13c   : > { %34599 = shalt.err (!%p34596_p0)
}
 0x13d   : > { %s38916_s15 = sld [smem:[#allocation76_spill]]  ;;  %s35069_s11 = smov [#allocation19]  }
 0x13e   : > { %s1021_s13 = sshll.u32 %s35069_s11, 4  ;;  %s35070_s25 = smov [#allocation22]   ;;  %s1022_s13 = int_to_ptr.vmem [resolvable:$true] %s1021_s13 }
 0x13f   : > { %s1045_s18 = sshll.u32 %s35070_s25, 4  ;;  %s34611_s5 = scalar_lea.vmem %s1022_s13, 512  ;;  %s1046_s18 = int_to_ptr.vmem [resolvable:$true] %s1045_s18 }
 0x140   : > { %p34612_p1 = scmp.ne.s32.totalorder %s1022_s13, %s34611_s5  ;;  %p34619_p9 = scmp.lt.s32.totalorder %s1022_s13, %s1022_s13 }
 0x141   : > { %p34620_p4 = scmp.lt.s32.totalorder %s34611_s5, %s34611_s5 }
 0x142   : > { %p34614_p2 = pnand %p34612_p1, %p35345_p13 }
 0x143   : > { %33756 = dma.hbm_to_vmem [thread:$0]  (!%p35337_p12), %s38916_s15, 64, %s1001_s23, [#allocation15]  }
 0x144   : > { %p34615_p3 = pneg %p34614_p2  ;;  %p34621_p5 = por %p34620_p4, %p34619_p9 }
 0x146   : > { %p34622_p6 = pnand %p34621_p5, %p34615_p3 }
 0x148   : > { %34625 = shalt.err (!%p34622_p6)
}
 0x149   : > { %s38917_s23 = sld [smem:[#allocation77_spill]]  ;;  %s34637_s10 = scalar_lea.vmem %s1046_s18, 512 }
 0x14a   : > { %p34638_p10 = scmp.ne.s32.totalorder %s1046_s18, %s34637_s10  ;;  %p34645_p11 = scmp.lt.s32.totalorder %s1046_s18, %s1046_s18 }
 0x14b   : > { %p34646_p0 = scmp.lt.s32.totalorder %s34637_s10, %s34637_s10 }
 0x14c   : > { %p34640_p7 = pnand %p34638_p10, %p35345_p13 }
 0x14d   : > { %p34647_p1 = por %p34646_p0, %p34645_p11 }
 0x14e   : > { %p34641_p8 = pneg %p34640_p7 }
 0x14f   : > { %33762 = dma.hbm_to_vmem [thread:$0]  (!%p35337_p12), %s38917_s23, 512, %s1022_s13, [#allocation18], %s38914_s3, %s38914_s3, %s38913_s16  }
 0x150   : > { %p34648_p2 = pnand %p34647_p1, %p34641_p8 }
 0x152   : > { %34651 = shalt.err (!%p34648_p2)
}
 0x153   : > { %s38918_s5 = sld [smem:[#allocation79_spill]]  ;;  %s35071_s15 = smov [#allocation25]  }
 0x154   : > { %s1073_s11 = sshll.u32 %s35071_s15, 4  ;;  %s35072_s13 = smov [#allocation28]   ;;  %s1074_s11 = int_to_ptr.vmem [resolvable:$true] %s1073_s11 }
 0x155   : > { %s1097_s25 = sshll.u32 %s35072_s13, 4  ;;  %s34663_s23 = scalar_lea.vmem %s1074_s11, 16  ;;  %s1098_s25 = int_to_ptr.vmem [resolvable:$true] %s1097_s25 }
 0x156   : > { %p34664_p3 = scmp.ne.s32.totalorder %s1074_s11, %s34663_s23  ;;  %s34670_s10 = scalar_lea.vmem %s1074_s11, 32 }
 0x157   : > { %p34671_p5 = scmp.lt.s32.totalorder %s1074_s11, %s1074_s11  ;;  %p34672_p6 = scmp.lt.s32.totalorder %s34670_s10, %s34663_s23 }
 0x158   : > { %p34666_p9 = pnand %p34664_p3, %p35345_p13 }
 0x159   : > { %33768 = dma.hbm_to_vmem [thread:$0]  (!%p35337_p12), %s38918_s5, 512, %s1046_s18, [#allocation21], %s38914_s3, %s38914_s3, %s38913_s16  }
 0x15a   : > { %p34667_p4 = pneg %p34666_p9  ;;  %p34673_p10 = por %p34672_p6, %p34671_p5 }
 0x15c   : > { %p34674_p7 = pnand %p34673_p10, %p34667_p4 }
 0x15e   : > { %34677 = shalt.err (!%p34674_p7)
}
 0x15f   : > { %s38919_s6 = sld [smem:[#allocation81_spill]]  ;;  %s34689_s18 = scalar_lea.vmem %s1098_s25, 16 }
 0x160   : > { %p34690_p8 = scmp.ne.s32.totalorder %s1098_s25, %s34689_s18  ;;  %s34696_s5 = scalar_lea.vmem %s1098_s25, 32 }
 0x161   : > { %p34697_p1 = scmp.lt.s32.totalorder %s1098_s25, %s1098_s25  ;;  %p34698_p2 = scmp.lt.s32.totalorder %s34696_s5, %s34689_s18 }
 0x162   : > { %p34692_p11 = pnand %p34690_p8, %p35345_p13 }
 0x163   : > { %p34699_p3 = por %p34698_p2, %p34697_p1 }
 0x164   : > { %p34693_p0 = pneg %p34692_p11 }
 0x165   : > { %33774 = dma.hbm_to_vmem [thread:$0]  (!%p35337_p12), %s38919_s6, 16, %s1074_s11, [#allocation24]  }
 0x166   : > { %p34700_p9 = pnand %p34699_p3, %p34693_p0 }
 0x168   : > { %34703 = shalt.err (!%p34700_p9)
}
 0x169   : > { %s38920_s15 = sld [smem:[#allocation83_spill]]  ;;  %s35073_s13 = smov [#allocation31]  }
 0x16a   : > { %s1121_s23 = sshll.u32 %s35073_s13, 4  ;;  %s35074_s6 = smov [#allocation34]   ;;  %s1122_s23 = int_to_ptr.vmem [resolvable:$true] %s1121_s23 }
 0x16b   : > { %s1145_s11 = sshll.u32 %s35074_s6, 4  ;;  %s34715_s10 = scalar_lea.vmem %s1122_s23, 16  ;;  %s1146_s11 = int_to_ptr.vmem [resolvable:$true] %s1145_s11 }
 0x16c   : > { %p34716_p4 = scmp.ne.s32.totalorder %s1122_s23, %s34715_s10  ;;  %s34722_s8 = scalar_lea.vmem %s1122_s23, 32 }
 0x16d   : > { %p34723_p10 = scmp.lt.s32.totalorder %s1122_s23, %s1122_s23  ;;  %p34724_p7 = scmp.lt.s32.totalorder %s34722_s8, %s34715_s10 }
 0x16e   : > { %p34718_p5 = pnand %p34716_p4, %p35345_p13 }
 0x16f   : > { %33780 = dma.hbm_to_vmem [thread:$0]  (!%p35337_p12), %s38920_s15, 16, %s1098_s25, [#allocation27]  }
 0x170   : > { %p34719_p6 = pneg %p34718_p5  ;;  %p34725_p8 = por %p34724_p7, %p34723_p10 }
 0x172   : > { %p34726_p11 = pnand %p34725_p8, %p34719_p6 }
 0x174   : > { %34729 = shalt.err (!%p34726_p11)
}
 0x175   : > { %s38921_s18 = sld [smem:[#allocation84_spill]]  ;;  %s34741_s25 = scalar_lea.vmem %s1146_s11, 16 }
 0x176   : > { %p34742_p0 = scmp.ne.s32.totalorder %s1146_s11, %s34741_s25  ;;  %s34748_s5 = scalar_lea.vmem %s1146_s11, 32 }
 0x177   : > { %p34749_p3 = scmp.lt.s32.totalorder %s1146_s11, %s1146_s11  ;;  %p34750_p9 = scmp.lt.s32.totalorder %s34748_s5, %s34741_s25 }
 0x178   : > { %p34744_p1 = pnand %p34742_p0, %p35345_p13 }
 0x179   : > { %p34751_p4 = por %p34750_p9, %p34749_p3 }
 0x17a   : > { %p34745_p2 = pneg %p34744_p1 }
 0x17b   : > { %33786 = dma.hbm_to_vmem [thread:$0]  (!%p35337_p12), %s38921_s18, 16, %s1122_s23, [#allocation30]  }
 0x17c   : > { %p34752_p5 = pnand %p34751_p4, %p34745_p2 }
 0x17e   : > { %34755 = shalt.err (!%p34752_p5)
}
 0x17f   : > { %s38922_s8 = sld [smem:[#allocation85_spill]]  ;;  %s35075_s15 = smov [#allocation37]  }
 0x180   : > { %s1169_s13 = sshll.u32 %s35075_s15, 4  ;;  %s35076_s23 = smov [#allocation40]   ;;  %s1170_s13 = int_to_ptr.vmem [resolvable:$true] %s1169_s13 }
 0x181   : > { %s1193_s6 = sshll.u32 %s35076_s23, 4  ;;  %s34767_s10 = scalar_lea.vmem %s1170_s13, 16  ;;  %s1194_s6 = int_to_ptr.vmem [resolvable:$true] %s1193_s6 }
 0x182   : > { %p34768_p6 = scmp.ne.s32.totalorder %s1170_s13, %s34767_s10  ;;  %s34774_s18 = scalar_lea.vmem %s1170_s13, 32 }
 0x183   : > { %p34775_p8 = scmp.lt.s32.totalorder %s1170_s13, %s1170_s13  ;;  %p34776_p11 = scmp.lt.s32.totalorder %s34774_s18, %s34767_s10 }
 0x184   : > { %p34770_p10 = pnand %p34768_p6, %p35345_p13 }
 0x185   : > { %33792 = dma.hbm_to_vmem [thread:$0]  (!%p35337_p12), %s38922_s8, 16, %s1146_s11, [#allocation33]  }
 0x186   : > { %p34771_p7 = pneg %p34770_p10  ;;  %p34777_p0 = por %p34776_p11, %p34775_p8 }
 0x188   : > { %p34778_p1 = pnand %p34777_p0, %p34771_p7 }
 0x18a   : > { %34781 = shalt.err (!%p34778_p1)
}
 0x18b   : > { %s38923_s25 = sld [smem:[#allocation86_spill]]  ;;  %s34793_s11 = scalar_lea.vmem %s1194_s6, 16 }
 0x18c   : > { %p34794_p2 = scmp.ne.s32.totalorder %s1194_s6, %s34793_s11  ;;  %s34800_s5 = scalar_lea.vmem %s1194_s6, 32 }
 0x18d   : > { %p34801_p4 = scmp.lt.s32.totalorder %s1194_s6, %s1194_s6  ;;  %p34802_p5 = scmp.lt.s32.totalorder %s34800_s5, %s34793_s11 }
 0x18e   : > { %p34796_p3 = pnand %p34794_p2, %p35345_p13 }
 0x18f   : > { %p34803_p6 = por %p34802_p5, %p34801_p4 }
 0x190   : > { %p34797_p9 = pneg %p34796_p3 }
 0x191   : > { %33798 = dma.hbm_to_vmem [thread:$0]  (!%p35337_p12), %s38923_s25, 16, %s1170_s13, [#allocation36]  }
 0x192   : > { %p34804_p10 = pnand %p34803_p6, %p34797_p9 }
 0x194   : > { %34807 = shalt.err (!%p34804_p10)
}
 0x195   : > { %s38924_s8 = sld [smem:[#allocation87_spill]]  ;;  %s35077_s15 = smov [#allocation43]  }
 0x196   : > { %s1217_s23 = sshll.u32 %s35077_s15, 4  ;;  %s35078_s13 = smov [#allocation46]   ;;  %s1218_s23 = int_to_ptr.vmem [resolvable:$true] %s1217_s23 }
 0x197   : > { %s1241_s10 = sshll.u32 %s35078_s13, 4  ;;  %s34819_s18 = scalar_lea.vmem %s1218_s23, 16  ;;  %s1242_s10 = int_to_ptr.vmem [resolvable:$true] %s1241_s10 }
 0x198   : > { %p34820_p7 = scmp.ne.s32.totalorder %s1218_s23, %s34819_s18  ;;  %s34826_s25 = scalar_lea.vmem %s1218_s23, 32 }
 0x199   : > { %p34827_p0 = scmp.lt.s32.totalorder %s1218_s23, %s1218_s23  ;;  %p34828_p1 = scmp.lt.s32.totalorder %s34826_s25, %s34819_s18 }
 0x19a   : > { %p34822_p8 = pnand %p34820_p7, %p35345_p13 }
 0x19b   : > { %33804 = dma.hbm_to_vmem [thread:$0]  (!%p35337_p12), %s38924_s8, 16, %s1194_s6, [#allocation39]  }
 0x19c   : > { %p34823_p11 = pneg %p34822_p8  ;;  %p34829_p2 = por %p34828_p1, %p34827_p0 }
 0x19e   : > { %p34830_p3 = pnand %p34829_p2, %p34823_p11 }
 0x1a0   : > { %34833 = shalt.err (!%p34830_p3)
}
 0x1a1   : > { %s38925_s11 = sld [smem:[#allocation89_spill]]  ;;  %s34845_s6 = scalar_lea.vmem %s1242_s10, 16 }
 0x1a2   : > { %p34846_p9 = scmp.ne.s32.totalorder %s1242_s10, %s34845_s6  ;;  %s34852_s5 = scalar_lea.vmem %s1242_s10, 32 }
 0x1a3   : > { %p34853_p6 = scmp.lt.s32.totalorder %s1242_s10, %s1242_s10  ;;  %p34854_p10 = scmp.lt.s32.totalorder %s34852_s5, %s34845_s6 }
 0x1a4   : > { %p34848_p4 = pnand %p34846_p9, %p35345_p13 }
 0x1a5   : > { %p34855_p7 = por %p34854_p10, %p34853_p6 }
 0x1a6   : > { %p34849_p5 = pneg %p34848_p4 }
 0x1a7   : > { %33810 = dma.hbm_to_vmem [thread:$0]  (!%p35337_p12), %s38925_s11, 16, %s1218_s23, [#allocation42]  }
 0x1a8   : > { %p34856_p8 = pnand %p34855_p7, %p34849_p5 }
 0x1aa   : > { %34859 = shalt.err (!%p34856_p8)
}
 0x1ab   : > { %s38926_s8 = sld [smem:[#allocation90_spill]]  ;;  %s35079_s15 = smov [#allocation47]  }
 0x1ac   : > { %s1257_s13 = sshll.u32 %s35079_s15, 4  ;;  %s1258_s13 = int_to_ptr.vmem [resolvable:$true] %s1257_s13 }
 0x1ad   : > { %s34871_s23 = scalar_lea.vmem %s1258_s13, 512  ;;  %p34879_p2 = scmp.lt.s32.totalorder %s1258_s13, %s1258_s13 }
 0x1ae   : > { %p34872_p11 = scmp.ne.s32.totalorder %s1258_s13, %s34871_s23  ;;  %p34880_p3 = scmp.lt.s32.totalorder %s34871_s23, %s34871_s23 }
 0x1b0   : > { %p34874_p0 = pnand %p34872_p11, %p35345_p13  ;;  %p34881_p9 = por %p34880_p3, %p34879_p2 }
 0x1b1   : > { %33816 = dma.hbm_to_vmem [thread:$0]  (!%p35337_p12), %s38926_s8, 16, %s1242_s10, [#allocation45]  }
 0x1b2   : > { %p34875_p1 = pneg %p34874_p0 }
 0x1b4   : > { %p34882_p4 = pnand %p34881_p9, %p34875_p1 }
 0x1b6   : > { %34885 = shalt.err (!%p34882_p4)
}
 0x1b7   : > { %33819 = dma.hbm_to_vmem [thread:$0]  (!%p35337_p12), %s35268_s9, 512, %s1258_s13, [#allocation48], %s38914_s3, %s38914_s3, %s38913_s16  }
 0x1b8   : > { %p38927_p5 = scmp.ne.s32.totalorder %s38901_s26, 0 }
 0x1b9   : > { %p38928_p6 = scmp.eq.s32.totalorder (!%p38927_p5), %s35301_s7, 0 }
 0x1ba   : > { %1284 = sbr.rel (%p38927_p5) target bundleno = 8290 (0x2062), region = 164 }
 0x1bf   : > { %34929 = dma.done.wait (%p38928_p6), [#allocation3], 128   ;;  %p38929_p13 = pmov %p38928_p6 }
 0x1c0   : > { %p38930_p10 = pmov %p38928_p6 }
 0x1c1   : > { %34931 = vsyncadd (%p38929_p13), [#allocation3], 4294967168 }
 0x1c2   : > { %34933 = dma.done.wait (%p38930_p10), [#allocation6], 144   ;;  %p38931_p7 = pmov %p38928_p6 }
 0x1c3   : > { %p38932_p8 = pmov %p38928_p6 }
 0x1c4   : > { %34935 = vsyncadd (%p38931_p7), [#allocation6], 4294967152 }
 0x1c5   : > { %34937 = dma.done.wait (%p38932_p8), [#allocation9], 80   ;;  %p38933_p12 = pmov %p38928_p6 }
 0x1c6   : > { %p38934_p11 = pmov %p38928_p6 }
 0x1c7   : > { %34939 = vsyncadd (%p38933_p12), [#allocation9], 4294967216 }
 0x1c8   : > { %34941 = dma.done.wait (%p38934_p11), [#allocation12], 528   ;;  %p38935_p0 = pmov %p38928_p6 }
 0x1ca   : > { %34943 = vsyncadd (%p38935_p0), [#allocation12], 4294966768  ;;  %p38936_p1 = pmov %p38935_p0 }
 0x1cb   : > { %p38937_p2 = pmov %p38935_p0 }
 0x1cc   : > { %34945 = dma.done.wait (%p38936_p1), [#allocation15], 80  }
 0x1cd   : > { %34947 = vsyncadd (%p38937_p2), [#allocation15], 4294967216  ;;  %p38938_p3 = pmov %p38935_p0 }
 0x1ce   : > { %p38939_p9 = pmov %p38935_p0 }
 0x1cf   : > { %34949 = dma.done.wait (%p38938_p3), [#allocation18], 528  }
 0x1d0   : > { %34951 = vsyncadd (%p38939_p9), [#allocation18], 4294966768  ;;  %p38940_p4 = pmov %p38935_p0 }
 0x1d1   : > { %p38941_p5 = pmov %p38935_p0 }
 0x1d2   : > { %34953 = dma.done.wait (%p38940_p4), [#allocation21], 528  }
 0x1d3   : > { %34955 = vsyncadd (%p38941_p5), [#allocation21], 4294966768  ;;  %p38942_p6 = pmov %p38935_p0 }
 0x1d4   : > { %p38943_p13 = pmov %p38935_p0 }
 0x1d5   : > { %34957 = dma.done.wait (%p38942_p6), [#allocation24], 32  }
 0x1d6   : > { %34959 = vsyncadd (%p38943_p13), [#allocation24], 4294967264  ;;  %p38944_p10 = pmov %p38935_p0 }
 0x1d7   : > { %p38945_p7 = pmov %p38935_p0 }
 0x1d8   : > { %34961 = dma.done.wait (%p38944_p10), [#allocation27], 528  }
 0x1d9   : > { %34963 = vsyncadd (%p38945_p7), [#allocation27], 4294966768  ;;  %p38946_p8 = pmov %p38935_p0 }
 0x1da   : > { %p38947_p12 = pmov %p38935_p0 }
 0x1db   : > { %34965 = dma.done.wait (%p38946_p8), [#allocation30], 528  }
 0x1dc   : > { %34967 = vsyncadd (%p38947_p12), [#allocation30], 4294966768  ;;  %p38948_p11 = pmov %p38935_p0 }
 0x1de   : > { %34969 = dma.done.wait (%p38948_p11), [#allocation33], 528  }
 0x1df   : > { %34971 = vsyncadd (%p38935_p0), [#allocation33], 4294966768  ;;  %p38949_p1 = pmov %p38935_p0 }
 0x1e0   : > { %p38950_p2 = pmov %p38935_p0 }
 0x1e1   : > { %34973 = dma.done.wait (%p38949_p1), [#allocation36], 528  }
 0x1e2   : > { %34975 = vsyncadd (%p38950_p2), [#allocation36], 4294966768  ;;  %p38951_p3 = pmov %p38935_p0 }
 0x1e3   : > { %p38952_p9 = pmov %p38935_p0 }
 0x1e4   : > { %34977 = dma.done.wait (%p38951_p3), [#allocation39], 528  }
 0x1e5   : > { %34979 = vsyncadd (%p38952_p9), [#allocation39], 4294966768  ;;  %p38953_p4 = pmov %p38935_p0 }
 0x1e6   : > { %p38954_p5 = pmov %p38935_p0 }
 0x1e7   : > { %34981 = dma.done.wait (%p38953_p4), [#allocation42], 528  }
 0x1e8   : > { %34983 = vsyncadd (%p38954_p5), [#allocation42], 4294966768  ;;  %p38955_p6 = pmov %p38935_p0 }
 0x1e9   : > { %p38956_p13 = pmov %p38935_p0 }
 0x1ea   : > { %34985 = dma.done.wait (%p38955_p6), [#allocation45], 528  }
 0x1eb   : > { %34987 = vsyncadd (%p38956_p13), [#allocation45], 4294966768  ;;  %p38957_p10 = pmov %p38935_p0 }
 0x1ec   : > { %p38958_p7 = pmov %p38935_p0 }
 0x1ed   : > { %34989 = dma.done.wait (%p38957_p10), [#allocation48], 512  }
 0x1ee   : > { %34991 = vsyncadd (%p38958_p7), [#allocation48], 4294966784  ;;  %s38959_s0 = sld [smem:[#allocation71_spill]]  ;;  %v35080_v0 = vmov 0.0   ;;  %vm35081_vm0 = vmmov 0   ;;  %p1489_p8 = scmp.lt.s32.totalorder %s35301_s7, 1 }
 0x1ef   : > { %31135 = vmatprep.subr.mxu0 %v35080_v0  ;;  %31146 = vmatprep.subr.mxu1 %v35080_v0  ;;  %vm1515_vm1 = vcmask 261120   ;;  %v1496_v8 = vld [vmem:[#allocation2] sm:$0xff]  ;;  %s38961_s16 = sld [smem:[#allocation67_spill]]  ;;  %vm2010_vm2 = vcmask 23552   ;;  %v1502_v33 = vld [vmem:[#allocation10] sm:$0x7] }
 0x1f0   : > { %31143 = vmatprep.mubr.msk.f32.mxu0 %vm35081_vm0, %v35080_v0  ;;  %31154 = vmatprep.mubr.msk.f32.mxu1 %vm35081_vm0, %v35080_v0  ;;  %s1490_s1 = scalar_select %p1489_p8, %s35301_s7, 1  ;;  %v1517_v10 = vsel %vm1515_vm1, %v1496_v8, 0  ;;  %vm2017_vm3 = vcmask 1042432   ;;  %v29912_v56 = vld [vmem:[#allocation8] ss:$0 sm:$0xff]  ;;  %vm2534_vm4 = vcmask 64512  }
 0x1f1   : > { %v35629_v12 = vand.u32 4294901760, %v1517_v10  ;;  %v2019_v37 = vsel %vm2017_vm3, %v1502_v33, 0  ;;  %s35082_s18 = smov 120   ;;  %s35083_s25 = smov 112   ;;  %vm4399_vm5 = vcmask 130048   ;;  %vm6334_vm6 = vcmask 195584  }
 0x1f2   : > { %s29928_s3 = sshll.u32 %s1490_s1, 4  ;;  %v35683_v40 = vand.u32 4294901760, %v2019_v37  ;;  %s35084_s11 = smov 104   ;;  %vm26534_vm7 = vcmask 122880  }
 0x1f3   : > { %v35644_v17 = vsub.f32 %v1517_v10, %v35629_v12  ;;  %s35085_s6 = smov 96   ;;  %s35086_s5 = smov 8  }
 0x1f4   : > { %s38960_s26 = smov %s38959_s0  ;;  %v1500_v1 = vld [vmem:[%s38959_s0 + $0x18] sm:$0xff]  ;;  %v2139_v43 = vsub.f32 %v2019_v37, %v35683_v40  ;;  %s35087_s8 = smov 16  }
 0x1f5   : > { %v1499_v2 = vld [vmem:[%s38960_s26 + $0x10] sm:$0xff]  ;;  %v1498_v3 = vld [vmem:[%s38960_s26 + $0x8] sm:$0xff]  ;;  %v35615_v4 = vand.u32 4294901760, %v1500_v1  ;;  %v1497_v7 = vld [vmem:[%s38960_s26] sm:$0xff]  ;;  %s1493_s10 = scalar_lea.vmem %s38961_s16, %s29928_s3  ;;  %v1590_v22 = vand.u32 4294901760, %v35644_v17  ;;  %s35088_s15 = smov 24  }
 0x1f6   : > { %v35617_v5 = vand.u32 4294901760, %v1499_v2  ;;  %v35619_v6 = vand.u32 4294901760, %v1498_v3  ;;  %v35622_v9 = vand.u32 4294901760, %v1497_v7  ;;  %v1494_v29 = vld [vmem:[%s1493_s10] sm:$0xff]  ;;  %v1495_v30 = vld [vmem:[%s1493_s10 + $0x8] sm:$0xff]  ;;  %v2140_v46 = vand.u32 4294901760, %v2139_v43 }
 0x1f7   : > { %31136 = vmatpush3.msra.mxu0 %v35615_v4  ;;  %v35627_v11 = vsub.f32 %v1500_v1, %v35615_v4  ;;  %v1591_v26 = vsub.f32 %v35644_v17, %v1590_v22  ;;  %v2012_v34 = vsel %vm2010_vm2, %v1494_v29, 0  ;;  %v2015_v36 = vsel %vm2010_vm2, %v1495_v30, 0  ;;  %s38962_s13 = sld [smem:[#allocation80_spill]]  ;;  %s1487_s0 = sand.u32 1, %s35002_s28  }
 0x1f8   : > { %v35632_v13 = vsub.f32 %v1499_v2, %v35617_v5  ;;  %v35635_v14 = vsub.f32 %v1498_v3, %v35619_v6  ;;  %31137 = vmatprep.subr.mxu0 %v35080_v0  ;;  %v35639_v15 = vsub.f32 %v1497_v7, %v35622_v9  ;;  %v35674_v38 = vand.u32 4294901760, %v2012_v34  ;;  %s38963_s23 = sld [smem:[#allocation91_spill]]  ;;  %s29925_s1 = sshll.u32 %s35301_s7, 4 }
 0x1f9   : > { %31138 = vmatpush3.msra.mxu0 %v35617_v5  ;;  %v1625_v16 = vand.u32 4294901760, %v35627_v11  ;;  %v1592_v31 = vand.u32 4294901760, %v1591_v26  ;;  %v35678_v39 = vand.u32 4294901760, %v2015_v36  ;;  %v2141_v49 = vsub.f32 %v2139_v43, %v2140_v46  ;;  %s1488_s16 = scalar_lea.vmem [#allocation49], %s1487_s0  ;;  %s29465_s10 = scalar_lea.hbm %s35278_s17, %s29925_s1 }
 0x1fa   : > { %v1632_v18 = vand.u32 4294901760, %v35632_v13  ;;  %v1639_v19 = vand.u32 4294901760, %v35635_v14  ;;  %31139 = vmatprep.subr.mxu0 %v35080_v0  ;;  %v1646_v20 = vand.u32 4294901760, %v35639_v15  ;;  %v35688_v41 = vsub.f32 %v2012_v34, %v35674_v38  ;;  %s29467_s3 = sshll.u32 %s1488_s16, 4  ;;  %p38964_p11 = scmp.ne.s32.totalorder %s38898_s22, 0  ;;  %s29468_s3 = int_to_ptr.vmem [resolvable:$true] %s29467_s3 }
 0x1fb   : > { %31140 = vmatpush3.msra.mxu0 %v35619_v6  ;;  %v1626_v21 = vsub.f32 %v35627_v11, %v1625_v16  ;;  %v35693_v42 = vsub.f32 %v2015_v36, %v35678_v39  ;;  %v2142_v52 = vand.u32 4294901760, %v2141_v49 }
 0x1fc   : > { %v1633_v23 = vsub.f32 %v35632_v13, %v1632_v18  ;;  %v1640_v24 = vsub.f32 %v35635_v14, %v1639_v19  ;;  %31141 = vmatprep.subr.mxu0 %v35080_v0  ;;  %v1647_v28 = vsub.f32 %v35639_v15, %v1646_v20  ;;  %v35703_v44 = vand.u32 4294901760, %v35688_v41 }
 0x1fd   : > { %31142 = vmatpush3.msra.mxu0 %v35622_v9  ;;  %v1627_v25 = vand.u32 4294901760, %v1626_v21  ;;  %v35708_v45 = vand.u32 4294901760, %v35693_v42 }
 0x1fe   : > { %v1634_v27 = vand.u32 4294901760, %v1633_v23  ;;  %31157 = vmatprep.subr.mxu0 %v35080_v0  ;;  %v1641_v32 = vand.u32 4294901760, %v1640_v24  ;;  %31144 = vmatmul.mubr.f32.vlgmr.msra.gmra.mxu0 %v1592_v31  ;;  %v1648_v35 = vand.u32 4294901760, %v1647_v28  ;;  %v2090_v47 = vsub.f32 %v35688_v41, %v35703_v44 }
 0x1ff   : > { %31147 = vmatpush3.msra.mxu1 %v1627_v25  ;;  %31158 = vmatpush3.msra.mxu0 %v35627_v11  ;;  %v2100_v48 = vsub.f32 %v35693_v42, %v35708_v45 }
 0x200   : > { %31148 = vmatprep.subr.mxu1 %v35080_v0  ;;  %31159 = vmatprep.subr.mxu0 %v35080_v0  ;;  %v35732_v50 = vand.u32 4294901760, %v2090_v47 }
 0x201   : > { %31149 = vmatpush3.msra.mxu1 %v1634_v27  ;;  %31160 = vmatpush3.msra.mxu0 %v35632_v13  ;;  %v35736_v51 = vand.u32 4294901760, %v2100_v48 }
 0x202   : > { %31150 = vmatprep.subr.mxu1 %v35080_v0  ;;  %31161 = vmatprep.subr.mxu0 %v35080_v0 }
 0x203   : > { %31151 = vmatpush3.msra.mxu1 %v1641_v32  ;;  %31162 = vmatpush3.msra.mxu0 %v35635_v14 }
 0x204   : > { %31152 = vmatprep.subr.mxu1 %v35080_v0  ;;  %31163 = vmatprep.subr.mxu0 %v35080_v0 }
 0x205   : > { %31153 = vmatpush3.msra.mxu1 %v1648_v35  ;;  %31164 = vmatpush3.msra.mxu0 %v35639_v15 }
 0x206   : > { %31155 = vmatmul.mubr.f32.vlgmr.msra.gmra.mxu1 %v35629_v12  ;;  %31168 = vmatprep.subr.mxu1 %v35080_v0 }
 0x207   : > { %31169 = vmatpush3.msra.mxu1 %v35615_v4  ;;  %31165 = vmatprep.mubr.msk.f32.mxu0 %vm35081_vm0, %v35080_v0 }
 0x208   : > { %31170 = vmatprep.subr.mxu1 %v35080_v0  ;;  %31179 = vmatprep.subr.mxu0 %v35080_v0 }
 0x209   : > { %31166 = vmatmul.mubr.f32.vlgmr.msra.gmra.mxu0 %v35644_v17  ;;  %31171 = vmatpush3.msra.mxu1 %v35617_v5 }
 0x20a   : > { %31180 = vmatpush3.msra.mxu0 %v1625_v16  ;;  %31172 = vmatprep.subr.mxu1 %v35080_v0 }
 0x20b   : > { %31181 = vmatprep.subr.mxu0 %v35080_v0  ;;  %31173 = vmatpush3.msra.mxu1 %v35619_v6 }
 0x20c   : > { %31182 = vmatpush3.msra.mxu0 %v1632_v18  ;;  %31174 = vmatprep.subr.mxu1 %v35080_v0 }
 0x20d   : > { %31183 = vmatprep.subr.mxu0 %v35080_v0  ;;  %31175 = vmatpush3.msra.mxu1 %v35622_v9 }
 0x20e   : > { %31176 = vmatprep.mubr.msk.f32.mxu1 %vm35081_vm0, %v35080_v0  ;;  %31184 = vmatpush3.msra.mxu0 %v1639_v19 }
 0x20f   : > { %31177 = vmatmul.mubr.f32.vlgmr.msra.gmra.mxu1 %v1590_v22  ;;  %31185 = vmatprep.subr.mxu0 %v35080_v0 }
 0x210   : > { %31190 = vmatprep.subr.mxu1 %v35080_v0  ;;  %31186 = vmatpush3.msra.mxu0 %v1646_v20 }
 0x211   : > { %31187 = vmatprep.mubr.msk.f32.mxu0 %vm35081_vm0, %v35080_v0  ;;  %31191 = vmatpush3.msra.mxu1 %v35615_v4 }
 0x212   : > { %31188 = vmatmul.mubr.f32.vlgmr.msra.gmra.mxu0 %v35629_v12  ;;  %31192 = vmatprep.subr.mxu1 %v35080_v0 }
 0x213   : > { %31201 = vmatprep.subr.mxu0 %v35683_v40  ;;  %31193 = vmatpush3.msra.mxu1 %v35617_v5 }
 0x214   : > { %31198 = vmatprep.mubr.msk.f32.mxu1 %vm35081_vm0, %v35080_v0  ;;  %31194 = vmatprep.subr.mxu1 %v35080_v0 }
 0x215   : > { %31202 = vmatpush3.msra.mxu0 %v35683_v40  ;;  %31195 = vmatpush3.msra.mxu1 %v35619_v6  ;;  %v29913_v6 = vld [vmem:[#allocation11] ss:$0 sm:$0xff] }
 0x216   : > { %31203 = vmatprep.mubr.f32.mxu0 %v35732_v50  ;;  %31196 = vmatprep.subr.mxu1 %v35080_v0 }
 0x217   : > { %31204 = vmatmul.mubr.f32.vlgmr.msra.gmra.mxu0 %v35736_v51  ;;  %31197 = vmatpush3.msra.mxu1 %v35622_v9 }
 0x218   : > { %31211 = vmatprep.subr.mxu0 %v2139_v43  ;;  %31199 = vmatmul.mubr.f32.vlgmr.msra.gmra.mxu1 %v35629_v12 }
 0x219   : > { %31206 = vmatprep.subr.mxu1 %v2142_v52  ;;  %31208 = vmatprep.mubr.f32.mxu1 %v35674_v38 }
 0x21a   : > { %31207 = vmatpush3.msra.mxu1 %v2142_v52  ;;  %31212 = vmatpush3.msra.mxu0 %v2139_v43 }
 0x21b   : > { %31213 = vmatprep.mubr.f32.mxu0 %v35688_v41  ;;  %31216 = vmatprep.subr.mxu1 %v35683_v40 }
 0x21c   : > { %31214 = vmatmul.mubr.f32.vlgmr.msra.gmra.mxu0 %v35693_v42  ;;  %31209 = vmatmul.mubr.f32.vlgmr.msra.gmra.mxu1 %v35678_v39 }
 0x21d   : > { %31221 = vmatprep.subr.mxu0 %v2140_v46  ;;  %31217 = vmatpush3.msra.mxu1 %v35683_v40 }
 0x21e   : > { %31218 = vmatprep.mubr.f32.mxu1 %v35703_v44  ;;  %31222 = vmatpush3.msra.mxu0 %v2140_v46 }
 0x21f   : > { %31223 = vmatprep.mubr.f32.mxu0 %v35674_v38  ;;  %31226 = vmatprep.subr.mxu1 %v35683_v40 }
 0x220   : > { %31224 = vmatmul.mubr.f32.vlgmr.msra.gmra.mxu0 %v35678_v39  ;;  %31219 = vmatmul.mubr.f32.vlgmr.msra.gmra.mxu1 %v35708_v45 }
 0x221   : > { %31231 = vmatprep.subr.mxu0 %v35080_v0  ;;  %31227 = vmatpush3.msra.mxu1 %v35683_v40 }
 0x222   : > { %31228 = vmatprep.mubr.f32.mxu1 %v35674_v38  ;;  %31235 = vmatprep.mubr.msk.f32.mxu0 %vm35081_vm0, %v35080_v0 }
 0x223   : > { %31238 = vmatprep.subr.mxu1 %v35080_v0 }
 0x224   : > { %31229 = vmatmul.mubr.f32.vlgmr.msra.gmra.mxu1 %v35678_v39 }
 0x225   : > { %31242 = vmatprep.mubr.msk.f32.mxu1 %vm35081_vm0, %v35080_v0 }
 0x2be   : > { %v1594_v53 = vpop.f32.mrf.mxu0 }
 0x2bf   : > { %v1595_v59 = vadd.f32 %v29912_v56, %v1594_v53 }
 0x2c0   : > { %v31145_v54 = vpop.f32.mrf.mxu0 }
 0x2c6   : > { %v1685_v55 = vpop.f32.mrf.mxu1 }
 0x2c7   : > { %v1686_v61 = vadd.f32 %v1685_v55, %v1595_v59 }
 0x2c8   : > { %v31156_v57 = vpop.f32.mrf.mxu1 }
 0x2c9   : > { %v1765_v58 = vpop.f32.mrf.mxu0 }
 0x2ca   : > { %v1766_v1 = vadd.f32 %v1765_v58, %v1686_v61 }
 0x2cb   : > { %v31167_v60 = vpop.f32.mrf.mxu0 }
 0x2cf   : > { %v1842_v62 = vpop.f32.mrf.mxu1 }
 0x2d0   : > { %v1843_v3 = vadd.f32 %v1842_v62, %v1766_v1 }
 0x2d1   : > { %v31178_v63 = vpop.f32.mrf.mxu1 }
 0x2d2   : > { %v1925_v2 = vpop.f32.mrf.mxu0 }
 0x2d3   : > { %v1926_v7 = vadd.f32 %v1925_v2, %v1843_v3 }
 0x2d4   : > { %v31189_v4 = vpop.f32.mrf.mxu0 }
 0x2d7   : > { %v31205_v5 = vpop.f32.mrf.mxu0 }
 0x2d8   : > { %v2000_v8 = vpop.f32.mrf.mxu1  ;;  %v2104_v11 = vadd.f32 %v31205_v5, %v29913_v6 }
 0x2d9   : > { %v2093_v9 = vpop.f32.mrf.mxu0  ;;  %v35769_v10 = vadd.f32 %v2000_v8, %v1926_v7 }
 0x2da   : > { %v31200_v12 = vpop.f32.mrf.mxu1  ;;  %v2094_v16 = vadd.f32 %v29913_v6, %v2093_v9 }
 0x2db   : > { %2511 = vrot.lane.b32.xlu1 %v35769_v10, %s35082_s18  ;;  %v2535_v14 = vsel %vm2534_vm4, %v35769_v10, 0 }
 0x2dc   : > { %v31215_v13 = vpop.f32.mrf.mxu0  ;;  %v31210_v15 = vpop.f32.mrf.mxu1  ;;  %v35775_v20 = vand.u32 4294901760, %v2535_v14 }
 0x2dd   : > { %v2186_v17 = vadd.f32 %v31210_v15, %v2104_v11 }
 0x2de   : > { %v2259_v18 = vpop.f32.mrf.mxu0  ;;  %v2179_v19 = vpop.f32.mrf.mxu1  ;;  %v2609_v30 = vsub.f32 %v2535_v14, %v35775_v20 }
 0x2df   : > { %v2267_v21 = vadd.f32 %v31215_v13, %v2186_v17  ;;  %v2180_v22 = vadd.f32 %v2179_v19, %v2094_v16 }
 0x2e0   : > { %v31220_v23 = vpop.f32.mrf.mxu1  ;;  %v31225_v24 = vpop.f32.mrf.mxu0  ;;  %v2610_v40 = vand.u32 4294901760, %v2609_v30 }
 0x2e1   : > { %v2260_v25 = vadd.f32 %v2259_v18, %v2180_v22  ;;  %v2349_v26 = vadd.f32 %v31220_v23, %v2267_v21 }
 0x2e2   : > { %v2340_v27 = vpop.f32.mrf.mxu1  ;;  %v2422_v31 = vpop.f32.mrf.mxu0  ;;  %v2611_v49 = vsub.f32 %v2609_v30, %v2610_v40 }
 0x2e3   : > { %v2429_v28 = vadd.f32 %v31225_v24, %v2349_v26  ;;  %v2341_v29 = vadd.f32 %v2340_v27, %v2260_v25 }
 0x2e4   : > { %v31230_v32 = vpop.f32.mrf.mxu1  ;;  %v2612_v56 = vand.u32 4294901760, %v2611_v49 }
 0x2e5   : > { %v2423_v33 = vadd.f32 %v2422_v31, %v2341_v29  ;;  %v35778_v34 = vadd.f32 %v31230_v32, %v2429_v28 }
 0x2e6   : > { %v2500_v35 = vpop.f32.mrf.mxu1 }
 0x2e7   : > { %v35780_v36 = vadd.f32 %v2500_v35, %v2423_v33  ;;  %2528 = vrot.lane.b32.xlu1 %v35778_v34, %s35083_s25  ;;  %2524 = vrot.lane.b32.xlu0 %v35778_v34, %s35082_s18  ;;  %v2539_v37 = vsel %vm2534_vm4, %v35778_v34, 0 }
 0x2e8   : > { %v2570_v43 = vand.u32 4294901760, %v2539_v37 }
 0x2e9   : > { %v2537_v46 = vsel %vm2534_vm4, %v35780_v36, 0 }
 0x2ea   : > { %31232 = vmatpush3.xpose.msra.mxu0 %v2570_v43  ;;  %v2648_v47 = vsub.f32 %v2539_v37, %v2570_v43  ;;  %v2573_v48 = vand.u32 4294901760, %v2537_v46 }
 0x2eb   : > { %2514 = vrot.lane.b32.xlu1 %v35769_v10, %s35083_s25  ;;  %2522 = vrot.lane.b32.xlu0 %v35780_v36, %s35082_s18 }
 0x2ec   : > { %31233 = vmatprep.subr.mxu0 %v35080_v0  ;;  %v2655_v52 = vsub.f32 %v2537_v46, %v2573_v48  ;;  %v2649_v53 = vand.u32 4294901760, %v2648_v47 }
 0x2ee   : > { %31234 = vmatpush3.xpose.msra.mxu0 %v2573_v48  ;;  %v2650_v54 = vsub.f32 %v2648_v47, %v2649_v53  ;;  %v2656_v55 = vand.u32 4294901760, %v2655_v52 }
 0x2ef   : > { %2530 = vrot.lane.b32.xlu1 %v35780_v36, %s35084_s11  ;;  %2526 = vrot.lane.b32.xlu0 %v35780_v36, %s35083_s25 }
 0x2f0   : > { %31245 = vmatprep.subr.mxu0 %v35080_v0  ;;  %v2651_v57 = vand.u32 4294901760, %v2650_v54  ;;  %v2657_v58 = vsub.f32 %v2655_v52, %v2656_v55 }
 0x2f1   : > { %31236 = vmatmul.mubr.f32.vlgmr.msra.gmra.mxu0 %v2612_v56 }
 0x2f2   : > { %31239 = vmatpush3.xpose.msra.mxu1 %v2651_v57  ;;  %31246 = vmatpush3.xpose.msra.mxu0 %v2648_v47  ;;  %v2658_v59 = vand.u32 4294901760, %v2657_v58 }
 0x2f3   : > { %2532 = vrot.lane.b32.xlu0 %v35778_v34, %s35084_s11  ;;  %31240 = vmatprep.subr.mxu1 %v35080_v0 }
 0x2f4   : > { %31247 = vmatprep.subr.mxu0 %v35080_v0  ;;  %31249 = vmatprep.mubr.msk.f32.mxu0 %vm35081_vm0, %v35080_v0 }
 0x2f6   : > { %31241 = vmatpush3.xpose.msra.mxu1 %v2658_v59  ;;  %31248 = vmatpush3.xpose.msra.mxu0 %v2655_v52 }
 0x2f7   : > { %2517 = vrot.lane.b32.xlu0 %v35769_v10, %s35084_s11  ;;  %31252 = vmatprep.subr.mxu1 %v35080_v0 }
 0x2f8   : > { %31259 = vmatprep.subr.mxu0 %v35080_v0 }
 0x2f9   : > { %31243 = vmatmul.mubr.f32.vlgmr.msra.gmra.mxu1 %v35775_v20  ;;  %31250 = vmatmul.mubr.f32.vlgmr.msra.gmra.mxu0 %v2609_v30 }
 0x2fa   : > { %31253 = vmatpush3.xpose.msra.mxu1 %v2570_v43  ;;  %31260 = vmatpush3.xpose.msra.mxu0 %v2649_v53 }
 0x2fb   : > { %31254 = vmatprep.subr.mxu1 %v35080_v0  ;;  %31261 = vmatprep.subr.mxu0 %v35080_v0 }
 0x2fc   : > { %31256 = vmatprep.mubr.msk.f32.mxu1 %vm35081_vm0, %v35080_v0  ;;  %31263 = vmatprep.mubr.msk.f32.mxu0 %vm35081_vm0, %v35080_v0 }
 0x2fe   : > { %31255 = vmatpush3.xpose.msra.mxu1 %v2573_v48  ;;  %31262 = vmatpush3.xpose.msra.mxu0 %v2656_v55 }
 0x2ff   : > { %31266 = vmatprep.subr.mxu1 %v35080_v0  ;;  %31273 = vmatprep.subr.mxu0 %v35080_v0 }
 0x301   : > { %31257 = vmatmul.mubr.f32.vlgmr.msra.gmra.mxu1 %v2610_v40  ;;  %31264 = vmatmul.mubr.f32.vlgmr.msra.gmra.mxu0 %v35775_v20 }
 0x302   : > { %31267 = vmatpush3.xpose.msra.mxu1 %v2570_v43  ;;  %31270 = vmatprep.mubr.msk.f32.mxu1 %vm35081_vm0, %v35080_v0 }
 0x303   : > { %31268 = vmatprep.subr.mxu1 %v35080_v0  ;;  %31277 = vmatprep.mubr.msk.f32.mxu0 %vm35081_vm0, %v35080_v0 }
 0x306   : > { %31269 = vmatpush3.xpose.msra.mxu1 %v2573_v48 }
 0x307   : > { %31280 = vmatprep.subr.mxu1 %v35080_v0 }
 0x309   : > { %31271 = vmatmul.mubr.f32.vlgmr.msra.gmra.mxu1 %v35775_v20 }
 0x30a   : > { %31284 = vmatprep.mubr.msk.f32.mxu1 %vm35081_vm0, %v35080_v0 }
 0x34d   : > { %v35829_v60 = vpop.permute.xlu1 %2511 }
 0x34e   : > { %v3000_v61 = vsel %vm2534_vm4, %v35829_v60, 0 }
 0x34f   : > { %v35833_v62 = vand.u32 4294901760, %v3000_v61 }
 0x351   : > { %v3074_v63 = vsub.f32 %v3000_v61, %v35833_v62 }
 0x353   : > { %v3075_v2 = vand.u32 4294901760, %v3074_v63 }
 0x355   : > { %v3076_v9 = vsub.f32 %v3074_v63, %v3075_v2 }
 0x357   : > { %v3077_v15 = vand.u32 4294901760, %v3076_v9 }
 0x359   : > { %v35836_v1 = vpop.permute.xlu0 %2524  ;;  %v35842_v7 = vpop.permute.xlu1 %2528 }
 0x35a   : > { %v3004_v3 = vsel %vm2534_vm4, %v35836_v1, 0  ;;  %v3469_v22 = vsel %vm2534_vm4, %v35842_v7, 0 }
 0x35b   : > { %v3035_v4 = vand.u32 4294901760, %v3004_v3  ;;  %v35864_v25 = vand.u32 4294901760, %v3469_v22 }
 0x35d   : > { %v3113_v5 = vsub.f32 %v3004_v3, %v3035_v4  ;;  %v35840_v6 = vpop.permute.xlu0 %2522  ;;  %31274 = vmatpush3.xpose.msra.mxu0 %v3035_v4  ;;  %v35848_v17 = vpop.permute.xlu1 %2514  ;;  %v3578_v28 = vsub.f32 %v3469_v22, %v35864_v25 }
 0x35e   : > { %v3002_v8 = vsel %vm2534_vm4, %v35840_v6, 0  ;;  %31275 = vmatprep.subr.mxu0 %v35080_v0  ;;  %v3465_v20 = vsel %vm2534_vm4, %v35848_v17, 0 }
 0x35f   : > { %v3114_v11 = vand.u32 4294901760, %v3113_v5  ;;  %v3038_v12 = vand.u32 4294901760, %v3002_v8  ;;  %v35858_v23 = vand.u32 4294901760, %v3465_v20  ;;  %v3579_v31 = vand.u32 4294901760, %v3578_v28 }
 0x361   : > { %v3120_v13 = vsub.f32 %v3002_v8, %v3038_v12  ;;  %31276 = vmatpush3.xpose.msra.mxu0 %v3038_v12  ;;  %v3115_v14 = vsub.f32 %v3113_v5, %v3114_v11  ;;  %v35860_v24 = vpop.permute.xlu0 %2526  ;;  %v35870_v27 = vsub.f32 %v3465_v20, %v35858_v23  ;;  %v3580_v40 = vsub.f32 %v3578_v28, %v3579_v31  ;;  %v35914_v54 = vpop.permute.xlu1 %2530 }
 0x362   : > { %31287 = vmatprep.subr.mxu0 %v35080_v0  ;;  %v3467_v26 = vsel %vm2534_vm4, %v35860_v24, 0  ;;  %v3932_v57 = vsel %vm2534_vm4, %v35914_v54, 0 }
 0x363   : > { %v3121_v16 = vand.u32 4294901760, %v3120_v13  ;;  %v3116_v18 = vand.u32 4294901760, %v3115_v14  ;;  %v35877_v29 = vand.u32 4294901760, %v3467_v26  ;;  %v3540_v30 = vand.u32 4294901760, %v35870_v27 }
 0x364   : > { %31278 = vmatmul.mubr.f32.vlgmr.msra.gmra.mxu0 %v3077_v15  ;;  %v3581_v47 = vand.u32 4294901760, %v3580_v40  ;;  %v3968_v59 = vand.u32 4294901760, %v3932_v57 }
 0x365   : > { %31288 = vmatpush3.xpose.msra.mxu0 %v3113_v5  ;;  %v3122_v19 = vsub.f32 %v3120_v13, %v3121_v16  ;;  %31291 = vmatprep.mubr.msk.f32.mxu0 %vm35081_vm0, %v35080_v0  ;;  %v3585_v32 = vsub.f32 %v3467_v26, %v35877_v29  ;;  %v35887_v33 = vpop.permute.xlu0 %2532  ;;  %v3541_v35 = vsub.f32 %v35870_v27, %v3540_v30 }
 0x366   : > { %31281 = vmatpush3.xpose.msra.mxu1 %v3116_v18  ;;  %31289 = vmatprep.subr.mxu0 %v35080_v0  ;;  %v3934_v53 = vsel %vm2534_vm4, %v35887_v33, 0 }
 0x367   : > { %31282 = vmatprep.subr.mxu1 %v35080_v0  ;;  %v3123_v21 = vand.u32 4294901760, %v3122_v19  ;;  %v3586_v37 = vand.u32 4294901760, %v3585_v32  ;;  %v3542_v43 = vand.u32 4294901760, %v3541_v35  ;;  %v35920_v56 = vand.u32 4294901760, %v3934_v53 }
 0x369   : > { %31290 = vmatpush3.xpose.msra.mxu0 %v3120_v13  ;;  %v35901_v46 = vpop.permute.xlu0 %2517  ;;  %v3587_v48 = vsub.f32 %v3585_v32, %v3586_v37  ;;  %v4043_v61 = vsub.f32 %v3934_v53, %v35920_v56 }
 0x36a   : > { %31283 = vmatpush3.xpose.msra.mxu1 %v3123_v21  ;;  %31301 = vmatprep.subr.mxu0 %v35080_v0  ;;  %v3930_v49 = vsel %vm2534_vm4, %v35901_v46, 0 }
 0x36b   : > { %31294 = vmatprep.subr.mxu1 %v35080_v0  ;;  %v3588_v52 = vand.u32 4294901760, %v3587_v48  ;;  %v35916_v55 = vand.u32 4294901760, %v3930_v49 }
 0x36c   : > { %31292 = vmatmul.mubr.f32.vlgmr.msra.gmra.mxu0 %v3074_v63  ;;  %v4050_v63 = vsub.f32 %v3932_v57, %v3968_v59 }
 0x36d   : > { %31285 = vmatmul.mubr.f32.vlgmr.msra.gmra.mxu1 %v35833_v62  ;;  %31302 = vmatpush3.xpose.msra.mxu0 %v3114_v11  ;;  %v4004_v58 = vsub.f32 %v3930_v49, %v35916_v55 }
 0x36e   : > { %31295 = vmatpush3.xpose.msra.mxu1 %v3035_v4  ;;  %31303 = vmatprep.subr.mxu0 %v35080_v0 }
 0x36f   : > { %31296 = vmatprep.subr.mxu1 %v35080_v0  ;;  %31298 = vmatprep.mubr.msk.f32.mxu1 %vm35081_vm0, %v35080_v0 }
 0x370   : > { %31305 = vmatprep.mubr.msk.f32.mxu0 %vm35081_vm0, %v35080_v0 }
 0x371   : > { %31304 = vmatpush3.xpose.msra.mxu0 %v3121_v16 }
 0x372   : > { %31297 = vmatpush3.xpose.msra.mxu1 %v3038_v12  ;;  %31315 = vmatprep.subr.mxu0 %v35080_v0 }
 0x373   : > { %31308 = vmatprep.subr.mxu1 %v35080_v0 }
 0x374   : > { %31306 = vmatmul.mubr.f32.vlgmr.msra.gmra.mxu0 %v35833_v62 }
 0x375   : > { %31299 = vmatmul.mubr.f32.vlgmr.msra.gmra.mxu1 %v3075_v2  ;;  %31316 = vmatpush3.xpose.msra.mxu0 %v35864_v25  ;;  %v4044_v2 = vand.u32 4294901760, %v4043_v61 }
 0x376   : > { %31309 = vmatpush3.xpose.msra.mxu1 %v3035_v4  ;;  %31317 = vmatprep.subr.mxu0 %v35080_v0  ;;  %v4051_v4 = vand.u32 4294901760, %v4050_v63 }
 0x377   : > { %31310 = vmatprep.subr.mxu1 %v35080_v0  ;;  %31312 = vmatprep.mubr.msk.f32.mxu1 %vm35081_vm0, %v35080_v0  ;;  %v4045_v5 = vsub.f32 %v4043_v61, %v4044_v2 }
 0x378   : > { %31319 = vmatprep.mubr.msk.f32.mxu0 %vm35081_vm0, %v35080_v0  ;;  %v4052_v11 = vsub.f32 %v4050_v63, %v4051_v4 }
 0x379   : > { %31318 = vmatpush3.xpose.msra.mxu0 %v35877_v29  ;;  %v4046_v9 = vand.u32 4294901760, %v4045_v5 }
 0x37a   : > { %31311 = vmatpush3.xpose.msra.mxu1 %v3038_v12  ;;  %31329 = vmatprep.subr.mxu0 %v35080_v0  ;;  %v4053_v12 = vand.u32 4294901760, %v4052_v11 }
 0x37b   : > { %31322 = vmatprep.subr.mxu1 %v35080_v0 }
 0x37c   : > { %31320 = vmatmul.mubr.f32.vlgmr.msra.gmra.mxu0 %v3542_v43 }
 0x37d   : > { %31313 = vmatmul.mubr.f32.vlgmr.msra.gmra.mxu1 %v35833_v62  ;;  %31330 = vmatpush3.xpose.msra.mxu0 %v3578_v28  ;;  %v4005_v62 = vand.u32 4294901760, %v4004_v58 }
 0x37e   : > { %31323 = vmatpush3.xpose.msra.mxu1 %v3581_v47  ;;  %31331 = vmatprep.subr.mxu0 %v35080_v0 }
 0x37f   : > { %31324 = vmatprep.subr.mxu1 %v35080_v0  ;;  %31326 = vmatprep.mubr.msk.f32.mxu1 %vm35081_vm0, %v35080_v0  ;;  %v4006_v3 = vsub.f32 %v4004_v58, %v4005_v62 }
 0x380   : > { %31333 = vmatprep.mubr.msk.f32.mxu0 %vm35081_vm0, %v35080_v0 }
 0x381   : > { %31332 = vmatpush3.xpose.msra.mxu0 %v3585_v32  ;;  %v4007_v8 = vand.u32 4294901760, %v4006_v3 }
 0x382   : > { %31325 = vmatpush3.xpose.msra.mxu1 %v3588_v52  ;;  %31343 = vmatprep.subr.mxu0 %v35080_v0 }
 0x383   : > { %31336 = vmatprep.subr.mxu1 %v35080_v0 }
 0x384   : > { %31334 = vmatmul.mubr.f32.vlgmr.msra.gmra.mxu0 %v35870_v27 }
 0x385   : > { %31327 = vmatmul.mubr.f32.vlgmr.msra.gmra.mxu1 %v35858_v23  ;;  %31344 = vmatpush3.xpose.msra.mxu0 %v3579_v31 }
 0x386   : > { %31337 = vmatpush3.xpose.msra.mxu1 %v35864_v25  ;;  %31345 = vmatprep.subr.mxu0 %v35080_v0 }
 0x387   : > { %31338 = vmatprep.subr.mxu1 %v35080_v0  ;;  %31340 = vmatprep.mubr.msk.f32.mxu1 %vm35081_vm0, %v35080_v0 }
 0x388   : > { %31347 = vmatprep.mubr.msk.f32.mxu0 %vm35081_vm0, %v35080_v0 }
 0x389   : > { %31346 = vmatpush3.xpose.msra.mxu0 %v3586_v37 }
 0x38a   : > { %31339 = vmatpush3.xpose.msra.mxu1 %v35877_v29  ;;  %31357 = vmatprep.subr.mxu0 %v35080_v0 }
 0x38b   : > { %31350 = vmatprep.subr.mxu1 %v35080_v0 }
 0x38c   : > { %31348 = vmatmul.mubr.f32.vlgmr.msra.gmra.mxu0 %v35858_v23 }
 0x38d   : > { %31341 = vmatmul.mubr.f32.vlgmr.msra.gmra.mxu1 %v3540_v30  ;;  %31358 = vmatpush3.xpose.msra.mxu0 %v35920_v56 }
 0x38e   : > { %31351 = vmatpush3.xpose.msra.mxu1 %v35864_v25  ;;  %31359 = vmatprep.subr.mxu0 %v35080_v0 }
 0x38f   : > { %31352 = vmatprep.subr.mxu1 %v35080_v0  ;;  %31354 = vmatprep.mubr.msk.f32.mxu1 %vm35081_vm0, %v35080_v0 }
 0x390   : > { %31361 = vmatprep.mubr.msk.f32.mxu0 %vm35081_vm0, %v35080_v0 }
 0x391   : > { %31360 = vmatpush3.xpose.msra.mxu0 %v3968_v59 }
 0x392   : > { %31353 = vmatpush3.xpose.msra.mxu1 %v35877_v29  ;;  %31371 = vmatprep.subr.mxu0 %v35080_v0 }
 0x393   : > { %31364 = vmatprep.subr.mxu1 %v35080_v0 }
 0x394   : > { %31362 = vmatmul.mubr.f32.vlgmr.msra.gmra.mxu0 %v4007_v8 }
 0x395   : > { %31355 = vmatmul.mubr.f32.vlgmr.msra.gmra.mxu1 %v35858_v23  ;;  %31372 = vmatpush3.xpose.msra.mxu0 %v4043_v61 }
 0x396   : > { %31365 = vmatpush3.xpose.msra.mxu1 %v4046_v9  ;;  %31373 = vmatprep.subr.mxu0 %v35080_v0 }
 0x397   : > { %31366 = vmatprep.subr.mxu1 %v35080_v0  ;;  %31368 = vmatprep.mubr.msk.f32.mxu1 %vm35081_vm0, %v35080_v0 }
 0x398   : > { %31375 = vmatprep.mubr.msk.f32.mxu0 %vm35081_vm0, %v35080_v0 }
 0x399   : > { %31374 = vmatpush3.xpose.msra.mxu0 %v4050_v63 }
 0x39a   : > { %31367 = vmatpush3.xpose.msra.mxu1 %v4053_v12  ;;  %31385 = vmatprep.subr.mxu0 %v35080_v0 }
 0x39b   : > { %31378 = vmatprep.subr.mxu1 %v35080_v0 }
 0x39c   : > { %31376 = vmatmul.mubr.f32.vlgmr.msra.gmra.mxu0 %v4004_v58 }
 0x39d   : > { %31369 = vmatmul.mubr.f32.vlgmr.msra.gmra.mxu1 %v35916_v55  ;;  %31386 = vmatpush3.xpose.msra.mxu0 %v4044_v2 }
 0x39e   : > { %31379 = vmatpush3.xpose.msra.mxu1 %v35920_v56  ;;  %31387 = vmatprep.subr.mxu0 %v35080_v0 }
 0x39f   : > { %31380 = vmatprep.subr.mxu1 %v35080_v0  ;;  %31382 = vmatprep.mubr.msk.f32.mxu1 %vm35081_vm0, %v35080_v0 }
 0x3a0   : > { %31389 = vmatprep.mubr.msk.f32.mxu0 %vm35081_vm0, %v35080_v0 }
 0x3a1   : > { %31388 = vmatpush3.xpose.msra.mxu0 %v4051_v4 }
 0x3a2   : > { %31381 = vmatpush3.xpose.msra.mxu1 %v3968_v59  ;;  %31399 = vmatprep.subr.mxu0 %v35080_v0 }
 0x3a3   : > { %31392 = vmatprep.subr.mxu1 %v35080_v0 }
 0x3a4   : > { %31390 = vmatmul.mubr.f32.vlgmr.msra.gmra.mxu0 %v35916_v55 }
 0x3a5   : > { %31383 = vmatmul.mubr.f32.vlgmr.msra.gmra.mxu1 %v4005_v62  ;;  %31403 = vmatprep.mubr.msk.f32.mxu0 %vm35081_vm0, %v35080_v0 }
 0x3a6   : > { %31393 = vmatpush3.xpose.msra.mxu1 %v35920_v56  ;;  %31396 = vmatprep.mubr.msk.f32.mxu1 %vm35081_vm0, %v35080_v0 }
 0x3a7   : > { %31394 = vmatprep.subr.mxu1 %v35080_v0 }
 0x3aa   : > { %31395 = vmatpush3.xpose.msra.mxu1 %v3968_v59 }
 0x3ab   : > { %31406 = vmatprep.subr.mxu1 %v35080_v0 }
 0x3ad   : > { %31397 = vmatmul.mubr.f32.vlgmr.msra.gmra.mxu1 %v35916_v55 }
 0x3ae   : > { %31410 = vmatprep.mubr.msk.f32.mxu1 %vm35081_vm0, %v35080_v0 }
 0x3b1   : > { %v2614_v13 = vpop.f32.mrf.mxu0 }
 0x3b3   : > { %v31237_v14 = vpop.f32.mrf.mxu0 }
 0x3b9   : > { %v2695_v15 = vpop.f32.mrf.mxu1  ;;  %v2771_v16 = vpop.f32.mrf.mxu0 }
 0x3ba   : > { %v2696_v20 = vadd.f32 %v2695_v15, %v2614_v13 }
 0x3bb   : > { %v31244_v18 = vpop.f32.mrf.mxu1  ;;  %v31251_v19 = vpop.f32.mrf.mxu0 }
 0x3bc   : > { %v2772_v23 = vadd.f32 %v2771_v16, %v2696_v20 }
 0x3c1   : > { %v2846_v21 = vpop.f32.mrf.mxu1  ;;  %v2923_v22 = vpop.f32.mrf.mxu0 }
 0x3c2   : > { %v2847_v27 = vadd.f32 %v2846_v21, %v2772_v23 }
 0x3c3   : > { %v31258_v25 = vpop.f32.mrf.mxu1  ;;  %v31265_v26 = vpop.f32.mrf.mxu0 }
 0x3c4   : > { %v2924_v28 = vadd.f32 %v2923_v22, %v2847_v27 }
 0x3c9   : > { %v2996_v29 = vpop.f32.mrf.mxu1 }
 0x3ca   : > { %v2997_v30 = vadd.f32 %v2996_v29, %v2924_v28 }
 0x3cb   : > { %v31272_v31 = vpop.f32.mrf.mxu1 }
 0x3cc   : > { %v4395_v32 = vmul.f32 0.17677669, %v2997_v30 }
 0x3ce   : > { %v4400_v35 = vsel %vm4399_vm5, %v4395_v32, -inf }
 0x3cf   : > { %4401 = vmax.xlane.f32.xlu1 %v4400_v35 }
 0x424   : > { %v3079_v37 = vpop.f32.mrf.mxu0 }
 0x426   : > { %v31279_v40 = vpop.f32.mrf.mxu0 }
 0x42c   : > { %v3236_v43 = vpop.f32.mrf.mxu0 }
 0x42d   : > { %v3160_v47 = vpop.f32.mrf.mxu1 }
 0x42e   : > { %v31293_v48 = vpop.f32.mrf.mxu0  ;;  %v3161_v52 = vadd.f32 %v3160_v47, %v3079_v37 }
 0x42f   : > { %v31286_v49 = vpop.f32.mrf.mxu1 }
 0x430   : > { %v3237_v56 = vadd.f32 %v3236_v43, %v3161_v52 }
 0x434   : > { %v3388_v53 = vpop.f32.mrf.mxu0 }
 0x435   : > { %v3311_v55 = vpop.f32.mrf.mxu1 }
 0x436   : > { %v31307_v57 = vpop.f32.mrf.mxu0  ;;  %v3312_v59 = vadd.f32 %v3311_v55, %v3237_v56 }
 0x437   : > { %v31300_v58 = vpop.f32.mrf.mxu1 }
 0x438   : > { %v3389_v61 = vadd.f32 %v3388_v53, %v3312_v59 }
 0x43c   : > { %v3544_v62 = vpop.f32.mrf.mxu0 }
 0x43d   : > { %v3461_v63 = vpop.f32.mrf.mxu1 }
 0x43e   : > { %v3462_v2 = vadd.f32 %v3461_v63, %v3389_v61  ;;  %v31321_v3 = vpop.f32.mrf.mxu0 }
 0x43f   : > { %v31314_v4 = vpop.f32.mrf.mxu1 }
 0x440   : > { %v4396_v5 = vmul.f32 0.17677669, %v3462_v2 }
 0x442   : > { %v4403_v8 = vsel %vm4399_vm5, %v4396_v5, -inf }
 0x443   : > { %4404 = vmax.xlane.f32.xlu0 %v4403_v8 }
 0x444   : > { %v3701_v9 = vpop.f32.mrf.mxu0 }
 0x445   : > { %v3625_v11 = vpop.f32.mrf.mxu1 }
 0x446   : > { %v31335_v12 = vpop.f32.mrf.mxu0  ;;  %v3626_v14 = vadd.f32 %v3625_v11, %v3544_v62 }
 0x447   : > { %v31328_v13 = vpop.f32.mrf.mxu1 }
 0x448   : > { %v3702_v18 = vadd.f32 %v3701_v9, %v3626_v14 }
 0x44c   : > { %v3853_v15 = vpop.f32.mrf.mxu0 }
 0x44d   : > { %v3776_v16 = vpop.f32.mrf.mxu1 }
 0x44e   : > { %v31349_v19 = vpop.f32.mrf.mxu0  ;;  %v3777_v21 = vadd.f32 %v3776_v16, %v3702_v18 }
 0x44f   : > { %v31342_v20 = vpop.f32.mrf.mxu1 }
 0x450   : > { %v3854_v22 = vadd.f32 %v3853_v15, %v3777_v21 }
 0x454   : > { %v4009_v23 = vpop.f32.mrf.mxu0 }
 0x455   : > { %v3926_v25 = vpop.f32.mrf.mxu1 }
 0x456   : > { %v3927_v26 = vadd.f32 %v3926_v25, %v3854_v22  ;;  %v31363_v27 = vpop.f32.mrf.mxu0 }
 0x457   : > { %v31356_v28 = vpop.f32.mrf.mxu1 }
 0x458   : > { %v4397_v29 = vmul.f32 0.17677669, %v3927_v26  ;;  %v4402_v30 = vpop.xlane.xlu1 %4401 }
 0x459   : > { %v4412_v31 = vsub.f32 %v4395_v32, %v4402_v30 }
 0x45a   : > { %v4406_v35 = vsel %vm4399_vm5, %v4397_v29, -inf }
 0x45b   : > { %v4416_v37 = vmul.f32 1.442695, %v4412_v31  ;;  %4407 = vmax.xlane.f32.xlu0 %v4406_v35 }
 0x45c   : > { %v4166_v40 = vpop.f32.mrf.mxu0 }
 0x45d   : > { %33994 = vpow2.f32 %v4416_v37  ;;  %v4090_v43 = vpop.f32.mrf.mxu1 }
 0x45e   : > { %v31377_v47 = vpop.f32.mrf.mxu0  ;;  %v4091_v49 = vadd.f32 %v4090_v43, %v4009_v23 }
 0x45f   : > { %v31370_v48 = vpop.f32.mrf.mxu1 }
 0x460   : > { %v4167_v55 = vadd.f32 %v4166_v40, %v4091_v49 }
 0x464   : > { %v4318_v52 = vpop.f32.mrf.mxu0 }
 0x465   : > { %v4241_v53 = vpop.f32.mrf.mxu1 }
 0x466   : > { %v31391_v56 = vpop.f32.mrf.mxu0  ;;  %v4242_v58 = vadd.f32 %v4241_v53, %v4167_v55 }
 0x467   : > { %v31384_v57 = vpop.f32.mrf.mxu1 }
 0x468   : > { %v4319_v32 = vadd.f32 %v4318_v52, %v4242_v58 }
 0x46a   : > { %v33995_v59 = vpop.eup %33994 }
 0x46b   : > { %v4424_v61 = vsel %vm4399_vm5, %v33995_v59, 0.0 }
 0x46c   : > { %4425 = vadd.xlane.f32.xlu0 %v4424_v61 }
 0x46d   : > { %v4391_v62 = vpop.f32.mrf.mxu1 }
 0x46e   : > { %v4392_v63 = vadd.f32 %v4391_v62, %v4319_v32 }
 0x46f   : > { %v31398_v2 = vpop.f32.mrf.mxu1 }
 0x470   : > { %v4398_v3 = vmul.f32 0.17677669, %v4392_v63 }
 0x472   : > { %v4409_v4 = vsel %vm4399_vm5, %v4398_v3, -inf }
 0x473   : > { %4410 = vmax.xlane.f32.xlu1 %v4409_v4 }
 0x482   : > { %4444 = vrot.lane.b32.xlu0 %v35780_v36, %s35085_s6 }
 0x4cc   : > { %v4405_v8 = vpop.xlane.xlu0 %4404 }
 0x4cd   : > { %v4413_v9 = vsub.f32 %v4396_v5, %v4405_v8 }
 0x4cf   : > { %v4418_v11 = vmul.f32 1.442695, %v4413_v9 }
 0x4d1   : > { %33996 = vpow2.f32 %v4418_v11 }
 0x4de   : > { %v33997_v12 = vpop.eup %33996 }
 0x4df   : > { %v4427_v13 = vsel %vm4399_vm5, %v33997_v12, 0.0 }
 0x4e0   : > { %4428 = vadd.xlane.f32.xlu1 %v4427_v13 }
 0x4e4   : > { %v4408_v14 = vpop.xlane.xlu0 %4407 }
 0x4e5   : > { %v4414_v15 = vsub.f32 %v4397_v29, %v4408_v14 }
 0x4e7   : > { %v4420_v16 = vmul.f32 1.442695, %v4414_v15 }
 0x4e9   : > { %33998 = vpow2.f32 %v4420_v16 }
 0x4f1   : > { %4446 = vrot.lane.b32.xlu1 %v35778_v34, %s35085_s6 }
 0x4f6   : > { %v35992_v18 = vpop.eup %33998 }
 0x4f7   : > { %v4430_v36 = vsel %vm4399_vm5, %v35992_v18, 0.0 }
 0x4f8   : > { %4431 = vadd.xlane.f32.xlu0 %v4430_v36 }
 0x4fc   : > { %v4411_v5 = vpop.xlane.xlu1 %4410 }
 0x4fd   : > { %v4415_v19 = vsub.f32 %v4398_v3, %v4411_v5 }
 0x4ff   : > { %v4422_v20 = vmul.f32 1.442695, %v4415_v19 }
 0x501   : > { %34000 = vpow2.f32 %v4422_v20 }
 0x50e   : > { %4914 = vrot.lane.b32.xlu0 %v35836_v1, %s35085_s6  ;;  %v35998_v21 = vpop.eup %34000  ;;  %v4426_v1 = vpop.xlane.xlu0 %4425 }
 0x50f   : > { %v4433_v34 = vsel %vm4399_vm5, %v35998_v21, 0.0  ;;  %34002 = vrcp.f32 %v4426_v1 }
 0x512   : > { %4912 = vrot.lane.b32.xlu0 %v35840_v6, %s35085_s6  ;;  %v4445_v26 = vpop.permute.xlu0 %4444 }
 0x513   : > { %v4485_v28 = vand.u32 4294901760, %v4445_v26 }
 0x515   : > { %4434 = vadd.xlane.f32.xlu1 %v4433_v34 }
 0x516   : > { %5382 = vrot.lane.b32.xlu0 %v35842_v7, %s35085_s6 }
 0x51a   : > { %5380 = vrot.lane.b32.xlu0 %v35860_v24, %s35085_s6  ;;  %v4567_v24 = vsub.f32 %v4445_v26, %v4485_v28 }
 0x51c   : > { %v34003_v22 = vpop.eup %34002  ;;  %v4568_v35 = vand.u32 4294901760, %v4567_v24 }
 0x51d   : > { %v4440_v6 = vmul.f32 %v34003_v22, %v33995_v59 }
 0x51e   : > { %5850 = vrot.lane.b32.xlu0 %v35887_v33, %s35085_s6  ;;  %v4569_v47 = vsub.f32 %v4567_v24, %v4568_v35 }
 0x51f   : > { %v4451_v23 = vsel %vm4399_vm5, %v4440_v6, 0 }
 0x520   : > { %v4520_v25 = vand.u32 4294901760, %v4451_v23  ;;  %v4570_v52 = vand.u32 4294901760, %v4569_v47 }
 0x522   : > { %5848 = vrot.lane.b32.xlu0 %v35914_v54, %s35085_s6  ;;  %v4521_v27 = vsub.f32 %v4451_v23, %v4520_v25 }
 0x524   : > { %v4522_v29 = vand.u32 4294901760, %v4521_v27 }
 0x526   : > { %v4523_v31 = vsub.f32 %v4521_v27, %v4522_v29 }
 0x528   : > { %v4524_v54 = vand.u32 4294901760, %v4523_v31 }
 0x569   : > { %v4429_v7 = vpop.xlane.xlu1 %4428 }
 0x56a   : > { %34004 = vrcp.f32 %v4429_v7 }
 0x56d   : > { %v4447_v30 = vpop.permute.xlu1 %4446 }
 0x56e   : > { %v4482_v33 = vand.u32 4294901760, %v4447_v30 }
 0x570   : > { %v4560_v37 = vsub.f32 %v4447_v30, %v4482_v33  ;;  %31400 = vmatpush3.msra.mxu0 %v4482_v33 }
 0x571   : > { %31401 = vmatprep.subr.mxu0 %v35080_v0 }
 0x572   : > { %v4561_v40 = vand.u32 4294901760, %v4560_v37  ;;  %31402 = vmatpush3.msra.mxu0 %v4485_v28 }
 0x573   : > { %31404 = vmatmul.mubr.f32.vlgmr.msra.gmra.mxu0 %v4524_v54  ;;  %31413 = vmatprep.subr.mxu0 %v35080_v0 }
 0x574   : > { %31414 = vmatpush3.msra.mxu0 %v4560_v37  ;;  %31417 = vmatprep.mubr.msk.f32.mxu0 %vm35081_vm0, %v35080_v0  ;;  %v4562_v43 = vsub.f32 %v4560_v37, %v4561_v40 }
 0x575   : > { %31415 = vmatprep.subr.mxu0 %v35080_v0 }
 0x576   : > { %31416 = vmatpush3.msra.mxu0 %v4567_v24  ;;  %v4563_v48 = vand.u32 4294901760, %v4562_v43 }
 0x577   : > { %v34005_v49 = vpop.eup %34004  ;;  %31418 = vmatmul.mubr.f32.vlgmr.msra.gmra.mxu0 %v4521_v27  ;;  %31427 = vmatprep.subr.mxu0 %v35080_v0 }
 0x578   : > { %31407 = vmatpush3.msra.mxu1 %v4563_v48  ;;  %31428 = vmatpush3.msra.mxu0 %v4561_v40  ;;  %v4441_v53 = vmul.f32 %v34005_v49, %v33997_v12 }
 0x579   : > { %31408 = vmatprep.subr.mxu1 %v35080_v0  ;;  %31429 = vmatprep.subr.mxu0 %v35080_v0 }
 0x57a   : > { %31409 = vmatpush3.msra.mxu1 %v4570_v52  ;;  %31430 = vmatpush3.msra.mxu0 %v4568_v35  ;;  %v4919_v55 = vsel %vm4399_vm5, %v4441_v53, 0 }
 0x57b   : > { %31431 = vmatprep.mubr.msk.f32.mxu0 %vm35081_vm0, %v35080_v0  ;;  %31411 = vmatmul.mubr.f32.vlgmr.msra.gmra.mxu1 %v4520_v25  ;;  %v36024_v56 = vand.u32 4294901760, %v4919_v55 }
 0x57c   : > { %31420 = vmatprep.subr.mxu1 %v35080_v0  ;;  %31432 = vmatmul.mubr.f32.vlgmr.msra.gmra.mxu0 %v4520_v25 }
 0x57d   : > { %31421 = vmatpush3.msra.mxu1 %v4482_v33  ;;  %31424 = vmatprep.mubr.msk.f32.mxu1 %vm35081_vm0, %v35080_v0  ;;  %v36034_v57 = vsub.f32 %v4919_v55, %v36024_v56 }
 0x57e   : > { %31422 = vmatprep.subr.mxu1 %v35080_v0  ;;  %31441 = vmatprep.subr.mxu0 %v35080_v0 }
 0x57f   : > { %31423 = vmatpush3.msra.mxu1 %v4485_v28  ;;  %31445 = vmatprep.mubr.msk.f32.mxu0 %vm35081_vm0, %v35080_v0  ;;  %v4990_v59 = vand.u32 4294901760, %v36034_v57 }
 0x580   : > { %31425 = vmatmul.mubr.f32.vlgmr.msra.gmra.mxu1 %v4522_v29  ;;  %31434 = vmatprep.subr.mxu1 %v35080_v0 }
 0x581   : > { %31435 = vmatpush3.msra.mxu1 %v4482_v33  ;;  %v4432_v58 = vpop.xlane.xlu0 %4431  ;;  %31438 = vmatprep.mubr.msk.f32.mxu1 %vm35081_vm0, %v35080_v0  ;;  %v4991_v62 = vsub.f32 %v36034_v57, %v4990_v59 }
 0x582   : > { %34006 = vrcp.f32 %v4432_v58  ;;  %31436 = vmatprep.subr.mxu1 %v35080_v0 }
 0x583   : > { %31437 = vmatpush3.msra.mxu1 %v4485_v28  ;;  %v4992_v8 = vand.u32 4294901760, %v4991_v62 }
 0x584   : > { %31439 = vmatmul.mubr.f32.vlgmr.msra.gmra.mxu1 %v4520_v25  ;;  %31448 = vmatprep.subr.mxu1 %v35080_v0 }
 0x585   : > { %v4915_v61 = vpop.permute.xlu0 %4914  ;;  %31452 = vmatprep.mubr.msk.f32.mxu1 %vm35081_vm0, %v35080_v0 }
 0x586   : > { %v4950_v32 = vand.u32 4294901760, %v4915_v61 }
 0x588   : > { %v5028_v63 = vsub.f32 %v4915_v61, %v4950_v32  ;;  %31442 = vmatpush3.msra.mxu0 %v4950_v32 }
 0x589   : > { %v4913_v2 = vpop.permute.xlu0 %4912  ;;  %31443 = vmatprep.subr.mxu0 %v35080_v0 }
 0x58a   : > { %v5029_v3 = vand.u32 4294901760, %v5028_v63  ;;  %v4953_v4 = vand.u32 4294901760, %v4913_v2 }
 0x58c   : > { %v5035_v9 = vsub.f32 %v4913_v2, %v4953_v4  ;;  %31444 = vmatpush3.msra.mxu0 %v4953_v4  ;;  %v5030_v11 = vsub.f32 %v5028_v63, %v5029_v3 }
 0x58d   : > { %v5383_v12 = vpop.permute.xlu0 %5382  ;;  %31446 = vmatmul.mubr.f32.vlgmr.msra.gmra.mxu0 %v4992_v8  ;;  %31455 = vmatprep.subr.mxu0 %v35080_v0 }
 0x58e   : > { %v5036_v13 = vand.u32 4294901760, %v5035_v9  ;;  %v36047_v14 = vand.u32 4294901760, %v5383_v12  ;;  %31456 = vmatpush3.msra.mxu0 %v5028_v63  ;;  %v5031_v15 = vand.u32 4294901760, %v5030_v11  ;;  %31459 = vmatprep.mubr.msk.f32.mxu0 %vm35081_vm0, %v35080_v0 }
 0x58f   : > { %v34007_v16 = vpop.eup %34006  ;;  %31457 = vmatprep.subr.mxu0 %v35080_v0 }
 0x590   : > { %31449 = vmatpush3.msra.mxu1 %v5031_v15  ;;  %31458 = vmatpush3.msra.mxu0 %v5035_v9  ;;  %v5037_v36 = vsub.f32 %v5035_v9, %v5036_v13  ;;  %v4442_v5 = vmul.f32 %v34007_v16, %v35992_v18  ;;  %v36056_v20 = vsub.f32 %v5383_v12, %v36047_v14 }
 0x591   : > { %v5381_v19 = vpop.permute.xlu0 %5380  ;;  %31460 = vmatmul.mubr.f32.vlgmr.msra.gmra.mxu0 %v36034_v57  ;;  %31469 = vmatprep.subr.mxu0 %v35080_v0 }
 0x592   : > { %v36058_v34 = vand.u32 4294901760, %v5381_v19  ;;  %31470 = vmatpush3.msra.mxu0 %v5029_v3  ;;  %31450 = vmatprep.subr.mxu1 %v35080_v0  ;;  %v5038_v1 = vand.u32 4294901760, %v5037_v36  ;;  %v5387_v22 = vsel %vm4399_vm5, %v4442_v5, 0  ;;  %v5497_v25 = vand.u32 4294901760, %v36056_v20 }
 0x593   : > { %31471 = vmatprep.subr.mxu0 %v35080_v0  ;;  %31473 = vmatprep.mubr.msk.f32.mxu0 %vm35081_vm0, %v35080_v0  ;;  %v36065_v18 = vand.u32 4294901760, %v5387_v22 }
 0x594   : > { %v5503_v6 = vsub.f32 %v5381_v19, %v36058_v34  ;;  %31451 = vmatpush3.msra.mxu1 %v5038_v1  ;;  %31472 = vmatpush3.msra.mxu0 %v5036_v13  ;;  %v5498_v29 = vsub.f32 %v36056_v20, %v5497_v25 }
 0x595   : > { %31453 = vmatmul.mubr.f32.vlgmr.msra.gmra.mxu1 %v36024_v56  ;;  %31462 = vmatprep.subr.mxu1 %v35080_v0  ;;  %v5457_v23 = vsub.f32 %v5387_v22, %v36065_v18  ;;  %v5851_v28 = vpop.permute.xlu0 %5850 }
 0x596   : > { %31474 = vmatmul.mubr.f32.vlgmr.msra.gmra.mxu0 %v36024_v56  ;;  %31483 = vmatprep.subr.mxu0 %v35080_v0  ;;  %v5504_v27 = vand.u32 4294901760, %v5503_v6  ;;  %v5499_v33 = vand.u32 4294901760, %v5498_v29  ;;  %v36088_v37 = vand.u32 4294901760, %v5851_v28 }
 0x597   : > { %31463 = vmatpush3.msra.mxu1 %v4950_v32  ;;  %31484 = vmatpush3.msra.mxu0 %v36047_v14  ;;  %v5458_v26 = vand.u32 4294901760, %v5457_v23 }
 0x598   : > { %31464 = vmatprep.subr.mxu1 %v35080_v0  ;;  %31485 = vmatprep.subr.mxu0 %v35080_v0  ;;  %v5505_v30 = vsub.f32 %v5503_v6, %v5504_v27  ;;  %v36098_v43 = vsub.f32 %v5851_v28, %v36088_v37 }
 0x599   : > { %31465 = vmatpush3.msra.mxu1 %v4953_v4  ;;  %31466 = vmatprep.mubr.msk.f32.mxu1 %vm35081_vm0, %v35080_v0  ;;  %v5459_v7 = vsub.f32 %v5457_v23, %v5458_v26  ;;  %v5849_v31 = vpop.permute.xlu0 %5848 }
 0x59a   : > { %31486 = vmatpush3.msra.mxu0 %v36058_v34  ;;  %31467 = vmatmul.mubr.f32.vlgmr.msra.gmra.mxu1 %v4990_v59  ;;  %v5506_v54 = vand.u32 4294901760, %v5505_v30  ;;  %v36093_v40 = vand.u32 4294901760, %v5849_v31  ;;  %v5965_v48 = vand.u32 4294901760, %v36098_v43 }
 0x59b   : > { %31476 = vmatprep.subr.mxu1 %v35080_v0  ;;  %31480 = vmatprep.mubr.msk.f32.mxu1 %vm35081_vm0, %v35080_v0  ;;  %v5460_v24 = vand.u32 4294901760, %v5459_v7 }
 0x59c   : > { %31477 = vmatpush3.msra.mxu1 %v4950_v32  ;;  %31487 = vmatprep.mubr.msk.f32.mxu0 %vm35081_vm0, %v35080_v0  ;;  %v36107_v47 = vsub.f32 %v5849_v31, %v36093_v40  ;;  %v5966_v52 = vsub.f32 %v36098_v43, %v5965_v48 }
 0x59d   : > { %31478 = vmatprep.subr.mxu1 %v35080_v0  ;;  %31497 = vmatprep.subr.mxu0 %v35080_v0 }
 0x59e   : > { %31479 = vmatpush3.msra.mxu1 %v4953_v4  ;;  %31488 = vmatmul.mubr.f32.vlgmr.msra.gmra.mxu0 %v5460_v24  ;;  %v4435_v35 = vpop.xlane.xlu1 %4434  ;;  %v5972_v49 = vand.u32 4294901760, %v36107_v47  ;;  %v5967_v57 = vand.u32 4294901760, %v5966_v52 }
 0x59f   : > { %31481 = vmatmul.mubr.f32.vlgmr.msra.gmra.mxu1 %v36024_v56  ;;  %31490 = vmatprep.subr.mxu1 %v35080_v0  ;;  %34008 = vrcp.f32 %v4435_v35 }
 0x5a0   : > { %31498 = vmatpush3.msra.mxu0 %v36056_v20  ;;  %31491 = vmatpush3.msra.mxu1 %v5499_v33  ;;  %v5973_v55 = vsub.f32 %v36107_v47, %v5972_v49 }
 0x5a1   : > { %31499 = vmatprep.subr.mxu0 %v35080_v0  ;;  %31492 = vmatprep.subr.mxu1 %v35080_v0 }
 0x5a2   : > { %31500 = vmatpush3.msra.mxu0 %v5503_v6  ;;  %31493 = vmatpush3.msra.mxu1 %v5506_v54 }
 0x5a3   : > { %31494 = vmatprep.mubr.msk.f32.mxu1 %vm35081_vm0, %v35080_v0  ;;  %31501 = vmatprep.mubr.msk.f32.mxu0 %vm35081_vm0, %v35080_v0 }
 0x5a4   : > { %31511 = vmatprep.subr.mxu0 %v35080_v0  ;;  %31495 = vmatmul.mubr.f32.vlgmr.msra.gmra.mxu1 %v36065_v18 }
 0x5a5   : > { %31502 = vmatmul.mubr.f32.vlgmr.msra.gmra.mxu0 %v5457_v23  ;;  %31504 = vmatprep.subr.mxu1 %v35080_v0 }
 0x5a6   : > { %31512 = vmatpush3.msra.mxu0 %v5497_v25  ;;  %31505 = vmatpush3.msra.mxu1 %v36047_v14 }
 0x5a7   : > { %31513 = vmatprep.subr.mxu0 %v35080_v0  ;;  %31506 = vmatprep.subr.mxu1 %v35080_v0 }
 0x5a8   : > { %31514 = vmatpush3.msra.mxu0 %v5504_v27  ;;  %31507 = vmatpush3.msra.mxu1 %v36058_v34 }
 0x5a9   : > { %31508 = vmatprep.mubr.msk.f32.mxu1 %vm35081_vm0, %v35080_v0  ;;  %31515 = vmatprep.mubr.msk.f32.mxu0 %vm35081_vm0, %v35080_v0 }
 0x5aa   : > { %31525 = vmatprep.subr.mxu0 %v35080_v0  ;;  %31509 = vmatmul.mubr.f32.vlgmr.msra.gmra.mxu1 %v5458_v26 }
 0x5ab   : > { %31516 = vmatmul.mubr.f32.vlgmr.msra.gmra.mxu0 %v36065_v18  ;;  %31518 = vmatprep.subr.mxu1 %v35080_v0 }
 0x5ac   : > { %v34009_v53 = vpop.eup %34008  ;;  %31526 = vmatpush3.msra.mxu0 %v36088_v37  ;;  %31519 = vmatpush3.msra.mxu1 %v36047_v14 }
 0x5ad   : > { %31527 = vmatprep.subr.mxu0 %v35080_v0  ;;  %31520 = vmatprep.subr.mxu1 %v35080_v0  ;;  %v4443_v56 = vmul.f32 %v34009_v53, %v35998_v21  ;;  %v5974_v21 = vand.u32 4294901760, %v5973_v55 }
 0x5ae   : > { %31528 = vmatpush3.msra.mxu0 %v36093_v40  ;;  %31521 = vmatpush3.msra.mxu1 %v36058_v34 }
 0x5af   : > { %31522 = vmatprep.mubr.msk.f32.mxu1 %vm35081_vm0, %v35080_v0  ;;  %31532 = vmatprep.subr.mxu1 %v35080_v0  ;;  %v5855_v58 = vsel %vm4399_vm5, %v4443_v56, 0 }
 0x5b0   : > { %31523 = vmatmul.mubr.f32.vlgmr.msra.gmra.mxu1 %v36065_v18  ;;  %v5924_v59 = vand.u32 4294901760, %v5855_v58  ;;  %31529 = vmatprep.mubr.msk.f32.mxu0 %vm35081_vm0, %v35080_v0 }
 0x5b1   : > { %31533 = vmatpush3.msra.mxu1 %v5967_v57  ;;  %31536 = vmatprep.mubr.msk.f32.mxu1 %vm35081_vm0, %v35080_v0  ;;  %v1507_v57 = vld [vmem:[#allocation13 + $0x18] sm:$0xff] }
 0x5b2   : > { %31534 = vmatprep.subr.mxu1 %v35080_v0  ;;  %v5925_v61 = vsub.f32 %v5855_v58, %v5924_v59  ;;  %31539 = vmatprep.subr.mxu0 %v35080_v0  ;;  %v1506_v58 = vld [vmem:[#allocation13 + $0x10] sm:$0xff] }
 0x5b3   : > { %31535 = vmatpush3.msra.mxu1 %v5974_v21  ;;  %v36176_v21 = vand.u32 4294901760, %v1506_v58 }
 0x5b4   : > { %31546 = vmatprep.subr.mxu1 %v35080_v0  ;;  %31537 = vmatmul.mubr.f32.vlgmr.msra.gmra.mxu1 %v5924_v59  ;;  %v5926_v32 = vand.u32 4294901760, %v5925_v61 }
 0x5b5   : > { %31547 = vmatpush3.msra.mxu1 %v36088_v37  ;;  %31550 = vmatprep.mubr.msk.f32.mxu1 %vm35081_vm0, %v35080_v0 }
 0x5b6   : > { %31548 = vmatprep.subr.mxu1 %v35080_v0  ;;  %v5927_v62 = vsub.f32 %v5925_v61, %v5926_v32 }
 0x5b7   : > { %31549 = vmatpush3.msra.mxu1 %v36093_v40 }
 0x5b8   : > { %31560 = vmatprep.subr.mxu1 %v35080_v0  ;;  %31551 = vmatmul.mubr.f32.vlgmr.msra.gmra.mxu1 %v5926_v32  ;;  %v5928_v63 = vand.u32 4294901760, %v5927_v62 }
 0x5b9   : > { %31561 = vmatpush3.msra.mxu1 %v36088_v37  ;;  %31564 = vmatprep.mubr.msk.f32.mxu1 %vm35081_vm0, %v35080_v0 }
 0x5ba   : > { %31562 = vmatprep.subr.mxu1 %v35080_v0  ;;  %31530 = vmatmul.mubr.f32.vlgmr.msra.gmra.mxu0 %v5928_v63  ;;  %v36182_v63 = vsub.f32 %v1506_v58, %v36176_v21 }
 0x5bb   : > { %31563 = vmatpush3.msra.mxu1 %v36093_v40  ;;  %31540 = vmatpush3.msra.mxu0 %v36098_v43 }
 0x5bc   : > { %31565 = vmatmul.mubr.f32.vlgmr.msra.gmra.mxu1 %v5924_v59  ;;  %31541 = vmatprep.subr.mxu0 %v35080_v0 }
 0x5bd   : > { %31542 = vmatpush3.msra.mxu0 %v36107_v47  ;;  %31543 = vmatprep.mubr.msk.f32.mxu0 %vm35081_vm0, %v35080_v0 }
 0x5be   : > { %31553 = vmatprep.subr.mxu0 %v35080_v0  ;;  %31544 = vmatmul.mubr.f32.vlgmr.msra.gmra.mxu0 %v5925_v61 }
 0x5bf   : > { %31554 = vmatpush3.msra.mxu0 %v5965_v48  ;;  %31557 = vmatprep.mubr.msk.f32.mxu0 %vm35081_vm0, %v35080_v0 }
 0x5c0   : > { %31555 = vmatprep.subr.mxu0 %v35080_v0  ;;  %31578 = vmatprep.subr.mxu1 %v35080_v0 }
 0x5c1   : > { %31556 = vmatpush3.msra.mxu0 %v5972_v49  ;;  %31586 = vmatprep.mubr.msk.f32.mxu1 %vm35081_vm0, %v35080_v0 }
 0x5c2   : > { %31558 = vmatmul.mubr.f32.vlgmr.msra.gmra.mxu0 %v5924_v59  ;;  %31567 = vmatprep.subr.mxu0 %v35080_v0  ;;  %v36174_v59 = vand.u32 4294901760, %v1507_v57 }
 0x5c3   : > { %31575 = vmatprep.mubr.msk.f32.mxu0 %vm35081_vm0, %v35080_v0 }
 0x5c4   : > { %31568 = vmatpush3.msra.mxu0 %v36174_v59 }
 0x5c5   : > { %31569 = vmatprep.subr.mxu0 %v35080_v0 }
 0x5c6   : > { %31570 = vmatpush3.msra.mxu0 %v36176_v21 }
 0x5c7   : > { %31571 = vmatprep.subr.mxu0 %v35080_v0 }
 0x633   : > { %v4526_v2 = vpop.f32.mrf.mxu0 }
 0x635   : > { %v31405_v3 = vpop.f32.mrf.mxu0 }
 0x637   : > { %v4683_v4 = vpop.f32.mrf.mxu0 }
 0x639   : > { %v31419_v8 = vpop.f32.mrf.mxu0 }
 0x63b   : > { %v4607_v9 = vpop.f32.mrf.mxu1 }
 0x63c   : > { %v4608_v11 = vadd.f32 %v4607_v9, %v4526_v2  ;;  %v4835_v12 = vpop.f32.mrf.mxu0  ;;  %v6458_v9 = vand.u32 4294901760, %v36182_v63 }
 0x63d   : > { %v31412_v13 = vpop.f32.mrf.mxu1 }
 0x63e   : > { %v31433_v14 = vpop.f32.mrf.mxu0  ;;  %v4684_v15 = vadd.f32 %v4683_v4, %v4608_v11 }
 0x640   : > { %v4758_v16 = vpop.f32.mrf.mxu1 }
 0x641   : > { %v4759_v36 = vadd.f32 %v4758_v16, %v4684_v15 }
 0x642   : > { %v31426_v5 = vpop.f32.mrf.mxu1 }
 0x643   : > { %v4836_v19 = vadd.f32 %v4835_v12, %v4759_v36  ;;  %v6459_v12 = vsub.f32 %v36182_v63, %v6458_v9 }
 0x644   : > { %v4908_v20 = vpop.f32.mrf.mxu1 }
 0x645   : > { %v36170_v34 = vadd.f32 %v4908_v20, %v4836_v19  ;;  %v6460_v16 = vand.u32 4294901760, %v6459_v12 }
 0x646   : > { %v31440_v1 = vpop.f32.mrf.mxu1 }
 0x647   : > { %v6316_v58 = vadd.f32 %v36170_v34, %v35769_v10 }
 0x64d   : > { %v4994_v22 = vpop.f32.mrf.mxu0 }
 0x64f   : > { %v31447_v18 = vpop.f32.mrf.mxu0 }
 0x651   : > { %v5151_v6 = vpop.f32.mrf.mxu0 }
 0x653   : > { %v31461_v23 = vpop.f32.mrf.mxu0 }
 0x655   : > { %v5075_v25 = vpop.f32.mrf.mxu1 }
 0x656   : > { %v5076_v26 = vadd.f32 %v5075_v25, %v4994_v22  ;;  %v5303_v27 = vpop.f32.mrf.mxu0  ;;  %v1505_v22 = vld [vmem:[#allocation13 + $0x8] sm:$0xff]  ;;  %v1504_v25 = vld [vmem:[#allocation13] sm:$0xff] }
 0x657   : > { %v31454_v28 = vpop.f32.mrf.mxu1  ;;  %v36200_v18 = vand.u32 4294901760, %v1505_v22 }
 0x658   : > { %v31475_v7 = vpop.f32.mrf.mxu0  ;;  %v5152_v29 = vadd.f32 %v5151_v6, %v5076_v26  ;;  %v36205_v26 = vand.u32 4294901760, %v1504_v25 }
 0x659   : > { %31572 = vmatpush3.msra.mxu0 %v36200_v18 }
 0x65a   : > { %v5226_v24 = vpop.f32.mrf.mxu1  ;;  %31573 = vmatprep.subr.mxu0 %v35080_v0 }
 0x65b   : > { %v5227_v30 = vadd.f32 %v5226_v24, %v5152_v29  ;;  %v36211_v24 = vsub.f32 %v1504_v25, %v36205_v26  ;;  %31574 = vmatpush3.msra.mxu0 %v36205_v26 }
 0x65c   : > { %v31468_v31 = vpop.f32.mrf.mxu1  ;;  %31589 = vmatprep.subr.mxu0 %v35080_v0 }
 0x65d   : > { %v5304_v33 = vadd.f32 %v5303_v27, %v5227_v30 }
 0x65e   : > { %v5462_v35 = vpop.f32.mrf.mxu0 }
 0x65f   : > { %v5376_v37 = vpop.f32.mrf.mxu1 }
 0x660   : > { %v5377_v54 = vadd.f32 %v5376_v37, %v5304_v33  ;;  %v31489_v40 = vpop.f32.mrf.mxu0  ;;  %v6472_v37 = vand.u32 4294901760, %v36211_v24 }
 0x661   : > { %v31482_v43 = vpop.f32.mrf.mxu1 }
 0x662   : > { %v6317_v47 = vadd.f32 %v5377_v54, %v35829_v60  ;;  %v36179_v60 = vsub.f32 %v1507_v57, %v36174_v59 }
 0x664   : > { %v5543_v48 = vpop.f32.mrf.mxu1  ;;  %6321 = vrot.lane.b32.xlu0 %v6317_v47, %s35086_s5  ;;  %v6451_v8 = vand.u32 4294901760, %v36179_v60  ;;  %v6473_v47 = vsub.f32 %v36211_v24, %v6472_v37 }
 0x665   : > { %v5544_v49 = vadd.f32 %v5543_v48, %v5462_v35  ;;  %v5619_v52 = vpop.f32.mrf.mxu0 }
 0x666   : > { %v31496_v53 = vpop.f32.mrf.mxu1  ;;  %v6452_v11 = vsub.f32 %v36179_v60, %v6451_v8 }
 0x667   : > { %v5620_v55 = vadd.f32 %v5619_v52, %v5544_v49  ;;  %v31503_v56 = vpop.f32.mrf.mxu0  ;;  %v6474_v52 = vand.u32 4294901760, %v6473_v47 }
 0x668   : > { %v6453_v15 = vand.u32 4294901760, %v6452_v11 }
 0x66a   : > { %v5694_v61 = vpop.f32.mrf.mxu1  ;;  %31579 = vmatpush3.msra.mxu1 %v6453_v15 }
 0x66b   : > { %v5695_v32 = vadd.f32 %v5694_v61, %v5620_v55  ;;  %v5771_v62 = vpop.f32.mrf.mxu0  ;;  %31580 = vmatprep.subr.mxu1 %v35080_v0 }
 0x66c   : > { %v31510_v2 = vpop.f32.mrf.mxu1  ;;  %31581 = vmatpush3.msra.mxu1 %v6460_v16 }
 0x66d   : > { %v5772_v3 = vadd.f32 %v5771_v62, %v5695_v32  ;;  %v31517_v4 = vpop.f32.mrf.mxu0  ;;  %31582 = vmatprep.subr.mxu1 %v35080_v0 }
 0x670   : > { %v5844_v13 = vpop.f32.mrf.mxu1 }
 0x671   : > { %v5845_v14 = vadd.f32 %v5844_v13, %v5772_v3 }
 0x672   : > { %v31524_v36 = vpop.f32.mrf.mxu1 }
 0x673   : > { %v6318_v5 = vadd.f32 %v5845_v14, %v35848_v17  ;;  %v36203_v17 = vsub.f32 %v1505_v22, %v36200_v18 }
 0x674   : > { %v6011_v19 = vpop.f32.mrf.mxu1 }
 0x675   : > { %6325 = vrot.lane.b32.xlu0 %v6318_v5, %s35087_s8  ;;  %v6465_v29 = vand.u32 4294901760, %v36203_v17 }
 0x676   : > { %v31538_v20 = vpop.f32.mrf.mxu1 }
 0x677   : > { %v6466_v35 = vsub.f32 %v36203_v17, %v6465_v29 }
 0x678   : > { %v6162_v1 = vpop.f32.mrf.mxu1 }
 0x679   : > { %v6467_v43 = vand.u32 4294901760, %v6466_v35 }
 0x67a   : > { %v31552_v6 = vpop.f32.mrf.mxu1  ;;  %v5930_v23 = vpop.f32.mrf.mxu0 }
 0x67b   : > { %v6012_v7 = vadd.f32 %v6011_v19, %v5930_v23  ;;  %31583 = vmatpush3.msra.mxu1 %v6467_v43  ;;  %v6834_v19 = vld [vmem:[#allocation19] sm:$0xff] }
 0x67c   : > { %v6312_v27 = vpop.f32.mrf.mxu1  ;;  %v31531_v28 = vpop.f32.mrf.mxu0  ;;  %31584 = vmatprep.subr.mxu1 %v35080_v0  ;;  %v36312_v22 = vand.u32 4294901760, %v6834_v19 }
 0x67d   : > { %31585 = vmatpush3.msra.mxu1 %v6474_v52 }
 0x67e   : > { %v31566_v30 = vpop.f32.mrf.mxu1  ;;  %v6087_v31 = vpop.f32.mrf.mxu0  ;;  %31600 = vmatprep.subr.mxu1 %v35080_v0  ;;  %v36322_v23 = vsub.f32 %v6834_v19, %v36312_v22 }
 0x67f   : > { %v6088_v33 = vadd.f32 %v6087_v31, %v6012_v7 }
 0x680   : > { %v31545_v54 = vpop.f32.mrf.mxu0 }
 0x681   : > { %v6163_v40 = vadd.f32 %v6162_v1, %v6088_v33  ;;  %v29914_v33 = vld [vmem:[#allocation14] ss:$0 sm:$0xff] }
 0x682   : > { %v6239_v48 = vpop.f32.mrf.mxu0 }
 0x683   : > { %v6240_v49 = vadd.f32 %v6239_v48, %v6163_v40 }
 0x684   : > { %v31559_v53 = vpop.f32.mrf.mxu0 }
 0x685   : > { %v6313_v55 = vadd.f32 %v6312_v27, %v6240_v49 }
 0x687   : > { %v6319_v56 = vadd.f32 %v6313_v55, %v35901_v46 }
 0x689   : > { %6329 = vrot.lane.b32.xlu1 %v6319_v56, %s35088_s15 }
 0x6d6   : > { %v6322_v57 = vpop.permute.xlu0 %6321 }
 0x6d7   : > { %v6332_v32 = vsel %vm2534_vm4, %v6316_v58, %v6322_v57 }
 0x6e7   : > { %v6326_v61 = vpop.permute.xlu0 %6325 }
 0x6e8   : > { %v6333_v62 = vsel %vm4399_vm5, %v6332_v32, %v6326_v61 }
 0x6fb   : > { %v6330_v2 = vpop.permute.xlu1 %6329 }
 0x6fc   : > { %v36231_v3 = vsel %vm6334_vm6, %v6333_v62, %v6330_v2 }
 0x6fd   : > { %v6343_v46 = vsel %vm1515_vm1, %v36231_v3, 0 }
 0x6fe   : > { %v6414_v4 = vand.u32 4294901760, %v6343_v46 }
 0x700   : > { %v6415_v11 = vsub.f32 %v6343_v46, %v6414_v4  ;;  %31587 = vmatmul.mubr.f32.vlgmr.msra.gmra.mxu1 %v6414_v4 }
 0x701   : > { %31601 = vmatpush3.msra.mxu1 %v36174_v59  ;;  %31608 = vmatprep.mubr.msk.f32.mxu1 %vm35081_vm0, %v35080_v0 }
 0x702   : > { %31602 = vmatprep.subr.mxu1 %v35080_v0  ;;  %v6416_v10 = vand.u32 4294901760, %v6415_v11 }
 0x703   : > { %31603 = vmatpush3.msra.mxu1 %v36176_v21 }
 0x704   : > { %31604 = vmatprep.subr.mxu1 %v35080_v0  ;;  %v6417_v34 = vsub.f32 %v6415_v11, %v6416_v10 }
 0x705   : > { %31605 = vmatpush3.msra.mxu1 %v36200_v18 }
 0x706   : > { %31606 = vmatprep.subr.mxu1 %v35080_v0  ;;  %v6418_v12 = vand.u32 4294901760, %v6417_v34 }
 0x707   : > { %31607 = vmatpush3.msra.mxu1 %v36205_v26 }
 0x708   : > { %31609 = vmatmul.mubr.f32.vlgmr.msra.gmra.mxu1 %v6416_v10  ;;  %31622 = vmatprep.subr.mxu1 %v35080_v0 }
 0x709   : > { %31576 = vmatmul.mubr.f32.vlgmr.msra.gmra.mxu0 %v6418_v12  ;;  %31623 = vmatpush3.msra.mxu1 %v36174_v59  ;;  %v6832_v59 = vld [vmem:[#allocation16] sm:$0x7] }
 0x70a   : > { %31590 = vmatpush3.msra.mxu0 %v36179_v60  ;;  %31624 = vmatprep.subr.mxu1 %v35080_v0 }
 0x70b   : > { %31591 = vmatprep.subr.mxu0 %v35080_v0  ;;  %31625 = vmatpush3.msra.mxu1 %v36176_v21  ;;  %v6851_v21 = vsel %vm2017_vm3, %v6832_v59, 0 }
 0x70c   : > { %31592 = vmatpush3.msra.mxu0 %v36182_v63  ;;  %31626 = vmatprep.subr.mxu1 %v35080_v0  ;;  %v6884_v60 = vand.u32 4294901760, %v6851_v21 }
 0x70d   : > { %31593 = vmatprep.subr.mxu0 %v35080_v0  ;;  %31627 = vmatpush3.msra.mxu1 %v36200_v18 }
 0x70e   : > { %31594 = vmatpush3.msra.mxu0 %v36203_v17  ;;  %31628 = vmatprep.subr.mxu1 %v35080_v0  ;;  %v7478_v17 = vand.u32 4294901760, %v36322_v23 }
 0x70f   : > { %31595 = vmatprep.subr.mxu0 %v35080_v0  ;;  %31597 = vmatprep.mubr.msk.f32.mxu0 %vm35081_vm0, %v35080_v0 }
 0x710   : > { %31596 = vmatpush3.msra.mxu0 %v36211_v24  ;;  %31629 = vmatpush3.msra.mxu1 %v36205_v26 }
 0x711   : > { %31630 = vmatprep.mubr.msk.f32.mxu1 %vm35081_vm0, %v35080_v0  ;;  %31598 = vmatmul.mubr.f32.vlgmr.msra.gmra.mxu0 %v6415_v11 }
 0x712   : > { %31611 = vmatprep.subr.mxu0 %v35080_v0  ;;  %31631 = vmatmul.mubr.f32.vlgmr.msra.gmra.mxu1 %v6414_v4 }
 0x713   : > { %31612 = vmatpush3.msra.mxu0 %v6451_v8  ;;  %31619 = vmatprep.mubr.msk.f32.mxu0 %vm35081_vm0, %v35080_v0  ;;  %v6971_v8 = vsub.f32 %v6851_v21, %v6884_v60 }
 0x714   : > { %31613 = vmatprep.subr.mxu0 %v35080_v0  ;;  %31640 = vmatprep.mubr.f32.mxu1 %v35674_v38 }
 0x715   : > { %31614 = vmatpush3.msra.mxu0 %v6458_v9  ;;  %v6972_v63 = vand.u32 4294901760, %v6971_v8 }
 0x716   : > { %31615 = vmatprep.subr.mxu0 %v35080_v0 }
 0x717   : > { %31616 = vmatpush3.msra.mxu0 %v6465_v29  ;;  %v6973_v9 = vsub.f32 %v6971_v8, %v6972_v63 }
 0x718   : > { %31617 = vmatprep.subr.mxu0 %v35080_v0 }
 0x719   : > { %31618 = vmatpush3.msra.mxu0 %v6472_v37  ;;  %v6974_v13 = vand.u32 4294901760, %v6973_v9 }
 0x71a   : > { %31620 = vmatmul.mubr.f32.vlgmr.msra.gmra.mxu0 %v6414_v4  ;;  %31633 = vmatprep.subr.mxu0 %v6884_v60  ;;  %v29915_v4 = vld [vmem:[#allocation17] ss:$0 sm:$0xff] }
 0x71b   : > { %31635 = vmatprep.mubr.f32.mxu0 %v35732_v50  ;;  %31634 = vmatpush3.msra.mxu0 %v6884_v60  ;;  %v6837_v50 = vld [vmem:[#allocation19 + $0x18] sm:$0xff] }
 0x71c   : > { %31643 = vmatprep.subr.mxu0 %v6971_v8  ;;  %31638 = vmatprep.subr.mxu1 %v6974_v13  ;;  %v36284_v14 = vand.u32 4294901760, %v6837_v50 }
 0x71d   : > { %31639 = vmatpush3.msra.mxu1 %v6974_v13 }
 0x71e   : > { %31636 = vmatmul.mubr.f32.vlgmr.msra.gmra.mxu0 %v35736_v51  ;;  %v6836_v51 = vld [vmem:[#allocation19 + $0x10] sm:$0xff]  ;;  %31641 = vmatmul.mubr.f32.vlgmr.msra.gmra.mxu1 %v35678_v39 }
 0x71f   : > { %31644 = vmatpush3.msra.mxu0 %v6971_v8  ;;  %31645 = vmatprep.mubr.f32.mxu0 %v35688_v41  ;;  %v36289_v41 = vsub.f32 %v6837_v50, %v36284_v14  ;;  %v36291_v15 = vand.u32 4294901760, %v6836_v51 }
 0x720   : > { %31653 = vmatprep.subr.mxu0 %v6972_v63  ;;  %31648 = vmatprep.subr.mxu1 %v6884_v60 }
 0x721   : > { %31649 = vmatpush3.msra.mxu1 %v6884_v60  ;;  %31650 = vmatprep.mubr.f32.mxu1 %v35703_v44  ;;  %v7457_v16 = vand.u32 4294901760, %v36289_v41  ;;  %v36296_v36 = vsub.f32 %v6836_v51, %v36291_v15 }
 0x722   : > { %31646 = vmatmul.mubr.f32.vlgmr.msra.gmra.mxu0 %v35693_v42  ;;  %v6835_v42 = vld [vmem:[#allocation19 + $0x8] sm:$0xff]  ;;  %31658 = vmatprep.subr.mxu1 %v6884_v60 }
 0x723   : > { %31654 = vmatpush3.msra.mxu0 %v6972_v63  ;;  %31655 = vmatprep.mubr.f32.mxu0 %v35674_v38  ;;  %v36299_v5 = vand.u32 4294901760, %v6835_v42  ;;  %v7458_v44 = vsub.f32 %v36289_v41, %v7457_v16  ;;  %v7464_v20 = vand.u32 4294901760, %v36296_v36 }
 0x724   : > { %31663 = vmatprep.subr.mxu0 %v35080_v0  ;;  %31651 = vmatmul.mubr.f32.vlgmr.msra.gmra.mxu1 %v35708_v45 }
 0x725   : > { %v36310_v1 = vsub.f32 %v6835_v42, %v36299_v5  ;;  %31659 = vmatpush3.msra.mxu1 %v6884_v60  ;;  %31660 = vmatprep.mubr.f32.mxu1 %v35674_v38  ;;  %v7459_v18 = vand.u32 4294901760, %v7458_v44  ;;  %v7465_v45 = vsub.f32 %v36296_v36, %v7464_v20 }
 0x726   : > { %31656 = vmatmul.mubr.f32.vlgmr.msra.gmra.mxu0 %v35678_v39  ;;  %31674 = vmatprep.subr.mxu1 %v35080_v0 }
 0x727   : > { %31664 = vmatpush3.msra.mxu0 %v36284_v14  ;;  %31671 = vmatprep.mubr.msk.f32.mxu0 %vm35081_vm0, %v35080_v0  ;;  %v7471_v6 = vand.u32 4294901760, %v36310_v1  ;;  %v7466_v25 = vand.u32 4294901760, %v7465_v45 }
 0x728   : > { %31665 = vmatprep.subr.mxu0 %v35080_v0  ;;  %31661 = vmatmul.mubr.f32.vlgmr.msra.gmra.mxu1 %v35678_v39  ;;  %v7479_v39 = vsub.f32 %v36322_v23, %v7478_v17 }
 0x729   : > { %31666 = vmatpush3.msra.mxu0 %v36291_v15  ;;  %v7472_v38 = vsub.f32 %v36310_v1, %v7471_v6  ;;  %31675 = vmatpush3.msra.mxu1 %v7459_v18 }
 0x72a   : > { %31667 = vmatprep.subr.mxu0 %v35080_v0  ;;  %31682 = vmatprep.mubr.msk.f32.mxu1 %vm35081_vm0, %v35080_v0  ;;  %v7480_v27 = vand.u32 4294901760, %v7479_v39 }
 0x72b   : > { %31668 = vmatpush3.msra.mxu0 %v36299_v5  ;;  %31676 = vmatprep.subr.mxu1 %v35080_v0  ;;  %v7473_v26 = vand.u32 4294901760, %v7472_v38 }
 0x72c   : > { %31669 = vmatprep.subr.mxu0 %v35080_v0  ;;  %31677 = vmatpush3.msra.mxu1 %v7466_v25 }
 0x72d   : > { %31670 = vmatpush3.msra.mxu0 %v36312_v22  ;;  %31678 = vmatprep.subr.mxu1 %v35080_v0 }
 0x72e   : > { %31685 = vmatprep.subr.mxu0 %v35080_v0  ;;  %31679 = vmatpush3.msra.mxu1 %v7473_v26 }
 0x72f   : > { %31680 = vmatprep.subr.mxu1 %v35080_v0 }
 0x730   : > { %31681 = vmatpush3.msra.mxu1 %v7480_v27 }
 0x731   : > { %31696 = vmatprep.subr.mxu1 %v35080_v0 }
 0x7c0   : > { %v6511_v28 = vpop.f32.mrf.mxu1 }
 0x7c2   : > { %v31588_v7 = vpop.f32.mrf.mxu1 }
 0x7c3   : > { %v29916_v7 = vld [vmem:[#allocation20] ss:$0 sm:$0xff] }
 0x7c8   : > { %v6668_v29 = vpop.f32.mrf.mxu1 }
 0x7c9   : > { %v6420_v24 = vpop.f32.mrf.mxu0 }
 0x7ca   : > { %v31610_v30 = vpop.f32.mrf.mxu1  ;;  %v6421_v35 = vadd.f32 %v29914_v33, %v6420_v24 }
 0x7cb   : > { %v31577_v31 = vpop.f32.mrf.mxu0 }
 0x7cc   : > { %v6512_v40 = vadd.f32 %v6511_v28, %v6421_v35 }
 0x7d1   : > { %v6591_v37 = vpop.f32.mrf.mxu0 }
 0x7d2   : > { %v6826_v54 = vpop.f32.mrf.mxu1  ;;  %v6592_v48 = vadd.f32 %v6591_v37, %v6512_v40 }
 0x7d3   : > { %v31599_v43 = vpop.f32.mrf.mxu0 }
 0x7d4   : > { %v31632_v47 = vpop.f32.mrf.mxu1  ;;  %v6669_v49 = vadd.f32 %v6668_v29, %v6592_v48 }
 0x7da   : > { %v6751_v52 = vpop.f32.mrf.mxu0 }
 0x7db   : > { %v6752_v53 = vadd.f32 %v6751_v52, %v6669_v49 }
 0x7dc   : > { %v31621_v55 = vpop.f32.mrf.mxu0 }
 0x7dd   : > { %v6827_v56 = vadd.f32 %v6826_v54, %v6752_v53 }
 0x7de   : > { %v31637_v11 = vpop.f32.mrf.mxu0  ;;  %v31642_v60 = vpop.f32.mrf.mxu1 }
 0x7df   : > { %v6830_v57 = vmax.f32 %v6827_v56, 0.0  ;;  %v6936_v10 = vadd.f32 %v31637_v11, %v29915_v4 }
 0x7e0   : > { %v6925_v34 = vpop.f32.mrf.mxu0  ;;  %v7011_v63 = vpop.f32.mrf.mxu1 }
 0x7e1   : > { %v6831_v58 = vadd.f32 %v6830_v57, %v36231_v3  ;;  %v6926_v21 = vadd.f32 %v29915_v4, %v6925_v34  ;;  %v7018_v8 = vadd.f32 %v31642_v60, %v6936_v10 }
 0x7e2   : > { %v31647_v12 = vpop.f32.mrf.mxu0 }
 0x7e3   : > { %v7349_v61 = vsel %vm1515_vm1, %v6831_v58, 0  ;;  %v7012_v13 = vadd.f32 %v7011_v63, %v6926_v21  ;;  %v7099_v50 = vadd.f32 %v31647_v12, %v7018_v8 }
 0x7e4   : > { %v7420_v32 = vand.u32 4294901760, %v7349_v61  ;;  %v7091_v59 = vpop.f32.mrf.mxu0 }
 0x7e6   : > { %31683 = vmatmul.mubr.f32.vlgmr.msra.gmra.mxu1 %v7420_v32  ;;  %v7421_v62 = vsub.f32 %v7349_v61, %v7420_v32  ;;  %v31657_v9 = vpop.f32.mrf.mxu0 }
 0x7e7   : > { %31697 = vmatpush3.msra.mxu1 %v36284_v14  ;;  %31704 = vmatprep.mubr.msk.f32.mxu1 %vm35081_vm0, %v35080_v0 }
 0x7e8   : > { %31698 = vmatprep.subr.mxu1 %v35080_v0  ;;  %v7422_v2 = vand.u32 4294901760, %v7421_v62  ;;  %v7254_v42 = vpop.f32.mrf.mxu0 }
 0x7e9   : > { %31699 = vmatpush3.msra.mxu1 %v36291_v15 }
 0x7ea   : > { %31700 = vmatprep.subr.mxu1 %v35080_v0  ;;  %v7423_v46 = vsub.f32 %v7421_v62, %v7422_v2 }
 0x7eb   : > { %31701 = vmatpush3.msra.mxu1 %v36299_v5 }
 0x7ec   : > { %31702 = vmatprep.subr.mxu1 %v35080_v0  ;;  %v7424_v3 = vand.u32 4294901760, %v7423_v46 }
 0x7ed   : > { %31703 = vmatpush3.msra.mxu1 %v36312_v22 }
 0x7ee   : > { %31705 = vmatmul.mubr.f32.vlgmr.msra.gmra.mxu1 %v7422_v2  ;;  %31718 = vmatprep.subr.mxu1 %v35080_v0 }
 0x7ef   : > { %31672 = vmatmul.mubr.f32.vlgmr.msra.gmra.mxu0 %v7424_v3  ;;  %31719 = vmatpush3.msra.mxu1 %v36284_v14  ;;  %v31652_v14 = vpop.f32.mrf.mxu1 }
 0x7f0   : > { %31686 = vmatpush3.msra.mxu0 %v36289_v41  ;;  %31720 = vmatprep.subr.mxu1 %v35080_v0  ;;  %v7181_v51 = vadd.f32 %v31652_v14, %v7099_v50  ;;  %v7092_v41 = vadd.f32 %v7091_v59, %v7012_v13 }
 0x7f1   : > { %31687 = vmatprep.subr.mxu0 %v35080_v0  ;;  %31721 = vmatpush3.msra.mxu1 %v36291_v15  ;;  %v7172_v15 = vpop.f32.mrf.mxu1 }
 0x7f2   : > { %31688 = vmatpush3.msra.mxu0 %v36296_v36  ;;  %31722 = vmatprep.subr.mxu1 %v35080_v0  ;;  %v7261_v36 = vadd.f32 %v31657_v9, %v7181_v51 }
 0x7f3   : > { %31689 = vmatprep.subr.mxu0 %v35080_v0  ;;  %31723 = vmatpush3.msra.mxu1 %v36299_v5  ;;  %v31662_v5 = vpop.f32.mrf.mxu1 }
 0x7f4   : > { %31690 = vmatpush3.msra.mxu0 %v36310_v1  ;;  %31724 = vmatprep.subr.mxu1 %v35080_v0  ;;  %v36388_v19 = vadd.f32 %v31662_v5, %v7261_v36 }
 0x7f5   : > { %31691 = vmatprep.subr.mxu0 %v35080_v0  ;;  %31693 = vmatprep.mubr.msk.f32.mxu0 %vm35081_vm0, %v35080_v0 }
 0x7f6   : > { %31692 = vmatpush3.msra.mxu0 %v36322_v23  ;;  %31725 = vmatpush3.msra.mxu1 %v36312_v22  ;;  %v7865_v24 = vsel %vm2534_vm4, %v36388_v19, 0 }
 0x7f7   : > { %31726 = vmatprep.mubr.msk.f32.mxu1 %vm35081_vm0, %v35080_v0  ;;  %31694 = vmatmul.mubr.f32.vlgmr.msra.gmra.mxu0 %v7421_v62  ;;  %v7945_v37 = vand.u32 4294901760, %v7865_v24 }
 0x7f8   : > { %31707 = vmatprep.subr.mxu0 %v35080_v0  ;;  %31727 = vmatmul.mubr.f32.vlgmr.msra.gmra.mxu1 %v7420_v32 }
 0x7f9   : > { %31708 = vmatpush3.msra.mxu0 %v7457_v16  ;;  %31715 = vmatprep.mubr.msk.f32.mxu0 %vm35081_vm0, %v35080_v0  ;;  %v7173_v16 = vadd.f32 %v7172_v15, %v7092_v41  ;;  %v7946_v47 = vsub.f32 %v7865_v24, %v7945_v37 }
 0x7fa   : > { %31709 = vmatprep.subr.mxu0 %v35080_v0 }
 0x7fb   : > { %31710 = vmatpush3.msra.mxu0 %v7464_v20  ;;  %v7255_v44 = vadd.f32 %v7254_v42, %v7173_v16  ;;  %v7332_v20 = vpop.f32.mrf.mxu1  ;;  %v7947_v56 = vand.u32 4294901760, %v7946_v47 }
 0x7fc   : > { %31711 = vmatprep.subr.mxu0 %v35080_v0 }
 0x7fd   : > { %31712 = vmatpush3.msra.mxu0 %v7471_v6  ;;  %v36390_v1 = vadd.f32 %v7332_v20, %v7255_v44  ;;  %v7948_v62 = vsub.f32 %v7946_v47, %v7947_v56 }
 0x7fe   : > { %31713 = vmatprep.subr.mxu0 %v35080_v0 }
 0x7ff   : > { %31714 = vmatpush3.msra.mxu0 %v7478_v17  ;;  %7844 = vrot.lane.b32.xlu1 %v36390_v1, %s35083_s25  ;;  %v7863_v22 = vsel %vm2534_vm4, %v36390_v1, 0  ;;  %v7949_v3 = vand.u32 4294901760, %v7948_v62 }
 0x800   : > { %31716 = vmatmul.mubr.f32.vlgmr.msra.gmra.mxu0 %v7420_v32  ;;  %7838 = vrot.lane.b32.xlu0 %v36390_v1, %s35082_s18  ;;  %v36398_v18 = vand.u32 4294901760, %v7863_v22 }
 0x802   : > { %31736 = vmatprep.mubr.f32.mxu1 %v36398_v18  ;;  %v36402_v45 = vsub.f32 %v7863_v22, %v36398_v18 }
 0x804   : > { %v7937_v6 = vand.u32 4294901760, %v36402_v45 }
 0x806   : > { %v7938_v23 = vsub.f32 %v36402_v45, %v7937_v6 }
 0x808   : > { %v7939_v25 = vand.u32 4294901760, %v7938_v23 }
 0x80a   : > { %31731 = vmatprep.mubr.f32.mxu0 %v7939_v25 }
 0x871   : > { %v36451_v8 = vpop.permute.xlu1 %7844 }
 0x872   : > { %v36410_v43 = vpop.permute.xlu0 %7838  ;;  %v8853_v13 = vsel %vm2534_vm4, %v36451_v8, 0 }
 0x873   : > { %v8358_v52 = vsel %vm2534_vm4, %v36410_v43, 0  ;;  %v36459_v15 = vand.u32 4294901760, %v8853_v13 }
 0x874   : > { %v36416_v58 = vand.u32 4294901760, %v8358_v52 }
 0x876   : > { %v36425_v2 = vsub.f32 %v8358_v52, %v36416_v58 }
 0x878   : > { %v8432_v11 = vand.u32 4294901760, %v36425_v2 }
 0x87a   : > { %v8433_v12 = vsub.f32 %v36425_v2, %v8432_v11 }
 0x87c   : > { %v8434_v59 = vand.u32 4294901760, %v8433_v12 }
 0x8a6   : > { %v7517_v38 = vpop.f32.mrf.mxu1 }
 0x8a8   : > { %v31684_v17 = vpop.f32.mrf.mxu1 }
 0x8ae   : > { %v7674_v26 = vpop.f32.mrf.mxu1 }
 0x8af   : > { %v7426_v39 = vpop.f32.mrf.mxu0 }
 0x8b0   : > { %v31706_v27 = vpop.f32.mrf.mxu1  ;;  %v7427_v29 = vadd.f32 %v29916_v7, %v7426_v39 }
 0x8b1   : > { %v31673_v28 = vpop.f32.mrf.mxu0 }
 0x8b2   : > { %v7518_v33 = vadd.f32 %v7517_v38, %v7427_v29 }
 0x8b7   : > { %v7597_v30 = vpop.f32.mrf.mxu0 }
 0x8b8   : > { %v7832_v31 = vpop.f32.mrf.mxu1  ;;  %v7598_v40 = vadd.f32 %v7597_v30, %v7518_v33 }
 0x8b9   : > { %v31695_v35 = vpop.f32.mrf.mxu0 }
 0x8ba   : > { %v31728_v54 = vpop.f32.mrf.mxu1  ;;  %v7675_v48 = vadd.f32 %v7674_v26, %v7598_v40 }
 0x8c0   : > { %v7757_v49 = vpop.f32.mrf.mxu0 }
 0x8c1   : > { %v7758_v53 = vadd.f32 %v7757_v49, %v7675_v48 }
 0x8c2   : > { %v31717_v55 = vpop.f32.mrf.mxu0 }
 0x8c3   : > { %v36414_v57 = vadd.f32 %v7832_v31, %v7758_v53 }
 0x8c5   : > { %v7867_v61 = vsel %vm2534_vm4, %v36414_v57, 0  ;;  %7861 = vrot.lane.b32.xlu1 %v36414_v57, %s35084_s11  ;;  %7857 = vrot.lane.b32.xlu0 %v36414_v57, %s35082_s18 }
 0x8c6   : > { %v7900_v32 = vand.u32 4294901760, %v7867_v61 }
 0x8c8   : > { %31729 = vmatprep.subr.mxu0 %v7900_v32  ;;  %v7987_v46 = vsub.f32 %v7867_v61, %v7900_v32 }
 0x8c9   : > { %31730 = vmatpush3.xpose.msra.mxu0 %v7900_v32  ;;  %7852 = vrot.lane.b32.xlu1 %v36388_v19, %s35084_s11 }
 0x8ca   : > { %7840 = vrot.lane.b32.xlu0 %v36388_v19, %s35082_s18  ;;  %31739 = vmatprep.subr.mxu0 %v7987_v46  ;;  %v7988_v4 = vand.u32 4294901760, %v7987_v46 }
 0x8cc   : > { %31732 = vmatmul.mubr.f32.vlgmr.msra.gmra.mxu0 %v7949_v3  ;;  %v7989_v10 = vsub.f32 %v7987_v46, %v7988_v4 }
 0x8cd   : > { %31740 = vmatpush3.xpose.msra.mxu0 %v7987_v46  ;;  %31741 = vmatprep.mubr.f32.mxu0 %v36402_v45  ;;  %v36470_v45 = vsub.f32 %v8853_v13, %v36459_v15 }
 0x8ce   : > { %7859 = vrot.lane.b32.xlu0 %v36414_v57, %s35083_s25  ;;  %31749 = vmatprep.subr.mxu0 %v7988_v4  ;;  %v7990_v34 = vand.u32 4294901760, %v7989_v10 }
 0x8cf   : > { %v8927_v28 = vand.u32 4294901760, %v36470_v45 }
 0x8d0   : > { %31734 = vmatprep.subr.mxu1 %v7990_v34  ;;  %31742 = vmatmul.mubr.f32.vlgmr.msra.gmra.mxu0 %v7946_v47 }
 0x8d1   : > { %31735 = vmatpush3.xpose.msra.mxu1 %v7990_v34  ;;  %31750 = vmatpush3.xpose.msra.mxu0 %v7988_v4  ;;  %v8928_v40 = vsub.f32 %v36470_v45, %v8927_v28 }
 0x8d2   : > { %7846 = vrot.lane.b32.xlu0 %v36388_v19, %s35083_s25  ;;  %31751 = vmatprep.mubr.f32.mxu0 %v36398_v18 }
 0x8d3   : > { %31744 = vmatprep.subr.mxu1 %v7900_v32  ;;  %v8929_v55 = vand.u32 4294901760, %v8928_v40 }
 0x8d4   : > { %31737 = vmatmul.mubr.f32.vlgmr.msra.gmra.mxu1 %v7945_v37  ;;  %31752 = vmatmul.mubr.f32.vlgmr.msra.gmra.mxu0 %v7945_v37 }
 0x8d5   : > { %31745 = vmatpush3.xpose.msra.mxu1 %v7900_v32  ;;  %31746 = vmatprep.mubr.f32.mxu1 %v7937_v6 }
 0x8d6   : > { %7850 = vrot.lane.b32.xlu0 %v36390_v1, %s35084_s11  ;;  %31754 = vmatprep.subr.mxu1 %v7900_v32 }
 0x8d7   : > { %31761 = vmatprep.mubr.f32.mxu0 %v8434_v59 }
 0x8d8   : > { %31747 = vmatmul.mubr.f32.vlgmr.msra.gmra.mxu1 %v7947_v56 }
 0x8d9   : > { %31755 = vmatpush3.xpose.msra.mxu1 %v7900_v32  ;;  %31756 = vmatprep.mubr.f32.mxu1 %v36398_v18 }
 0x8dc   : > { %31757 = vmatmul.mubr.f32.vlgmr.msra.gmra.mxu1 %v7945_v37 }
 0x8dd   : > { %31766 = vmatprep.mubr.f32.mxu1 %v36416_v58 }
 0x937   : > { %v36447_v21 = vpop.permute.xlu0 %7857  ;;  %v36465_v20 = vpop.permute.xlu1 %7861 }
 0x938   : > { %v8362_v60 = vsel %vm2534_vm4, %v36447_v21, 0  ;;  %v9352_v17 = vsel %vm2534_vm4, %v36465_v20, 0 }
 0x939   : > { %v8395_v63 = vand.u32 4294901760, %v8362_v60  ;;  %v36487_v30 = vand.u32 4294901760, %v9352_v17 }
 0x93b   : > { %v8482_v9 = vsub.f32 %v8362_v60, %v8395_v63  ;;  %31759 = vmatprep.subr.mxu0 %v8395_v63  ;;  %v36482_v7 = vpop.permute.xlu1 %7852  ;;  %v9472_v47 = vsub.f32 %v9352_v17, %v36487_v30 }
 0x93c   : > { %v36455_v50 = vpop.permute.xlu0 %7840  ;;  %31760 = vmatpush3.xpose.msra.mxu0 %v8395_v63  ;;  %v9350_v37 = vsel %vm2534_vm4, %v36482_v7, 0 }
 0x93d   : > { %v8360_v14 = vsel %vm2534_vm4, %v36455_v50, 0  ;;  %31769 = vmatprep.subr.mxu0 %v8482_v9  ;;  %v8483_v51 = vand.u32 4294901760, %v8482_v9  ;;  %v36501_v49 = vand.u32 4294901760, %v9350_v37  ;;  %v9473_v56 = vand.u32 4294901760, %v9472_v47 }
 0x93e   : > { %v8440_v41 = vand.u32 4294901760, %v8360_v14 }
 0x93f   : > { %v8484_v42 = vsub.f32 %v8482_v9, %v8483_v51  ;;  %v9431_v61 = vsub.f32 %v9350_v37, %v36501_v49  ;;  %v9474_v62 = vsub.f32 %v9472_v47, %v9473_v56 }
 0x940   : > { %v8441_v16 = vsub.f32 %v8360_v14, %v8440_v41  ;;  %v36461_v36 = vpop.permute.xlu0 %7859 }
 0x941   : > { %v8857_v5 = vsel %vm2534_vm4, %v36461_v36, 0  ;;  %v8485_v44 = vand.u32 4294901760, %v8484_v42  ;;  %v9475_v3 = vand.u32 4294901760, %v9474_v62 }
 0x942   : > { %v8442_v22 = vand.u32 4294901760, %v8441_v16  ;;  %v36467_v18 = vand.u32 4294901760, %v8857_v5 }
 0x943   : > { %31764 = vmatprep.subr.mxu1 %v8485_v44 }
 0x944   : > { %v8977_v6 = vsub.f32 %v8857_v5, %v36467_v18  ;;  %v36473_v23 = vpop.permute.xlu0 %7846  ;;  %31765 = vmatpush3.xpose.msra.mxu1 %v8485_v44  ;;  %v8443_v25 = vsub.f32 %v8441_v16, %v8442_v22 }
 0x945   : > { %v8855_v38 = vsel %vm2534_vm4, %v36473_v23, 0  ;;  %31774 = vmatprep.subr.mxu1 %v8395_v63 }
 0x946   : > { %v36479_v26 = vand.u32 4294901760, %v8855_v38  ;;  %v8444_v39 = vand.u32 4294901760, %v8443_v25  ;;  %v8978_v27 = vand.u32 4294901760, %v8977_v6 }
 0x947   : > { %31767 = vmatmul.mubr.f32.vlgmr.msra.gmra.mxu1 %v8440_v41 }
 0x948   : > { %v8936_v29 = vsub.f32 %v8855_v38, %v36479_v26  ;;  %v36485_v24 = vpop.permute.xlu0 %7850  ;;  %31762 = vmatmul.mubr.f32.vlgmr.msra.gmra.mxu0 %v8444_v39  ;;  %31775 = vmatpush3.xpose.msra.mxu1 %v8395_v63  ;;  %v8979_v33 = vsub.f32 %v8977_v6, %v8978_v27 }
 0x949   : > { %v9348_v31 = vsel %vm2534_vm4, %v36485_v24, 0  ;;  %31770 = vmatpush3.xpose.msra.mxu0 %v8482_v9  ;;  %31771 = vmatprep.mubr.f32.mxu0 %v36425_v2  ;;  %v9432_v2 = vand.u32 4294901760, %v9431_v61 }
 0x94a   : > { %v8937_v35 = vand.u32 4294901760, %v8936_v29  ;;  %31776 = vmatprep.mubr.f32.mxu1 %v8432_v11  ;;  %31779 = vmatprep.subr.mxu0 %v8483_v51  ;;  %v36496_v54 = vand.u32 4294901760, %v9348_v31  ;;  %v8980_v48 = vand.u32 4294901760, %v8979_v33 }
 0x94b   : > { %31784 = vmatprep.subr.mxu1 %v8395_v63  ;;  %31777 = vmatmul.mubr.f32.vlgmr.msra.gmra.mxu1 %v8442_v22  ;;  %v9433_v4 = vsub.f32 %v9431_v61, %v9432_v2 }
 0x94c   : > { %31772 = vmatmul.mubr.f32.vlgmr.msra.gmra.mxu0 %v8441_v16  ;;  %31785 = vmatpush3.xpose.msra.mxu1 %v8395_v63  ;;  %v8938_v52 = vsub.f32 %v8936_v29, %v8937_v35  ;;  %v9421_v53 = vsub.f32 %v9348_v31, %v36496_v54 }
 0x94d   : > { %31780 = vmatpush3.xpose.msra.mxu0 %v8483_v51  ;;  %31781 = vmatprep.mubr.f32.mxu0 %v36416_v58  ;;  %v9434_v10 = vand.u32 4294901760, %v9433_v4 }
 0x94e   : > { %31786 = vmatprep.mubr.f32.mxu1 %v36416_v58  ;;  %31789 = vmatprep.subr.mxu0 %v36467_v18  ;;  %v8939_v58 = vand.u32 4294901760, %v8938_v52  ;;  %v9422_v32 = vand.u32 4294901760, %v9421_v53 }
 0x94f   : > { %31794 = vmatprep.subr.mxu1 %v8980_v48  ;;  %31787 = vmatmul.mubr.f32.vlgmr.msra.gmra.mxu1 %v8440_v41 }
 0x950   : > { %31782 = vmatmul.mubr.f32.vlgmr.msra.gmra.mxu0 %v8440_v41  ;;  %31795 = vmatpush3.xpose.msra.mxu1 %v8980_v48  ;;  %v9423_v46 = vsub.f32 %v9421_v53, %v9422_v32 }
 0x951   : > { %31790 = vmatpush3.xpose.msra.mxu0 %v36467_v18  ;;  %31791 = vmatprep.mubr.f32.mxu0 %v8929_v55 }
 0x952   : > { %31796 = vmatprep.mubr.f32.mxu1 %v36459_v15  ;;  %31799 = vmatprep.subr.mxu0 %v8977_v6  ;;  %v9424_v11 = vand.u32 4294901760, %v9423_v46 }
 0x953   : > { %31804 = vmatprep.subr.mxu1 %v36467_v18  ;;  %31797 = vmatmul.mubr.f32.vlgmr.msra.gmra.mxu1 %v36479_v26 }
 0x954   : > { %31792 = vmatmul.mubr.f32.vlgmr.msra.gmra.mxu0 %v8939_v58  ;;  %31805 = vmatpush3.xpose.msra.mxu1 %v36467_v18 }
 0x955   : > { %31800 = vmatpush3.xpose.msra.mxu0 %v8977_v6  ;;  %31801 = vmatprep.mubr.f32.mxu0 %v36470_v45 }
 0x956   : > { %31806 = vmatprep.mubr.f32.mxu1 %v8927_v28  ;;  %31809 = vmatprep.subr.mxu0 %v8978_v27 }
 0x957   : > { %31814 = vmatprep.subr.mxu1 %v36467_v18  ;;  %31807 = vmatmul.mubr.f32.vlgmr.msra.gmra.mxu1 %v8937_v35 }
 0x958   : > { %31802 = vmatmul.mubr.f32.vlgmr.msra.gmra.mxu0 %v8936_v29  ;;  %31815 = vmatpush3.xpose.msra.mxu1 %v36467_v18 }
 0x959   : > { %31810 = vmatpush3.xpose.msra.mxu0 %v8978_v27  ;;  %31811 = vmatprep.mubr.f32.mxu0 %v36459_v15 }
 0x95a   : > { %31816 = vmatprep.mubr.f32.mxu1 %v36459_v15  ;;  %31819 = vmatprep.subr.mxu0 %v36487_v30 }
 0x95b   : > { %31824 = vmatprep.subr.mxu1 %v9475_v3  ;;  %31817 = vmatmul.mubr.f32.vlgmr.msra.gmra.mxu1 %v36479_v26 }
 0x95c   : > { %31812 = vmatmul.mubr.f32.vlgmr.msra.gmra.mxu0 %v36479_v26  ;;  %31825 = vmatpush3.xpose.msra.mxu1 %v9475_v3 }
 0x95d   : > { %31820 = vmatpush3.xpose.msra.mxu0 %v36487_v30  ;;  %31821 = vmatprep.mubr.f32.mxu0 %v9424_v11 }
 0x95e   : > { %31826 = vmatprep.mubr.f32.mxu1 %v36496_v54  ;;  %31829 = vmatprep.subr.mxu0 %v9472_v47 }
 0x95f   : > { %31834 = vmatprep.subr.mxu1 %v36487_v30  ;;  %31827 = vmatmul.mubr.f32.vlgmr.msra.gmra.mxu1 %v36501_v49 }
 0x960   : > { %31822 = vmatmul.mubr.f32.vlgmr.msra.gmra.mxu0 %v9434_v10  ;;  %31835 = vmatpush3.xpose.msra.mxu1 %v36487_v30 }
 0x961   : > { %31830 = vmatpush3.xpose.msra.mxu0 %v9472_v47  ;;  %31831 = vmatprep.mubr.f32.mxu0 %v9421_v53 }
 0x962   : > { %31836 = vmatprep.mubr.f32.mxu1 %v9422_v32  ;;  %31839 = vmatprep.subr.mxu0 %v9473_v56 }
 0x963   : > { %31844 = vmatprep.subr.mxu1 %v36487_v30  ;;  %31837 = vmatmul.mubr.f32.vlgmr.msra.gmra.mxu1 %v9432_v2 }
 0x964   : > { %31832 = vmatmul.mubr.f32.vlgmr.msra.gmra.mxu0 %v9431_v61  ;;  %31845 = vmatpush3.xpose.msra.mxu1 %v36487_v30 }
 0x965   : > { %31840 = vmatpush3.xpose.msra.mxu0 %v9473_v56  ;;  %31841 = vmatprep.mubr.f32.mxu0 %v36496_v54 }
 0x966   : > { %31846 = vmatprep.mubr.f32.mxu1 %v36496_v54 }
 0x967   : > { %31847 = vmatmul.mubr.f32.vlgmr.msra.gmra.mxu1 %v36501_v49 }
 0x968   : > { %31842 = vmatmul.mubr.f32.vlgmr.msra.gmra.mxu0 %v36501_v49 }
 0x98c   : > { %v31733_v34 = vpop.f32.mrf.mxu0 }
 0x98e   : > { %v7941_v12 = vpop.f32.mrf.mxu0 }
 0x990   : > { %v31743_v59 = vpop.f32.mrf.mxu0 }
 0x992   : > { %v8107_v60 = vpop.f32.mrf.mxu0 }
 0x994   : > { %v31738_v63 = vpop.f32.mrf.mxu1  ;;  %v31753_v41 = vpop.f32.mrf.mxu0 }
 0x995   : > { %v8034_v9 = vadd.f32 %v31738_v63, %v31733_v34 }
 0x996   : > { %v8027_v13 = vpop.f32.mrf.mxu1  ;;  %v8270_v18 = vpop.f32.mrf.mxu0 }
 0x997   : > { %v8028_v14 = vadd.f32 %v8027_v13, %v7941_v12  ;;  %v8115_v51 = vadd.f32 %v31743_v59, %v8034_v9 }
 0x998   : > { %v31748_v15 = vpop.f32.mrf.mxu1 }
 0x999   : > { %v8197_v42 = vadd.f32 %v31748_v15, %v8115_v51  ;;  %v8108_v16 = vadd.f32 %v8107_v60, %v8028_v14 }
 0x99a   : > { %v8188_v5 = vpop.f32.mrf.mxu1 }
 0x99b   : > { %v8189_v44 = vadd.f32 %v8188_v5, %v8108_v16  ;;  %v8277_v22 = vadd.f32 %v31753_v41, %v8197_v42 }
 0x99c   : > { %v31758_v45 = vpop.f32.mrf.mxu1 }
 0x99d   : > { %v8355_v6 = vadd.f32 %v31758_v45, %v8277_v22  ;;  %v8271_v25 = vadd.f32 %v8270_v18, %v8189_v44 }
 0x99e   : > { %v8348_v38 = vpop.f32.mrf.mxu1 }
 0x99f   : > { %v36531_v17 = vmul.f32 0.17677669, %v8355_v6  ;;  %v8349_v26 = vadd.f32 %v8348_v38, %v8271_v25 }
 0x9a1   : > { %v36533_v39 = vmul.f32 0.17677669, %v8349_v26  ;;  %v9854_v27 = vsel %vm2534_vm4, %v36531_v17, -inf }
 0x9a2   : > { %9855 = vmax.xlane.f32.xlu1 %v9854_v27 }
 0x9a3   : > { %v9851_v28 = vsel %vm2534_vm4, %v36533_v39, -inf }
 0x9a4   : > { %9852 = vmax.xlane.f32.xlu0 %v9851_v28 }
 0xa07   : > { %v31768_v29 = vpop.f32.mrf.mxu1 }
 0xa08   : > { %v31763_v30 = vpop.f32.mrf.mxu0 }
 0xa09   : > { %v8522_v31 = vpop.f32.mrf.mxu1  ;;  %v8529_v35 = vadd.f32 %v31768_v29, %v31763_v30 }
 0xa0a   : > { %v8436_v33 = vpop.f32.mrf.mxu0 }
 0xa0b   : > { %v31778_v37 = vpop.f32.mrf.mxu1  ;;  %v8523_v40 = vadd.f32 %v8522_v31, %v8436_v33 }
 0xa0c   : > { %v31773_v54 = vpop.f32.mrf.mxu0 }
 0xa0d   : > { %v8610_v47 = vadd.f32 %v31773_v54, %v8529_v35  ;;  %v8683_v48 = vpop.f32.mrf.mxu1 }
 0xa0e   : > { %v8602_v49 = vpop.f32.mrf.mxu0 }
 0xa0f   : > { %v8692_v52 = vadd.f32 %v31778_v37, %v8610_v47  ;;  %v8603_v53 = vadd.f32 %v8602_v49, %v8523_v40  ;;  %v31788_v55 = vpop.f32.mrf.mxu1 }
 0xa10   : > { %v31783_v56 = vpop.f32.mrf.mxu0 }
 0xa11   : > { %v8684_v61 = vadd.f32 %v8683_v48, %v8603_v53  ;;  %v8772_v58 = vadd.f32 %v31783_v56, %v8692_v52  ;;  %v8843_v32 = vpop.f32.mrf.mxu1 }
 0xa12   : > { %v8765_v62 = vpop.f32.mrf.mxu0 }
 0xa13   : > { %v8766_v2 = vadd.f32 %v8765_v62, %v8684_v61  ;;  %v31798_v46 = vpop.f32.mrf.mxu1  ;;  %v8850_v4 = vadd.f32 %v31788_v55, %v8772_v58 }
 0xa14   : > { %v31793_v3 = vpop.f32.mrf.mxu0 }
 0xa15   : > { %v8844_v11 = vadd.f32 %v8843_v32, %v8766_v2  ;;  %v9017_v10 = vpop.f32.mrf.mxu1  ;;  %v9024_v59 = vadd.f32 %v31798_v46, %v31793_v3  ;;  %v36541_v9 = vmul.f32 0.17677669, %v8850_v4 }
 0xa16   : > { %v8931_v34 = vpop.f32.mrf.mxu0 }
 0xa17   : > { %v36539_v12 = vmul.f32 0.17677669, %v8844_v11  ;;  %v31808_v60 = vpop.f32.mrf.mxu1  ;;  %v9018_v13 = vadd.f32 %v9017_v10, %v8931_v34  ;;  %v9860_v6 = vsel %vm2534_vm4, %v36541_v9, -inf }
 0xa18   : > { %v31803_v63 = vpop.f32.mrf.mxu0 }
 0xa19   : > { %v9105_v14 = vadd.f32 %v31803_v63, %v9024_v59  ;;  %v9178_v51 = vpop.f32.mrf.mxu1  ;;  %v9857_v41 = vsel %vm2534_vm4, %v36539_v12, -inf }
 0xa1a   : > { %v9097_v15 = vpop.f32.mrf.mxu0  ;;  %9858 = vmax.xlane.f32.xlu0 %v9857_v41 }
 0xa1b   : > { %v9187_v42 = vadd.f32 %v31808_v60, %v9105_v14  ;;  %v9098_v16 = vadd.f32 %v9097_v15, %v9018_v13  ;;  %v31818_v5 = vpop.f32.mrf.mxu1 }
 0xa1c   : > { %v31813_v44 = vpop.f32.mrf.mxu0 }
 0xa1d   : > { %v9179_v22 = vadd.f32 %v9178_v51, %v9098_v16  ;;  %v9267_v18 = vadd.f32 %v31813_v44, %v9187_v42  ;;  %v9338_v45 = vpop.f32.mrf.mxu1 }
 0xa1e   : > { %v9260_v25 = vpop.f32.mrf.mxu0  ;;  %9861 = vmax.xlane.f32.xlu0 %v9860_v6 }
 0xa1f   : > { %v9345_v38 = vadd.f32 %v31818_v5, %v9267_v18  ;;  %v9261_v26 = vadd.f32 %v9260_v25, %v9179_v22  ;;  %v31828_v27 = vpop.f32.mrf.mxu1 }
 0xa20   : > { %v31823_v28 = vpop.f32.mrf.mxu0 }
 0xa21   : > { %v9848_v29 = vmul.f32 0.17677669, %v9345_v38  ;;  %v9339_v30 = vadd.f32 %v9338_v45, %v9261_v26  ;;  %v9512_v31 = vpop.f32.mrf.mxu1  ;;  %v9519_v37 = vadd.f32 %v31828_v27, %v31823_v28 }
 0xa22   : > { %v9426_v33 = vpop.f32.mrf.mxu0 }
 0xa23   : > { %v36547_v35 = vmul.f32 0.17677669, %v9339_v30  ;;  %v31838_v54 = vpop.f32.mrf.mxu1  ;;  %v9866_v40 = vsel %vm2534_vm4, %v9848_v29, -inf  ;;  %v9513_v48 = vadd.f32 %v9512_v31, %v9426_v33 }
 0xa24   : > { %v31833_v47 = vpop.f32.mrf.mxu0  ;;  %9867 = vmax.xlane.f32.xlu0 %v9866_v40 }
 0xa25   : > { %v9600_v49 = vadd.f32 %v31833_v47, %v9519_v37  ;;  %v9673_v52 = vpop.f32.mrf.mxu1  ;;  %v9863_v53 = vsel %vm2534_vm4, %v36547_v35, -inf }
 0xa26   : > { %v9592_v55 = vpop.f32.mrf.mxu0  ;;  %9864 = vmax.xlane.f32.xlu1 %v9863_v53 }
 0xa27   : > { %v9682_v56 = vadd.f32 %v31838_v54, %v9600_v49  ;;  %v9593_v61 = vadd.f32 %v9592_v55, %v9513_v48  ;;  %v31848_v32 = vpop.f32.mrf.mxu1 }
 0xa28   : > { %v31843_v58 = vpop.f32.mrf.mxu0 }
 0xa29   : > { %v9674_v62 = vadd.f32 %v9673_v52, %v9593_v61  ;;  %v9762_v2 = vadd.f32 %v31843_v58, %v9682_v56  ;;  %v9833_v10 = vpop.f32.mrf.mxu1 }
 0xa2a   : > { %v9755_v46 = vpop.f32.mrf.mxu0 }
 0xa2b   : > { %v9840_v3 = vadd.f32 %v31848_v32, %v9762_v2  ;;  %v9756_v4 = vadd.f32 %v9755_v46, %v9674_v62  ;;  %v9856_v11 = vpop.xlane.xlu1 %9855 }
 0xa2c   : > { %v9876_v34 = vsub.f32 %v36531_v17, %v9856_v11 }
 0xa2d   : > { %v9850_v59 = vmul.f32 0.17677669, %v9840_v3  ;;  %v9834_v60 = vadd.f32 %v9833_v10, %v9756_v4  ;;  %v9853_v63 = vpop.xlane.xlu0 %9852 }
 0xa2e   : > { %v9885_v13 = vmul.f32 1.442695, %v9876_v34  ;;  %v9875_v14 = vsub.f32 %v36533_v39, %v9853_v63 }
 0xa2f   : > { %v9849_v51 = vmul.f32 0.17677669, %v9834_v60  ;;  %v9872_v41 = vsel %vm2534_vm4, %v9850_v59, -inf }
 0xa30   : > { %34010 = vpow2.f32 %v9885_v13  ;;  %v9883_v15 = vmul.f32 1.442695, %v9875_v14  ;;  %9873 = vmax.xlane.f32.xlu0 %v9872_v41 }
 0xa31   : > { %v9869_v42 = vsel %vm2534_vm4, %v9849_v51, -inf }
 0xa32   : > { %34012 = vpow2.f32 %v9883_v15  ;;  %9870 = vmax.xlane.f32.xlu1 %v9869_v42 }
 0xa3d   : > { %v36556_v16 = vpop.eup %34010 }
 0xa3e   : > { %v9902_v17 = vsel %vm2534_vm4, %v36556_v16, 0.0 }
 0xa3f   : > { %v34013_v5 = vpop.eup %34012  ;;  %9903 = vadd.xlane.f32.xlu0 %v9902_v17 }
 0xa40   : > { %v9899_v44 = vsel %vm2534_vm4, %v34013_v5, 0.0 }
 0xa41   : > { %9900 = vadd.xlane.f32.xlu1 %v9899_v44 }
 0xaa3   : > { %v9859_v39 = vpop.xlane.xlu0 %9858 }
 0xaa4   : > { %v9877_v22 = vsub.f32 %v36539_v12, %v9859_v39 }
 0xaa6   : > { %v9887_v18 = vmul.f32 1.442695, %v9877_v22 }
 0xaa7   : > { %v9862_v45 = vpop.xlane.xlu0 %9861 }
 0xaa8   : > { %34014 = vpow2.f32 %v9887_v18  ;;  %v9878_v6 = vsub.f32 %v36541_v9, %v9862_v45 }
 0xaaa   : > { %v9889_v25 = vmul.f32 1.442695, %v9878_v6 }
 0xaac   : > { %34016 = vpow2.f32 %v9889_v25 }
 0xaad   : > { %v9868_v38 = vpop.xlane.xlu0 %9867 }
 0xaae   : > { %v9880_v26 = vsub.f32 %v9848_v29, %v9868_v38 }
 0xaaf   : > { %v9865_v31 = vpop.xlane.xlu1 %9864 }
 0xab0   : > { %v9893_v27 = vmul.f32 1.442695, %v9880_v26  ;;  %v9879_v58 = vsub.f32 %v36547_v35, %v9865_v31 }
 0xab2   : > { %34018 = vpow2.f32 %v9893_v27  ;;  %v9891_v32 = vmul.f32 1.442695, %v9879_v58 }
 0xab5   : > { %v36563_v28 = vpop.eup %34014 }
 0xab6   : > { %v9905_v30 = vsel %vm2534_vm4, %v36563_v28, 0.0 }
 0xab7   : > { %9906 = vadd.xlane.f32.xlu1 %v9905_v30 }
 0xab9   : > { %v36567_v33 = vpop.eup %34016  ;;  %v9874_v12 = vpop.xlane.xlu0 %9873 }
 0xaba   : > { %v9882_v37 = vsub.f32 %v9850_v59, %v9874_v12  ;;  %v9908_v9 = vsel %vm2534_vm4, %v36567_v33, 0.0 }
 0xabb   : > { %v9871_v54 = vpop.xlane.xlu1 %9870  ;;  %9909 = vadd.xlane.f32.xlu0 %v9908_v9 }
 0xabc   : > { %v9897_v40 = vmul.f32 1.442695, %v9882_v37  ;;  %v9881_v29 = vsub.f32 %v9849_v51, %v9871_v54 }
 0xabe   : > { %34020 = vpow2.f32 %v9897_v40  ;;  %v9895_v47 = vmul.f32 1.442695, %v9881_v29 }
 0xabf   : > { %v36571_v48 = vpop.eup %34018 }
 0xac0   : > { %34022 = vpow2.f32 %v9895_v47  ;;  %v9914_v49 = vsel %vm2534_vm4, %v36571_v48, 0.0 }
 0xac1   : > { %9915 = vadd.xlane.f32.xlu0 %v9914_v49 }
 0xac8   : > { %9939 = vrot.lane.b32.xlu1 %v36414_v57, %s35085_s6  ;;  %v9904_v59 = vpop.xlane.xlu0 %9903 }
 0xaca   : > { %v9901_v52 = vpop.xlane.xlu1 %9900 }
 0xacb   : > { %v36577_v53 = vpop.eup %34020  ;;  %34024 = vrcp.f32 %v9901_v52 }
 0xacc   : > { %v9920_v55 = vsel %vm2534_vm4, %v36577_v53, 0.0  ;;  %34026 = vpow2.f32 %v9891_v32 }
 0xacd   : > { %v36581_v56 = vpop.eup %34022  ;;  %9921 = vadd.xlane.f32.xlu0 %v9920_v55  ;;  %34028 = vrcp.f32 %v9904_v59 }
 0xace   : > { %v9917_v61 = vsel %vm2534_vm4, %v36581_v56, 0.0 }
 0xad1   : > { %9918 = vadd.xlane.f32.xlu0 %v9917_v61 }
 0xad8   : > { %v34025_v62 = vpop.eup %34024 }
 0xad9   : > { %v9931_v2 = vmul.f32 %v34025_v62, %v34013_v5  ;;  %v36589_v34 = vpop.eup %34026 }
 0xada   : > { %v9911_v35 = vsel %vm2534_vm4, %v36589_v34, 0.0  ;;  %v34029_v60 = vpop.eup %34028 }
 0xadb   : > { %v9943_v57 = vsel %vm2534_vm4, %v9931_v2, 0  ;;  %v9932_v63 = vmul.f32 %v34029_v60, %v36556_v16 }
 0xadc   : > { %v10014_v46 = vand.u32 4294901760, %v9943_v57 }
 0xadd   : > { %v9946_v13 = vsel %vm2534_vm4, %v9932_v63, 0 }
 0xade   : > { %31856 = vmatprep.mubr.f32.mxu1 %v10014_v46  ;;  %v10015_v3 = vsub.f32 %v9943_v57, %v10014_v46 }
 0xae0   : > { %v10016_v4 = vand.u32 4294901760, %v10015_v3 }
 0xae2   : > { %v10017_v11 = vsub.f32 %v10015_v3, %v10016_v4 }
 0xae4   : > { %v10018_v10 = vand.u32 4294901760, %v10017_v11 }
 0xae6   : > { %31851 = vmatprep.mubr.f32.mxu0 %v10018_v10 }
 0xae7   : > { %10437 = vrot.lane.b32.xlu0 %v36447_v21, %s35085_s6  ;;  %v10024_v21 = vand.u32 4294901760, %v9946_v13 }
 0xae9   : > { %v10025_v14 = vsub.f32 %v9946_v13, %v10024_v21 }
 0xaeb   : > { %v10026_v51 = vand.u32 4294901760, %v10025_v14 }
 0xaec   : > { %9912 = vadd.xlane.f32.xlu1 %v9911_v35 }
 0xaed   : > { %v10027_v15 = vsub.f32 %v10025_v14, %v10026_v51 }
 0xafd   : > { %10935 = vrot.lane.b32.xlu1 %v36461_v36, %s35085_s6 }
 0xb01   : > { %11433 = vrot.lane.b32.xlu1 %v36465_v20, %s35085_s6  ;;  %v10028_v20 = vand.u32 4294901760, %v10027_v15 }
 0xb40   : > { %v9907_v41 = vpop.xlane.xlu1 %9906 }
 0xb41   : > { %34030 = vrcp.f32 %v9907_v41 }
 0xb44   : > { %v9940_v42 = vpop.permute.xlu1 %9939  ;;  %v9910_v17 = vpop.xlane.xlu0 %9909 }
 0xb45   : > { %v9979_v5 = vand.u32 4294901760, %v9940_v42  ;;  %34032 = vrcp.f32 %v9910_v17 }
 0xb47   : > { %v10066_v36 = vsub.f32 %v9940_v42, %v9979_v5  ;;  %31849 = vmatprep.subr.mxu0 %v9979_v5 }
 0xb48   : > { %31850 = vmatpush3.msra.mxu0 %v9979_v5 }
 0xb49   : > { %31852 = vmatmul.mubr.f32.vlgmr.msra.gmra.mxu0 %v10028_v20  ;;  %31859 = vmatprep.subr.mxu0 %v10066_v36  ;;  %v10067_v44 = vand.u32 4294901760, %v10066_v36 }
 0xb4a   : > { %31860 = vmatpush3.msra.mxu0 %v10066_v36  ;;  %31861 = vmatprep.mubr.f32.mxu0 %v10015_v3  ;;  %v9916_v25 = vpop.xlane.xlu0 %9915 }
 0xb4b   : > { %31869 = vmatprep.subr.mxu0 %v10067_v44  ;;  %v10068_v16 = vsub.f32 %v10066_v36, %v10067_v44  ;;  %34034 = vrcp.f32 %v9916_v25 }
 0xb4d   : > { %31862 = vmatmul.mubr.f32.vlgmr.msra.gmra.mxu0 %v10025_v14  ;;  %v10069_v39 = vand.u32 4294901760, %v10068_v16 }
 0xb4e   : > { %v34031_v22 = vpop.eup %34030  ;;  %31870 = vmatpush3.msra.mxu0 %v10067_v44  ;;  %31871 = vmatprep.mubr.f32.mxu0 %v10014_v46 }
 0xb4f   : > { %31854 = vmatprep.subr.mxu1 %v10069_v39  ;;  %v9933_v18 = vmul.f32 %v34031_v22, %v36563_v28 }
 0xb50   : > { %31855 = vmatpush3.msra.mxu1 %v10069_v39 }
 0xb51   : > { %31857 = vmatmul.mubr.f32.vlgmr.msra.gmra.mxu1 %v10024_v21  ;;  %31864 = vmatprep.subr.mxu1 %v9979_v5  ;;  %v10441_v45 = vsel %vm2534_vm4, %v9933_v18, 0 }
 0xb52   : > { %v34033_v6 = vpop.eup %34032  ;;  %31872 = vmatmul.mubr.f32.vlgmr.msra.gmra.mxu0 %v10024_v21  ;;  %31865 = vmatpush3.msra.mxu1 %v9979_v5  ;;  %v10512_v38 = vand.u32 4294901760, %v10441_v45 }
 0xb53   : > { %31866 = vmatprep.mubr.f32.mxu1 %v10016_v4  ;;  %31874 = vmatprep.subr.mxu1 %v9979_v5  ;;  %v9934_v26 = vmul.f32 %v34033_v6, %v36567_v33 }
 0xb54   : > { %v10513_v27 = vsub.f32 %v10441_v45, %v10512_v38 }
 0xb55   : > { %31867 = vmatmul.mubr.f32.vlgmr.msra.gmra.mxu1 %v10026_v51  ;;  %v10444_v30 = vsel %vm2534_vm4, %v9934_v26, 0 }
 0xb56   : > { %31875 = vmatpush3.msra.mxu1 %v9979_v5  ;;  %31876 = vmatprep.mubr.f32.mxu1 %v10014_v46  ;;  %v9922_v28 = vpop.xlane.xlu0 %9921  ;;  %v10514_v31 = vand.u32 4294901760, %v10513_v27  ;;  %v10522_v12 = vand.u32 4294901760, %v10444_v30 }
 0xb58   : > { %v10515_v37 = vsub.f32 %v10513_v27, %v10514_v31  ;;  %v10523_v9 = vsub.f32 %v10444_v30, %v10522_v12  ;;  %v34035_v2 = vpop.eup %34034 }
 0xb59   : > { %31877 = vmatmul.mubr.f32.vlgmr.msra.gmra.mxu1 %v10024_v21  ;;  %v9936_v46 = vmul.f32 %v34035_v2, %v36571_v48 }
 0xb5a   : > { %31886 = vmatprep.mubr.f32.mxu1 %v10512_v38  ;;  %v9919_v54 = vpop.xlane.xlu0 %9918  ;;  %v10516_v40 = vand.u32 4294901760, %v10515_v37  ;;  %v10524_v29 = vand.u32 4294901760, %v10523_v9 }
 0xb5b   : > { %34036 = vrcp.f32 %v9919_v54  ;;  %v10942_v10 = vsel %vm2534_vm4, %v9936_v46, 0 }
 0xb5c   : > { %31881 = vmatprep.mubr.f32.mxu0 %v10516_v40  ;;  %v10525_v47 = vsub.f32 %v10523_v9, %v10524_v29  ;;  %34038 = vrcp.f32 %v9922_v28  ;;  %v11020_v13 = vand.u32 4294901760, %v10942_v10 }
 0xb5e   : > { %v10438_v49 = vpop.permute.xlu0 %10437  ;;  %v10526_v55 = vand.u32 4294901760, %v10525_v47  ;;  %v11021_v42 = vsub.f32 %v10942_v10, %v11020_v13 }
 0xb5f   : > { %v10477_v33 = vand.u32 4294901760, %v10438_v49 }
 0xb60   : > { %v11022_v16 = vand.u32 4294901760, %v11021_v42 }
 0xb61   : > { %v10564_v52 = vsub.f32 %v10438_v49, %v10477_v33  ;;  %31879 = vmatprep.subr.mxu0 %v10477_v33 }
 0xb62   : > { %31880 = vmatpush3.msra.mxu0 %v10477_v33 }
 0xb63   : > { %31882 = vmatmul.mubr.f32.vlgmr.msra.gmra.mxu0 %v10526_v55  ;;  %31889 = vmatprep.subr.mxu0 %v10564_v52  ;;  %v10565_v61 = vand.u32 4294901760, %v10564_v52 }
 0xb64   : > { %31890 = vmatpush3.msra.mxu0 %v10564_v52  ;;  %31891 = vmatprep.mubr.f32.mxu0 %v10513_v27 }
 0xb65   : > { %31899 = vmatprep.subr.mxu0 %v10565_v61  ;;  %v10566_v58 = vsub.f32 %v10564_v52, %v10565_v61 }
 0xb67   : > { %31892 = vmatmul.mubr.f32.vlgmr.msra.gmra.mxu0 %v10523_v9  ;;  %v10567_v32 = vand.u32 4294901760, %v10566_v58 }
 0xb68   : > { %31900 = vmatpush3.msra.mxu0 %v10565_v61  ;;  %31901 = vmatprep.mubr.f32.mxu0 %v10512_v38  ;;  %v34037_v60 = vpop.eup %34036 }
 0xb69   : > { %31884 = vmatprep.subr.mxu1 %v10567_v32  ;;  %v34039_v21 = vpop.eup %34038  ;;  %v9937_v41 = vmul.f32 %v34037_v60, %v36581_v56 }
 0xb6a   : > { %31885 = vmatpush3.msra.mxu1 %v10567_v32  ;;  %v9938_v17 = vmul.f32 %v34039_v21, %v36577_v53  ;;  %v11023_v53 = vsub.f32 %v11021_v42, %v11022_v16 }
 0xb6b   : > { %31887 = vmatmul.mubr.f32.vlgmr.msra.gmra.mxu1 %v10522_v12  ;;  %31894 = vmatprep.subr.mxu1 %v10477_v33  ;;  %v11437_v44 = vsel %vm2534_vm4, %v9937_v41, 0 }
 0xb6c   : > { %31902 = vmatmul.mubr.f32.vlgmr.msra.gmra.mxu0 %v10522_v12  ;;  %31895 = vmatpush3.msra.mxu1 %v10477_v33  ;;  %v11440_v56 = vsel %vm2534_vm4, %v9938_v17, 0  ;;  %v11508_v22 = vand.u32 4294901760, %v11437_v44  ;;  %v11024_v27 = vand.u32 4294901760, %v11023_v53 }
 0xb6d   : > { %31896 = vmatprep.mubr.f32.mxu1 %v10514_v31  ;;  %31904 = vmatprep.subr.mxu1 %v10477_v33  ;;  %v11518_v45 = vand.u32 4294901760, %v11440_v56 }
 0xb6f   : > { %31897 = vmatmul.mubr.f32.vlgmr.msra.gmra.mxu1 %v10524_v29  ;;  %v11519_v30 = vsub.f32 %v11440_v56, %v11518_v45 }
 0xb70   : > { %31905 = vmatpush3.msra.mxu1 %v10477_v33  ;;  %31906 = vmatprep.mubr.f32.mxu1 %v10512_v38  ;;  %v11509_v38 = vsub.f32 %v11437_v44, %v11508_v22 }
 0xb71   : > { %v11520_v31 = vand.u32 4294901760, %v11519_v30 }
 0xb72   : > { %v11510_v28 = vand.u32 4294901760, %v11509_v38 }
 0xb73   : > { %31907 = vmatmul.mubr.f32.vlgmr.msra.gmra.mxu1 %v10522_v12  ;;  %v11521_v37 = vsub.f32 %v11519_v30, %v11520_v31 }
 0xb74   : > { %v11511_v12 = vsub.f32 %v11509_v38, %v11510_v28 }
 0xb75   : > { %v9913_v62 = vpop.xlane.xlu1 %9912  ;;  %v11522_v54 = vand.u32 4294901760, %v11521_v37 }
 0xb76   : > { %34040 = vrcp.f32 %v9913_v62  ;;  %v11512_v9 = vand.u32 4294901760, %v11511_v12 }
 0xb79   : > { %v10936_v57 = vpop.permute.xlu1 %10935 }
 0xb7a   : > { %v10975_v3 = vand.u32 4294901760, %v10936_v57 }
 0xb7c   : > { %v11062_v4 = vsub.f32 %v10936_v57, %v10975_v3  ;;  %31909 = vmatprep.subr.mxu0 %v10975_v3 }
 0xb7d   : > { %v11434_v11 = vpop.permute.xlu1 %11433  ;;  %31910 = vmatpush3.msra.mxu0 %v10975_v3 }
 0xb7e   : > { %v36605_v35 = vand.u32 4294901760, %v11434_v11  ;;  %31919 = vmatprep.subr.mxu0 %v11062_v4  ;;  %v11063_v59 = vand.u32 4294901760, %v11062_v4 }
 0xb80   : > { %v11064_v63 = vsub.f32 %v11062_v4, %v11063_v59  ;;  %v36608_v14 = vsub.f32 %v11434_v11, %v36605_v35 }
 0xb82   : > { %v11065_v51 = vand.u32 4294901760, %v11064_v63  ;;  %v11561_v36 = vand.u32 4294901760, %v36608_v14 }
 0xb83   : > { %v34041_v48 = vpop.eup %34040 }
 0xb84   : > { %31914 = vmatprep.subr.mxu1 %v11065_v51  ;;  %v9935_v15 = vmul.f32 %v34041_v48, %v36589_v34  ;;  %v11562_v34 = vsub.f32 %v36608_v14, %v11561_v36 }
 0xb85   : > { %31915 = vmatpush3.msra.mxu1 %v11065_v51 }
 0xb86   : > { %31924 = vmatprep.subr.mxu1 %v10975_v3  ;;  %v10939_v5 = vsel %vm2534_vm4, %v9935_v15, 0  ;;  %v11563_v25 = vand.u32 4294901760, %v11562_v34 }
 0xb87   : > { %v11010_v20 = vand.u32 4294901760, %v10939_v5 }
 0xb89   : > { %31916 = vmatprep.mubr.f32.mxu1 %v11010_v20  ;;  %v11011_v39 = vsub.f32 %v10939_v5, %v11010_v20 }
 0xb8a   : > { %31917 = vmatmul.mubr.f32.vlgmr.msra.gmra.mxu1 %v11020_v13 }
 0xb8b   : > { %31925 = vmatpush3.msra.mxu1 %v10975_v3  ;;  %v11012_v18 = vand.u32 4294901760, %v11011_v39 }
 0xb8c   : > { %31934 = vmatprep.subr.mxu1 %v10975_v3 }
 0xb8d   : > { %31926 = vmatprep.mubr.f32.mxu1 %v11012_v18  ;;  %v11013_v6 = vsub.f32 %v11011_v39, %v11012_v18 }
 0xb8e   : > { %31927 = vmatmul.mubr.f32.vlgmr.msra.gmra.mxu1 %v11022_v16 }
 0xb8f   : > { %31935 = vmatpush3.msra.mxu1 %v10975_v3  ;;  %31936 = vmatprep.mubr.f32.mxu1 %v11010_v20  ;;  %v11014_v26 = vand.u32 4294901760, %v11013_v6 }
 0xb90   : > { %31944 = vmatprep.subr.mxu1 %v11563_v25 }
 0xb91   : > { %31911 = vmatprep.mubr.f32.mxu0 %v11014_v26 }
 0xb92   : > { %31912 = vmatmul.mubr.f32.vlgmr.msra.gmra.mxu0 %v11024_v27  ;;  %31937 = vmatmul.mubr.f32.vlgmr.msra.gmra.mxu1 %v11020_v13 }
 0xb93   : > { %31920 = vmatpush3.msra.mxu0 %v11062_v4  ;;  %31945 = vmatpush3.msra.mxu1 %v11563_v25 }
 0xb94   : > { %31921 = vmatprep.mubr.f32.mxu0 %v11011_v39  ;;  %31929 = vmatprep.subr.mxu0 %v11063_v59 }
 0xb95   : > { %31946 = vmatprep.mubr.f32.mxu1 %v11508_v22  ;;  %31954 = vmatprep.subr.mxu1 %v36605_v35 }
 0xb96   : > { %31922 = vmatmul.mubr.f32.vlgmr.msra.gmra.mxu0 %v11021_v42  ;;  %31947 = vmatmul.mubr.f32.vlgmr.msra.gmra.mxu1 %v11518_v45 }
 0xb97   : > { %31930 = vmatpush3.msra.mxu0 %v11063_v59  ;;  %31955 = vmatpush3.msra.mxu1 %v36605_v35 }
 0xb98   : > { %31931 = vmatprep.mubr.f32.mxu0 %v11010_v20  ;;  %31939 = vmatprep.subr.mxu0 %v36605_v35 }
 0xb99   : > { %31956 = vmatprep.mubr.f32.mxu1 %v11510_v28  ;;  %31964 = vmatprep.subr.mxu1 %v36605_v35 }
 0xb9a   : > { %31932 = vmatmul.mubr.f32.vlgmr.msra.gmra.mxu0 %v11020_v13  ;;  %31957 = vmatmul.mubr.f32.vlgmr.msra.gmra.mxu1 %v11520_v31  ;;  %v6842_v31 = vld [vmem:[#allocation22 + $0x18] sm:$0xff] }
 0xb9b   : > { %31940 = vmatpush3.msra.mxu0 %v36605_v35  ;;  %31965 = vmatpush3.msra.mxu1 %v36605_v35 }
 0xb9c   : > { %31941 = vmatprep.mubr.f32.mxu0 %v11512_v9  ;;  %31949 = vmatprep.subr.mxu0 %v36608_v14 }
 0xb9d   : > { %31966 = vmatprep.mubr.f32.mxu1 %v11508_v22 }
 0xb9e   : > { %31942 = vmatmul.mubr.f32.vlgmr.msra.gmra.mxu0 %v11522_v54  ;;  %31967 = vmatmul.mubr.f32.vlgmr.msra.gmra.mxu1 %v11518_v45 }
 0xb9f   : > { %31950 = vmatpush3.msra.mxu0 %v36608_v14  ;;  %31951 = vmatprep.mubr.f32.mxu0 %v11509_v38 }
 0xba0   : > { %31959 = vmatprep.subr.mxu0 %v11561_v36 }
 0xba2   : > { %31952 = vmatmul.mubr.f32.vlgmr.msra.gmra.mxu0 %v11519_v30 }
 0xba3   : > { %31960 = vmatpush3.msra.mxu0 %v11561_v36  ;;  %31961 = vmatprep.mubr.f32.mxu0 %v11508_v22 }
 0xba6   : > { %31962 = vmatmul.mubr.f32.vlgmr.msra.gmra.mxu0 %v11518_v45 }
 0xc09   : > { %v31853_v40 = vpop.f32.mrf.mxu0 }
 0xc0b   : > { %v36626_v29 = vpop.f32.mrf.mxu0 }
 0xc0d   : > { %v31863_v47 = vpop.f32.mrf.mxu0 }
 0xc0f   : > { %v36628_v52 = vpop.f32.mrf.mxu0 }
 0xc11   : > { %v31858_v49 = vpop.f32.mrf.mxu1 }
 0xc12   : > { %v10113_v33 = vadd.f32 %v31858_v49, %v31853_v40  ;;  %v31873_v62 = vpop.f32.mrf.mxu0  ;;  %v6841_v40 = vld [vmem:[#allocation22 + $0x10] sm:$0xff] }
 0xc13   : > { %v36630_v55 = vpop.f32.mrf.mxu1  ;;  %v36649_v49 = vand.u32 4294901760, %v6841_v40 }
 0xc14   : > { %v10194_v61 = vadd.f32 %v31863_v47, %v10113_v33  ;;  %v36636_v4 = vpop.f32.mrf.mxu0 }
 0xc15   : > { %v31868_v58 = vpop.f32.mrf.mxu1 }
 0xc16   : > { %v10276_v32 = vadd.f32 %v31868_v58, %v10194_v61  ;;  %v6840_v58 = vld [vmem:[#allocation22 + $0x8] sm:$0xff] }
 0xc17   : > { %v36632_v2 = vpop.f32.mrf.mxu1 }
 0xc18   : > { %v10356_v57 = vadd.f32 %v31873_v62, %v10276_v32 }
 0xc19   : > { %v31878_v46 = vpop.f32.mrf.mxu1 }
 0xc1a   : > { %v36634_v3 = vadd.f32 %v31878_v46, %v10356_v57  ;;  %v36657_v46 = vsub.f32 %v6841_v40, %v36649_v49 }
 0xc1b   : > { %v36638_v59 = vpop.f32.mrf.mxu1 }
 0xc23   : > { %v31883_v11 = vpop.f32.mrf.mxu0 }
 0xc25   : > { %v10518_v10 = vpop.f32.mrf.mxu0 }
 0xc27   : > { %v31893_v35 = vpop.f32.mrf.mxu0 }
 0xc29   : > { %v10684_v60 = vpop.f32.mrf.mxu0 }
 0xc2b   : > { %v31888_v63 = vpop.f32.mrf.mxu1 }
 0xc2c   : > { %v10611_v13 = vadd.f32 %v31888_v63, %v31883_v11  ;;  %v31903_v48 = vpop.f32.mrf.mxu0  ;;  %v36659_v11 = vand.u32 4294901760, %v6840_v58 }
 0xc2d   : > { %v10604_v21 = vpop.f32.mrf.mxu1 }
 0xc2e   : > { %v10605_v14 = vadd.f32 %v10604_v21, %v10518_v10  ;;  %v10692_v51 = vadd.f32 %v31893_v35, %v10611_v13  ;;  %v10847_v20 = vpop.f32.mrf.mxu0  ;;  %v36666_v21 = vand.u32 4294901760, %v36657_v46 }
 0xc2f   : > { %v31898_v41 = vpop.f32.mrf.mxu1 }
 0xc30   : > { %v10774_v15 = vadd.f32 %v31898_v41, %v10692_v51  ;;  %v10685_v42 = vadd.f32 %v10684_v60, %v10605_v14  ;;  %v6839_v60 = vld [vmem:[#allocation22] sm:$0xff]  ;;  %v36669_v14 = vsub.f32 %v6840_v58, %v36659_v11 }
 0xc31   : > { %v10765_v17 = vpop.f32.mrf.mxu1  ;;  %v36671_v51 = vand.u32 4294901760, %v6839_v60 }
 0xc32   : > { %v10766_v5 = vadd.f32 %v10765_v17, %v10685_v42  ;;  %v10854_v36 = vadd.f32 %v31903_v48, %v10774_v15 }
 0xc33   : > { %v31908_v44 = vpop.f32.mrf.mxu1 }
 0xc34   : > { %v10932_v16 = vadd.f32 %v31908_v44, %v10854_v36  ;;  %v10848_v39 = vadd.f32 %v10847_v20, %v10766_v5  ;;  %v12105_v5 = vsub.f32 %v36657_v46, %v36666_v21  ;;  %v36678_v36 = vand.u32 4294901760, %v36669_v14 }
 0xc35   : > { %v10925_v56 = vpop.f32.mrf.mxu1  ;;  %v36681_v20 = vsub.f32 %v6839_v60, %v36671_v51 }
 0xc36   : > { %v11934_v34 = vadd.f32 %v10932_v16, %v36455_v50  ;;  %v10926_v22 = vadd.f32 %v10925_v56, %v10848_v39  ;;  %v36644_v50 = vand.u32 4294901760, %v6842_v31  ;;  %v12106_v56 = vand.u32 4294901760, %v12105_v5 }
 0xc38   : > { %11943 = vrot.lane.b32.xlu1 %v11934_v34, %s35086_s5  ;;  %v11933_v18 = vadd.f32 %v10926_v22, %v36410_v43  ;;  %v36647_v47 = vsub.f32 %v6842_v31, %v36644_v50  ;;  %31969 = vmatprep.subr.mxu0 %v36644_v50  ;;  %v12112_v34 = vsub.f32 %v36669_v14, %v36678_v36  ;;  %v36689_v22 = vand.u32 4294901760, %v36681_v20 }
 0xc39   : > { %31970 = vmatpush3.msra.mxu0 %v36644_v50 }
 0xc3a   : > { %v36654_v57 = vand.u32 4294901760, %v36647_v47  ;;  %31971 = vmatprep.subr.mxu0 %v36649_v49 }
 0xc3b   : > { %31972 = vmatpush3.msra.mxu0 %v36649_v49 }
 0xc3c   : > { %11941 = vrot.lane.b32.xlu1 %v11933_v18, %s35086_s5  ;;  %v12098_v13 = vsub.f32 %v36647_v47, %v36654_v57  ;;  %31973 = vmatprep.subr.mxu0 %v36659_v11 }
 0xc3d   : > { %31974 = vmatpush3.msra.mxu0 %v36659_v11 }
 0xc3e   : > { %v12099_v17 = vand.u32 4294901760, %v12098_v13  ;;  %31975 = vmatprep.subr.mxu0 %v36671_v51 }
 0xc3f   : > { %31976 = vmatpush3.msra.mxu0 %v36671_v51 }
 0xc40   : > { %31980 = vmatprep.subr.mxu1 %v12099_v17  ;;  %31991 = vmatprep.subr.mxu0 %v36647_v47 }
 0xc41   : > { %31981 = vmatpush3.msra.mxu1 %v12099_v17 }
 0xc42   : > { %31982 = vmatprep.subr.mxu1 %v12106_v56 }
 0xc43   : > { %31983 = vmatpush3.msra.mxu1 %v12106_v56 }
 0xc4a   : > { %v31918_v53 = vpop.f32.mrf.mxu1 }
 0xc4c   : > { %v11102_v45 = vpop.f32.mrf.mxu1 }
 0xc4e   : > { %v31928_v6 = vpop.f32.mrf.mxu1 }
 0xc50   : > { %v11263_v25 = vpop.f32.mrf.mxu1 }
 0xc52   : > { %v31913_v38 = vpop.f32.mrf.mxu0  ;;  %v31938_v26 = vpop.f32.mrf.mxu1 }
 0xc53   : > { %v11109_v28 = vadd.f32 %v31918_v53, %v31913_v38 }
 0xc54   : > { %v11016_v27 = vpop.f32.mrf.mxu0  ;;  %v11423_v30 = vpop.f32.mrf.mxu1 }
 0xc55   : > { %v11103_v9 = vadd.f32 %v11102_v45, %v11016_v27 }
 0xc56   : > { %v31923_v12 = vpop.f32.mrf.mxu0  ;;  %v31948_v37 = vpop.f32.mrf.mxu1 }
 0xc57   : > { %v11190_v54 = vadd.f32 %v31923_v12, %v11109_v28 }
 0xc58   : > { %v11182_v43 = vpop.f32.mrf.mxu0  ;;  %v11600_v32 = vpop.f32.mrf.mxu1 }
 0xc59   : > { %v11183_v33 = vadd.f32 %v11182_v43, %v11103_v9  ;;  %v11272_v61 = vadd.f32 %v31928_v6, %v11190_v54  ;;  %v12113_v6 = vand.u32 4294901760, %v12112_v34 }
 0xc5a   : > { %v31933_v62 = vpop.f32.mrf.mxu0  ;;  %v31958_v15 = vpop.f32.mrf.mxu1 }
 0xc5b   : > { %v11352_v10 = vadd.f32 %v31933_v62, %v11272_v61  ;;  %v11264_v35 = vadd.f32 %v11263_v25, %v11183_v33  ;;  %v12119_v25 = vsub.f32 %v36681_v20, %v36689_v22  ;;  %31984 = vmatprep.subr.mxu1 %v12113_v6  ;;  %v10107_v62 = vadd.f32 %v36630_v55, %v36626_v29 }
 0xc5c   : > { %v11345_v63 = vpop.f32.mrf.mxu0  ;;  %31985 = vmatpush3.msra.mxu1 %v12113_v6 }
 0xc5d   : > { %v11430_v48 = vadd.f32 %v31938_v26, %v11352_v10  ;;  %v11346_v41 = vadd.f32 %v11345_v63, %v11264_v35  ;;  %v10187_v10 = vadd.f32 %v36628_v52, %v10107_v62 }
 0xc5e   : > { %v31943_v42 = vpop.f32.mrf.mxu0 }
 0xc5f   : > { %v11424_v44 = vadd.f32 %v11423_v30, %v11346_v41  ;;  %v11936_v16 = vadd.f32 %v11430_v48, %v36473_v23  ;;  %v11607_v18 = vadd.f32 %v31948_v37, %v31943_v42  ;;  %v11761_v23 = vpop.f32.mrf.mxu1  ;;  %v12120_v30 = vand.u32 4294901760, %v12119_v25 }
 0xc60   : > { %v11514_v39 = vpop.f32.mrf.mxu0  ;;  %v10268_v60 = vadd.f32 %v36632_v2, %v10187_v10  ;;  %v11932_v41 = vadd.f32 %v36634_v3, %v36388_v19  ;;  %v12521_v10 = vld [vmem:[#allocation26 + $0x10] sm:$0xff] }
 0xc61   : > { %11951 = vrot.lane.b32.xlu1 %v11936_v16, %s35087_s8  ;;  %v11935_v53 = vadd.f32 %v11424_v44, %v36451_v8  ;;  %v11601_v38 = vadd.f32 %v11600_v32, %v11514_v39  ;;  %v31968_v8 = vpop.f32.mrf.mxu1  ;;  %31986 = vmatprep.subr.mxu1 %v12120_v30 }
 0xc62   : > { %v31953_v45 = vpop.f32.mrf.mxu0  ;;  %31987 = vmatpush3.msra.mxu1 %v12120_v30  ;;  %v10350_v63 = vadd.f32 %v36636_v4, %v10268_v60  ;;  %v36832_v60 = vand.u32 4294901760, %v12521_v10 }
 0xc63   : > { %v11688_v26 = vadd.f32 %v31953_v45, %v11607_v18  ;;  %11949 = vrot.lane.b32.xlu0 %v11935_v53, %s35087_s8  ;;  %32002 = vmatprep.subr.mxu1 %v36644_v50  ;;  %v11921_v33 = vpop.f32.mrf.mxu1 }
 0xc64   : > { %v11680_v27 = vpop.f32.mrf.mxu0  ;;  %v10428_v48 = vadd.f32 %v36638_v59, %v10350_v63  ;;  %v12520_v63 = vld [vmem:[#allocation26 + $0x8] sm:$0xff] }
 0xc65   : > { %v11681_v28 = vadd.f32 %v11680_v27, %v11601_v38  ;;  %v11770_v31 = vadd.f32 %v31958_v15, %v11688_v26 }
 0xc66   : > { %v31963_v12 = vpop.f32.mrf.mxu0  ;;  %v11931_v15 = vadd.f32 %v10428_v48, %v36390_v1  ;;  %v36842_v48 = vsub.f32 %v12521_v10, %v36832_v60 }
 0xc67   : > { %v11850_v37 = vadd.f32 %v31963_v12, %v11770_v31  ;;  %v11762_v9 = vadd.f32 %v11761_v23, %v11681_v28 }
 0xc68   : > { %v11843_v54 = vpop.f32.mrf.mxu0 }
 0xc69   : > { %v11928_v40 = vadd.f32 %v31968_v8, %v11850_v37  ;;  %v11844_v43 = vadd.f32 %v11843_v54, %v11762_v9 }
 0xc6b   : > { %v11922_v61 = vadd.f32 %v11921_v33, %v11844_v43  ;;  %v11938_v58 = vadd.f32 %v11928_v40, %v36482_v7 }
 0xc6d   : > { %11959 = vrot.lane.b32.xlu1 %v11938_v58, %s35088_s15  ;;  %v11937_v32 = vadd.f32 %v11922_v61, %v36485_v24 }
 0xc6f   : > { %11957 = vrot.lane.b32.xlu0 %v11937_v32, %s35088_s15  ;;  %v12522_v32 = vld [vmem:[#allocation26 + $0x18] sm:$0xff] }
 0xc70   : > { %v36824_v62 = vand.u32 4294901760, %v12522_v32 }
 0xcaa   : > { %v11944_v35 = vpop.permute.xlu1 %11943 }
 0xcab   : > { %v11964_v42 = vsel %vm2534_vm4, %v11932_v41, %v11944_v35  ;;  %v36830_v35 = vsub.f32 %v12522_v32, %v36824_v62  ;;  %v12519_v41 = vld [vmem:[#allocation26] sm:$0xff] }
 0xcae   : > { %v11942_v13 = vpop.permute.xlu1 %11941 }
 0xcaf   : > { %v11963_v55 = vsel %vm2534_vm4, %v11931_v15, %v11942_v13  ;;  %v36839_v13 = vand.u32 4294901760, %v36830_v35  ;;  %v36851_v15 = vand.u32 4294901760, %v36842_v48 }
 0xcd3   : > { %v11952_v7 = vpop.permute.xlu1 %11951 }
 0xcd4   : > { %v11966_v29 = vsel %vm4399_vm5, %v11964_v42, %v11952_v7  ;;  %v36844_v7 = vand.u32 4294901760, %v12520_v63 }
 0xcd5   : > { %v11950_v24 = vpop.permute.xlu0 %11949 }
 0xcd6   : > { %v11965_v4 = vsel %vm4399_vm5, %v11963_v55, %v11950_v24  ;;  %v13152_v24 = vsub.f32 %v36830_v35, %v36839_v13  ;;  %v36854_v42 = vsub.f32 %v12520_v63, %v36844_v7 }
 0xcd8   : > { %v36864_v55 = vand.u32 4294901760, %v36854_v42 }
 0xcdf   : > { %v11960_v52 = vpop.permute.xlu1 %11959 }
 0xce0   : > { %v36715_v2 = vsel %vm6334_vm6, %v11966_v29, %v11960_v52  ;;  %v36856_v29 = vand.u32 4294901760, %v12519_v41  ;;  %v13159_v52 = vsub.f32 %v36842_v48, %v36851_v15 }
 0xce1   : > { %v11979_v59 = vsel %vm1515_vm1, %v36715_v2, 0  ;;  %v11958_v17 = vpop.permute.xlu0 %11957 }
 0xce2   : > { %v12060_v19 = vand.u32 4294901760, %v11979_v59  ;;  %v36721_v3 = vsel %vm6334_vm6, %v11965_v4, %v11958_v17  ;;  %v36867_v4 = vsub.f32 %v12519_v41, %v36856_v29  ;;  %v13166_v17 = vsub.f32 %v36854_v42, %v36864_v55 }
 0xce3   : > { %v11976_v1 = vsel %vm1515_vm1, %v36721_v3, 0 }
 0xce4   : > { %v12061_v5 = vsub.f32 %v11979_v59, %v12060_v19  ;;  %v12050_v44 = vand.u32 4294901760, %v11976_v1  ;;  %v13153_v59 = vand.u32 4294901760, %v13152_v24 }
 0xce6   : > { %v12062_v16 = vand.u32 4294901760, %v12061_v5  ;;  %v12051_v39 = vsub.f32 %v11976_v1, %v12050_v44  ;;  %31988 = vmatprep.mubr.f32.mxu1 %v12050_v44  ;;  %v13160_v1 = vand.u32 4294901760, %v13159_v52 }
 0xce7   : > { %31989 = vmatmul.mubr.f32.vlgmr.msra.gmra.mxu1 %v12060_v19 }
 0xce8   : > { %32003 = vmatpush3.msra.mxu1 %v36644_v50  ;;  %v12052_v56 = vand.u32 4294901760, %v12051_v39  ;;  %v12063_v34 = vsub.f32 %v12061_v5, %v12062_v16 }
 0xce9   : > { %32004 = vmatprep.subr.mxu1 %v36649_v49 }
 0xcea   : > { %32005 = vmatpush3.msra.mxu1 %v36649_v49  ;;  %32010 = vmatprep.mubr.f32.mxu1 %v12052_v56  ;;  %v12053_v18 = vsub.f32 %v12051_v39, %v12052_v56  ;;  %v12064_v23 = vand.u32 4294901760, %v12063_v34  ;;  %v29917_v56 = vld [vmem:[#allocation23] ss:$0 sm:$0xff] }
 0xceb   : > { %32006 = vmatprep.subr.mxu1 %v36659_v11 }
 0xcec   : > { %32007 = vmatpush3.msra.mxu1 %v36659_v11  ;;  %v12054_v53 = vand.u32 4294901760, %v12053_v18 }
 0xced   : > { %32008 = vmatprep.subr.mxu1 %v36671_v51 }
 0xcee   : > { %32009 = vmatpush3.msra.mxu1 %v36671_v51  ;;  %31977 = vmatprep.mubr.f32.mxu0 %v12054_v53 }
 0xcef   : > { %32011 = vmatmul.mubr.f32.vlgmr.msra.gmra.mxu1 %v12062_v16  ;;  %32024 = vmatprep.subr.mxu1 %v36644_v50 }
 0xcf0   : > { %31978 = vmatmul.mubr.f32.vlgmr.msra.gmra.mxu0 %v12064_v23  ;;  %32025 = vmatpush3.msra.mxu1 %v36644_v50  ;;  %v12517_v50 = vld [vmem:[%s38962_s13 + $0x18] sm:$0xff] }
 0xcf1   : > { %31992 = vmatpush3.msra.mxu0 %v36647_v47  ;;  %32032 = vmatprep.mubr.f32.mxu1 %v12050_v44  ;;  %v36762_v47 = vand.u32 4294901760, %v12517_v50 }
 0xcf2   : > { %31993 = vmatprep.subr.mxu0 %v36657_v46  ;;  %31999 = vmatprep.mubr.f32.mxu0 %v12051_v39 }
 0xcf3   : > { %32026 = vmatprep.subr.mxu1 %v36649_v49  ;;  %31994 = vmatpush3.msra.mxu0 %v36657_v46 }
 0xcf4   : > { %32027 = vmatpush3.msra.mxu1 %v36649_v49  ;;  %31995 = vmatprep.subr.mxu0 %v36669_v14  ;;  %v12516_v49 = vld [vmem:[%s38962_s13 + $0x10] sm:$0xff] }
 0xcf5   : > { %32028 = vmatprep.subr.mxu1 %v36659_v11  ;;  %31996 = vmatpush3.msra.mxu0 %v36669_v14  ;;  %v36769_v46 = vand.u32 4294901760, %v12516_v49 }
 0xcf6   : > { %32029 = vmatpush3.msra.mxu1 %v36659_v11  ;;  %31997 = vmatprep.subr.mxu0 %v36681_v20  ;;  %v12515_v11 = vld [vmem:[%s38962_s13 + $0x8] sm:$0xff] }
 0xcf7   : > { %32030 = vmatprep.subr.mxu1 %v36671_v51  ;;  %31998 = vmatpush3.msra.mxu0 %v36681_v20  ;;  %v12514_v20 = vld [vmem:[%s38962_s13] sm:$0xff] }
 0xcf8   : > { %32031 = vmatpush3.msra.mxu1 %v36671_v51  ;;  %32000 = vmatmul.mubr.f32.vlgmr.msra.gmra.mxu0 %v12061_v5  ;;  %v36778_v51 = vand.u32 4294901760, %v12515_v11  ;;  %v36789_v38 = vand.u32 4294901760, %v12514_v20 }
 0xcf9   : > { %32013 = vmatprep.subr.mxu0 %v36654_v57  ;;  %32033 = vmatmul.mubr.f32.vlgmr.msra.gmra.mxu1 %v12060_v19 }
 0xcfa   : > { %32014 = vmatpush3.msra.mxu0 %v36654_v57  ;;  %32021 = vmatprep.mubr.f32.mxu0 %v12050_v44  ;;  %v36767_v57 = vsub.f32 %v12517_v50, %v36762_v47  ;;  %v36786_v6 = vsub.f32 %v12515_v11, %v36778_v51  ;;  %v36797_v28 = vsub.f32 %v12514_v20, %v36789_v38  ;;  %v13167_v44 = vand.u32 4294901760, %v13166_v17 }
 0xcfb   : > { %32015 = vmatprep.subr.mxu0 %v36666_v21  ;;  %32046 = vmatprep.subr.mxu1 %v35080_v0 }
 0xcfc   : > { %32016 = vmatpush3.msra.mxu0 %v36666_v21  ;;  %32054 = vmatprep.mubr.msk.f32.mxu1 %vm35081_vm0, %v35080_v0  ;;  %v36775_v21 = vsub.f32 %v12516_v49, %v36769_v46  ;;  %v12644_v14 = vand.u32 4294901760, %v36767_v57  ;;  %v12658_v31 = vand.u32 4294901760, %v36786_v6  ;;  %v12665_v9 = vand.u32 4294901760, %v36797_v28 }
 0xcfd   : > { %32017 = vmatprep.subr.mxu0 %v36678_v36 }
 0xcfe   : > { %32018 = vmatpush3.msra.mxu0 %v36678_v36  ;;  %v12513_v36 = vld [vmem:[#allocation5] sm:$0xff]  ;;  %v12645_v45 = vsub.f32 %v36767_v57, %v12644_v14  ;;  %v12651_v25 = vand.u32 4294901760, %v36775_v21  ;;  %v12659_v37 = vsub.f32 %v36786_v6, %v12658_v31  ;;  %v12666_v43 = vsub.f32 %v36797_v28, %v12665_v9 }
 0xcff   : > { %32019 = vmatprep.subr.mxu0 %v36689_v22 }
 0xd00   : > { %32020 = vmatpush3.msra.mxu0 %v36689_v22  ;;  %v12536_v22 = vsel %vm1515_vm1, %v12513_v36, 0  ;;  %v12646_v27 = vand.u32 4294901760, %v12645_v45  ;;  %v12652_v30 = vsub.f32 %v36775_v21, %v12651_v25  ;;  %v12660_v40 = vand.u32 4294901760, %v12659_v37 }
 0xd01   : > { %32022 = vmatmul.mubr.f32.vlgmr.msra.gmra.mxu0 %v12060_v19  ;;  %32035 = vmatprep.subr.mxu0 %v35080_v0  ;;  %v36792_v26 = vand.u32 4294901760, %v12536_v22  ;;  %v12667_v61 = vand.u32 4294901760, %v12666_v43  ;;  %v36876_v19 = vand.u32 4294901760, %v36867_v4 }
 0xd02   : > { %32043 = vmatprep.mubr.msk.f32.mxu0 %vm35081_vm0, %v35080_v0  ;;  %32036 = vmatpush3.msra.mxu0 %v36762_v47  ;;  %v12653_v12 = vand.u32 4294901760, %v12652_v30 }
 0xd03   : > { %32037 = vmatprep.subr.mxu0 %v35080_v0  ;;  %v12608_v8 = vsub.f32 %v12536_v22, %v36792_v26  ;;  %32047 = vmatpush3.msra.mxu1 %v12646_v27  ;;  %v13173_v5 = vsub.f32 %v36867_v4, %v36876_v19 }
 0xd04   : > { %32038 = vmatpush3.msra.mxu0 %v36769_v46  ;;  %32048 = vmatprep.subr.mxu1 %v35080_v0 }
 0xd05   : > { %32039 = vmatprep.subr.mxu0 %v35080_v0  ;;  %v12609_v54 = vand.u32 4294901760, %v12608_v8  ;;  %32049 = vmatpush3.msra.mxu1 %v12653_v12  ;;  %v13174_v16 = vand.u32 4294901760, %v13173_v5 }
 0xd06   : > { %32040 = vmatpush3.msra.mxu0 %v36778_v51  ;;  %32050 = vmatprep.subr.mxu1 %v35080_v0 }
 0xd07   : > { %32041 = vmatprep.subr.mxu0 %v35080_v0  ;;  %v12610_v33 = vsub.f32 %v12608_v8, %v12609_v54  ;;  %32051 = vmatpush3.msra.mxu1 %v12660_v40 }
 0xd08   : > { %32042 = vmatpush3.msra.mxu0 %v36789_v38  ;;  %32052 = vmatprep.subr.mxu1 %v35080_v0 }
 0xd09   : > { %32057 = vmatprep.subr.mxu0 %v35080_v0  ;;  %v12611_v58 = vand.u32 4294901760, %v12610_v33  ;;  %32053 = vmatpush3.msra.mxu1 %v12667_v61 }
 0xd0a   : > { %32068 = vmatprep.subr.mxu1 %v35080_v0  ;;  %32055 = vmatmul.mubr.f32.vlgmr.msra.gmra.mxu1 %v36792_v26 }
 0xd0b   : > { %32044 = vmatmul.mubr.f32.vlgmr.msra.gmra.mxu0 %v12611_v58  ;;  %32069 = vmatpush3.msra.mxu1 %v36762_v47 }
 0xd0c   : > { %32058 = vmatpush3.msra.mxu0 %v36767_v57  ;;  %32070 = vmatprep.subr.mxu1 %v35080_v0 }
 0xd0d   : > { %32059 = vmatprep.subr.mxu0 %v35080_v0  ;;  %32071 = vmatpush3.msra.mxu1 %v36769_v46 }
 0xd0e   : > { %32060 = vmatpush3.msra.mxu0 %v36775_v21  ;;  %32072 = vmatprep.subr.mxu1 %v35080_v0 }
 0xd0f   : > { %32061 = vmatprep.subr.mxu0 %v35080_v0  ;;  %32073 = vmatpush3.msra.mxu1 %v36778_v51 }
 0xd10   : > { %32062 = vmatpush3.msra.mxu0 %v36786_v6  ;;  %32065 = vmatprep.mubr.msk.f32.mxu0 %vm35081_vm0, %v35080_v0 }
 0xd11   : > { %32063 = vmatprep.subr.mxu0 %v35080_v0  ;;  %32074 = vmatprep.subr.mxu1 %v35080_v0 }
 0xd12   : > { %32064 = vmatpush3.msra.mxu0 %v36797_v28  ;;  %32075 = vmatpush3.msra.mxu1 %v36789_v38 }
 0xd13   : > { %32079 = vmatprep.subr.mxu0 %v35080_v0  ;;  %32066 = vmatmul.mubr.f32.vlgmr.msra.gmra.mxu0 %v12608_v8 }
 0xd14   : > { %32080 = vmatpush3.msra.mxu0 %v12644_v14  ;;  %32076 = vmatprep.mubr.msk.f32.mxu1 %vm35081_vm0, %v35080_v0 }
 0xd15   : > { %32081 = vmatprep.subr.mxu0 %v35080_v0  ;;  %32090 = vmatprep.subr.mxu1 %v35080_v0 }
 0xd16   : > { %32077 = vmatmul.mubr.f32.vlgmr.msra.gmra.mxu1 %v12609_v54  ;;  %32082 = vmatpush3.msra.mxu0 %v12651_v25 }
 0xd17   : > { %32091 = vmatpush3.msra.mxu1 %v36762_v47  ;;  %32083 = vmatprep.subr.mxu0 %v35080_v0 }
 0xd18   : > { %32092 = vmatprep.subr.mxu1 %v35080_v0  ;;  %32084 = vmatpush3.msra.mxu0 %v12658_v31 }
 0xd19   : > { %32093 = vmatpush3.msra.mxu1 %v36769_v46  ;;  %32085 = vmatprep.subr.mxu0 %v35080_v0 }
 0xd1a   : > { %32094 = vmatprep.subr.mxu1 %v35080_v0  ;;  %32086 = vmatpush3.msra.mxu0 %v12665_v9 }
 0xd1b   : > { %32087 = vmatprep.mubr.msk.f32.mxu0 %vm35081_vm0, %v35080_v0  ;;  %32095 = vmatpush3.msra.mxu1 %v36778_v51 }
 0xd1c   : > { %32088 = vmatmul.mubr.f32.vlgmr.msra.gmra.mxu0 %v36792_v26  ;;  %32096 = vmatprep.subr.mxu1 %v35080_v0 }
 0xd1d   : > { %32097 = vmatpush3.msra.mxu1 %v36789_v38  ;;  %32098 = vmatprep.mubr.msk.f32.mxu1 %vm35081_vm0, %v35080_v0 }
 0xd1e   : > { %32099 = vmatmul.mubr.f32.vlgmr.msra.gmra.mxu1 %v36792_v26  ;;  %32112 = vmatprep.subr.mxu1 %v13153_v59 }
 0xd1f   : > { %32113 = vmatpush3.msra.mxu1 %v13153_v59  ;;  %32101 = vmatprep.subr.mxu0 %v36824_v62 }
 0xd20   : > { %32114 = vmatprep.subr.mxu1 %v13160_v1  ;;  %32102 = vmatpush3.msra.mxu0 %v36824_v62 }
 0xd21   : > { %32115 = vmatpush3.msra.mxu1 %v13160_v1  ;;  %32103 = vmatprep.subr.mxu0 %v36832_v60 }
 0xd22   : > { %32116 = vmatprep.subr.mxu1 %v13167_v44  ;;  %32104 = vmatpush3.msra.mxu0 %v36832_v60 }
 0xd23   : > { %32117 = vmatpush3.msra.mxu1 %v13167_v44  ;;  %32105 = vmatprep.subr.mxu0 %v36844_v7  ;;  %v29919_v44 = vld [vmem:[#allocation28] ss:$0 sm:$0xff] }
 0xd24   : > { %32118 = vmatprep.subr.mxu1 %v13174_v16  ;;  %32106 = vmatpush3.msra.mxu0 %v36844_v7 }
 0xd25   : > { %32119 = vmatpush3.msra.mxu1 %v13174_v16  ;;  %32107 = vmatprep.subr.mxu0 %v36856_v29 }
 0xd26   : > { %32134 = vmatprep.subr.mxu1 %v36824_v62  ;;  %32108 = vmatpush3.msra.mxu0 %v36856_v29 }
 0xd27   : > { %32123 = vmatprep.subr.mxu0 %v36830_v35 }
 0xda7   : > { %v31990_v34 = vpop.f32.mrf.mxu1 }
 0xda9   : > { %v12157_v47 = vpop.f32.mrf.mxu1 }
 0xdaf   : > { %v32012_v57 = vpop.f32.mrf.mxu1 }
 0xdb0   : > { %v31979_v39 = vpop.f32.mrf.mxu0 }
 0xdb1   : > { %v12067_v53 = vadd.f32 %v31979_v39, %v29917_v56  ;;  %v12327_v51 = vpop.f32.mrf.mxu1 }
 0xdb2   : > { %v12056_v18 = vpop.f32.mrf.mxu0 }
 0xdb3   : > { %v12057_v23 = vadd.f32 %v29917_v56, %v12056_v18  ;;  %v12164_v49 = vadd.f32 %v31990_v34, %v12067_v53 }
 0xdb5   : > { %v12158_v21 = vadd.f32 %v12157_v47, %v12057_v23 }
 0xdb8   : > { %v32001_v50 = vpop.f32.mrf.mxu0 }
 0xdb9   : > { %v12251_v11 = vadd.f32 %v32001_v50, %v12164_v49  ;;  %v32034_v20 = vpop.f32.mrf.mxu1 }
 0xdba   : > { %v12243_v46 = vpop.f32.mrf.mxu0 }
 0xdbb   : > { %v12244_v14 = vadd.f32 %v12243_v46, %v12158_v21  ;;  %v12336_v36 = vadd.f32 %v32012_v57, %v12251_v11  ;;  %v12499_v27 = vpop.f32.mrf.mxu1 }
 0xdbd   : > { %v12328_v6 = vadd.f32 %v12327_v51, %v12244_v14 }
 0xdc1   : > { %v32023_v22 = vpop.f32.mrf.mxu0 }
 0xdc2   : > { %v12425_v45 = vadd.f32 %v32023_v22, %v12336_v36 }
 0xdc3   : > { %v12418_v25 = vpop.f32.mrf.mxu0 }
 0xdc4   : > { %v12506_v38 = vadd.f32 %v32034_v20, %v12425_v45  ;;  %v12419_v26 = vadd.f32 %v12418_v25, %v12328_v6 }
 0xdc6   : > { %v12510_v30 = vmax.f32 %v12506_v38, 0.0  ;;  %v12500_v28 = vadd.f32 %v12499_v27, %v12419_v26 }
 0xdc8   : > { %v12512_v31 = vadd.f32 %v12510_v30, %v36715_v2  ;;  %v12509_v8 = vmax.f32 %v12500_v28, 0.0 }
 0xdca   : > { %v13033_v12 = vsel %vm1515_vm1, %v12512_v31, 0  ;;  %v12511_v37 = vadd.f32 %v12509_v8, %v36721_v3  ;;  %v12704_v63 = vpop.f32.mrf.mxu1 }
 0xdcb   : > { %v36899_v9 = vand.u32 4294901760, %v13033_v12 }
 0xdcc   : > { %v13030_v54 = vsel %vm1515_vm1, %v12511_v37, 0 }
 0xdcd   : > { %v36903_v40 = vsub.f32 %v13033_v12, %v36899_v9  ;;  %v36905_v43 = vand.u32 4294901760, %v13030_v54 }
 0xdcf   : > { %v36908_v33 = vsub.f32 %v13030_v54, %v36905_v43  ;;  %32120 = vmatprep.mubr.f32.mxu1 %v36905_v43  ;;  %v36912_v2 = vand.u32 4294901760, %v36903_v40 }
 0xdd0   : > { %32121 = vmatmul.mubr.f32.vlgmr.msra.gmra.mxu1 %v36899_v9 }
 0xdd1   : > { %32135 = vmatpush3.msra.mxu1 %v36824_v62  ;;  %v36917_v3 = vand.u32 4294901760, %v36908_v33  ;;  %v13117_v58 = vsub.f32 %v36903_v40, %v36912_v2 }
 0xdd2   : > { %32136 = vmatprep.subr.mxu1 %v36832_v60 }
 0xdd3   : > { %32137 = vmatpush3.msra.mxu1 %v36832_v60  ;;  %32142 = vmatprep.mubr.f32.mxu1 %v36917_v3  ;;  %v13107_v61 = vsub.f32 %v36908_v33, %v36917_v3  ;;  %v36933_v10 = vand.u32 4294901760, %v13117_v58 }
 0xdd4   : > { %32138 = vmatprep.subr.mxu1 %v36844_v7 }
 0xdd5   : > { %32139 = vmatpush3.msra.mxu1 %v36844_v7  ;;  %v36928_v32 = vand.u32 4294901760, %v13107_v61 }
 0xdd6   : > { %32140 = vmatprep.subr.mxu1 %v36856_v29 }
 0xdd7   : > { %32141 = vmatpush3.msra.mxu1 %v36856_v29  ;;  %32109 = vmatprep.mubr.f32.mxu0 %v36928_v32 }
 0xdd8   : > { %32143 = vmatmul.mubr.f32.vlgmr.msra.gmra.mxu1 %v36912_v2  ;;  %32156 = vmatprep.subr.mxu1 %v36824_v62 }
 0xdd9   : > { %32110 = vmatmul.mubr.f32.vlgmr.msra.gmra.mxu0 %v36933_v10  ;;  %32157 = vmatpush3.msra.mxu1 %v36824_v62  ;;  %v29918_v62 = vld [vmem:[#allocation25] ss:$0 sm:$0xff] }
 0xdda   : > { %32124 = vmatpush3.msra.mxu0 %v36830_v35  ;;  %32164 = vmatprep.mubr.f32.mxu1 %v36905_v43  ;;  %v12613_v35 = vpop.f32.mrf.mxu0 }
 0xddb   : > { %32125 = vmatprep.subr.mxu0 %v36842_v48  ;;  %32131 = vmatprep.mubr.f32.mxu0 %v36908_v33 }
 0xddc   : > { %32158 = vmatprep.subr.mxu1 %v36832_v60  ;;  %32126 = vmatpush3.msra.mxu0 %v36842_v48 }
 0xddd   : > { %32159 = vmatpush3.msra.mxu1 %v36832_v60  ;;  %32127 = vmatprep.subr.mxu0 %v36854_v42  ;;  %v12614_v60 = vadd.f32 %v29918_v62, %v12613_v35 }
 0xdde   : > { %32160 = vmatprep.subr.mxu1 %v36844_v7  ;;  %32128 = vmatpush3.msra.mxu0 %v36854_v42 }
 0xddf   : > { %32161 = vmatpush3.msra.mxu1 %v36844_v7  ;;  %32129 = vmatprep.subr.mxu0 %v36867_v4  ;;  %v12705_v48 = vadd.f32 %v12704_v63, %v12614_v60  ;;  %v32056_v7 = vpop.f32.mrf.mxu1 }
 0xde0   : > { %32162 = vmatprep.subr.mxu1 %v36856_v29  ;;  %32130 = vmatpush3.msra.mxu0 %v36867_v4 }
 0xde1   : > { %32163 = vmatpush3.msra.mxu1 %v36856_v29  ;;  %32132 = vmatmul.mubr.f32.vlgmr.msra.gmra.mxu0 %v36903_v40  ;;  %v12861_v42 = vpop.f32.mrf.mxu1 }
 0xde2   : > { %32145 = vmatprep.subr.mxu0 %v36839_v13  ;;  %32165 = vmatmul.mubr.f32.vlgmr.msra.gmra.mxu1 %v36899_v9 }
 0xde3   : > { %32146 = vmatpush3.msra.mxu0 %v36839_v13  ;;  %32153 = vmatprep.mubr.f32.mxu0 %v36905_v43  ;;  %v32045_v13 = vpop.f32.mrf.mxu0  ;;  %v32078_v52 = vpop.f32.mrf.mxu1 }
 0xde4   : > { %32147 = vmatprep.subr.mxu0 %v36851_v15  ;;  %32174 = vmatprep.subr.mxu1 %v35080_v0 }
 0xde5   : > { %32148 = vmatpush3.msra.mxu0 %v36851_v15  ;;  %32178 = vmatprep.mubr.msk.f32.mxu1 %vm35081_vm0, %v35080_v0  ;;  %v12784_v41 = vpop.f32.mrf.mxu0  ;;  %v13019_v59 = vpop.f32.mrf.mxu1 }
 0xde6   : > { %32149 = vmatprep.subr.mxu0 %v36864_v55  ;;  %v12785_v24 = vadd.f32 %v12784_v41, %v12705_v48 }
 0xde7   : > { %32150 = vmatpush3.msra.mxu0 %v36864_v55  ;;  %v32067_v15 = vpop.f32.mrf.mxu0  ;;  %v32100_v1 = vpop.f32.mrf.mxu1 }
 0xde8   : > { %32151 = vmatprep.subr.mxu0 %v36876_v19  ;;  %v12862_v29 = vadd.f32 %v12861_v42, %v12785_v24 }
 0xde9   : > { %32152 = vmatpush3.msra.mxu0 %v36876_v19  ;;  %v12944_v55 = vpop.f32.mrf.mxu0 }
 0xdea   : > { %32154 = vmatmul.mubr.f32.vlgmr.msra.gmra.mxu0 %v36899_v9  ;;  %32167 = vmatprep.subr.mxu0 %v35080_v0  ;;  %v12945_v4 = vadd.f32 %v12944_v55, %v12862_v29 }
 0xdeb   : > { %32171 = vmatprep.mubr.msk.f32.mxu0 %vm35081_vm0, %v35080_v0  ;;  %v32089_v17 = vpop.f32.mrf.mxu0 }
 0xdec   : > { %v36972_v19 = vadd.f32 %v13019_v59, %v12945_v4 }
 0xdee   : > { %v13587_v50 = vsel %vm2534_vm4, %v36972_v19, 0 }
 0xdef   : > { %v36976_v11 = vand.u32 4294901760, %v13587_v50 }
 0xdf1   : > { %v13661_v22 = vsub.f32 %v13587_v50, %v36976_v11 }
 0xdf3   : > { %v13662_v31 = vand.u32 4294901760, %v13661_v22 }
 0xdf5   : > { %v13663_v61 = vsub.f32 %v13661_v22, %v13662_v31 }
 0xdf7   : > { %v13664_v63 = vand.u32 4294901760, %v13663_v61 }
 0xe90   : > { %v32122_v16 = vpop.f32.mrf.mxu1 }
 0xe92   : > { %v13211_v53 = vpop.f32.mrf.mxu1 }
 0xe98   : > { %v32144_v47 = vpop.f32.mrf.mxu1 }
 0xe99   : > { %v32111_v5 = vpop.f32.mrf.mxu0 }
 0xe9a   : > { %v13121_v56 = vadd.f32 %v32111_v5, %v29919_v44  ;;  %v13381_v14 = vpop.f32.mrf.mxu1 }
 0xe9b   : > { %v13110_v39 = vpop.f32.mrf.mxu0 }
 0xe9c   : > { %v13111_v34 = vadd.f32 %v29919_v44, %v13110_v39  ;;  %v13218_v23 = vadd.f32 %v32122_v16, %v13121_v56 }
 0xe9e   : > { %v13212_v46 = vadd.f32 %v13211_v53, %v13111_v34 }
 0xea1   : > { %v32133_v18 = vpop.f32.mrf.mxu0 }
 0xea2   : > { %v13305_v57 = vadd.f32 %v32133_v18, %v13218_v23  ;;  %v32166_v36 = vpop.f32.mrf.mxu1 }
 0xea3   : > { %v13297_v49 = vpop.f32.mrf.mxu0 }
 0xea4   : > { %v13298_v21 = vadd.f32 %v13297_v49, %v13212_v46  ;;  %v13390_v51 = vadd.f32 %v32144_v47, %v13305_v57  ;;  %v13553_v27 = vpop.f32.mrf.mxu1 }
 0xea6   : > { %v13382_v6 = vadd.f32 %v13381_v14, %v13298_v21 }
 0xeaa   : > { %v32155_v20 = vpop.f32.mrf.mxu0 }
 0xeab   : > { %v13479_v45 = vadd.f32 %v32155_v20, %v13390_v51 }
 0xeac   : > { %v13472_v25 = vpop.f32.mrf.mxu0 }
 0xead   : > { %v36979_v38 = vadd.f32 %v32166_v36, %v13479_v45  ;;  %v13473_v26 = vadd.f32 %v13472_v25, %v13382_v6 }
 0xeaf   : > { %v36981_v30 = vadd.f32 %v13553_v27, %v13473_v26  ;;  %13577 = vrot.lane.b32.xlu0 %v36979_v38, %s35082_s18  ;;  %v13591_v28 = vsel %vm2534_vm4, %v36979_v38, 0 }
 0xeb0   : > { %v13622_v8 = vand.u32 4294901760, %v13591_v28 }
 0xeb1   : > { %13575 = vrot.lane.b32.xlu1 %v36981_v30, %s35082_s18  ;;  %v13589_v12 = vsel %vm2534_vm4, %v36981_v30, 0 }
 0xeb2   : > { %32168 = vmatpush3.xpose.msra.mxu0 %v13622_v8  ;;  %v13700_v37 = vsub.f32 %v13591_v28, %v13622_v8  ;;  %v13625_v54 = vand.u32 4294901760, %v13589_v12 }
 0xeb3   : > { %13564 = vrot.lane.b32.xlu0 %v36972_v19, %s35082_s18  ;;  %32169 = vmatprep.subr.mxu0 %v35080_v0 }
 0xeb4   : > { %v13707_v58 = vsub.f32 %v13589_v12, %v13625_v54  ;;  %v13701_v62 = vand.u32 4294901760, %v13700_v37 }
 0xeb5   : > { %13581 = vrot.lane.b32.xlu1 %v36979_v38, %s35083_s25 }
 0xeb6   : > { %32170 = vmatpush3.xpose.msra.mxu0 %v13625_v54  ;;  %v13702_v35 = vsub.f32 %v13700_v37, %v13701_v62  ;;  %v13708_v60 = vand.u32 4294901760, %v13707_v58 }
 0xeb7   : > { %13579 = vrot.lane.b32.xlu0 %v36981_v30, %s35083_s25  ;;  %32181 = vmatprep.subr.mxu0 %v35080_v0 }
 0xeb8   : > { %v13703_v13 = vand.u32 4294901760, %v13702_v35  ;;  %v13709_v48 = vsub.f32 %v13707_v58, %v13708_v60 }
 0xeb9   : > { %13567 = vrot.lane.b32.xlu1 %v36972_v19, %s35083_s25  ;;  %32172 = vmatmul.mubr.f32.vlgmr.msra.gmra.mxu0 %v13664_v63 }
 0xeba   : > { %32175 = vmatpush3.xpose.msra.mxu1 %v13703_v13  ;;  %32182 = vmatpush3.xpose.msra.mxu0 %v13700_v37  ;;  %v13710_v7 = vand.u32 4294901760, %v13709_v48 }
 0xebb   : > { %13585 = vrot.lane.b32.xlu0 %v36979_v38, %s35084_s11  ;;  %32176 = vmatprep.subr.mxu1 %v35080_v0 }
 0xebc   : > { %32183 = vmatprep.subr.mxu0 %v35080_v0  ;;  %32185 = vmatprep.mubr.msk.f32.mxu0 %vm35081_vm0, %v35080_v0 }
 0xebd   : > { %13583 = vrot.lane.b32.xlu1 %v36981_v30, %s35084_s11 }
 0xebe   : > { %32177 = vmatpush3.xpose.msra.mxu1 %v13710_v7  ;;  %32184 = vmatpush3.xpose.msra.mxu0 %v13707_v58 }
 0xebf   : > { %13570 = vrot.lane.b32.xlu0 %v36972_v19, %s35084_s11  ;;  %32188 = vmatprep.subr.mxu1 %v35080_v0 }
 0xec0   : > { %32195 = vmatprep.subr.mxu0 %v35080_v0 }
 0xec1   : > { %32179 = vmatmul.mubr.f32.vlgmr.msra.gmra.mxu1 %v36976_v11  ;;  %32186 = vmatmul.mubr.f32.vlgmr.msra.gmra.mxu0 %v13661_v22 }
 0xec2   : > { %32189 = vmatpush3.xpose.msra.mxu1 %v13622_v8  ;;  %32196 = vmatpush3.xpose.msra.mxu0 %v13701_v62 }
 0xec3   : > { %32190 = vmatprep.subr.mxu1 %v35080_v0  ;;  %32197 = vmatprep.subr.mxu0 %v35080_v0 }
 0xec4   : > { %32192 = vmatprep.mubr.msk.f32.mxu1 %vm35081_vm0, %v35080_v0  ;;  %32199 = vmatprep.mubr.msk.f32.mxu0 %vm35081_vm0, %v35080_v0 }
 0xec6   : > { %32191 = vmatpush3.xpose.msra.mxu1 %v13625_v54  ;;  %32198 = vmatpush3.xpose.msra.mxu0 %v13708_v60 }
 0xec7   : > { %32202 = vmatprep.subr.mxu1 %v35080_v0  ;;  %32209 = vmatprep.subr.mxu0 %v35080_v0 }
 0xec9   : > { %32193 = vmatmul.mubr.f32.vlgmr.msra.gmra.mxu1 %v13662_v31  ;;  %32200 = vmatmul.mubr.f32.vlgmr.msra.gmra.mxu0 %v36976_v11 }
 0xeca   : > { %32203 = vmatpush3.xpose.msra.mxu1 %v13622_v8  ;;  %32206 = vmatprep.mubr.msk.f32.mxu1 %vm35081_vm0, %v35080_v0 }
 0xecb   : > { %32204 = vmatprep.subr.mxu1 %v35080_v0  ;;  %32213 = vmatprep.mubr.msk.f32.mxu0 %vm35081_vm0, %v35080_v0 }
 0xece   : > { %32205 = vmatpush3.xpose.msra.mxu1 %v13625_v54 }
 0xecf   : > { %32216 = vmatprep.subr.mxu1 %v35080_v0 }
 0xed1   : > { %32207 = vmatmul.mubr.f32.vlgmr.msra.gmra.mxu1 %v36976_v11 }
 0xed2   : > { %32220 = vmatprep.mubr.msk.f32.mxu1 %vm35081_vm0, %v35080_v0 }
 0xf21   : > { %v37032_v41 = vpop.permute.xlu0 %13577 }
 0xf22   : > { %v14056_v24 = vsel %vm2534_vm4, %v37032_v41, 0 }
 0xf23   : > { %v14087_v15 = vand.u32 4294901760, %v14056_v24  ;;  %v37036_v42 = vpop.permute.xlu1 %13575 }
 0xf24   : > { %v14054_v29 = vsel %vm2534_vm4, %v37036_v42, 0 }
 0xf25   : > { %v14165_v52 = vsub.f32 %v14056_v24, %v14087_v15  ;;  %v14090_v55 = vand.u32 4294901760, %v14054_v29  ;;  %v37040_v4 = vpop.permute.xlu0 %13564  ;;  %32210 = vmatpush3.xpose.msra.mxu0 %v14087_v15 }
 0xf26   : > { %v14052_v59 = vsel %vm2534_vm4, %v37040_v4, 0  ;;  %32211 = vmatprep.subr.mxu0 %v35080_v0 }
 0xf27   : > { %v14166_v17 = vand.u32 4294901760, %v14165_v52  ;;  %v14172_v1 = vsub.f32 %v14054_v29, %v14090_v55  ;;  %v37045_v5 = vand.u32 4294901760, %v14052_v59  ;;  %v37049_v34 = vpop.permute.xlu1 %13581 }
 0xf28   : > { %v14521_v49 = vsel %vm2534_vm4, %v37049_v34, 0 }
 0xf29   : > { %v14173_v44 = vand.u32 4294901760, %v14172_v1  ;;  %v14126_v16 = vsub.f32 %v14052_v59, %v37045_v5  ;;  %32212 = vmatpush3.xpose.msra.mxu0 %v14090_v55  ;;  %v14167_v39 = vsub.f32 %v14165_v52, %v14166_v17  ;;  %v37056_v46 = vpop.permute.xlu0 %13579  ;;  %v37060_v11 = vand.u32 4294901760, %v14521_v49 }
 0xf2a   : > { %32223 = vmatprep.subr.mxu0 %v35080_v0  ;;  %v14519_v14 = vsel %vm2534_vm4, %v37056_v46, 0 }
 0xf2b   : > { %v14127_v56 = vand.u32 4294901760, %v14126_v16  ;;  %v14174_v18 = vsub.f32 %v14172_v1, %v14173_v44  ;;  %v14168_v53 = vand.u32 4294901760, %v14167_v39  ;;  %v37054_v57 = vpop.permute.xlu1 %13567  ;;  %v14630_v36 = vsub.f32 %v14521_v49, %v37060_v11 }
 0xf2c   : > { %v14517_v21 = vsel %vm2534_vm4, %v37054_v57, 0  ;;  %v37074_v20 = vand.u32 4294901760, %v14519_v14 }
 0xf2d   : > { %v14128_v23 = vsub.f32 %v14126_v16, %v14127_v56  ;;  %32217 = vmatpush3.xpose.msra.mxu1 %v14168_v53  ;;  %v14175_v47 = vand.u32 4294901760, %v14174_v18  ;;  %v37069_v51 = vand.u32 4294901760, %v14517_v21  ;;  %v14631_v45 = vand.u32 4294901760, %v14630_v36  ;;  %v37094_v31 = vpop.permute.xlu0 %13585 }
 0xf2e   : > { %32218 = vmatprep.subr.mxu1 %v35080_v0  ;;  %v14637_v6 = vsub.f32 %v14519_v14, %v37074_v20  ;;  %v14986_v61 = vsel %vm2534_vm4, %v37094_v31, 0 }
 0xf2f   : > { %v14129_v50 = vand.u32 4294901760, %v14128_v23  ;;  %v37079_v22 = vsub.f32 %v14517_v21, %v37069_v51  ;;  %v14632_v26 = vsub.f32 %v14630_v36, %v14631_v45  ;;  %v37110_v62 = vpop.permute.xlu1 %13583  ;;  %v37114_v35 = vand.u32 4294901760, %v14986_v61 }
 0xf30   : > { %v14638_v27 = vand.u32 4294901760, %v14637_v6  ;;  %v14984_v63 = vsel %vm2534_vm4, %v37110_v62, 0 }
 0xf31   : > { %32214 = vmatmul.mubr.f32.vlgmr.msra.gmra.mxu0 %v14129_v50  ;;  %32219 = vmatpush3.xpose.msra.mxu1 %v14175_v47  ;;  %v14592_v25 = vand.u32 4294901760, %v37079_v22  ;;  %v14633_v8 = vand.u32 4294901760, %v14632_v26  ;;  %v37108_v58 = vpop.permute.xlu0 %13570  ;;  %v15095_v48 = vsub.f32 %v14986_v61, %v37114_v35  ;;  %v15020_v7 = vand.u32 4294901760, %v14984_v63 }
 0xf32   : > { %32224 = vmatpush3.xpose.msra.mxu0 %v14165_v52  ;;  %32230 = vmatprep.subr.mxu1 %v35080_v0  ;;  %v14639_v12 = vsub.f32 %v14637_v6, %v14638_v27  ;;  %v14982_v60 = vsel %vm2534_vm4, %v37108_v58, 0 }
 0xf33   : > { %32225 = vmatprep.subr.mxu0 %v35080_v0  ;;  %32227 = vmatprep.mubr.msk.f32.mxu0 %vm35081_vm0, %v35080_v0  ;;  %v14593_v28 = vsub.f32 %v37079_v22, %v14592_v25  ;;  %v37124_v13 = vand.u32 4294901760, %v14982_v60  ;;  %v15102_v29 = vsub.f32 %v14984_v63, %v15020_v7 }
 0xf34   : > { %32221 = vmatmul.mubr.f32.vlgmr.msra.gmra.mxu1 %v37045_v5  ;;  %v14640_v54 = vand.u32 4294901760, %v14639_v12 }
 0xf35   : > { %32231 = vmatpush3.xpose.msra.mxu1 %v14087_v15  ;;  %32234 = vmatprep.mubr.msk.f32.mxu1 %vm35081_vm0, %v35080_v0  ;;  %v14594_v37 = vand.u32 4294901760, %v14593_v28  ;;  %v15056_v24 = vsub.f32 %v14982_v60, %v37124_v13 }
 0xf36   : > { %32226 = vmatpush3.xpose.msra.mxu0 %v14172_v1  ;;  %32232 = vmatprep.subr.mxu1 %v35080_v0 }
 0xf37   : > { %32237 = vmatprep.subr.mxu0 %v35080_v0  ;;  %v15057_v52 = vand.u32 4294901760, %v15056_v24 }
 0xf39   : > { %32228 = vmatmul.mubr.f32.vlgmr.msra.gmra.mxu0 %v14126_v16  ;;  %32233 = vmatpush3.xpose.msra.mxu1 %v14090_v55 }
 0xf3a   : > { %32238 = vmatpush3.xpose.msra.mxu0 %v14166_v17  ;;  %32244 = vmatprep.subr.mxu1 %v35080_v0  ;;  %v15058_v17 = vsub.f32 %v15056_v24, %v15057_v52 }
 0xf3b   : > { %32239 = vmatprep.subr.mxu0 %v35080_v0  ;;  %32241 = vmatprep.mubr.msk.f32.mxu0 %vm35081_vm0, %v35080_v0 }
 0xf3c   : > { %32235 = vmatmul.mubr.f32.vlgmr.msra.gmra.mxu1 %v14127_v56 }
 0xf3d   : > { %32245 = vmatpush3.xpose.msra.mxu1 %v14087_v15  ;;  %32248 = vmatprep.mubr.msk.f32.mxu1 %vm35081_vm0, %v35080_v0  ;;  %v15096_v15 = vand.u32 4294901760, %v15095_v48 }
 0xf3e   : > { %32240 = vmatpush3.xpose.msra.mxu0 %v14173_v44  ;;  %32246 = vmatprep.subr.mxu1 %v35080_v0  ;;  %v15059_v44 = vand.u32 4294901760, %v15058_v17 }
 0xf3f   : > { %32251 = vmatprep.subr.mxu0 %v35080_v0  ;;  %v15097_v59 = vsub.f32 %v15095_v48, %v15096_v15 }
 0xf41   : > { %32242 = vmatmul.mubr.f32.vlgmr.msra.gmra.mxu0 %v37045_v5  ;;  %32247 = vmatpush3.xpose.msra.mxu1 %v14090_v55  ;;  %v15103_v55 = vand.u32 4294901760, %v15102_v29 }
 0xf42   : > { %32252 = vmatpush3.xpose.msra.mxu0 %v37060_v11  ;;  %32258 = vmatprep.subr.mxu1 %v35080_v0 }
 0xf43   : > { %32253 = vmatprep.subr.mxu0 %v35080_v0  ;;  %32255 = vmatprep.mubr.msk.f32.mxu0 %vm35081_vm0, %v35080_v0  ;;  %v15104_v1 = vsub.f32 %v15102_v29, %v15103_v55 }
 0xf44   : > { %32249 = vmatmul.mubr.f32.vlgmr.msra.gmra.mxu1 %v37045_v5  ;;  %v15098_v5 = vand.u32 4294901760, %v15097_v59 }
 0xf45   : > { %32259 = vmatpush3.xpose.msra.mxu1 %v14633_v8  ;;  %32262 = vmatprep.mubr.msk.f32.mxu1 %vm35081_vm0, %v35080_v0  ;;  %v15105_v16 = vand.u32 4294901760, %v15104_v1 }
 0xf46   : > { %32254 = vmatpush3.xpose.msra.mxu0 %v37074_v20  ;;  %32260 = vmatprep.subr.mxu1 %v35080_v0 }
 0xf47   : > { %32265 = vmatprep.subr.mxu0 %v35080_v0 }
 0xf49   : > { %32256 = vmatmul.mubr.f32.vlgmr.msra.gmra.mxu0 %v14594_v37  ;;  %32261 = vmatpush3.xpose.msra.mxu1 %v14640_v54 }
 0xf4a   : > { %32266 = vmatpush3.xpose.msra.mxu0 %v14630_v36  ;;  %32272 = vmatprep.subr.mxu1 %v35080_v0 }
 0xf4b   : > { %32267 = vmatprep.subr.mxu0 %v35080_v0  ;;  %32269 = vmatprep.mubr.msk.f32.mxu0 %vm35081_vm0, %v35080_v0 }
 0xf4c   : > { %32263 = vmatmul.mubr.f32.vlgmr.msra.gmra.mxu1 %v37069_v51 }
 0xf4d   : > { %32273 = vmatpush3.xpose.msra.mxu1 %v37060_v11  ;;  %32276 = vmatprep.mubr.msk.f32.mxu1 %vm35081_vm0, %v35080_v0 }
 0xf4e   : > { %32268 = vmatpush3.xpose.msra.mxu0 %v14637_v6  ;;  %32274 = vmatprep.subr.mxu1 %v35080_v0 }
 0xf4f   : > { %32279 = vmatprep.subr.mxu0 %v35080_v0 }
 0xf51   : > { %32270 = vmatmul.mubr.f32.vlgmr.msra.gmra.mxu0 %v37079_v22  ;;  %32275 = vmatpush3.xpose.msra.mxu1 %v37074_v20 }
 0xf52   : > { %32280 = vmatpush3.xpose.msra.mxu0 %v14631_v45  ;;  %32286 = vmatprep.subr.mxu1 %v35080_v0 }
 0xf53   : > { %32281 = vmatprep.subr.mxu0 %v35080_v0  ;;  %32283 = vmatprep.mubr.msk.f32.mxu0 %vm35081_vm0, %v35080_v0 }
 0xf54   : > { %32277 = vmatmul.mubr.f32.vlgmr.msra.gmra.mxu1 %v14592_v25 }
 0xf55   : > { %32287 = vmatpush3.xpose.msra.mxu1 %v37060_v11  ;;  %32290 = vmatprep.mubr.msk.f32.mxu1 %vm35081_vm0, %v35080_v0 }
 0xf56   : > { %32282 = vmatpush3.xpose.msra.mxu0 %v14638_v27  ;;  %32288 = vmatprep.subr.mxu1 %v35080_v0 }
 0xf57   : > { %32293 = vmatprep.subr.mxu0 %v35080_v0 }
 0xf59   : > { %32284 = vmatmul.mubr.f32.vlgmr.msra.gmra.mxu0 %v37069_v51  ;;  %32289 = vmatpush3.xpose.msra.mxu1 %v37074_v20 }
 0xf5a   : > { %32294 = vmatpush3.xpose.msra.mxu0 %v37114_v35  ;;  %32300 = vmatprep.subr.mxu1 %v35080_v0 }
 0xf5b   : > { %32295 = vmatprep.subr.mxu0 %v35080_v0  ;;  %32297 = vmatprep.mubr.msk.f32.mxu0 %vm35081_vm0, %v35080_v0 }
 0xf5c   : > { %32291 = vmatmul.mubr.f32.vlgmr.msra.gmra.mxu1 %v37069_v51 }
 0xf5d   : > { %32301 = vmatpush3.xpose.msra.mxu1 %v15098_v5  ;;  %32304 = vmatprep.mubr.msk.f32.mxu1 %vm35081_vm0, %v35080_v0 }
 0xf5e   : > { %32296 = vmatpush3.xpose.msra.mxu0 %v15020_v7  ;;  %32302 = vmatprep.subr.mxu1 %v35080_v0 }
 0xf5f   : > { %32307 = vmatprep.subr.mxu0 %v35080_v0 }
 0xf61   : > { %32298 = vmatmul.mubr.f32.vlgmr.msra.gmra.mxu0 %v15059_v44  ;;  %32303 = vmatpush3.xpose.msra.mxu1 %v15105_v16 }
 0xf62   : > { %32308 = vmatpush3.xpose.msra.mxu0 %v15095_v48  ;;  %32314 = vmatprep.subr.mxu1 %v35080_v0 }
 0xf63   : > { %32309 = vmatprep.subr.mxu0 %v35080_v0  ;;  %32311 = vmatprep.mubr.msk.f32.mxu0 %vm35081_vm0, %v35080_v0 }
 0xf64   : > { %32305 = vmatmul.mubr.f32.vlgmr.msra.gmra.mxu1 %v37124_v13 }
 0xf65   : > { %32315 = vmatpush3.xpose.msra.mxu1 %v37114_v35  ;;  %32318 = vmatprep.mubr.msk.f32.mxu1 %vm35081_vm0, %v35080_v0 }
 0xf66   : > { %32310 = vmatpush3.xpose.msra.mxu0 %v15102_v29  ;;  %32316 = vmatprep.subr.mxu1 %v35080_v0 }
 0xf67   : > { %32321 = vmatprep.subr.mxu0 %v35080_v0 }
 0xf69   : > { %32312 = vmatmul.mubr.f32.vlgmr.msra.gmra.mxu0 %v15056_v24  ;;  %32317 = vmatpush3.xpose.msra.mxu1 %v15020_v7 }
 0xf6a   : > { %32322 = vmatpush3.xpose.msra.mxu0 %v15096_v15  ;;  %32328 = vmatprep.subr.mxu1 %v35080_v0 }
 0xf6b   : > { %32323 = vmatprep.subr.mxu0 %v35080_v0  ;;  %32325 = vmatprep.mubr.msk.f32.mxu0 %vm35081_vm0, %v35080_v0 }
 0xf6c   : > { %32319 = vmatmul.mubr.f32.vlgmr.msra.gmra.mxu1 %v15057_v52 }
 0xf6d   : > { %32329 = vmatpush3.xpose.msra.mxu1 %v37114_v35  ;;  %32332 = vmatprep.mubr.msk.f32.mxu1 %vm35081_vm0, %v35080_v0 }
 0xf6e   : > { %32324 = vmatpush3.xpose.msra.mxu0 %v15103_v55  ;;  %32330 = vmatprep.subr.mxu1 %v35080_v0 }
 0xf6f   : > { %32335 = vmatprep.subr.mxu0 %v35080_v0 }
 0xf71   : > { %32326 = vmatmul.mubr.f32.vlgmr.msra.gmra.mxu0 %v37124_v13  ;;  %32331 = vmatpush3.xpose.msra.mxu1 %v15020_v7 }
 0xf72   : > { %32339 = vmatprep.mubr.msk.f32.mxu0 %vm35081_vm0, %v35080_v0  ;;  %32342 = vmatprep.subr.mxu1 %v35080_v0 }
 0xf74   : > { %32333 = vmatmul.mubr.f32.vlgmr.msra.gmra.mxu1 %v37124_v13 }
 0xf75   : > { %32346 = vmatprep.mubr.msk.f32.mxu1 %vm35081_vm0, %v35080_v0 }
 0xf79   : > { %v13666_v39 = vpop.f32.mrf.mxu0 }
 0xf7b   : > { %v32173_v56 = vpop.f32.mrf.mxu0 }
 0xf81   : > { %v13747_v18 = vpop.f32.mrf.mxu1  ;;  %v13823_v53 = vpop.f32.mrf.mxu0 }
 0xf82   : > { %v13748_v47 = vadd.f32 %v13747_v18, %v13666_v39 }
 0xf83   : > { %v32180_v23 = vpop.f32.mrf.mxu1  ;;  %v32187_v50 = vpop.f32.mrf.mxu0 }
 0xf84   : > { %v13824_v21 = vadd.f32 %v13823_v53, %v13748_v47 }
 0xf89   : > { %v13898_v49 = vpop.f32.mrf.mxu1  ;;  %v13975_v11 = vpop.f32.mrf.mxu0 }
 0xf8a   : > { %v13899_v36 = vadd.f32 %v13898_v49, %v13824_v21 }
 0xf8b   : > { %v32194_v14 = vpop.f32.mrf.mxu1  ;;  %v32201_v51 = vpop.f32.mrf.mxu0 }
 0xf8c   : > { %v13976_v20 = vadd.f32 %v13975_v11, %v13899_v36 }
 0xf91   : > { %v14048_v22 = vpop.f32.mrf.mxu1 }
 0xf92   : > { %v14049_v45 = vadd.f32 %v14048_v22, %v13976_v20 }
 0xf93   : > { %v32208_v6 = vpop.f32.mrf.mxu1 }
 0xf94   : > { %v15447_v25 = vmul.f32 0.17677669, %v14049_v45 }
 0xf96   : > { %v15451_v26 = vsel %vm4399_vm5, %v15447_v25, -inf }
 0xf97   : > { %15452 = vmax.xlane.f32.xlu1 %v15451_v26 }
 0xff1   : > { %v14131_v27 = vpop.f32.mrf.mxu0 }
 0xff3   : > { %v32215_v28 = vpop.f32.mrf.mxu0 }
 0xff4   : > { %v14212_v8 = vpop.f32.mrf.mxu1 }
 0xff5   : > { %v14213_v35 = vadd.f32 %v14212_v8, %v14131_v27 }
 0xff6   : > { %v32222_v12 = vpop.f32.mrf.mxu1 }
 0xff9   : > { %v14288_v37 = vpop.f32.mrf.mxu0 }
 0xffa   : > { %v14289_v63 = vadd.f32 %v14288_v37, %v14213_v35 }
 0xffb   : > { %v32229_v54 = vpop.f32.mrf.mxu0 }
 0xffc   : > { %v14363_v61 = vpop.f32.mrf.mxu1 }
 0xffd   : > { %v14364_v48 = vadd.f32 %v14363_v61, %v14289_v63 }
 0xffe   : > { %v32236_v60 = vpop.f32.mrf.mxu1 }
0x1001   : > { %v14440_v13 = vpop.f32.mrf.mxu0 }
0x1002   : > { %v14441_v24 = vadd.f32 %v14440_v13, %v14364_v48 }
0x1003   : > { %v32243_v7 = vpop.f32.mrf.mxu0 }
0x1004   : > { %v14513_v15 = vpop.f32.mrf.mxu1 }
0x1005   : > { %v14514_v29 = vadd.f32 %v14513_v15, %v14441_v24 }
0x1006   : > { %v32250_v52 = vpop.f32.mrf.mxu1 }
0x1007   : > { %v15448_v55 = vmul.f32 0.17677669, %v14514_v29 }
0x1009   : > { %v14596_v59 = vpop.f32.mrf.mxu0  ;;  %v15454_v17 = vsel %vm4399_vm5, %v15448_v55, -inf }
0x100a   : > { %15455 = vmax.xlane.f32.xlu0 %v15454_v17 }
0x100b   : > { %v32257_v1 = vpop.f32.mrf.mxu0 }
0x100c   : > { %v14677_v5 = vpop.f32.mrf.mxu1 }
0x100d   : > { %v14678_v18 = vadd.f32 %v14677_v5, %v14596_v59 }
0x100e   : > { %v32264_v44 = vpop.f32.mrf.mxu1 }
0x1011   : > { %v14753_v16 = vpop.f32.mrf.mxu0 }
0x1012   : > { %v14754_v23 = vadd.f32 %v14753_v16, %v14678_v18 }
0x1013   : > { %v32271_v39 = vpop.f32.mrf.mxu0 }
0x1014   : > { %v14828_v56 = vpop.f32.mrf.mxu1 }
0x1015   : > { %v14829_v47 = vadd.f32 %v14828_v56, %v14754_v23 }
0x1016   : > { %v32278_v53 = vpop.f32.mrf.mxu1 }
0x1019   : > { %v14905_v50 = vpop.f32.mrf.mxu0 }
0x101a   : > { %v14906_v11 = vadd.f32 %v14905_v50, %v14829_v47 }
0x101b   : > { %v32285_v49 = vpop.f32.mrf.mxu0 }
0x101c   : > { %v14978_v21 = vpop.f32.mrf.mxu1 }
0x101d   : > { %v14979_v14 = vadd.f32 %v14978_v21, %v14906_v11 }
0x101e   : > { %v32292_v51 = vpop.f32.mrf.mxu1 }
0x101f   : > { %v15449_v36 = vmul.f32 0.17677669, %v14979_v14 }
0x1020   : > { %v15453_v20 = vpop.xlane.xlu1 %15452 }
0x1021   : > { %v15463_v22 = vsub.f32 %v15447_v25, %v15453_v20  ;;  %v15061_v45 = vpop.f32.mrf.mxu0  ;;  %v15457_v6 = vsel %vm4399_vm5, %v15449_v36, -inf }
0x1022   : > { %15458 = vmax.xlane.f32.xlu0 %v15457_v6 }
0x1023   : > { %v15467_v26 = vmul.f32 1.442695, %v15463_v22  ;;  %v32299_v27 = vpop.f32.mrf.mxu0 }
0x1024   : > { %v15142_v28 = vpop.f32.mrf.mxu1 }
0x1025   : > { %34042 = vpow2.f32 %v15467_v26  ;;  %v15143_v61 = vadd.f32 %v15142_v28, %v15061_v45 }
0x1026   : > { %v32306_v8 = vpop.f32.mrf.mxu1 }
0x1029   : > { %v15218_v12 = vpop.f32.mrf.mxu0 }
0x102a   : > { %v15219_v60 = vadd.f32 %v15218_v12, %v15143_v61 }
0x102b   : > { %v32313_v37 = vpop.f32.mrf.mxu0 }
0x102c   : > { %v15293_v54 = vpop.f32.mrf.mxu1 }
0x102d   : > { %v15294_v48 = vadd.f32 %v15293_v54, %v15219_v60 }
0x102e   : > { %v32320_v35 = vpop.f32.mrf.mxu1 }
0x1031   : > { %v15370_v63 = vpop.f32.mrf.mxu0 }
0x1032   : > { %v34043_v13 = vpop.eup %34042  ;;  %v15371_v24 = vadd.f32 %v15370_v63, %v15294_v48 }
0x1033   : > { %v32327_v7 = vpop.f32.mrf.mxu0  ;;  %v15475_v25 = vsel %vm4399_vm5, %v34043_v13, 0.0 }
0x1034   : > { %15476 = vadd.xlane.f32.xlu0 %v15475_v25  ;;  %v15443_v15 = vpop.f32.mrf.mxu1 }
0x1035   : > { %v15444_v29 = vadd.f32 %v15443_v15, %v15371_v24 }
0x1036   : > { %v32334_v52 = vpop.f32.mrf.mxu1 }
0x1037   : > { %v15450_v59 = vmul.f32 0.17677669, %v15444_v29 }
0x1039   : > { %v15460_v17 = vsel %vm4399_vm5, %v15450_v59, -inf }
0x103a   : > { %15461 = vmax.xlane.f32.xlu1 %v15460_v17 }
0x104a   : > { %15495 = vrot.lane.b32.xlu0 %v36981_v30, %s35085_s6 }
0x1093   : > { %v15456_v1 = vpop.xlane.xlu0 %15455 }
0x1094   : > { %v15464_v5 = vsub.f32 %v15448_v55, %v15456_v1 }
0x1096   : > { %v15469_v44 = vmul.f32 1.442695, %v15464_v5 }
0x1098   : > { %34044 = vpow2.f32 %v15469_v44 }
0x10a5   : > { %v34045_v16 = vpop.eup %34044 }
0x10a6   : > { %v15478_v39 = vsel %vm4399_vm5, %v34045_v16, 0.0 }
0x10a7   : > { %15479 = vadd.xlane.f32.xlu1 %v15478_v39 }
0x10ab   : > { %v15459_v56 = vpop.xlane.xlu0 %15458 }
0x10ac   : > { %v15465_v18 = vsub.f32 %v15449_v36, %v15459_v56 }
0x10ae   : > { %v15471_v53 = vmul.f32 1.442695, %v15465_v18 }
0x10b0   : > { %34046 = vpow2.f32 %v15471_v53 }
0x10b8   : > { %15497 = vrot.lane.b32.xlu1 %v36979_v38, %s35085_s6 }
0x10bd   : > { %v37191_v23 = vpop.eup %34046 }
0x10be   : > { %v15481_v30 = vsel %vm4399_vm5, %v37191_v23, 0.0 }
0x10bf   : > { %15482 = vadd.xlane.f32.xlu0 %v15481_v30 }
0x10c3   : > { %v15462_v55 = vpop.xlane.xlu1 %15461 }
0x10c4   : > { %v15466_v50 = vsub.f32 %v15450_v59, %v15462_v55 }
0x10c6   : > { %v15473_v47 = vmul.f32 1.442695, %v15466_v50 }
0x10c8   : > { %34048 = vpow2.f32 %v15473_v47 }
0x10d5   : > { %15965 = vrot.lane.b32.xlu0 %v37032_v41, %s35085_s6  ;;  %v37197_v49 = vpop.eup %34048  ;;  %v15477_v41 = vpop.xlane.xlu0 %15476 }
0x10d6   : > { %v15484_v38 = vsel %vm4399_vm5, %v37197_v49, 0.0  ;;  %34050 = vrcp.f32 %v15477_v41 }
0x10d9   : > { %15963 = vrot.lane.b32.xlu0 %v37036_v42, %s35085_s6  ;;  %v15496_v51 = vpop.permute.xlu0 %15495 }
0x10da   : > { %v15536_v20 = vand.u32 4294901760, %v15496_v51 }
0x10dc   : > { %15485 = vadd.xlane.f32.xlu1 %v15484_v38 }
0x10dd   : > { %16433 = vrot.lane.b32.xlu0 %v37049_v34, %s35085_s6 }
0x10e1   : > { %16431 = vrot.lane.b32.xlu0 %v37056_v46, %s35085_s6  ;;  %v15618_v46 = vsub.f32 %v15496_v51, %v15536_v20 }
0x10e3   : > { %v34051_v11 = vpop.eup %34050  ;;  %v15619_v26 = vand.u32 4294901760, %v15618_v46 }
0x10e4   : > { %v15491_v42 = vmul.f32 %v34051_v11, %v34043_v13 }
0x10e5   : > { %16901 = vrot.lane.b32.xlu0 %v37094_v31, %s35085_s6  ;;  %v15620_v8 = vsub.f32 %v15618_v46, %v15619_v26 }
0x10e6   : > { %v15502_v21 = vsel %vm4399_vm5, %v15491_v42, 0 }
0x10e7   : > { %v15571_v14 = vand.u32 4294901760, %v15502_v21  ;;  %v15621_v61 = vand.u32 4294901760, %v15620_v8 }
0x10e9   : > { %16899 = vrot.lane.b32.xlu0 %v37110_v62, %s35085_s6  ;;  %v15572_v36 = vsub.f32 %v15502_v21, %v15571_v14 }
0x10eb   : > { %v15573_v22 = vand.u32 4294901760, %v15572_v36 }
0x10ed   : > { %v15574_v6 = vsub.f32 %v15572_v36, %v15573_v22 }
0x10ef   : > { %v15575_v62 = vand.u32 4294901760, %v15574_v6 }
0x1130   : > { %v15480_v34 = vpop.xlane.xlu1 %15479 }
0x1131   : > { %34052 = vrcp.f32 %v15480_v34 }
0x1134   : > { %v15498_v45 = vpop.permute.xlu1 %15497 }
0x1135   : > { %v15533_v31 = vand.u32 4294901760, %v15498_v45 }
0x1137   : > { %v15611_v27 = vsub.f32 %v15498_v45, %v15533_v31  ;;  %32336 = vmatpush3.msra.mxu0 %v15533_v31 }
0x1138   : > { %32337 = vmatprep.subr.mxu0 %v35080_v0 }
0x1139   : > { %v15612_v28 = vand.u32 4294901760, %v15611_v27  ;;  %32338 = vmatpush3.msra.mxu0 %v15536_v20 }
0x113a   : > { %32340 = vmatmul.mubr.f32.vlgmr.msra.gmra.mxu0 %v15575_v62  ;;  %32349 = vmatprep.subr.mxu0 %v35080_v0 }
0x113b   : > { %v15613_v12 = vsub.f32 %v15611_v27, %v15612_v28  ;;  %32350 = vmatpush3.msra.mxu0 %v15611_v27  ;;  %32353 = vmatprep.mubr.msk.f32.mxu0 %vm35081_vm0, %v35080_v0 }
0x113c   : > { %32351 = vmatprep.subr.mxu0 %v35080_v0 }
0x113d   : > { %v15614_v37 = vand.u32 4294901760, %v15613_v12  ;;  %32352 = vmatpush3.msra.mxu0 %v15618_v46 }
0x113e   : > { %v34053_v54 = vpop.eup %34052  ;;  %32354 = vmatmul.mubr.f32.vlgmr.msra.gmra.mxu0 %v15572_v36  ;;  %32363 = vmatprep.subr.mxu0 %v35080_v0 }
0x113f   : > { %v15492_v35 = vmul.f32 %v34053_v54, %v34045_v16  ;;  %32343 = vmatpush3.msra.mxu1 %v15614_v37  ;;  %32364 = vmatpush3.msra.mxu0 %v15612_v28 }
0x1140   : > { %32344 = vmatprep.subr.mxu1 %v35080_v0  ;;  %32365 = vmatprep.subr.mxu0 %v35080_v0 }
0x1141   : > { %v15970_v60 = vsel %vm4399_vm5, %v15492_v35, 0  ;;  %32345 = vmatpush3.msra.mxu1 %v15621_v61  ;;  %32366 = vmatpush3.msra.mxu0 %v15619_v26 }
0x1142   : > { %v37221_v63 = vand.u32 4294901760, %v15970_v60  ;;  %32367 = vmatprep.mubr.msk.f32.mxu0 %vm35081_vm0, %v35080_v0  ;;  %32347 = vmatmul.mubr.f32.vlgmr.msra.gmra.mxu1 %v15571_v14 }
0x1143   : > { %32356 = vmatprep.subr.mxu1 %v35080_v0  ;;  %32368 = vmatmul.mubr.f32.vlgmr.msra.gmra.mxu0 %v15571_v14 }
0x1144   : > { %32357 = vmatpush3.msra.mxu1 %v15533_v31  ;;  %32360 = vmatprep.mubr.msk.f32.mxu1 %vm35081_vm0, %v35080_v0  ;;  %v37233_v13 = vsub.f32 %v15970_v60, %v37221_v63 }
0x1145   : > { %32358 = vmatprep.subr.mxu1 %v35080_v0  ;;  %32377 = vmatprep.subr.mxu0 %v35080_v0 }
0x1146   : > { %32359 = vmatpush3.msra.mxu1 %v15536_v20  ;;  %32381 = vmatprep.mubr.msk.f32.mxu0 %vm35081_vm0, %v35080_v0  ;;  %v16041_v7 = vand.u32 4294901760, %v37233_v13 }
0x1147   : > { %32361 = vmatmul.mubr.f32.vlgmr.msra.gmra.mxu1 %v15573_v22  ;;  %32370 = vmatprep.subr.mxu1 %v35080_v0 }
0x1148   : > { %32371 = vmatpush3.msra.mxu1 %v15533_v31  ;;  %v15483_v48 = vpop.xlane.xlu0 %15482  ;;  %32374 = vmatprep.mubr.msk.f32.mxu1 %vm35081_vm0, %v35080_v0  ;;  %v16042_v15 = vsub.f32 %v37233_v13, %v16041_v7 }
0x1149   : > { %34054 = vrcp.f32 %v15483_v48  ;;  %32372 = vmatprep.subr.mxu1 %v35080_v0 }
0x114a   : > { %32373 = vmatpush3.msra.mxu1 %v15536_v20  ;;  %v16043_v1 = vand.u32 4294901760, %v16042_v15 }
0x114b   : > { %32375 = vmatmul.mubr.f32.vlgmr.msra.gmra.mxu1 %v15571_v14  ;;  %32384 = vmatprep.subr.mxu1 %v35080_v0 }
0x114c   : > { %v15966_v25 = vpop.permute.xlu0 %15965  ;;  %32388 = vmatprep.mubr.msk.f32.mxu1 %vm35081_vm0, %v35080_v0 }
0x114d   : > { %v37243_v24 = vand.u32 4294901760, %v15966_v25 }
0x114f   : > { %v16079_v29 = vsub.f32 %v15966_v25, %v37243_v24  ;;  %32378 = vmatpush3.msra.mxu0 %v37243_v24 }
0x1150   : > { %v15964_v52 = vpop.permute.xlu0 %15963  ;;  %32379 = vmatprep.subr.mxu0 %v35080_v0 }
0x1151   : > { %v16080_v59 = vand.u32 4294901760, %v16079_v29  ;;  %v16004_v17 = vand.u32 4294901760, %v15964_v52 }
0x1153   : > { %v16081_v5 = vsub.f32 %v16079_v29, %v16080_v59  ;;  %v16086_v44 = vsub.f32 %v15964_v52, %v16004_v17  ;;  %32380 = vmatpush3.msra.mxu0 %v16004_v17 }
0x1154   : > { %v16434_v16 = vpop.permute.xlu0 %16433  ;;  %32382 = vmatmul.mubr.f32.vlgmr.msra.gmra.mxu0 %v16043_v1  ;;  %32391 = vmatprep.subr.mxu0 %v35080_v0 }
0x1155   : > { %v16082_v39 = vand.u32 4294901760, %v16081_v5  ;;  %v16087_v56 = vand.u32 4294901760, %v16086_v44  ;;  %v37252_v18 = vand.u32 4294901760, %v16434_v16  ;;  %32392 = vmatpush3.msra.mxu0 %v16079_v29  ;;  %32395 = vmatprep.mubr.msk.f32.mxu0 %vm35081_vm0, %v35080_v0 }
0x1156   : > { %v34055_v53 = vpop.eup %34054  ;;  %32393 = vmatprep.subr.mxu0 %v35080_v0 }
0x1157   : > { %v15493_v30 = vmul.f32 %v34055_v53, %v37191_v23  ;;  %v16088_v55 = vsub.f32 %v16086_v44, %v16087_v56  ;;  %32385 = vmatpush3.msra.mxu1 %v16082_v39  ;;  %32394 = vmatpush3.msra.mxu0 %v16086_v44  ;;  %v16547_v41 = vsub.f32 %v16434_v16, %v37252_v18 }
0x1158   : > { %v16432_v50 = vpop.permute.xlu0 %16431  ;;  %32396 = vmatmul.mubr.f32.vlgmr.msra.gmra.mxu0 %v37233_v13  ;;  %32405 = vmatprep.subr.mxu0 %v35080_v0 }
0x1159   : > { %v16438_v47 = vsel %vm4399_vm5, %v15493_v30, 0  ;;  %v16089_v38 = vand.u32 4294901760, %v16088_v55  ;;  %v37262_v11 = vand.u32 4294901760, %v16432_v50  ;;  %32406 = vmatpush3.msra.mxu0 %v16080_v59  ;;  %32386 = vmatprep.subr.mxu1 %v35080_v0  ;;  %v16548_v14 = vand.u32 4294901760, %v16547_v41 }
0x115a   : > { %v37265_v42 = vand.u32 4294901760, %v16438_v47  ;;  %32407 = vmatprep.subr.mxu0 %v35080_v0  ;;  %32409 = vmatprep.mubr.msk.f32.mxu0 %vm35081_vm0, %v35080_v0 }
0x115b   : > { %v16554_v23 = vsub.f32 %v16432_v50, %v37262_v11  ;;  %32387 = vmatpush3.msra.mxu1 %v16089_v38  ;;  %32408 = vmatpush3.msra.mxu0 %v16087_v56  ;;  %v16549_v22 = vsub.f32 %v16547_v41, %v16548_v14 }
0x115c   : > { %32389 = vmatmul.mubr.f32.vlgmr.msra.gmra.mxu1 %v37221_v63  ;;  %32398 = vmatprep.subr.mxu1 %v35080_v0  ;;  %v16508_v21 = vsub.f32 %v16438_v47, %v37265_v42  ;;  %v16902_v20 = vpop.permute.xlu0 %16901 }
0x115d   : > { %32410 = vmatmul.mubr.f32.vlgmr.msra.gmra.mxu0 %v37221_v63  ;;  %32419 = vmatprep.subr.mxu0 %v35080_v0  ;;  %v16555_v36 = vand.u32 4294901760, %v16554_v23  ;;  %v16550_v6 = vand.u32 4294901760, %v16549_v22  ;;  %v37293_v27 = vand.u32 4294901760, %v16902_v20 }
0x115e   : > { %32399 = vmatpush3.msra.mxu1 %v37243_v24  ;;  %32420 = vmatpush3.msra.mxu0 %v37252_v18  ;;  %v16509_v51 = vand.u32 4294901760, %v16508_v21 }
0x115f   : > { %32400 = vmatprep.subr.mxu1 %v35080_v0  ;;  %32421 = vmatprep.subr.mxu0 %v35080_v0  ;;  %v16556_v45 = vsub.f32 %v16554_v23, %v16555_v36  ;;  %v37302_v8 = vsub.f32 %v16902_v20, %v37293_v27 }
0x1160   : > { %32401 = vmatpush3.msra.mxu1 %v16004_v17  ;;  %32402 = vmatprep.mubr.msk.f32.mxu1 %vm35081_vm0, %v35080_v0  ;;  %v16510_v34 = vsub.f32 %v16508_v21, %v16509_v51  ;;  %v16900_v31 = vpop.permute.xlu0 %16899 }
0x1161   : > { %32422 = vmatpush3.msra.mxu0 %v37262_v11  ;;  %32403 = vmatmul.mubr.f32.vlgmr.msra.gmra.mxu1 %v16041_v7  ;;  %v16557_v62 = vand.u32 4294901760, %v16556_v45  ;;  %v37297_v28 = vand.u32 4294901760, %v16900_v31  ;;  %v17016_v37 = vand.u32 4294901760, %v37302_v8 }
0x1162   : > { %32412 = vmatprep.subr.mxu1 %v35080_v0  ;;  %32416 = vmatprep.mubr.msk.f32.mxu1 %vm35081_vm0, %v35080_v0  ;;  %v16511_v46 = vand.u32 4294901760, %v16510_v34 }
0x1163   : > { %32413 = vmatpush3.msra.mxu1 %v37243_v24  ;;  %32423 = vmatprep.mubr.msk.f32.mxu0 %vm35081_vm0, %v35080_v0  ;;  %v37311_v12 = vsub.f32 %v16900_v31, %v37297_v28  ;;  %v17017_v61 = vsub.f32 %v37302_v8, %v17016_v37 }
0x1164   : > { %32414 = vmatprep.subr.mxu1 %v35080_v0  ;;  %32433 = vmatprep.subr.mxu0 %v35080_v0 }
0x1165   : > { %32415 = vmatpush3.msra.mxu1 %v16004_v17  ;;  %32424 = vmatmul.mubr.f32.vlgmr.msra.gmra.mxu0 %v16511_v46  ;;  %v15486_v26 = vpop.xlane.xlu1 %15485  ;;  %v17023_v54 = vand.u32 4294901760, %v37311_v12  ;;  %v17018_v13 = vand.u32 4294901760, %v17017_v61 }
0x1166   : > { %32417 = vmatmul.mubr.f32.vlgmr.msra.gmra.mxu1 %v37221_v63  ;;  %32426 = vmatprep.subr.mxu1 %v35080_v0  ;;  %34056 = vrcp.f32 %v15486_v26 }
0x1167   : > { %32434 = vmatpush3.msra.mxu0 %v16547_v41  ;;  %32427 = vmatpush3.msra.mxu1 %v16550_v6  ;;  %v17024_v60 = vsub.f32 %v37311_v12, %v17023_v54 }
0x1168   : > { %32435 = vmatprep.subr.mxu0 %v35080_v0  ;;  %32428 = vmatprep.subr.mxu1 %v35080_v0 }
0x1169   : > { %32436 = vmatpush3.msra.mxu0 %v16554_v23  ;;  %32429 = vmatpush3.msra.mxu1 %v16557_v62 }
0x116a   : > { %32430 = vmatprep.mubr.msk.f32.mxu1 %vm35081_vm0, %v35080_v0  ;;  %32437 = vmatprep.mubr.msk.f32.mxu0 %vm35081_vm0, %v35080_v0 }
0x116b   : > { %32447 = vmatprep.subr.mxu0 %v35080_v0  ;;  %32431 = vmatmul.mubr.f32.vlgmr.msra.gmra.mxu1 %v37265_v42 }
0x116c   : > { %32438 = vmatmul.mubr.f32.vlgmr.msra.gmra.mxu0 %v16508_v21  ;;  %32440 = vmatprep.subr.mxu1 %v35080_v0 }
0x116d   : > { %32448 = vmatpush3.msra.mxu0 %v16548_v14  ;;  %32441 = vmatpush3.msra.mxu1 %v37252_v18 }
0x116e   : > { %32449 = vmatprep.subr.mxu0 %v35080_v0  ;;  %32442 = vmatprep.subr.mxu1 %v35080_v0 }
0x116f   : > { %32450 = vmatpush3.msra.mxu0 %v16555_v36  ;;  %32443 = vmatpush3.msra.mxu1 %v37262_v11 }
0x1170   : > { %32444 = vmatprep.mubr.msk.f32.mxu1 %vm35081_vm0, %v35080_v0  ;;  %32451 = vmatprep.mubr.msk.f32.mxu0 %vm35081_vm0, %v35080_v0 }
0x1171   : > { %32461 = vmatprep.subr.mxu0 %v35080_v0  ;;  %32445 = vmatmul.mubr.f32.vlgmr.msra.gmra.mxu1 %v16509_v51 }
0x1172   : > { %32452 = vmatmul.mubr.f32.vlgmr.msra.gmra.mxu0 %v37265_v42  ;;  %32454 = vmatprep.subr.mxu1 %v35080_v0 }
0x1173   : > { %v34057_v35 = vpop.eup %34056  ;;  %32462 = vmatpush3.msra.mxu0 %v37293_v27  ;;  %32455 = vmatpush3.msra.mxu1 %v37252_v18 }
0x1174   : > { %v15494_v63 = vmul.f32 %v34057_v35, %v37197_v49  ;;  %32463 = vmatprep.subr.mxu0 %v35080_v0  ;;  %32456 = vmatprep.subr.mxu1 %v35080_v0  ;;  %v17025_v49 = vand.u32 4294901760, %v17024_v60 }
0x1175   : > { %32464 = vmatpush3.msra.mxu0 %v37297_v28  ;;  %32457 = vmatpush3.msra.mxu1 %v37262_v11 }
0x1176   : > { %32458 = vmatprep.mubr.msk.f32.mxu1 %vm35081_vm0, %v35080_v0  ;;  %32468 = vmatprep.subr.mxu1 %v35080_v0  ;;  %v16906_v48 = vsel %vm4399_vm5, %v15494_v63, 0 }
0x1177   : > { %32459 = vmatmul.mubr.f32.vlgmr.msra.gmra.mxu1 %v37265_v42  ;;  %v16975_v7 = vand.u32 4294901760, %v16906_v48  ;;  %32465 = vmatprep.mubr.msk.f32.mxu0 %vm35081_vm0, %v35080_v0 }
0x1178   : > { %32469 = vmatpush3.msra.mxu1 %v17018_v13  ;;  %32472 = vmatprep.mubr.msk.f32.mxu1 %vm35081_vm0, %v35080_v0  ;;  %v12527_v13 = vld [vmem:[#allocation29 + $0x18] sm:$0xff] }
0x1179   : > { %32470 = vmatprep.subr.mxu1 %v35080_v0  ;;  %v16976_v25 = vsub.f32 %v16906_v48, %v16975_v7  ;;  %32475 = vmatprep.subr.mxu0 %v35080_v0  ;;  %v12526_v48 = vld [vmem:[#allocation29 + $0x10] sm:$0xff] }
0x117a   : > { %32471 = vmatpush3.msra.mxu1 %v17025_v49  ;;  %v37380_v49 = vand.u32 4294901760, %v12526_v48 }
0x117b   : > { %32482 = vmatprep.subr.mxu1 %v35080_v0  ;;  %32473 = vmatmul.mubr.f32.vlgmr.msra.gmra.mxu1 %v16975_v7  ;;  %v16977_v24 = vand.u32 4294901760, %v16976_v25 }
0x117c   : > { %32483 = vmatpush3.msra.mxu1 %v37293_v27  ;;  %32486 = vmatprep.mubr.msk.f32.mxu1 %vm35081_vm0, %v35080_v0 }
0x117d   : > { %32484 = vmatprep.subr.mxu1 %v35080_v0  ;;  %v16978_v15 = vsub.f32 %v16976_v25, %v16977_v24 }
0x117e   : > { %32485 = vmatpush3.msra.mxu1 %v37297_v28 }
0x117f   : > { %32496 = vmatprep.subr.mxu1 %v35080_v0  ;;  %32487 = vmatmul.mubr.f32.vlgmr.msra.gmra.mxu1 %v16977_v24  ;;  %v16979_v29 = vand.u32 4294901760, %v16978_v15 }
0x1180   : > { %32497 = vmatpush3.msra.mxu1 %v37293_v27  ;;  %32500 = vmatprep.mubr.msk.f32.mxu1 %vm35081_vm0, %v35080_v0 }
0x1181   : > { %32498 = vmatprep.subr.mxu1 %v35080_v0  ;;  %32466 = vmatmul.mubr.f32.vlgmr.msra.gmra.mxu0 %v16979_v29 }
0x1182   : > { %32499 = vmatpush3.msra.mxu1 %v37297_v28  ;;  %32476 = vmatpush3.msra.mxu0 %v37302_v8 }
0x1183   : > { %32501 = vmatmul.mubr.f32.vlgmr.msra.gmra.mxu1 %v16975_v7  ;;  %32477 = vmatprep.subr.mxu0 %v35080_v0 }
0x1184   : > { %32478 = vmatpush3.msra.mxu0 %v37311_v12  ;;  %32479 = vmatprep.mubr.msk.f32.mxu0 %vm35081_vm0, %v35080_v0 }
0x1185   : > { %32489 = vmatprep.subr.mxu0 %v35080_v0  ;;  %32480 = vmatmul.mubr.f32.vlgmr.msra.gmra.mxu0 %v16976_v25 }
0x1186   : > { %32490 = vmatpush3.msra.mxu0 %v17016_v37  ;;  %32493 = vmatprep.mubr.msk.f32.mxu0 %vm35081_vm0, %v35080_v0 }
0x1187   : > { %32491 = vmatprep.subr.mxu0 %v35080_v0  ;;  %32514 = vmatprep.subr.mxu1 %v35080_v0 }
0x1188   : > { %32492 = vmatpush3.msra.mxu0 %v17023_v54  ;;  %32522 = vmatprep.mubr.msk.f32.mxu1 %vm35081_vm0, %v35080_v0 }
0x1189   : > { %32494 = vmatmul.mubr.f32.vlgmr.msra.gmra.mxu0 %v16975_v7  ;;  %32503 = vmatprep.subr.mxu0 %v35080_v0  ;;  %v37378_v7 = vand.u32 4294901760, %v12527_v13 }
0x118a   : > { %32511 = vmatprep.mubr.msk.f32.mxu0 %vm35081_vm0, %v35080_v0 }
0x118b   : > { %v37383_v29 = vsub.f32 %v12527_v13, %v37378_v7  ;;  %32504 = vmatpush3.msra.mxu0 %v37378_v7 }
0x118c   : > { %32505 = vmatprep.subr.mxu0 %v35080_v0 }
0x118d   : > { %32506 = vmatpush3.msra.mxu0 %v37380_v49 }
0x118e   : > { %32507 = vmatprep.subr.mxu0 %v35080_v0 }
0x11fa   : > { %v15577_v52 = vpop.f32.mrf.mxu0 }
0x11fc   : > { %v32341_v59 = vpop.f32.mrf.mxu0 }
0x11fe   : > { %v15734_v17 = vpop.f32.mrf.mxu0 }
0x1200   : > { %v32355_v1 = vpop.f32.mrf.mxu0 }
0x1201   : > { %v17501_v1 = vand.u32 4294901760, %v37383_v29 }
0x1202   : > { %v15658_v5 = vpop.f32.mrf.mxu1 }
0x1203   : > { %v15659_v44 = vadd.f32 %v15658_v5, %v15577_v52  ;;  %v15886_v16 = vpop.f32.mrf.mxu0 }
0x1204   : > { %v32348_v39 = vpop.f32.mrf.mxu1 }
0x1205   : > { %v32369_v56 = vpop.f32.mrf.mxu0  ;;  %v15735_v18 = vadd.f32 %v15734_v17, %v15659_v44  ;;  %v17502_v44 = vsub.f32 %v37383_v29, %v17501_v1 }
0x1207   : > { %v15809_v53 = vpop.f32.mrf.mxu1 }
0x1208   : > { %v15810_v30 = vadd.f32 %v15809_v53, %v15735_v18  ;;  %v17503_v18 = vand.u32 4294901760, %v17502_v44 }
0x1209   : > { %v32362_v55 = vpop.f32.mrf.mxu1 }
0x120a   : > { %v15887_v50 = vadd.f32 %v15886_v16, %v15810_v30  ;;  %32515 = vmatpush3.msra.mxu1 %v17503_v18 }
0x120b   : > { %v15959_v47 = vpop.f32.mrf.mxu1  ;;  %32516 = vmatprep.subr.mxu1 %v35080_v0 }
0x120c   : > { %v37374_v38 = vadd.f32 %v15959_v47, %v15887_v50 }
0x120d   : > { %v32376_v41 = vpop.f32.mrf.mxu1 }
0x1214   : > { %v16045_v11 = vpop.f32.mrf.mxu0 }
0x1216   : > { %v32383_v42 = vpop.f32.mrf.mxu0 }
0x1218   : > { %v16202_v23 = vpop.f32.mrf.mxu0 }
0x121a   : > { %v32397_v21 = vpop.f32.mrf.mxu0 }
0x121c   : > { %v16126_v14 = vpop.f32.mrf.mxu1 }
0x121d   : > { %v16127_v51 = vadd.f32 %v16126_v14, %v16045_v11  ;;  %v16354_v36 = vpop.f32.mrf.mxu0  ;;  %v12525_v11 = vld [vmem:[#allocation29 + $0x8] sm:$0xff]  ;;  %v12524_v14 = vld [vmem:[#allocation29] sm:$0xff] }
0x121e   : > { %v32390_v20 = vpop.f32.mrf.mxu1  ;;  %v37404_v42 = vand.u32 4294901760, %v12525_v11 }
0x121f   : > { %v32411_v34 = vpop.f32.mrf.mxu0  ;;  %v16203_v22 = vadd.f32 %v16202_v23, %v16127_v51 }
0x1220   : > { %v37407_v51 = vsub.f32 %v12525_v11, %v37404_v42  ;;  %32508 = vmatpush3.msra.mxu0 %v37404_v42 }
0x1221   : > { %v16277_v46 = vpop.f32.mrf.mxu1  ;;  %32509 = vmatprep.subr.mxu0 %v35080_v0 }
0x1222   : > { %v16278_v45 = vadd.f32 %v16277_v46, %v16203_v22  ;;  %v17515_v22 = vand.u32 4294901760, %v37407_v51 }
0x1223   : > { %v32404_v6 = vpop.f32.mrf.mxu1 }
0x1224   : > { %v16355_v31 = vadd.f32 %v16354_v36, %v16278_v45 }
0x1225   : > { %v16513_v26 = vpop.f32.mrf.mxu0 }
0x1226   : > { %v16427_v27 = vpop.f32.mrf.mxu1 }
0x1227   : > { %v16428_v62 = vadd.f32 %v16427_v27, %v16355_v31  ;;  %v32425_v28 = vpop.f32.mrf.mxu0 }
0x1228   : > { %v32418_v8 = vpop.f32.mrf.mxu1 }
0x1229   : > { %v17368_v12 = vadd.f32 %v16428_v62, %v37040_v4  ;;  %v37386_v4 = vsub.f32 %v12526_v48, %v37380_v49  ;;  %v17367_v48 = vadd.f32 %v37374_v38, %v36972_v19  ;;  %v17883_v38 = vld [vmem:[#allocation32 + $0x8] sm:$0xff] }
0x122b   : > { %v16594_v37 = vpop.f32.mrf.mxu1  ;;  %17372 = vrot.lane.b32.xlu0 %v17368_v12, %s35086_s5  ;;  %v17508_v5 = vand.u32 4294901760, %v37386_v4 }
0x122c   : > { %v16595_v54 = vadd.f32 %v16594_v37, %v16513_v26  ;;  %v16670_v61 = vpop.f32.mrf.mxu0  ;;  %v17516_v26 = vsub.f32 %v37407_v51, %v17515_v22 }
0x122d   : > { %v32432_v35 = vpop.f32.mrf.mxu1  ;;  %v17509_v16 = vsub.f32 %v37386_v4, %v17508_v5 }
0x122e   : > { %v16671_v60 = vadd.f32 %v16670_v61, %v16595_v54  ;;  %v32439_v63 = vpop.f32.mrf.mxu0  ;;  %v17517_v8 = vand.u32 4294901760, %v17516_v26 }
0x122f   : > { %v17510_v53 = vand.u32 4294901760, %v17509_v16  ;;  %v17884_v16 = vld [vmem:[#allocation32 + $0x10] sm:$0xff] }
0x1231   : > { %v16745_v25 = vpop.f32.mrf.mxu1  ;;  %32517 = vmatpush3.msra.mxu1 %v17510_v53  ;;  %v17882_v53 = vld [vmem:[#allocation32] sm:$0xff] }
0x1232   : > { %v16746_v24 = vadd.f32 %v16745_v25, %v16671_v60  ;;  %v16822_v15 = vpop.f32.mrf.mxu0  ;;  %32518 = vmatprep.subr.mxu1 %v35080_v0 }
0x1233   : > { %v32446_v52 = vpop.f32.mrf.mxu1  ;;  %32519 = vmatpush3.msra.mxu1 %v17517_v8 }
0x1234   : > { %v16823_v59 = vadd.f32 %v16822_v15, %v16746_v24  ;;  %v32453_v17 = vpop.f32.mrf.mxu0  ;;  %32520 = vmatprep.subr.mxu1 %v35080_v0 }
0x1235   : > { %v17885_v17 = vld [vmem:[#allocation32 + $0x18] sm:$0xff] }
0x1237   : > { %v16895_v39 = vpop.f32.mrf.mxu1 }
0x1238   : > { %v16896_v56 = vadd.f32 %v16895_v39, %v16823_v59  ;;  %v37441_v39 = vand.u32 4294901760, %v17885_v17 }
0x1239   : > { %v32460_v30 = vpop.f32.mrf.mxu1 }
0x123a   : > { %v17369_v55 = vadd.f32 %v16896_v56, %v37054_v57  ;;  %v37409_v57 = vand.u32 4294901760, %v12524_v14  ;;  %v37448_v56 = vand.u32 4294901760, %v17884_v16  ;;  %v37453_v30 = vsub.f32 %v17885_v17, %v37441_v39 }
0x123b   : > { %v17062_v50 = vpop.f32.mrf.mxu1 }
0x123c   : > { %17376 = vrot.lane.b32.xlu0 %v17369_v55, %s35087_s8  ;;  %v37415_v46 = vsub.f32 %v12524_v14, %v37409_v57  ;;  %32510 = vmatpush3.msra.mxu0 %v37409_v57  ;;  %v37455_v55 = vand.u32 4294901760, %v17883_v38 }
0x123d   : > { %v32474_v47 = vpop.f32.mrf.mxu1  ;;  %32525 = vmatprep.subr.mxu0 %v35080_v0 }
0x123e   : > { %v17522_v27 = vand.u32 4294901760, %v37415_v46  ;;  %v37460_v47 = vsub.f32 %v17884_v16, %v37448_v56 }
0x123f   : > { %v17213_v41 = vpop.f32.mrf.mxu1 }
0x1240   : > { %v17523_v12 = vsub.f32 %v37415_v46, %v17522_v27  ;;  %v37475_v14 = vand.u32 4294901760, %v37460_v47 }
0x1241   : > { %v32488_v23 = vpop.f32.mrf.mxu1  ;;  %v16981_v21 = vpop.f32.mrf.mxu0 }
0x1242   : > { %v17063_v34 = vadd.f32 %v17062_v50, %v16981_v21  ;;  %v17524_v61 = vand.u32 4294901760, %v17523_v12  ;;  %v37467_v23 = vand.u32 4294901760, %v37453_v30  ;;  %v37470_v21 = vsub.f32 %v17883_v38, %v37455_v55 }
0x1243   : > { %v17363_v36 = vpop.f32.mrf.mxu1  ;;  %v32467_v20 = vpop.f32.mrf.mxu0 }
0x1244   : > { %32521 = vmatpush3.msra.mxu1 %v17524_v61  ;;  %v18020_v20 = vsub.f32 %v37453_v30, %v37467_v23 }
0x1245   : > { %v32502_v45 = vpop.f32.mrf.mxu1  ;;  %v17138_v6 = vpop.f32.mrf.mxu0  ;;  %32536 = vmatprep.subr.mxu1 %v35080_v0 }
0x1246   : > { %v17139_v31 = vadd.f32 %v17138_v6, %v17063_v34  ;;  %v37487_v34 = vand.u32 4294901760, %v37470_v21 }
0x1247   : > { %v32481_v62 = vpop.f32.mrf.mxu0 }
0x1248   : > { %v17214_v28 = vadd.f32 %v17213_v41, %v17139_v31  ;;  %v37462_v41 = vand.u32 4294901760, %v17882_v53  ;;  %v18034_v6 = vsub.f32 %v37470_v21, %v37487_v34 }
0x1249   : > { %v17290_v37 = vpop.f32.mrf.mxu0 }
0x124a   : > { %v17291_v54 = vadd.f32 %v17290_v37, %v17214_v28  ;;  %v18035_v26 = vand.u32 4294901760, %v18034_v6 }
0x124b   : > { %v32495_v35 = vpop.f32.mrf.mxu0 }
0x124c   : > { %v17364_v60 = vadd.f32 %v17363_v36, %v17291_v54  ;;  %v37478_v36 = vsub.f32 %v17882_v53, %v37462_v41 }
0x124e   : > { %v17370_v63 = vadd.f32 %v17364_v60, %v37108_v58  ;;  %v37496_v45 = vand.u32 4294901760, %v37478_v36 }
0x1250   : > { %17380 = vrot.lane.b32.xlu1 %v17370_v63, %s35088_s15  ;;  %v18041_v31 = vsub.f32 %v37478_v36, %v37496_v45 }
0x129d   : > { %v17373_v13 = vpop.permute.xlu0 %17372 }
0x129e   : > { %v17383_v24 = vsel %vm2534_vm4, %v17367_v48, %v17373_v13 }
0x12ae   : > { %v17377_v25 = vpop.permute.xlu0 %17376 }
0x12af   : > { %v17384_v15 = vsel %vm4399_vm5, %v17383_v24, %v17377_v25 }
0x12c2   : > { %v17381_v52 = vpop.permute.xlu1 %17380 }
0x12c3   : > { %v37435_v59 = vsel %vm6334_vm6, %v17384_v15, %v17381_v52  ;;  %v29920_v15 = vld [vmem:[#allocation31] ss:$0 sm:$0xff] }
0x12c4   : > { %v17393_v44 = vsel %vm1515_vm1, %v37435_v59, 0 }
0x12c5   : > { %v37439_v58 = vand.u32 4294901760, %v17393_v44 }
0x12c7   : > { %v17465_v19 = vsub.f32 %v17393_v44, %v37439_v58  ;;  %32523 = vmatmul.mubr.f32.vlgmr.msra.gmra.mxu1 %v37439_v58 }
0x12c8   : > { %32537 = vmatpush3.msra.mxu1 %v37378_v7  ;;  %32544 = vmatprep.mubr.msk.f32.mxu1 %vm35081_vm0, %v35080_v0 }
0x12c9   : > { %v17466_v18 = vand.u32 4294901760, %v17465_v19  ;;  %32538 = vmatprep.subr.mxu1 %v35080_v0 }
0x12ca   : > { %32539 = vmatpush3.msra.mxu1 %v37380_v49 }
0x12cb   : > { %v17467_v50 = vsub.f32 %v17465_v19, %v17466_v18  ;;  %32540 = vmatprep.subr.mxu1 %v35080_v0 }
0x12cc   : > { %32541 = vmatpush3.msra.mxu1 %v37404_v42 }
0x12cd   : > { %v17468_v11 = vand.u32 4294901760, %v17467_v50  ;;  %32542 = vmatprep.subr.mxu1 %v35080_v0 }
0x12ce   : > { %32543 = vmatpush3.msra.mxu1 %v37409_v57 }
0x12cf   : > { %32545 = vmatmul.mubr.f32.vlgmr.msra.gmra.mxu1 %v17466_v18  ;;  %32558 = vmatprep.subr.mxu1 %v35080_v0 }
0x12d0   : > { %32512 = vmatmul.mubr.f32.vlgmr.msra.gmra.mxu0 %v17468_v11  ;;  %32559 = vmatpush3.msra.mxu1 %v37378_v7  ;;  %v18027_v7 = vsub.f32 %v37460_v47, %v37475_v14 }
0x12d1   : > { %32526 = vmatpush3.msra.mxu0 %v37383_v29  ;;  %32560 = vmatprep.subr.mxu1 %v35080_v0 }
0x12d2   : > { %32527 = vmatprep.subr.mxu0 %v35080_v0  ;;  %32561 = vmatpush3.msra.mxu1 %v37380_v49  ;;  %v18021_v49 = vand.u32 4294901760, %v18020_v20 }
0x12d3   : > { %32528 = vmatpush3.msra.mxu0 %v37386_v4  ;;  %32562 = vmatprep.subr.mxu1 %v35080_v0  ;;  %v17887_v4 = vld [vmem:[#allocation35] sm:$0xff] }
0x12d4   : > { %32529 = vmatprep.subr.mxu0 %v35080_v0  ;;  %32563 = vmatpush3.msra.mxu1 %v37404_v42  ;;  %v18028_v42 = vand.u32 4294901760, %v18027_v7 }
0x12d5   : > { %32530 = vmatpush3.msra.mxu0 %v37407_v51  ;;  %32564 = vmatprep.subr.mxu1 %v35080_v0 }
0x12d6   : > { %32531 = vmatprep.subr.mxu0 %v35080_v0  ;;  %32533 = vmatprep.mubr.msk.f32.mxu0 %vm35081_vm0, %v35080_v0 }
0x12d7   : > { %32532 = vmatpush3.msra.mxu0 %v37415_v46  ;;  %32565 = vmatpush3.msra.mxu1 %v37409_v57  ;;  %v18042_v57 = vand.u32 4294901760, %v18041_v31 }
0x12d8   : > { %32566 = vmatprep.mubr.msk.f32.mxu1 %vm35081_vm0, %v35080_v0  ;;  %32534 = vmatmul.mubr.f32.vlgmr.msra.gmra.mxu0 %v17465_v19 }
0x12d9   : > { %32547 = vmatprep.subr.mxu0 %v35080_v0  ;;  %32567 = vmatmul.mubr.f32.vlgmr.msra.gmra.mxu1 %v37439_v58 }
0x12da   : > { %32580 = vmatprep.subr.mxu1 %v18021_v49  ;;  %32548 = vmatpush3.msra.mxu0 %v17501_v1 }
0x12db   : > { %32581 = vmatpush3.msra.mxu1 %v18021_v49  ;;  %32588 = vmatprep.mubr.f32.mxu1 %v36905_v43 }
0x12dc   : > { %32549 = vmatprep.subr.mxu0 %v35080_v0  ;;  %32582 = vmatprep.subr.mxu1 %v18028_v42 }
0x12dd   : > { %32550 = vmatpush3.msra.mxu0 %v17508_v5  ;;  %32583 = vmatpush3.msra.mxu1 %v18028_v42 }
0x12de   : > { %32551 = vmatprep.subr.mxu0 %v35080_v0  ;;  %32584 = vmatprep.subr.mxu1 %v18035_v26 }
0x12df   : > { %32552 = vmatpush3.msra.mxu0 %v17515_v22  ;;  %32585 = vmatpush3.msra.mxu1 %v18035_v26  ;;  %v37609_v22 = vand.u32 4294901760, %v17887_v4 }
0x12e0   : > { %32553 = vmatprep.subr.mxu0 %v35080_v0  ;;  %32586 = vmatprep.subr.mxu1 %v18042_v57 }
0x12e1   : > { %32554 = vmatpush3.msra.mxu0 %v17522_v27  ;;  %32555 = vmatprep.mubr.msk.f32.mxu0 %vm35081_vm0, %v35080_v0  ;;  %v37618_v28 = vsub.f32 %v17887_v4, %v37609_v22 }
0x12e2   : > { %32587 = vmatpush3.msra.mxu1 %v18042_v57  ;;  %32556 = vmatmul.mubr.f32.vlgmr.msra.gmra.mxu0 %v37439_v58 }
0x12e3   : > { %32569 = vmatprep.subr.mxu0 %v37441_v39  ;;  %32589 = vmatmul.mubr.f32.vlgmr.msra.gmra.mxu1 %v36899_v9  ;;  %v18567_v37 = vand.u32 4294901760, %v37618_v28 }
0x12e4   : > { %32602 = vmatprep.subr.mxu1 %v37441_v39  ;;  %32570 = vmatpush3.msra.mxu0 %v37441_v39 }
0x12e5   : > { %32577 = vmatprep.mubr.f32.mxu0 %v36928_v32  ;;  %32603 = vmatpush3.msra.mxu1 %v37441_v39  ;;  %v17888_v32 = vld [vmem:[#allocation35 + $0x8] sm:$0xff]  ;;  %v18568_v61 = vsub.f32 %v37618_v28, %v18567_v37 }
0x12e6   : > { %32610 = vmatprep.mubr.f32.mxu1 %v36917_v3  ;;  %32571 = vmatprep.subr.mxu0 %v37448_v56  ;;  %v37598_v29 = vand.u32 4294901760, %v17888_v32 }
0x12e7   : > { %32604 = vmatprep.subr.mxu1 %v37448_v56  ;;  %32572 = vmatpush3.msra.mxu0 %v37448_v56  ;;  %v18569_v35 = vand.u32 4294901760, %v18568_v61 }
0x12e8   : > { %32605 = vmatpush3.msra.mxu1 %v37448_v56  ;;  %32573 = vmatprep.subr.mxu0 %v37455_v55  ;;  %v37607_v51 = vsub.f32 %v17888_v32, %v37598_v29 }
0x12e9   : > { %32606 = vmatprep.subr.mxu1 %v37455_v55  ;;  %32574 = vmatpush3.msra.mxu0 %v37455_v55 }
0x12ea   : > { %32607 = vmatpush3.msra.mxu1 %v37455_v55  ;;  %32575 = vmatprep.subr.mxu0 %v37462_v41  ;;  %v18560_v62 = vand.u32 4294901760, %v37607_v51 }
0x12eb   : > { %32608 = vmatprep.subr.mxu1 %v37462_v41  ;;  %32576 = vmatpush3.msra.mxu0 %v37462_v41 }
0x12ec   : > { %32609 = vmatpush3.msra.mxu1 %v37462_v41  ;;  %32578 = vmatmul.mubr.f32.vlgmr.msra.gmra.mxu0 %v36933_v10  ;;  %v18561_v12 = vsub.f32 %v37607_v51, %v18560_v62 }
0x12ed   : > { %32591 = vmatprep.subr.mxu0 %v37453_v30  ;;  %32611 = vmatmul.mubr.f32.vlgmr.msra.gmra.mxu1 %v36912_v2 }
0x12ee   : > { %32624 = vmatprep.subr.mxu1 %v37441_v39  ;;  %32592 = vmatpush3.msra.mxu0 %v37453_v30  ;;  %v18562_v54 = vand.u32 4294901760, %v18561_v12 }
0x12ef   : > { %32599 = vmatprep.mubr.f32.mxu0 %v36908_v33  ;;  %32625 = vmatpush3.msra.mxu1 %v37441_v39  ;;  %v17889_v33 = vld [vmem:[#allocation35 + $0x10] sm:$0xff] }
0x12f0   : > { %32632 = vmatprep.mubr.f32.mxu1 %v36905_v43  ;;  %32593 = vmatprep.subr.mxu0 %v37460_v47  ;;  %v37590_v3 = vand.u32 4294901760, %v17889_v33 }
0x12f1   : > { %32626 = vmatprep.subr.mxu1 %v37448_v56  ;;  %32594 = vmatpush3.msra.mxu0 %v37460_v47  ;;  %v29921_v47 = vld [vmem:[#allocation34] ss:$0 sm:$0xff] }
0x12f2   : > { %32627 = vmatpush3.msra.mxu1 %v37448_v56  ;;  %32595 = vmatprep.subr.mxu0 %v37470_v21  ;;  %v37596_v10 = vsub.f32 %v17889_v33, %v37590_v3 }
0x12f3   : > { %32628 = vmatprep.subr.mxu1 %v37455_v55  ;;  %32596 = vmatpush3.msra.mxu0 %v37470_v21 }
0x12f4   : > { %32629 = vmatpush3.msra.mxu1 %v37455_v55  ;;  %32597 = vmatprep.subr.mxu0 %v37478_v36  ;;  %v18553_v5 = vand.u32 4294901760, %v37596_v10 }
0x12f5   : > { %32630 = vmatprep.subr.mxu1 %v37462_v41  ;;  %32598 = vmatpush3.msra.mxu0 %v37478_v36 }
0x12f6   : > { %32631 = vmatpush3.msra.mxu1 %v37462_v41  ;;  %32600 = vmatmul.mubr.f32.vlgmr.msra.gmra.mxu0 %v36903_v40  ;;  %v17890_v40 = vld [vmem:[#allocation35 + $0x18] sm:$0xff]  ;;  %v18554_v27 = vsub.f32 %v37596_v10, %v18553_v5 }
0x12f7   : > { %32613 = vmatprep.subr.mxu0 %v37467_v23  ;;  %32633 = vmatmul.mubr.f32.vlgmr.msra.gmra.mxu1 %v36899_v9 }
0x12f8   : > { %32614 = vmatpush3.msra.mxu0 %v37467_v23  ;;  %32621 = vmatprep.mubr.f32.mxu0 %v36905_v43  ;;  %v37585_v43 = vand.u32 4294901760, %v17890_v40  ;;  %v18555_v8 = vand.u32 4294901760, %v18554_v27 }
0x12f9   : > { %32615 = vmatprep.subr.mxu0 %v37475_v14  ;;  %32646 = vmatprep.subr.mxu1 %v35080_v0 }
0x12fa   : > { %32616 = vmatpush3.msra.mxu0 %v37475_v14  ;;  %32654 = vmatprep.mubr.msk.f32.mxu1 %vm35081_vm0, %v35080_v0  ;;  %v37588_v2 = vsub.f32 %v17890_v40, %v37585_v43 }
0x12fb   : > { %32617 = vmatprep.subr.mxu0 %v37487_v34 }
0x12fc   : > { %32618 = vmatpush3.msra.mxu0 %v37487_v34 }
0x12fd   : > { %32619 = vmatprep.subr.mxu0 %v37496_v45 }
0x12fe   : > { %32620 = vmatpush3.msra.mxu0 %v37496_v45 }
0x12ff   : > { %32622 = vmatmul.mubr.f32.vlgmr.msra.gmra.mxu0 %v36899_v9  ;;  %32635 = vmatprep.subr.mxu0 %v35080_v0  ;;  %v18546_v9 = vand.u32 4294901760, %v37588_v2 }
0x1300   : > { %32643 = vmatprep.mubr.msk.f32.mxu0 %vm35081_vm0, %v35080_v0  ;;  %32636 = vmatpush3.msra.mxu0 %v37585_v43 }
0x1301   : > { %32637 = vmatprep.subr.mxu0 %v35080_v0  ;;  %v18547_v1 = vsub.f32 %v37588_v2, %v18546_v9 }
0x1302   : > { %32638 = vmatpush3.msra.mxu0 %v37590_v3 }
0x1303   : > { %32639 = vmatprep.subr.mxu0 %v35080_v0  ;;  %v18548_v46 = vand.u32 4294901760, %v18547_v1 }
0x1304   : > { %32640 = vmatpush3.msra.mxu0 %v37598_v29 }
0x1305   : > { %32641 = vmatprep.subr.mxu0 %v35080_v0  ;;  %32647 = vmatpush3.msra.mxu1 %v18548_v46 }
0x1306   : > { %32642 = vmatpush3.msra.mxu0 %v37609_v22  ;;  %32648 = vmatprep.subr.mxu1 %v35080_v0 }
0x1307   : > { %32657 = vmatprep.subr.mxu0 %v35080_v0  ;;  %32649 = vmatpush3.msra.mxu1 %v18555_v8 }
0x1308   : > { %32650 = vmatprep.subr.mxu1 %v35080_v0 }
0x1309   : > { %32651 = vmatpush3.msra.mxu1 %v18562_v54 }
0x130a   : > { %32652 = vmatprep.subr.mxu1 %v35080_v0 }
0x130b   : > { %32653 = vmatpush3.msra.mxu1 %v18569_v35 }
0x130c   : > { %32668 = vmatprep.subr.mxu1 %v35080_v0 }
0x1387   : > { %v17561_v60 = vpop.f32.mrf.mxu1 }
0x1389   : > { %v32524_v63 = vpop.f32.mrf.mxu1 }
0x138a   : > { %v29922_v63 = vld [vmem:[#allocation37] ss:$0 sm:$0xff] }
0x138f   : > { %v17718_v13 = vpop.f32.mrf.mxu1 }
0x1390   : > { %v17470_v48 = vpop.f32.mrf.mxu0 }
0x1391   : > { %v32546_v25 = vpop.f32.mrf.mxu1  ;;  %v17471_v52 = vadd.f32 %v29920_v15, %v17470_v48 }
0x1392   : > { %v32513_v24 = vpop.f32.mrf.mxu0 }
0x1393   : > { %v17562_v16 = vadd.f32 %v17561_v60, %v17471_v52 }
0x1398   : > { %v17641_v17 = vpop.f32.mrf.mxu0 }
0x1399   : > { %v17876_v44 = vpop.f32.mrf.mxu1  ;;  %v17642_v19 = vadd.f32 %v17641_v17, %v17562_v16 }
0x139a   : > { %v32535_v58 = vpop.f32.mrf.mxu0 }
0x139b   : > { %v32568_v39 = vpop.f32.mrf.mxu1  ;;  %v17719_v38 = vadd.f32 %v17718_v13, %v17642_v19 }
0x13a2   : > { %v17801_v56 = vpop.f32.mrf.mxu0 }
0x13a3   : > { %v17802_v18 = vadd.f32 %v17801_v56, %v17719_v38  ;;  %v32590_v36 = vpop.f32.mrf.mxu1 }
0x13a4   : > { %v32557_v53 = vpop.f32.mrf.mxu0 }
0x13a5   : > { %v17877_v30 = vadd.f32 %v17876_v44, %v17802_v18  ;;  %v18079_v49 = vpop.f32.mrf.mxu1 }
0x13a7   : > { %v17880_v55 = vmax.f32 %v17877_v30, 0.0 }
0x13a9   : > { %v17881_v50 = vadd.f32 %v17880_v55, %v37435_v59 }
0x13ab   : > { %v18438_v41 = vsel %vm1515_vm1, %v17881_v50, 0 }
0x13ac   : > { %v37635_v11 = vand.u32 4294901760, %v18438_v41  ;;  %v32579_v23 = vpop.f32.mrf.mxu0 }
0x13ad   : > { %v17989_v21 = vadd.f32 %v32579_v23, %v29921_v47  ;;  %v32612_v26 = vpop.f32.mrf.mxu1 }
0x13ae   : > { %v18510_v14 = vsub.f32 %v18438_v41, %v37635_v11  ;;  %32655 = vmatmul.mubr.f32.vlgmr.msra.gmra.mxu1 %v37635_v11  ;;  %v17978_v7 = vpop.f32.mrf.mxu0 }
0x13af   : > { %32669 = vmatpush3.msra.mxu1 %v37585_v43  ;;  %v18086_v20 = vadd.f32 %v32590_v36, %v17989_v21  ;;  %32676 = vmatprep.mubr.msk.f32.mxu1 %vm35081_vm0, %v35080_v0  ;;  %v17979_v6 = vadd.f32 %v29921_v47, %v17978_v7  ;;  %v18249_v32 = vpop.f32.mrf.mxu1 }
0x13b0   : > { %32670 = vmatprep.subr.mxu1 %v35080_v0  ;;  %v18511_v59 = vand.u32 4294901760, %v18510_v14 }
0x13b1   : > { %32671 = vmatpush3.msra.mxu1 %v37590_v3  ;;  %v18080_v33 = vadd.f32 %v18079_v49, %v17979_v6 }
0x13b2   : > { %32672 = vmatprep.subr.mxu1 %v35080_v0  ;;  %v18512_v34 = vsub.f32 %v18510_v14, %v18511_v59 }
0x13b3   : > { %32673 = vmatpush3.msra.mxu1 %v37598_v29 }
0x13b4   : > { %32674 = vmatprep.subr.mxu1 %v35080_v0  ;;  %v18513_v45 = vand.u32 4294901760, %v18512_v34 }
0x13b5   : > { %32675 = vmatpush3.msra.mxu1 %v37609_v22 }
0x13b6   : > { %v32601_v42 = vpop.f32.mrf.mxu0  ;;  %32677 = vmatmul.mubr.f32.vlgmr.msra.gmra.mxu1 %v18511_v59  ;;  %32690 = vmatprep.subr.mxu1 %v35080_v0 }
0x13b7   : > { %v18173_v31 = vadd.f32 %v32601_v42, %v18086_v20  ;;  %32644 = vmatmul.mubr.f32.vlgmr.msra.gmra.mxu0 %v18513_v45  ;;  %32691 = vmatpush3.msra.mxu1 %v37585_v43 }
0x13b8   : > { %32658 = vmatpush3.msra.mxu0 %v37588_v2  ;;  %32692 = vmatprep.subr.mxu1 %v35080_v0  ;;  %v18165_v57 = vpop.f32.mrf.mxu0 }
0x13b9   : > { %32659 = vmatprep.subr.mxu0 %v35080_v0  ;;  %32693 = vmatpush3.msra.mxu1 %v37590_v3  ;;  %v18258_v40 = vadd.f32 %v32612_v26, %v18173_v31  ;;  %v18166_v43 = vadd.f32 %v18165_v57, %v18080_v33  ;;  %v32634_v3 = vpop.f32.mrf.mxu1 }
0x13ba   : > { %32660 = vmatpush3.msra.mxu0 %v37596_v10  ;;  %32694 = vmatprep.subr.mxu1 %v35080_v0 }
0x13bb   : > { %32661 = vmatprep.subr.mxu0 %v35080_v0  ;;  %32695 = vmatpush3.msra.mxu1 %v37598_v29  ;;  %v18250_v1 = vadd.f32 %v18249_v32, %v18166_v43  ;;  %v18421_v8 = vpop.f32.mrf.mxu1 }
0x13bc   : > { %32662 = vmatpush3.msra.mxu0 %v37607_v51  ;;  %32696 = vmatprep.subr.mxu1 %v35080_v0 }
0x13bd   : > { %32663 = vmatprep.subr.mxu0 %v35080_v0  ;;  %32665 = vmatprep.mubr.msk.f32.mxu0 %vm35081_vm0, %v35080_v0 }
0x13be   : > { %32664 = vmatpush3.msra.mxu0 %v37618_v28  ;;  %32697 = vmatpush3.msra.mxu1 %v37609_v22 }
0x13bf   : > { %v32623_v4 = vpop.f32.mrf.mxu0  ;;  %32698 = vmatprep.mubr.msk.f32.mxu1 %vm35081_vm0, %v35080_v0  ;;  %32666 = vmatmul.mubr.f32.vlgmr.msra.gmra.mxu0 %v18510_v14 }
0x13c0   : > { %v18347_v29 = vadd.f32 %v32623_v4, %v18258_v40  ;;  %32679 = vmatprep.subr.mxu0 %v35080_v0  ;;  %32699 = vmatmul.mubr.f32.vlgmr.msra.gmra.mxu1 %v37635_v11 }
0x13c1   : > { %v18340_v46 = vpop.f32.mrf.mxu0  ;;  %32680 = vmatpush3.msra.mxu0 %v18546_v9  ;;  %32687 = vmatprep.mubr.msk.f32.mxu0 %vm35081_vm0, %v35080_v0 }
0x13c2   : > { %v37673_v22 = vadd.f32 %v32634_v3, %v18347_v29  ;;  %v18341_v27 = vadd.f32 %v18340_v46, %v18250_v1  ;;  %32681 = vmatprep.subr.mxu0 %v35080_v0 }
0x13c3   : > { %32682 = vmatpush3.msra.mxu0 %v18553_v5 }
0x13c4   : > { %v37678_v12 = vadd.f32 %v18421_v8, %v18341_v27  ;;  %32683 = vmatprep.subr.mxu0 %v35080_v0  ;;  %v18954_v25 = vsel %vm2534_vm4, %v37673_v22, 0 }
0x13c5   : > { %32684 = vmatpush3.msra.mxu0 %v18560_v62  ;;  %v19034_v44 = vand.u32 4294901760, %v18954_v25 }
0x13c6   : > { %18933 = vrot.lane.b32.xlu1 %v37678_v12, %s35083_s25  ;;  %18927 = vrot.lane.b32.xlu0 %v37678_v12, %s35082_s18  ;;  %v18952_v2 = vsel %vm2534_vm4, %v37678_v12, 0 }
0x13c7   : > { %32685 = vmatprep.subr.mxu0 %v35080_v0  ;;  %v37690_v9 = vand.u32 4294901760, %v18952_v2  ;;  %v19035_v16 = vsub.f32 %v18954_v25, %v19034_v44 }
0x13c8   : > { %32686 = vmatpush3.msra.mxu0 %v18567_v37 }
0x13c9   : > { %32708 = vmatprep.mubr.f32.mxu1 %v37690_v9  ;;  %32688 = vmatmul.mubr.f32.vlgmr.msra.gmra.mxu0 %v37635_v11  ;;  %v37697_v10 = vsub.f32 %v18952_v2, %v37690_v9  ;;  %v19036_v30 = vand.u32 4294901760, %v19035_v16 }
0x13cb   : > { %v19026_v5 = vand.u32 4294901760, %v37697_v10  ;;  %v19037_v11 = vsub.f32 %v19035_v16, %v19036_v30 }
0x13cd   : > { %v19027_v51 = vsub.f32 %v37697_v10, %v19026_v5  ;;  %v19038_v14 = vand.u32 4294901760, %v19037_v11 }
0x13cf   : > { %v19028_v62 = vand.u32 4294901760, %v19027_v51 }
0x13d1   : > { %32703 = vmatprep.mubr.f32.mxu0 %v19028_v62 }
0x1438   : > { %v37705_v39 = vpop.permute.xlu0 %18927  ;;  %v37746_v42 = vpop.permute.xlu1 %18933 }
0x1439   : > { %v19447_v56 = vsel %vm2534_vm4, %v37705_v39, 0  ;;  %v19942_v57 = vsel %vm2534_vm4, %v37746_v42, 0 }
0x143a   : > { %v37711_v50 = vand.u32 4294901760, %v19447_v56  ;;  %v37754_v3 = vand.u32 4294901760, %v19942_v57 }
0x143c   : > { %v37720_v23 = vsub.f32 %v19447_v56, %v37711_v50 }
0x143e   : > { %v19521_v59 = vand.u32 4294901760, %v37720_v23 }
0x1440   : > { %v19522_v7 = vsub.f32 %v37720_v23, %v19521_v59 }
0x1442   : > { %v19523_v45 = vand.u32 4294901760, %v19522_v7 }
0x146e   : > { %v18606_v54 = vpop.f32.mrf.mxu1 }
0x1470   : > { %v32656_v61 = vpop.f32.mrf.mxu1 }
0x1476   : > { %v18763_v35 = vpop.f32.mrf.mxu1 }
0x1477   : > { %v18515_v28 = vpop.f32.mrf.mxu0 }
0x1478   : > { %v32678_v37 = vpop.f32.mrf.mxu1  ;;  %v18516_v13 = vadd.f32 %v29922_v63, %v18515_v28 }
0x1479   : > { %v32645_v60 = vpop.f32.mrf.mxu0 }
0x147a   : > { %v18607_v52 = vadd.f32 %v18606_v54, %v18516_v13 }
0x147f   : > { %v18686_v48 = vpop.f32.mrf.mxu0 }
0x1480   : > { %v18921_v24 = vpop.f32.mrf.mxu1  ;;  %v18687_v58 = vadd.f32 %v18686_v48, %v18607_v52 }
0x1481   : > { %v32667_v15 = vpop.f32.mrf.mxu0 }
0x1482   : > { %v32700_v17 = vpop.f32.mrf.mxu1  ;;  %v18764_v19 = vadd.f32 %v18763_v35, %v18687_v58 }
0x1489   : > { %v18846_v38 = vpop.f32.mrf.mxu0 }
0x148a   : > { %v18847_v18 = vadd.f32 %v18846_v38, %v18764_v19 }
0x148b   : > { %v32689_v53 = vpop.f32.mrf.mxu0 }
0x148c   : > { %v37709_v55 = vadd.f32 %v18921_v24, %v18847_v18 }
0x148e   : > { %v18956_v47 = vsel %vm2534_vm4, %v37709_v55, 0  ;;  %18950 = vrot.lane.b32.xlu1 %v37709_v55, %s35084_s11  ;;  %18946 = vrot.lane.b32.xlu0 %v37709_v55, %s35082_s18 }
0x148f   : > { %v18989_v41 = vand.u32 4294901760, %v18956_v47 }
0x1491   : > { %32701 = vmatprep.subr.mxu0 %v18989_v41  ;;  %v19076_v21 = vsub.f32 %v18956_v47, %v18989_v41 }
0x1492   : > { %32702 = vmatpush3.xpose.msra.mxu0 %v18989_v41  ;;  %18941 = vrot.lane.b32.xlu1 %v37673_v22, %s35084_s11 }
0x1493   : > { %18929 = vrot.lane.b32.xlu0 %v37673_v22, %s35082_s18  ;;  %32711 = vmatprep.subr.mxu0 %v19076_v21  ;;  %v19077_v36 = vand.u32 4294901760, %v19076_v21 }
0x1495   : > { %32704 = vmatmul.mubr.f32.vlgmr.msra.gmra.mxu0 %v19038_v14  ;;  %v19078_v20 = vsub.f32 %v19076_v21, %v19077_v36 }
0x1496   : > { %32712 = vmatpush3.xpose.msra.mxu0 %v19076_v21  ;;  %32713 = vmatprep.mubr.f32.mxu0 %v37697_v10  ;;  %v37765_v10 = vsub.f32 %v19942_v57, %v37754_v3 }
0x1497   : > { %18948 = vrot.lane.b32.xlu0 %v37709_v55, %s35083_s25  ;;  %32721 = vmatprep.subr.mxu0 %v19077_v36  ;;  %v19079_v34 = vand.u32 4294901760, %v19078_v20 }
0x1498   : > { %v20016_v60 = vand.u32 4294901760, %v37765_v10 }
0x1499   : > { %32706 = vmatprep.subr.mxu1 %v19079_v34  ;;  %32714 = vmatmul.mubr.f32.vlgmr.msra.gmra.mxu0 %v19035_v16 }
0x149a   : > { %32707 = vmatpush3.xpose.msra.mxu1 %v19079_v34  ;;  %32722 = vmatpush3.xpose.msra.mxu0 %v19077_v36  ;;  %v20017_v58 = vsub.f32 %v37765_v10, %v20016_v60 }
0x149b   : > { %18935 = vrot.lane.b32.xlu0 %v37673_v22, %s35083_s25  ;;  %32723 = vmatprep.mubr.f32.mxu0 %v37690_v9 }
0x149c   : > { %32716 = vmatprep.subr.mxu1 %v18989_v41  ;;  %v20018_v53 = vand.u32 4294901760, %v20017_v58 }
0x149d   : > { %32709 = vmatmul.mubr.f32.vlgmr.msra.gmra.mxu1 %v19034_v44  ;;  %32724 = vmatmul.mubr.f32.vlgmr.msra.gmra.mxu0 %v19034_v44 }
0x149e   : > { %32717 = vmatpush3.xpose.msra.mxu1 %v18989_v41  ;;  %32718 = vmatprep.mubr.f32.mxu1 %v19026_v5 }
0x149f   : > { %18939 = vrot.lane.b32.xlu0 %v37678_v12, %s35084_s11  ;;  %32733 = vmatprep.mubr.f32.mxu0 %v19523_v45 }
0x14a0   : > { %32726 = vmatprep.subr.mxu1 %v18989_v41 }
0x14a1   : > { %32719 = vmatmul.mubr.f32.vlgmr.msra.gmra.mxu1 %v19036_v30 }
0x14a2   : > { %32727 = vmatpush3.xpose.msra.mxu1 %v18989_v41  ;;  %32728 = vmatprep.mubr.f32.mxu1 %v37690_v9 }
0x14a5   : > { %32729 = vmatmul.mubr.f32.vlgmr.msra.gmra.mxu1 %v19034_v44 }
0x14a6   : > { %32738 = vmatprep.mubr.f32.mxu1 %v37711_v50 }
0x1500   : > { %v37742_v49 = vpop.permute.xlu0 %18946  ;;  %v37760_v8 = vpop.permute.xlu1 %18950 }
0x1501   : > { %v19451_v6 = vsel %vm2534_vm4, %v37742_v49, 0  ;;  %v20441_v61 = vsel %vm2534_vm4, %v37760_v8, 0 }
0x1502   : > { %v19484_v31 = vand.u32 4294901760, %v19451_v6  ;;  %v37782_v25 = vand.u32 4294901760, %v20441_v61 }
0x1504   : > { %v19571_v26 = vsub.f32 %v19451_v6, %v19484_v31  ;;  %32731 = vmatprep.subr.mxu0 %v19484_v31  ;;  %v37777_v63 = vpop.permute.xlu1 %18941  ;;  %v20561_v16 = vsub.f32 %v20441_v61, %v37782_v25 }
0x1505   : > { %v37750_v40 = vpop.permute.xlu0 %18929  ;;  %32732 = vmatpush3.xpose.msra.mxu0 %v19484_v31  ;;  %v20439_v17 = vsel %vm2534_vm4, %v37777_v63, 0 }
0x1506   : > { %v19449_v33 = vsel %vm2534_vm4, %v37750_v40, 0  ;;  %32741 = vmatprep.subr.mxu0 %v19571_v26  ;;  %v19572_v43 = vand.u32 4294901760, %v19571_v26  ;;  %v37796_v38 = vand.u32 4294901760, %v20439_v17  ;;  %v20562_v30 = vand.u32 4294901760, %v20561_v16 }
0x1507   : > { %v19529_v32 = vand.u32 4294901760, %v19449_v33 }
0x1508   : > { %v19573_v4 = vsub.f32 %v19571_v26, %v19572_v43  ;;  %v20520_v47 = vsub.f32 %v20439_v17, %v37796_v38  ;;  %v20563_v11 = vsub.f32 %v20561_v16, %v20562_v30 }
0x1509   : > { %v19530_v29 = vsub.f32 %v19449_v33, %v19529_v32  ;;  %v37756_v1 = vpop.permute.xlu0 %18948 }
0x150a   : > { %v19946_v46 = vsel %vm2534_vm4, %v37756_v1, 0  ;;  %v19574_v27 = vand.u32 4294901760, %v19573_v4  ;;  %v20564_v14 = vand.u32 4294901760, %v20563_v11 }
0x150b   : > { %v19531_v2 = vand.u32 4294901760, %v19530_v29  ;;  %v37762_v9 = vand.u32 4294901760, %v19946_v46 }
0x150c   : > { %32736 = vmatprep.subr.mxu1 %v19574_v27 }
0x150d   : > { %v19532_v5 = vsub.f32 %v19530_v29, %v19531_v2  ;;  %v20066_v51 = vsub.f32 %v19946_v46, %v37762_v9  ;;  %v37768_v62 = vpop.permute.xlu0 %18935  ;;  %32737 = vmatpush3.xpose.msra.mxu1 %v19574_v27 }
0x150e   : > { %v19944_v54 = vsel %vm2534_vm4, %v37768_v62, 0  ;;  %32746 = vmatprep.subr.mxu1 %v19484_v31 }
0x150f   : > { %v19533_v35 = vand.u32 4294901760, %v19532_v5  ;;  %v37774_v28 = vand.u32 4294901760, %v19944_v54  ;;  %v20067_v37 = vand.u32 4294901760, %v20066_v51 }
0x1510   : > { %32739 = vmatmul.mubr.f32.vlgmr.msra.gmra.mxu1 %v19529_v32 }
0x1511   : > { %v20025_v13 = vsub.f32 %v19944_v54, %v37774_v28  ;;  %v37780_v48 = vpop.permute.xlu0 %18939  ;;  %32734 = vmatmul.mubr.f32.vlgmr.msra.gmra.mxu0 %v19533_v35  ;;  %32747 = vmatpush3.xpose.msra.mxu1 %v19484_v31  ;;  %v20068_v15 = vsub.f32 %v20066_v51, %v20067_v37 }
0x1512   : > { %v20437_v24 = vsel %vm2534_vm4, %v37780_v48, 0  ;;  %32742 = vmatpush3.xpose.msra.mxu0 %v19571_v26  ;;  %32743 = vmatprep.mubr.f32.mxu0 %v37720_v23  ;;  %v20521_v23 = vand.u32 4294901760, %v20520_v47 }
0x1513   : > { %v20026_v52 = vand.u32 4294901760, %v20025_v13  ;;  %32748 = vmatprep.mubr.f32.mxu1 %v19521_v59  ;;  %32751 = vmatprep.subr.mxu0 %v19572_v43  ;;  %v37791_v44 = vand.u32 4294901760, %v20437_v24  ;;  %v20069_v19 = vand.u32 4294901760, %v20068_v15 }
0x1514   : > { %32756 = vmatprep.subr.mxu1 %v19484_v31  ;;  %32749 = vmatmul.mubr.f32.vlgmr.msra.gmra.mxu1 %v19531_v2  ;;  %v20522_v36 = vsub.f32 %v20520_v47, %v20521_v23 }
0x1515   : > { %32744 = vmatmul.mubr.f32.vlgmr.msra.gmra.mxu0 %v19530_v29  ;;  %32757 = vmatpush3.xpose.msra.mxu1 %v19484_v31  ;;  %v20027_v56 = vsub.f32 %v20025_v13, %v20026_v52  ;;  %v20510_v18 = vsub.f32 %v20437_v24, %v37791_v44 }
0x1516   : > { %32752 = vmatpush3.xpose.msra.mxu0 %v19572_v43  ;;  %32753 = vmatprep.mubr.f32.mxu0 %v37711_v50  ;;  %v20523_v59 = vand.u32 4294901760, %v20522_v36 }
0x1517   : > { %32758 = vmatprep.mubr.f32.mxu1 %v37711_v50  ;;  %32761 = vmatprep.subr.mxu0 %v37762_v9  ;;  %v20028_v41 = vand.u32 4294901760, %v20027_v56  ;;  %v20511_v50 = vand.u32 4294901760, %v20510_v18 }
0x1518   : > { %32766 = vmatprep.subr.mxu1 %v20069_v19  ;;  %32759 = vmatmul.mubr.f32.vlgmr.msra.gmra.mxu1 %v19529_v32 }
0x1519   : > { %32754 = vmatmul.mubr.f32.vlgmr.msra.gmra.mxu0 %v19529_v32  ;;  %32767 = vmatpush3.xpose.msra.mxu1 %v20069_v19  ;;  %v20512_v21 = vsub.f32 %v20510_v18, %v20511_v50 }
0x151a   : > { %32762 = vmatpush3.xpose.msra.mxu0 %v37762_v9  ;;  %32763 = vmatprep.mubr.f32.mxu0 %v20018_v53 }
0x151b   : > { %32768 = vmatprep.mubr.f32.mxu1 %v37754_v3  ;;  %32771 = vmatprep.subr.mxu0 %v20066_v51  ;;  %v20513_v20 = vand.u32 4294901760, %v20512_v21 }
0x151c   : > { %32776 = vmatprep.subr.mxu1 %v37762_v9  ;;  %32769 = vmatmul.mubr.f32.vlgmr.msra.gmra.mxu1 %v37774_v28 }
0x151d   : > { %32764 = vmatmul.mubr.f32.vlgmr.msra.gmra.mxu0 %v20028_v41  ;;  %32777 = vmatpush3.xpose.msra.mxu1 %v37762_v9 }
0x151e   : > { %32772 = vmatpush3.xpose.msra.mxu0 %v20066_v51  ;;  %32773 = vmatprep.mubr.f32.mxu0 %v37765_v10 }
0x151f   : > { %32778 = vmatprep.mubr.f32.mxu1 %v20016_v60  ;;  %32781 = vmatprep.subr.mxu0 %v20067_v37 }
0x1520   : > { %32786 = vmatprep.subr.mxu1 %v37762_v9  ;;  %32779 = vmatmul.mubr.f32.vlgmr.msra.gmra.mxu1 %v20026_v52 }
0x1521   : > { %32774 = vmatmul.mubr.f32.vlgmr.msra.gmra.mxu0 %v20025_v13  ;;  %32787 = vmatpush3.xpose.msra.mxu1 %v37762_v9 }
0x1522   : > { %32782 = vmatpush3.xpose.msra.mxu0 %v20067_v37  ;;  %32783 = vmatprep.mubr.f32.mxu0 %v37754_v3 }
0x1523   : > { %32788 = vmatprep.mubr.f32.mxu1 %v37754_v3  ;;  %32791 = vmatprep.subr.mxu0 %v37782_v25 }
0x1524   : > { %32796 = vmatprep.subr.mxu1 %v20564_v14  ;;  %32789 = vmatmul.mubr.f32.vlgmr.msra.gmra.mxu1 %v37774_v28 }
0x1525   : > { %32784 = vmatmul.mubr.f32.vlgmr.msra.gmra.mxu0 %v37774_v28  ;;  %32797 = vmatpush3.xpose.msra.mxu1 %v20564_v14 }
0x1526   : > { %32792 = vmatpush3.xpose.msra.mxu0 %v37782_v25  ;;  %32793 = vmatprep.mubr.f32.mxu0 %v20513_v20 }
0x1527   : > { %32798 = vmatprep.mubr.f32.mxu1 %v37791_v44  ;;  %32801 = vmatprep.subr.mxu0 %v20561_v16 }
0x1528   : > { %32806 = vmatprep.subr.mxu1 %v37782_v25  ;;  %32799 = vmatmul.mubr.f32.vlgmr.msra.gmra.mxu1 %v37796_v38 }
0x1529   : > { %32794 = vmatmul.mubr.f32.vlgmr.msra.gmra.mxu0 %v20523_v59  ;;  %32807 = vmatpush3.xpose.msra.mxu1 %v37782_v25 }
0x152a   : > { %32802 = vmatpush3.xpose.msra.mxu0 %v20561_v16  ;;  %32803 = vmatprep.mubr.f32.mxu0 %v20510_v18 }
0x152b   : > { %32808 = vmatprep.mubr.f32.mxu1 %v20511_v50  ;;  %32811 = vmatprep.subr.mxu0 %v20562_v30 }
0x152c   : > { %32816 = vmatprep.subr.mxu1 %v37782_v25  ;;  %32809 = vmatmul.mubr.f32.vlgmr.msra.gmra.mxu1 %v20521_v23 }
0x152d   : > { %32804 = vmatmul.mubr.f32.vlgmr.msra.gmra.mxu0 %v20520_v47  ;;  %32817 = vmatpush3.xpose.msra.mxu1 %v37782_v25 }
0x152e   : > { %32812 = vmatpush3.xpose.msra.mxu0 %v20562_v30  ;;  %32813 = vmatprep.mubr.f32.mxu0 %v37791_v44 }
0x152f   : > { %32818 = vmatprep.mubr.f32.mxu1 %v37791_v44 }
0x1530   : > { %32819 = vmatmul.mubr.f32.vlgmr.msra.gmra.mxu1 %v37796_v38 }
0x1531   : > { %32814 = vmatmul.mubr.f32.vlgmr.msra.gmra.mxu0 %v37796_v38 }
0x1555   : > { %v32705_v34 = vpop.f32.mrf.mxu0 }
0x1557   : > { %v19030_v7 = vpop.f32.mrf.mxu0 }
0x1559   : > { %v32715_v45 = vpop.f32.mrf.mxu0 }
0x155b   : > { %v19196_v6 = vpop.f32.mrf.mxu0 }
0x155d   : > { %v32710_v31 = vpop.f32.mrf.mxu1  ;;  %v32725_v32 = vpop.f32.mrf.mxu0 }
0x155e   : > { %v19123_v26 = vadd.f32 %v32710_v31, %v32705_v34 }
0x155f   : > { %v19116_v57 = vpop.f32.mrf.mxu1  ;;  %v19359_v9 = vpop.f32.mrf.mxu0 }
0x1560   : > { %v19117_v33 = vadd.f32 %v19116_v57, %v19030_v7  ;;  %v19204_v43 = vadd.f32 %v32715_v45, %v19123_v26 }
0x1561   : > { %v32720_v3 = vpop.f32.mrf.mxu1 }
0x1562   : > { %v19286_v4 = vadd.f32 %v32720_v3, %v19204_v43  ;;  %v19197_v29 = vadd.f32 %v19196_v6, %v19117_v33 }
0x1563   : > { %v19277_v46 = vpop.f32.mrf.mxu1 }
0x1564   : > { %v19278_v27 = vadd.f32 %v19277_v46, %v19197_v29  ;;  %v19366_v2 = vadd.f32 %v32725_v32, %v19286_v4 }
0x1565   : > { %v32730_v10 = vpop.f32.mrf.mxu1 }
0x1566   : > { %v19444_v5 = vadd.f32 %v32730_v10, %v19366_v2  ;;  %v19360_v51 = vadd.f32 %v19359_v9, %v19278_v27 }
0x1567   : > { %v19437_v54 = vpop.f32.mrf.mxu1 }
0x1568   : > { %v37826_v61 = vmul.f32 0.17677669, %v19444_v5  ;;  %v19438_v35 = vadd.f32 %v19437_v54, %v19360_v51 }
0x156a   : > { %v37828_v28 = vmul.f32 0.17677669, %v19438_v35  ;;  %v20943_v37 = vsel %vm2534_vm4, %v37826_v61, -inf }
0x156b   : > { %20944 = vmax.xlane.f32.xlu1 %v20943_v37 }
0x156c   : > { %v20940_v60 = vsel %vm2534_vm4, %v37828_v28, -inf }
0x156d   : > { %20941 = vmax.xlane.f32.xlu0 %v20940_v60 }
0x15d0   : > { %v32740_v13 = vpop.f32.mrf.mxu1 }
0x15d1   : > { %v32735_v25 = vpop.f32.mrf.mxu0 }
0x15d2   : > { %v19611_v24 = vpop.f32.mrf.mxu1  ;;  %v19618_v52 = vadd.f32 %v32740_v13, %v32735_v25 }
0x15d3   : > { %v19525_v15 = vpop.f32.mrf.mxu0 }
0x15d4   : > { %v32750_v17 = vpop.f32.mrf.mxu1  ;;  %v19612_v58 = vadd.f32 %v19611_v24, %v19525_v15 }
0x15d5   : > { %v32745_v44 = vpop.f32.mrf.mxu0 }
0x15d6   : > { %v19699_v16 = vadd.f32 %v32745_v44, %v19618_v52  ;;  %v19772_v19 = vpop.f32.mrf.mxu1 }
0x15d7   : > { %v19691_v38 = vpop.f32.mrf.mxu0 }
0x15d8   : > { %v19781_v56 = vadd.f32 %v32750_v17, %v19699_v16  ;;  %v19692_v18 = vadd.f32 %v19691_v38, %v19612_v58  ;;  %v32760_v53 = vpop.f32.mrf.mxu1 }
0x15d9   : > { %v32755_v30 = vpop.f32.mrf.mxu0 }
0x15da   : > { %v19773_v47 = vadd.f32 %v19772_v19, %v19692_v18  ;;  %v19861_v41 = vadd.f32 %v32755_v30, %v19781_v56  ;;  %v19932_v50 = vpop.f32.mrf.mxu1 }
0x15db   : > { %v19854_v11 = vpop.f32.mrf.mxu0 }
0x15dc   : > { %v19855_v23 = vadd.f32 %v19854_v11, %v19773_v47  ;;  %v32770_v21 = vpop.f32.mrf.mxu1  ;;  %v19939_v36 = vadd.f32 %v32760_v53, %v19861_v41 }
0x15dd   : > { %v32765_v14 = vpop.f32.mrf.mxu0 }
0x15de   : > { %v19933_v20 = vadd.f32 %v19932_v50, %v19855_v23  ;;  %v20106_v59 = vpop.f32.mrf.mxu1  ;;  %v20113_v45 = vadd.f32 %v32770_v21, %v32765_v14  ;;  %v37836_v26 = vmul.f32 0.17677669, %v19939_v36 }
0x15df   : > { %v20020_v34 = vpop.f32.mrf.mxu0 }
0x15e0   : > { %v37834_v7 = vmul.f32 0.17677669, %v19933_v20  ;;  %v32780_v6 = vpop.f32.mrf.mxu1  ;;  %v20107_v57 = vadd.f32 %v20106_v59, %v20020_v34  ;;  %v20949_v5 = vsel %vm2534_vm4, %v37836_v26, -inf }
0x15e1   : > { %v32775_v31 = vpop.f32.mrf.mxu0 }
0x15e2   : > { %v20194_v33 = vadd.f32 %v32775_v31, %v20113_v45  ;;  %v20267_v43 = vpop.f32.mrf.mxu1  ;;  %v20946_v32 = vsel %vm2534_vm4, %v37834_v7, -inf }
0x15e3   : > { %v20186_v3 = vpop.f32.mrf.mxu0  ;;  %20947 = vmax.xlane.f32.xlu0 %v20946_v32 }
0x15e4   : > { %v20276_v4 = vadd.f32 %v32780_v6, %v20194_v33  ;;  %v20187_v29 = vadd.f32 %v20186_v3, %v20107_v57  ;;  %v32790_v46 = vpop.f32.mrf.mxu1 }
0x15e5   : > { %v32785_v27 = vpop.f32.mrf.mxu0 }
0x15e6   : > { %v20268_v2 = vadd.f32 %v20267_v43, %v20187_v29  ;;  %v20356_v9 = vadd.f32 %v32785_v27, %v20276_v4  ;;  %v20427_v10 = vpop.f32.mrf.mxu1 }
0x15e7   : > { %v20349_v51 = vpop.f32.mrf.mxu0  ;;  %20950 = vmax.xlane.f32.xlu0 %v20949_v5 }
0x15e8   : > { %v20434_v54 = vadd.f32 %v32790_v46, %v20356_v9  ;;  %v20350_v35 = vadd.f32 %v20349_v51, %v20268_v2  ;;  %v32800_v37 = vpop.f32.mrf.mxu1 }
0x15e9   : > { %v32795_v60 = vpop.f32.mrf.mxu0 }
0x15ea   : > { %v20937_v13 = vmul.f32 0.17677669, %v20434_v54  ;;  %v20428_v25 = vadd.f32 %v20427_v10, %v20350_v35  ;;  %v20601_v24 = vpop.f32.mrf.mxu1  ;;  %v20608_v17 = vadd.f32 %v32800_v37, %v32795_v60 }
0x15eb   : > { %v20515_v15 = vpop.f32.mrf.mxu0 }
0x15ec   : > { %v37842_v52 = vmul.f32 0.17677669, %v20428_v25  ;;  %v32810_v44 = vpop.f32.mrf.mxu1  ;;  %v20955_v58 = vsel %vm2534_vm4, %v20937_v13, -inf  ;;  %v20602_v19 = vadd.f32 %v20601_v24, %v20515_v15 }
0x15ed   : > { %v32805_v16 = vpop.f32.mrf.mxu0  ;;  %20956 = vmax.xlane.f32.xlu0 %v20955_v58 }
0x15ee   : > { %v20689_v38 = vadd.f32 %v32805_v16, %v20608_v17  ;;  %v20762_v56 = vpop.f32.mrf.mxu1  ;;  %v20952_v18 = vsel %vm2534_vm4, %v37842_v52, -inf }
0x15ef   : > { %v20681_v53 = vpop.f32.mrf.mxu0  ;;  %20953 = vmax.xlane.f32.xlu1 %v20952_v18 }
0x15f0   : > { %v20771_v30 = vadd.f32 %v32810_v44, %v20689_v38  ;;  %v20682_v47 = vadd.f32 %v20681_v53, %v20602_v19  ;;  %v32820_v50 = vpop.f32.mrf.mxu1 }
0x15f1   : > { %v32815_v41 = vpop.f32.mrf.mxu0 }
0x15f2   : > { %v20763_v11 = vadd.f32 %v20762_v56, %v20682_v47  ;;  %v20851_v23 = vadd.f32 %v32815_v41, %v20771_v30  ;;  %v20922_v59 = vpop.f32.mrf.mxu1 }
0x15f3   : > { %v20844_v21 = vpop.f32.mrf.mxu0 }
0x15f4   : > { %v20929_v14 = vadd.f32 %v32820_v50, %v20851_v23  ;;  %v20845_v36 = vadd.f32 %v20844_v21, %v20763_v11  ;;  %v20945_v20 = vpop.xlane.xlu1 %20944 }
0x15f5   : > { %v20965_v34 = vsub.f32 %v37826_v61, %v20945_v20 }
0x15f6   : > { %v20939_v45 = vmul.f32 0.17677669, %v20929_v14  ;;  %v20923_v6 = vadd.f32 %v20922_v59, %v20845_v36  ;;  %v20942_v31 = vpop.xlane.xlu0 %20941 }
0x15f7   : > { %v20974_v57 = vmul.f32 1.442695, %v20965_v34  ;;  %v20964_v33 = vsub.f32 %v37828_v28, %v20942_v31 }
0x15f8   : > { %v20938_v43 = vmul.f32 0.17677669, %v20923_v6  ;;  %v20961_v32 = vsel %vm2534_vm4, %v20939_v45, -inf }
0x15f9   : > { %34058 = vpow2.f32 %v20974_v57  ;;  %v20972_v3 = vmul.f32 1.442695, %v20964_v33  ;;  %20962 = vmax.xlane.f32.xlu0 %v20961_v32 }
0x15fa   : > { %v20958_v4 = vsel %vm2534_vm4, %v20938_v43, -inf }
0x15fb   : > { %34060 = vpow2.f32 %v20972_v3  ;;  %20959 = vmax.xlane.f32.xlu1 %v20958_v4 }
0x1606   : > { %v37851_v29 = vpop.eup %34058 }
0x1607   : > { %v20991_v61 = vsel %vm2534_vm4, %v37851_v29, 0.0 }
0x1608   : > { %v34061_v46 = vpop.eup %34060  ;;  %20992 = vadd.xlane.f32.xlu0 %v20991_v61 }
0x1609   : > { %v20988_v27 = vsel %vm2534_vm4, %v34061_v46, 0.0 }
0x160a   : > { %20989 = vadd.xlane.f32.xlu1 %v20988_v27 }
0x166c   : > { %v20948_v28 = vpop.xlane.xlu0 %20947 }
0x166d   : > { %v20966_v2 = vsub.f32 %v37834_v7, %v20948_v28 }
0x166f   : > { %v20976_v9 = vmul.f32 1.442695, %v20966_v2 }
0x1670   : > { %v20951_v10 = vpop.xlane.xlu0 %20950 }
0x1671   : > { %34062 = vpow2.f32 %v20976_v9  ;;  %v20967_v5 = vsub.f32 %v37836_v26, %v20951_v10 }
0x1673   : > { %v20978_v51 = vmul.f32 1.442695, %v20967_v5 }
0x1675   : > { %34064 = vpow2.f32 %v20978_v51 }
0x1676   : > { %v20957_v54 = vpop.xlane.xlu0 %20956 }
0x1677   : > { %v20969_v35 = vsub.f32 %v20937_v13, %v20957_v54 }
0x1678   : > { %v20954_v24 = vpop.xlane.xlu1 %20953 }
0x1679   : > { %v20982_v37 = vmul.f32 1.442695, %v20969_v35  ;;  %v20968_v41 = vsub.f32 %v37842_v52, %v20954_v24 }
0x167b   : > { %34066 = vpow2.f32 %v20982_v37  ;;  %v20980_v50 = vmul.f32 1.442695, %v20968_v41 }
0x167e   : > { %v37858_v60 = vpop.eup %34062 }
0x167f   : > { %v20994_v25 = vsel %vm2534_vm4, %v37858_v60, 0.0 }
0x1680   : > { %20995 = vadd.xlane.f32.xlu1 %v20994_v25 }
0x1682   : > { %v37862_v15 = vpop.eup %34064  ;;  %v20963_v7 = vpop.xlane.xlu0 %20962 }
0x1683   : > { %v20971_v17 = vsub.f32 %v20939_v45, %v20963_v7  ;;  %v20997_v26 = vsel %vm2534_vm4, %v37862_v15, 0.0 }
0x1684   : > { %v20960_v44 = vpop.xlane.xlu1 %20959  ;;  %20998 = vadd.xlane.f32.xlu0 %v20997_v26 }
0x1685   : > { %v20986_v58 = vmul.f32 1.442695, %v20971_v17  ;;  %v20970_v13 = vsub.f32 %v20938_v43, %v20960_v44 }
0x1687   : > { %34068 = vpow2.f32 %v20986_v58  ;;  %v20984_v16 = vmul.f32 1.442695, %v20970_v13 }
0x1688   : > { %v37866_v19 = vpop.eup %34066 }
0x1689   : > { %34070 = vpow2.f32 %v20984_v16  ;;  %v21003_v38 = vsel %vm2534_vm4, %v37866_v19, 0.0 }
0x168a   : > { %21004 = vadd.xlane.f32.xlu0 %v21003_v38 }
0x1691   : > { %21028 = vrot.lane.b32.xlu1 %v37709_v55, %s35085_s6  ;;  %v20993_v45 = vpop.xlane.xlu0 %20992 }
0x1693   : > { %v20990_v56 = vpop.xlane.xlu1 %20989 }
0x1694   : > { %v37872_v18 = vpop.eup %34068  ;;  %34072 = vrcp.f32 %v20990_v56 }
0x1695   : > { %v21009_v53 = vsel %vm2534_vm4, %v37872_v18, 0.0  ;;  %34074 = vpow2.f32 %v20980_v50 }
0x1696   : > { %v37876_v30 = vpop.eup %34070  ;;  %21010 = vadd.xlane.f32.xlu0 %v21009_v53  ;;  %34076 = vrcp.f32 %v20993_v45 }
0x1697   : > { %v21006_v47 = vsel %vm2534_vm4, %v37876_v30, 0.0 }
0x169a   : > { %21007 = vadd.xlane.f32.xlu0 %v21006_v47 }
0x16a1   : > { %v34073_v11 = vpop.eup %34072 }
0x16a2   : > { %v21020_v23 = vmul.f32 %v34073_v11, %v34061_v46  ;;  %v37884_v34 = vpop.eup %34074 }
0x16a3   : > { %v21000_v52 = vsel %vm2534_vm4, %v37884_v34, 0.0  ;;  %v34077_v6 = vpop.eup %34076 }
0x16a4   : > { %v21032_v55 = vsel %vm2534_vm4, %v21020_v23, 0  ;;  %v21021_v31 = vmul.f32 %v34077_v6, %v37851_v29 }
0x16a5   : > { %v21103_v21 = vand.u32 4294901760, %v21032_v55 }
0x16a6   : > { %v21035_v57 = vsel %vm2534_vm4, %v21021_v31, 0 }
0x16a7   : > { %32828 = vmatprep.mubr.f32.mxu1 %v21103_v21  ;;  %v21104_v14 = vsub.f32 %v21032_v55, %v21103_v21 }
0x16a9   : > { %v21105_v36 = vand.u32 4294901760, %v21104_v14 }
0x16ab   : > { %v21106_v20 = vsub.f32 %v21104_v14, %v21105_v36 }
0x16ad   : > { %v21107_v59 = vand.u32 4294901760, %v21106_v20 }
0x16af   : > { %32823 = vmatprep.mubr.f32.mxu0 %v21107_v59 }
0x16b0   : > { %21526 = vrot.lane.b32.xlu0 %v37742_v49, %s35085_s6  ;;  %v21113_v49 = vand.u32 4294901760, %v21035_v57 }
0x16b2   : > { %v21114_v33 = vsub.f32 %v21035_v57, %v21113_v49 }
0x16b4   : > { %v21115_v43 = vand.u32 4294901760, %v21114_v33 }
0x16b5   : > { %21001 = vadd.xlane.f32.xlu1 %v21000_v52 }
0x16b6   : > { %v21116_v3 = vsub.f32 %v21114_v33, %v21115_v43 }
0x16c6   : > { %22024 = vrot.lane.b32.xlu1 %v37756_v1, %s35085_s6 }
0x16ca   : > { %22522 = vrot.lane.b32.xlu1 %v37760_v8, %s35085_s6  ;;  %v21117_v8 = vand.u32 4294901760, %v21116_v3 }
0x1709   : > { %v20996_v32 = vpop.xlane.xlu1 %20995 }
0x170a   : > { %34078 = vrcp.f32 %v20996_v32 }
0x170d   : > { %v21029_v4 = vpop.permute.xlu1 %21028  ;;  %v20999_v61 = vpop.xlane.xlu0 %20998 }
0x170e   : > { %v21068_v46 = vand.u32 4294901760, %v21029_v4  ;;  %34080 = vrcp.f32 %v20999_v61 }
0x1710   : > { %v21155_v1 = vsub.f32 %v21029_v4, %v21068_v46  ;;  %32821 = vmatprep.subr.mxu0 %v21068_v46 }
0x1711   : > { %32822 = vmatpush3.msra.mxu0 %v21068_v46 }
0x1712   : > { %32824 = vmatmul.mubr.f32.vlgmr.msra.gmra.mxu0 %v21117_v8  ;;  %32831 = vmatprep.subr.mxu0 %v21155_v1  ;;  %v21156_v27 = vand.u32 4294901760, %v21155_v1 }
0x1713   : > { %32832 = vmatpush3.msra.mxu0 %v21155_v1  ;;  %32833 = vmatprep.mubr.f32.mxu0 %v21104_v14  ;;  %v21005_v51 = vpop.xlane.xlu0 %21004 }
0x1714   : > { %32841 = vmatprep.subr.mxu0 %v21156_v27  ;;  %v21157_v29 = vsub.f32 %v21155_v1, %v21156_v27  ;;  %34082 = vrcp.f32 %v21005_v51 }
0x1716   : > { %32834 = vmatmul.mubr.f32.vlgmr.msra.gmra.mxu0 %v21114_v33  ;;  %v21158_v28 = vand.u32 4294901760, %v21157_v29 }
0x1717   : > { %v34079_v2 = vpop.eup %34078  ;;  %32842 = vmatpush3.msra.mxu0 %v21156_v27  ;;  %32843 = vmatprep.mubr.f32.mxu0 %v21103_v21 }
0x1718   : > { %32826 = vmatprep.subr.mxu1 %v21158_v28  ;;  %v21022_v9 = vmul.f32 %v34079_v2, %v37858_v60 }
0x1719   : > { %32827 = vmatpush3.msra.mxu1 %v21158_v28 }
0x171a   : > { %32829 = vmatmul.mubr.f32.vlgmr.msra.gmra.mxu1 %v21113_v49  ;;  %32836 = vmatprep.subr.mxu1 %v21068_v46  ;;  %v21530_v10 = vsel %vm2534_vm4, %v21022_v9, 0 }
0x171b   : > { %v34081_v5 = vpop.eup %34080  ;;  %32844 = vmatmul.mubr.f32.vlgmr.msra.gmra.mxu0 %v21113_v49  ;;  %32837 = vmatpush3.msra.mxu1 %v21068_v46  ;;  %v21601_v54 = vand.u32 4294901760, %v21530_v10 }
0x171c   : > { %v21023_v35 = vmul.f32 %v34081_v5, %v37862_v15  ;;  %32838 = vmatprep.mubr.f32.mxu1 %v21105_v36  ;;  %32846 = vmatprep.subr.mxu1 %v21068_v46 }
0x171d   : > { %v21602_v37 = vsub.f32 %v21530_v10, %v21601_v54 }
0x171e   : > { %v21533_v25 = vsel %vm2534_vm4, %v21023_v35, 0  ;;  %32839 = vmatmul.mubr.f32.vlgmr.msra.gmra.mxu1 %v21115_v43 }
0x171f   : > { %v21611_v24 = vand.u32 4294901760, %v21533_v25  ;;  %32847 = vmatpush3.msra.mxu1 %v21068_v46  ;;  %32848 = vmatprep.mubr.f32.mxu1 %v21103_v21  ;;  %v21011_v60 = vpop.xlane.xlu0 %21010  ;;  %v21603_v7 = vand.u32 4294901760, %v21602_v37 }
0x1721   : > { %v21604_v17 = vsub.f32 %v21602_v37, %v21603_v7  ;;  %v21612_v26 = vsub.f32 %v21533_v25, %v21611_v24  ;;  %v34083_v23 = vpop.eup %34082 }
0x1722   : > { %32849 = vmatmul.mubr.f32.vlgmr.msra.gmra.mxu1 %v21113_v49  ;;  %v21025_v55 = vmul.f32 %v34083_v23, %v37866_v19 }
0x1723   : > { %32858 = vmatprep.mubr.f32.mxu1 %v21601_v54  ;;  %v21008_v44 = vpop.xlane.xlu0 %21007  ;;  %v21605_v58 = vand.u32 4294901760, %v21604_v17  ;;  %v21613_v13 = vand.u32 4294901760, %v21612_v26 }
0x1724   : > { %34084 = vrcp.f32 %v21008_v44  ;;  %v22031_v59 = vsel %vm2534_vm4, %v21025_v55, 0 }
0x1725   : > { %32853 = vmatprep.mubr.f32.mxu0 %v21605_v58  ;;  %v21614_v15 = vsub.f32 %v21612_v26, %v21613_v13  ;;  %34086 = vrcp.f32 %v21011_v60  ;;  %v22109_v57 = vand.u32 4294901760, %v22031_v59 }
0x1727   : > { %v21527_v16 = vpop.permute.xlu0 %21526  ;;  %v21615_v53 = vand.u32 4294901760, %v21614_v15  ;;  %v22110_v4 = vsub.f32 %v22031_v59, %v22109_v57 }
0x1728   : > { %v21566_v38 = vand.u32 4294901760, %v21527_v16 }
0x1729   : > { %v22111_v29 = vand.u32 4294901760, %v22110_v4 }
0x172a   : > { %v21653_v56 = vsub.f32 %v21527_v16, %v21566_v38  ;;  %32851 = vmatprep.subr.mxu0 %v21566_v38 }
0x172b   : > { %32852 = vmatpush3.msra.mxu0 %v21566_v38  ;;  %v22112_v9 = vsub.f32 %v22110_v4, %v22111_v29 }
0x172c   : > { %32854 = vmatmul.mubr.f32.vlgmr.msra.gmra.mxu0 %v21615_v53  ;;  %32861 = vmatprep.subr.mxu0 %v21653_v56  ;;  %v21654_v47 = vand.u32 4294901760, %v21653_v56 }
0x172d   : > { %32862 = vmatpush3.msra.mxu0 %v21653_v56  ;;  %32863 = vmatprep.mubr.f32.mxu0 %v21602_v37  ;;  %v22113_v37 = vand.u32 4294901760, %v22112_v9 }
0x172e   : > { %32871 = vmatprep.subr.mxu0 %v21654_v47  ;;  %v21655_v41 = vsub.f32 %v21653_v56, %v21654_v47 }
0x1730   : > { %32864 = vmatmul.mubr.f32.vlgmr.msra.gmra.mxu0 %v21612_v26  ;;  %v21656_v50 = vand.u32 4294901760, %v21655_v41 }
0x1731   : > { %32872 = vmatpush3.msra.mxu0 %v21654_v47  ;;  %32873 = vmatprep.mubr.f32.mxu0 %v21601_v54  ;;  %v34085_v6 = vpop.eup %34084 }
0x1732   : > { %32856 = vmatprep.subr.mxu1 %v21656_v50  ;;  %v34087_v49 = vpop.eup %34086  ;;  %v21026_v32 = vmul.f32 %v34085_v6, %v37876_v30 }
0x1733   : > { %32857 = vmatpush3.msra.mxu1 %v21656_v50  ;;  %v21027_v61 = vmul.f32 %v34087_v49, %v37872_v18 }
0x1734   : > { %32859 = vmatmul.mubr.f32.vlgmr.msra.gmra.mxu1 %v21611_v24  ;;  %32866 = vmatprep.subr.mxu1 %v21566_v38  ;;  %v22526_v27 = vsel %vm2534_vm4, %v21026_v32, 0 }
0x1735   : > { %32874 = vmatmul.mubr.f32.vlgmr.msra.gmra.mxu0 %v21611_v24  ;;  %32867 = vmatpush3.msra.mxu1 %v21566_v38  ;;  %v22529_v30 = vsel %vm2534_vm4, %v21027_v61, 0  ;;  %v22597_v2 = vand.u32 4294901760, %v22526_v27 }
0x1736   : > { %32868 = vmatprep.mubr.f32.mxu1 %v21603_v7  ;;  %32876 = vmatprep.subr.mxu1 %v21566_v38  ;;  %v22607_v10 = vand.u32 4294901760, %v22529_v30 }
0x1738   : > { %32869 = vmatmul.mubr.f32.vlgmr.msra.gmra.mxu1 %v21613_v13  ;;  %v22608_v25 = vsub.f32 %v22529_v30, %v22607_v10 }
0x1739   : > { %32877 = vmatpush3.msra.mxu1 %v21566_v38  ;;  %32878 = vmatprep.mubr.f32.mxu1 %v21601_v54  ;;  %v22598_v54 = vsub.f32 %v22526_v27, %v22597_v2 }
0x173a   : > { %v22609_v60 = vand.u32 4294901760, %v22608_v25 }
0x173c   : > { %32879 = vmatmul.mubr.f32.vlgmr.msra.gmra.mxu1 %v21611_v24  ;;  %v22599_v24 = vand.u32 4294901760, %v22598_v54  ;;  %v22610_v17 = vsub.f32 %v22608_v25, %v22609_v60 }
0x173e   : > { %v21002_v11 = vpop.xlane.xlu1 %21001  ;;  %v22600_v7 = vsub.f32 %v22598_v54, %v22599_v24  ;;  %v22611_v44 = vand.u32 4294901760, %v22610_v17 }
0x173f   : > { %34088 = vrcp.f32 %v21002_v11 }
0x1740   : > { %v22601_v26 = vand.u32 4294901760, %v22600_v7 }
0x1742   : > { %v22025_v21 = vpop.permute.xlu1 %22024 }
0x1743   : > { %v22064_v14 = vand.u32 4294901760, %v22025_v21 }
0x1745   : > { %v22151_v36 = vsub.f32 %v22025_v21, %v22064_v14  ;;  %32881 = vmatprep.subr.mxu0 %v22064_v14 }
0x1746   : > { %v22523_v20 = vpop.permute.xlu1 %22522  ;;  %32882 = vmatpush3.msra.mxu0 %v22064_v14 }
0x1747   : > { %v37900_v52 = vand.u32 4294901760, %v22523_v20  ;;  %32891 = vmatprep.subr.mxu0 %v22151_v36  ;;  %v22152_v45 = vand.u32 4294901760, %v22151_v36 }
0x1749   : > { %v22153_v31 = vsub.f32 %v22151_v36, %v22152_v45  ;;  %v37903_v33 = vsub.f32 %v22523_v20, %v37900_v52 }
0x174b   : > { %v22154_v19 = vand.u32 4294901760, %v22153_v31  ;;  %v22650_v1 = vand.u32 4294901760, %v37903_v33 }
0x174c   : > { %v34089_v43 = vpop.eup %34088 }
0x174d   : > { %32886 = vmatprep.subr.mxu1 %v22154_v19  ;;  %v21024_v3 = vmul.f32 %v34089_v43, %v37884_v34  ;;  %v22651_v34 = vsub.f32 %v37903_v33, %v22650_v1 }
0x174e   : > { %32887 = vmatpush3.msra.mxu1 %v22154_v19 }
0x174f   : > { %32896 = vmatprep.subr.mxu1 %v22064_v14  ;;  %v22028_v46 = vsel %vm2534_vm4, %v21024_v3, 0  ;;  %v22652_v51 = vand.u32 4294901760, %v22651_v34 }
0x1750   : > { %v22099_v8 = vand.u32 4294901760, %v22028_v46 }
0x1752   : > { %32888 = vmatprep.mubr.f32.mxu1 %v22099_v8  ;;  %v22100_v28 = vsub.f32 %v22028_v46, %v22099_v8 }
0x1753   : > { %32889 = vmatmul.mubr.f32.vlgmr.msra.gmra.mxu1 %v22109_v57 }
0x1754   : > { %32897 = vmatpush3.msra.mxu1 %v22064_v14  ;;  %v22101_v18 = vand.u32 4294901760, %v22100_v28 }
0x1755   : > { %32906 = vmatprep.subr.mxu1 %v22064_v14 }
0x1756   : > { %32898 = vmatprep.mubr.f32.mxu1 %v22101_v18  ;;  %v22102_v5 = vsub.f32 %v22100_v28, %v22101_v18 }
0x1757   : > { %32899 = vmatmul.mubr.f32.vlgmr.msra.gmra.mxu1 %v22111_v29 }
0x1758   : > { %32907 = vmatpush3.msra.mxu1 %v22064_v14  ;;  %32908 = vmatprep.mubr.f32.mxu1 %v22099_v8  ;;  %v22103_v35 = vand.u32 4294901760, %v22102_v5 }
0x1759   : > { %32916 = vmatprep.subr.mxu1 %v22652_v51 }
0x175a   : > { %32883 = vmatprep.mubr.f32.mxu0 %v22103_v35 }
0x175b   : > { %32884 = vmatmul.mubr.f32.vlgmr.msra.gmra.mxu0 %v22113_v37  ;;  %32909 = vmatmul.mubr.f32.vlgmr.msra.gmra.mxu1 %v22109_v57 }
0x175c   : > { %32892 = vmatpush3.msra.mxu0 %v22151_v36  ;;  %32917 = vmatpush3.msra.mxu1 %v22652_v51 }
0x175d   : > { %32893 = vmatprep.mubr.f32.mxu0 %v22100_v28  ;;  %32901 = vmatprep.subr.mxu0 %v22152_v45 }
0x175e   : > { %32918 = vmatprep.mubr.f32.mxu1 %v22597_v2  ;;  %32926 = vmatprep.subr.mxu1 %v37900_v52 }
0x175f   : > { %32894 = vmatmul.mubr.f32.vlgmr.msra.gmra.mxu0 %v22110_v4  ;;  %32919 = vmatmul.mubr.f32.vlgmr.msra.gmra.mxu1 %v22607_v10 }
0x1760   : > { %32902 = vmatpush3.msra.mxu0 %v22152_v45  ;;  %32927 = vmatpush3.msra.mxu1 %v37900_v52 }
0x1761   : > { %32903 = vmatprep.mubr.f32.mxu0 %v22099_v8  ;;  %32911 = vmatprep.subr.mxu0 %v37900_v52 }
0x1762   : > { %32928 = vmatprep.mubr.f32.mxu1 %v22599_v24  ;;  %32936 = vmatprep.subr.mxu1 %v37900_v52 }
0x1763   : > { %32904 = vmatmul.mubr.f32.vlgmr.msra.gmra.mxu0 %v22109_v57  ;;  %32929 = vmatmul.mubr.f32.vlgmr.msra.gmra.mxu1 %v22609_v60 }
0x1764   : > { %32912 = vmatpush3.msra.mxu0 %v37900_v52  ;;  %32937 = vmatpush3.msra.mxu1 %v37900_v52 }
0x1765   : > { %32913 = vmatprep.mubr.f32.mxu0 %v22601_v26  ;;  %32921 = vmatprep.subr.mxu0 %v37903_v33 }
0x1766   : > { %32938 = vmatprep.mubr.f32.mxu1 %v22597_v2 }
0x1767   : > { %32914 = vmatmul.mubr.f32.vlgmr.msra.gmra.mxu0 %v22611_v44  ;;  %32939 = vmatmul.mubr.f32.vlgmr.msra.gmra.mxu1 %v22607_v10 }
0x1768   : > { %32922 = vmatpush3.msra.mxu0 %v37903_v33  ;;  %32923 = vmatprep.mubr.f32.mxu0 %v22598_v54 }
0x1769   : > { %32931 = vmatprep.subr.mxu0 %v22650_v1 }
0x176b   : > { %32924 = vmatmul.mubr.f32.vlgmr.msra.gmra.mxu0 %v22608_v25 }
0x176c   : > { %32932 = vmatpush3.msra.mxu0 %v22650_v1  ;;  %32933 = vmatprep.mubr.f32.mxu0 %v22597_v2 }
0x176f   : > { %32934 = vmatmul.mubr.f32.vlgmr.msra.gmra.mxu0 %v22607_v10 }
0x17d2   : > { %v32825_v58 = vpop.f32.mrf.mxu0 }
0x17d4   : > { %v21109_v13 = vpop.f32.mrf.mxu0 }
0x17d6   : > { %v32835_v15 = vpop.f32.mrf.mxu0 }
0x17d8   : > { %v21275_v16 = vpop.f32.mrf.mxu0 }
0x17da   : > { %v32830_v38 = vpop.f32.mrf.mxu1 }
0x17db   : > { %v21202_v56 = vadd.f32 %v32830_v38, %v32825_v58  ;;  %v32845_v50 = vpop.f32.mrf.mxu0  ;;  %v17895_v58 = vld [vmem:[#allocation38 + $0x18] sm:$0xff] }
0x17dc   : > { %v21195_v53 = vpop.f32.mrf.mxu1 }
0x17dd   : > { %v21196_v47 = vadd.f32 %v21195_v53, %v21109_v13  ;;  %v21283_v41 = vadd.f32 %v32835_v15, %v21202_v56  ;;  %v21438_v20 = vpop.f32.mrf.mxu0  ;;  %v17894_v56 = vld [vmem:[#allocation38 + $0x10] sm:$0xff] }
0x17de   : > { %v32840_v11 = vpop.f32.mrf.mxu1 }
0x17df   : > { %v21365_v23 = vadd.f32 %v32840_v11, %v21283_v41  ;;  %v21276_v55 = vadd.f32 %v21275_v16, %v21196_v47  ;;  %v37934_v47 = vand.u32 4294901760, %v17894_v56  ;;  %v17893_v11 = vld [vmem:[#allocation38 + $0x8] sm:$0xff] }
0x17e0   : > { %v21356_v21 = vpop.f32.mrf.mxu1 }
0x17e1   : > { %v21357_v14 = vadd.f32 %v21356_v21, %v21276_v55  ;;  %v21445_v36 = vadd.f32 %v32845_v50, %v21365_v23 }
0x17e2   : > { %v32850_v59 = vpop.f32.mrf.mxu1 }
0x17e3   : > { %v37921_v52 = vadd.f32 %v32850_v59, %v21445_v36  ;;  %v21439_v45 = vadd.f32 %v21438_v20, %v21357_v14  ;;  %v37942_v14 = vsub.f32 %v17894_v56, %v37934_v47  ;;  %v37944_v36 = vand.u32 4294901760, %v17893_v11 }
0x17e4   : > { %v21516_v6 = vpop.f32.mrf.mxu1 }
0x17e5   : > { %v37923_v31 = vadd.f32 %v21516_v6, %v21439_v45  ;;  %v17892_v45 = vld [vmem:[#allocation38] sm:$0xff] }
0x17ec   : > { %v32855_v57 = vpop.f32.mrf.mxu0 }
0x17ee   : > { %v21607_v49 = vpop.f32.mrf.mxu0 }
0x17f0   : > { %v32865_v33 = vpop.f32.mrf.mxu0 }
0x17f2   : > { %v21773_v19 = vpop.f32.mrf.mxu0 }
0x17f4   : > { %v32860_v43 = vpop.f32.mrf.mxu1 }
0x17f5   : > { %v21700_v32 = vadd.f32 %v32860_v43, %v32855_v57  ;;  %v32875_v46 = vpop.f32.mrf.mxu0 }
0x17f6   : > { %v21693_v3 = vpop.f32.mrf.mxu1 }
0x17f7   : > { %v21694_v4 = vadd.f32 %v21693_v3, %v21607_v49  ;;  %v21781_v61 = vadd.f32 %v32865_v33, %v21700_v32  ;;  %v21936_v34 = vpop.f32.mrf.mxu0  ;;  %v37951_v49 = vand.u32 4294901760, %v37942_v14  ;;  %v37954_v33 = vsub.f32 %v17893_v11, %v37944_v36 }
0x17f8   : > { %v32870_v1 = vpop.f32.mrf.mxu1  ;;  %v23021_v11 = vadd.f32 %v37921_v52, %v37673_v22 }
0x17f9   : > { %v21863_v8 = vadd.f32 %v32870_v1, %v21781_v61  ;;  %v21774_v27 = vadd.f32 %v21773_v19, %v21694_v4  ;;  %v37956_v19 = vand.u32 4294901760, %v17892_v45  ;;  %v37963_v1 = vand.u32 4294901760, %v37954_v33 }
0x17fa   : > { %v21854_v29 = vpop.f32.mrf.mxu1 }
0x17fb   : > { %v21855_v28 = vadd.f32 %v21854_v29, %v21774_v27  ;;  %v21943_v30 = vadd.f32 %v32875_v46, %v21863_v8  ;;  %v23194_v46 = vsub.f32 %v37942_v14, %v37951_v49  ;;  %v37966_v8 = vsub.f32 %v17892_v45, %v37956_v19 }
0x17fc   : > { %v32880_v2 = vpop.f32.mrf.mxu1 }
0x17fd   : > { %v22021_v18 = vadd.f32 %v32880_v2, %v21943_v30  ;;  %v21937_v9 = vadd.f32 %v21936_v34, %v21855_v28  ;;  %v23195_v30 = vand.u32 4294901760, %v23194_v46  ;;  %v23201_v34 = vsub.f32 %v37954_v33, %v37963_v1 }
0x17fe   : > { %v22014_v10 = vpop.f32.mrf.mxu1  ;;  %v37974_v2 = vand.u32 4294901760, %v37966_v8 }
0x17ff   : > { %v23023_v5 = vadd.f32 %v22021_v18, %v37750_v40  ;;  %v22015_v51 = vadd.f32 %v22014_v10, %v21937_v9  ;;  %v37929_v40 = vand.u32 4294901760, %v17895_v58 }
0x1801   : > { %23032 = vrot.lane.b32.xlu1 %v23023_v5, %s35086_s5  ;;  %v23022_v54 = vadd.f32 %v22015_v51, %v37705_v39  ;;  %v37932_v53 = vsub.f32 %v17895_v58, %v37929_v40  ;;  %32941 = vmatprep.subr.mxu0 %v37929_v40  ;;  %v23202_v5 = vand.u32 4294901760, %v23201_v34  ;;  %v23208_v51 = vsub.f32 %v37966_v8, %v37974_v2 }
0x1802   : > { %32942 = vmatpush3.msra.mxu0 %v37929_v40 }
0x1803   : > { %v37939_v21 = vand.u32 4294901760, %v37932_v53  ;;  %32943 = vmatprep.subr.mxu0 %v37934_v47 }
0x1804   : > { %32944 = vmatpush3.msra.mxu0 %v37934_v47 }
0x1805   : > { %23030 = vrot.lane.b32.xlu1 %v23022_v54, %s35086_s5  ;;  %v23187_v57 = vsub.f32 %v37932_v53, %v37939_v21  ;;  %32945 = vmatprep.subr.mxu0 %v37944_v36 }
0x1806   : > { %32946 = vmatpush3.msra.mxu0 %v37944_v36 }
0x1807   : > { %v23188_v61 = vand.u32 4294901760, %v23187_v57  ;;  %32947 = vmatprep.subr.mxu0 %v37956_v19 }
0x1808   : > { %32948 = vmatpush3.msra.mxu0 %v37956_v19 }
0x1809   : > { %32952 = vmatprep.subr.mxu1 %v23188_v61  ;;  %32963 = vmatprep.subr.mxu0 %v37932_v53 }
0x180a   : > { %32953 = vmatpush3.msra.mxu1 %v23188_v61 }
0x180b   : > { %32954 = vmatprep.subr.mxu1 %v23195_v30 }
0x180c   : > { %32955 = vmatpush3.msra.mxu1 %v23195_v30 }
0x180d   : > { %32956 = vmatprep.subr.mxu1 %v23202_v5 }
0x180e   : > { %32957 = vmatpush3.msra.mxu1 %v23202_v5 }
0x1813   : > { %v32890_v35 = vpop.f32.mrf.mxu1 }
0x1815   : > { %v22191_v37 = vpop.f32.mrf.mxu1 }
0x1817   : > { %v32900_v25 = vpop.f32.mrf.mxu1 }
0x1819   : > { %v22352_v24 = vpop.f32.mrf.mxu1 }
0x181b   : > { %v32885_v60 = vpop.f32.mrf.mxu0  ;;  %v32910_v7 = vpop.f32.mrf.mxu1 }
0x181c   : > { %v22198_v44 = vadd.f32 %v32890_v35, %v32885_v60 }
0x181d   : > { %v22105_v17 = vpop.f32.mrf.mxu0  ;;  %v22512_v26 = vpop.f32.mrf.mxu1 }
0x181e   : > { %v22192_v16 = vadd.f32 %v22191_v37, %v22105_v17 }
0x181f   : > { %v32895_v13 = vpop.f32.mrf.mxu0  ;;  %v32920_v15 = vpop.f32.mrf.mxu1 }
0x1820   : > { %v22279_v38 = vadd.f32 %v32895_v13, %v22198_v44 }
0x1821   : > { %v22271_v39 = vpop.f32.mrf.mxu0  ;;  %v22689_v23 = vpop.f32.mrf.mxu1 }
0x1822   : > { %v22272_v41 = vadd.f32 %v22271_v39, %v22192_v16  ;;  %v22361_v50 = vadd.f32 %v32900_v25, %v22279_v38  ;;  %v23209_v25 = vand.u32 4294901760, %v23208_v51 }
0x1823   : > { %v32905_v55 = vpop.f32.mrf.mxu0  ;;  %v32930_v3 = vpop.f32.mrf.mxu1 }
0x1824   : > { %v22441_v20 = vadd.f32 %v32905_v55, %v22361_v50  ;;  %v22353_v59 = vadd.f32 %v22352_v24, %v22272_v41  ;;  %32958 = vmatprep.subr.mxu1 %v23209_v25  ;;  %v23020_v55 = vadd.f32 %v37923_v31, %v37678_v12 }
0x1825   : > { %v22434_v6 = vpop.f32.mrf.mxu0  ;;  %32959 = vmatpush3.msra.mxu1 %v23209_v25 }
0x1826   : > { %v22519_v43 = vadd.f32 %v32910_v7, %v22441_v20  ;;  %v22435_v32 = vadd.f32 %v22434_v6, %v22353_v59  ;;  %32974 = vmatprep.subr.mxu1 %v37929_v40 }
0x1827   : > { %v32915_v4 = vpop.f32.mrf.mxu0 }
0x1828   : > { %v23025_v27 = vadd.f32 %v22519_v43, %v37768_v62  ;;  %v22513_v29 = vadd.f32 %v22512_v26, %v22435_v32  ;;  %v22696_v9 = vadd.f32 %v32920_v15, %v32915_v4  ;;  %v22850_v62 = vpop.f32.mrf.mxu1 }
0x1829   : > { %v22603_v28 = vpop.f32.mrf.mxu0 }
0x182a   : > { %v23024_v18 = vadd.f32 %v22513_v29, %v37746_v42  ;;  %23040 = vrot.lane.b32.xlu1 %v23025_v27, %s35087_s8  ;;  %v22690_v54 = vadd.f32 %v22689_v23, %v22603_v28  ;;  %v32940_v60 = vpop.f32.mrf.mxu1 }
0x182b   : > { %v32925_v10 = vpop.f32.mrf.mxu0 }
0x182c   : > { %v22777_v35 = vadd.f32 %v32925_v10, %v22696_v9  ;;  %23038 = vrot.lane.b32.xlu0 %v23024_v18, %s35087_s8  ;;  %v23010_v15 = vpop.f32.mrf.mxu1 }
0x182d   : > { %v22769_v37 = vpop.f32.mrf.mxu0 }
0x182e   : > { %v22770_v42 = vadd.f32 %v22769_v37, %v22690_v54  ;;  %v22859_v24 = vadd.f32 %v32930_v3, %v22777_v35 }
0x182f   : > { %v32935_v7 = vpop.f32.mrf.mxu0 }
0x1830   : > { %v22939_v17 = vadd.f32 %v32935_v7, %v22859_v24  ;;  %v22851_v26 = vadd.f32 %v22850_v62, %v22770_v42 }
0x1831   : > { %v22932_v44 = vpop.f32.mrf.mxu0 }
0x1832   : > { %v23017_v58 = vadd.f32 %v32940_v60, %v22939_v17  ;;  %v22933_v13 = vadd.f32 %v22932_v44, %v22851_v26 }
0x1834   : > { %v23027_v16 = vadd.f32 %v23017_v58, %v37777_v63  ;;  %v23011_v38 = vadd.f32 %v23010_v15, %v22933_v13  ;;  %v23611_v58 = vld [vmem:[#allocation44 + $0x18] sm:$0xff]  ;;  %v23610_v15 = vld [vmem:[#allocation44 + $0x10] sm:$0xff] }
0x1835   : > { %v38100_v13 = vand.u32 4294901760, %v23611_v58 }
0x1836   : > { %v23026_v56 = vadd.f32 %v23011_v38, %v37780_v48  ;;  %23048 = vrot.lane.b32.xlu1 %v23027_v16, %s35088_s15  ;;  %v38108_v38 = vand.u32 4294901760, %v23610_v15 }
0x1837   : > { %v38106_v16 = vsub.f32 %v23611_v58, %v38100_v13 }
0x1838   : > { %23046 = vrot.lane.b32.xlu0 %v23026_v56, %s35088_s15  ;;  %v23609_v56 = vld [vmem:[#allocation44 + $0x8] sm:$0xff] }
0x1873   : > { %v23033_v39 = vpop.permute.xlu1 %23032 }
0x1874   : > { %v23053_v20 = vsel %vm2534_vm4, %v23021_v11, %v23033_v39  ;;  %v38115_v39 = vand.u32 4294901760, %v38106_v16  ;;  %v23608_v11 = vld [vmem:[#allocation44] sm:$0xff] }
0x1877   : > { %v23031_v41 = vpop.permute.xlu1 %23030 }
0x1878   : > { %v23052_v48 = vsel %vm2534_vm4, %v23020_v55, %v23031_v41  ;;  %v38118_v41 = vsub.f32 %v23610_v15, %v38108_v38 }
0x187a   : > { %v38127_v55 = vand.u32 4294901760, %v38118_v41 }
0x189c   : > { %v23041_v50 = vpop.permute.xlu1 %23040 }
0x189d   : > { %v23055_v63 = vsel %vm4399_vm5, %v23053_v20, %v23041_v50  ;;  %v38120_v50 = vand.u32 4294901760, %v23609_v56 }
0x189e   : > { %v23039_v23 = vpop.permute.xlu0 %23038 }
0x189f   : > { %v23054_v6 = vsel %vm4399_vm5, %v23052_v48, %v23039_v23  ;;  %v24235_v23 = vsub.f32 %v38106_v16, %v38115_v39  ;;  %v38130_v20 = vsub.f32 %v23609_v56, %v38120_v50 }
0x18a1   : > { %v38140_v48 = vand.u32 4294901760, %v38130_v20 }
0x18a8   : > { %v23049_v59 = vpop.permute.xlu1 %23048 }
0x18a9   : > { %v37995_v45 = vsel %vm6334_vm6, %v23055_v63, %v23049_v59  ;;  %v38132_v63 = vand.u32 4294901760, %v23608_v11  ;;  %v24242_v59 = vsub.f32 %v38118_v41, %v38127_v55 }
0x18aa   : > { %v23068_v57 = vsel %vm1515_vm1, %v37995_v45, 0  ;;  %v23047_v22 = vpop.permute.xlu0 %23046 }
0x18ab   : > { %v23149_v52 = vand.u32 4294901760, %v23068_v57  ;;  %v38001_v43 = vsel %vm6334_vm6, %v23054_v6, %v23047_v22  ;;  %v38143_v6 = vsub.f32 %v23608_v11, %v38132_v63  ;;  %v24249_v22 = vsub.f32 %v38130_v20, %v38140_v48 }
0x18ac   : > { %v23065_v12 = vsel %vm1515_vm1, %v38001_v43, 0 }
0x18ad   : > { %v23150_v31 = vsub.f32 %v23068_v57, %v23149_v52  ;;  %v23139_v32 = vand.u32 4294901760, %v23065_v12  ;;  %v24236_v57 = vand.u32 4294901760, %v24235_v23 }
0x18af   : > { %v23151_v3 = vand.u32 4294901760, %v23150_v31  ;;  %v23140_v4 = vsub.f32 %v23065_v12, %v23139_v32  ;;  %32960 = vmatprep.mubr.f32.mxu1 %v23139_v32  ;;  %v24243_v12 = vand.u32 4294901760, %v24242_v59 }
0x18b0   : > { %32961 = vmatmul.mubr.f32.vlgmr.msra.gmra.mxu1 %v23149_v52 }
0x18b1   : > { %32975 = vmatpush3.msra.mxu1 %v37929_v40  ;;  %v23141_v61 = vand.u32 4294901760, %v23140_v4  ;;  %v23152_v46 = vsub.f32 %v23150_v31, %v23151_v3 }
0x18b2   : > { %32976 = vmatprep.subr.mxu1 %v37934_v47 }
0x18b3   : > { %32977 = vmatpush3.msra.mxu1 %v37934_v47  ;;  %32982 = vmatprep.mubr.f32.mxu1 %v23141_v61  ;;  %v23142_v27 = vsub.f32 %v23140_v4, %v23141_v61  ;;  %v23153_v28 = vand.u32 4294901760, %v23152_v46  ;;  %v29923_v61 = vld [vmem:[#allocation40] ss:$0 sm:$0xff] }
0x18b4   : > { %32978 = vmatprep.subr.mxu1 %v37944_v36 }
0x18b5   : > { %32979 = vmatpush3.msra.mxu1 %v37944_v36  ;;  %v23143_v29 = vand.u32 4294901760, %v23142_v27 }
0x18b6   : > { %32980 = vmatprep.subr.mxu1 %v37956_v19 }
0x18b7   : > { %32981 = vmatpush3.msra.mxu1 %v37956_v19  ;;  %32949 = vmatprep.mubr.f32.mxu0 %v23143_v29 }
0x18b8   : > { %32983 = vmatmul.mubr.f32.vlgmr.msra.gmra.mxu1 %v23151_v3  ;;  %32996 = vmatprep.subr.mxu1 %v37929_v40 }
0x18b9   : > { %32950 = vmatmul.mubr.f32.vlgmr.msra.gmra.mxu0 %v23153_v28  ;;  %32997 = vmatpush3.msra.mxu1 %v37929_v40  ;;  %v23606_v40 = vld [vmem:[#allocation41 + $0x18] sm:$0xff] }
0x18ba   : > { %32964 = vmatpush3.msra.mxu0 %v37932_v53  ;;  %33004 = vmatprep.mubr.f32.mxu1 %v23139_v32  ;;  %v38041_v53 = vand.u32 4294901760, %v23606_v40 }
0x18bb   : > { %32965 = vmatprep.subr.mxu0 %v37942_v14  ;;  %32971 = vmatprep.mubr.f32.mxu0 %v23140_v4 }
0x18bc   : > { %32998 = vmatprep.subr.mxu1 %v37934_v47  ;;  %32966 = vmatpush3.msra.mxu0 %v37942_v14 }
0x18bd   : > { %32999 = vmatpush3.msra.mxu1 %v37934_v47  ;;  %32967 = vmatprep.subr.mxu0 %v37954_v33  ;;  %v23605_v47 = vld [vmem:[#allocation41 + $0x10] sm:$0xff] }
0x18be   : > { %33000 = vmatprep.subr.mxu1 %v37944_v36  ;;  %32968 = vmatpush3.msra.mxu0 %v37954_v33  ;;  %v38047_v14 = vand.u32 4294901760, %v23605_v47 }
0x18bf   : > { %33001 = vmatpush3.msra.mxu1 %v37944_v36  ;;  %32969 = vmatprep.subr.mxu0 %v37966_v8  ;;  %v23604_v36 = vld [vmem:[#allocation41 + $0x8] sm:$0xff] }
0x18c0   : > { %33002 = vmatprep.subr.mxu1 %v37956_v19  ;;  %32970 = vmatpush3.msra.mxu0 %v37966_v8  ;;  %v23603_v8 = vld [vmem:[#allocation41] sm:$0xff] }
0x18c1   : > { %33003 = vmatpush3.msra.mxu1 %v37956_v19  ;;  %32972 = vmatmul.mubr.f32.vlgmr.msra.gmra.mxu0 %v23150_v31  ;;  %v38055_v19 = vand.u32 4294901760, %v23604_v36  ;;  %v38065_v9 = vand.u32 4294901760, %v23603_v8 }
0x18c2   : > { %32985 = vmatprep.subr.mxu0 %v37939_v21  ;;  %33005 = vmatmul.mubr.f32.vlgmr.msra.gmra.mxu1 %v23149_v52 }
0x18c3   : > { %32986 = vmatpush3.msra.mxu0 %v37939_v21  ;;  %32993 = vmatprep.mubr.f32.mxu0 %v23139_v32  ;;  %v38045_v21 = vsub.f32 %v23606_v40, %v38041_v53  ;;  %v38073_v51 = vsub.f32 %v23603_v8, %v38065_v9  ;;  %v24250_v32 = vand.u32 4294901760, %v24249_v22 }
0x18c4   : > { %32987 = vmatprep.subr.mxu0 %v37951_v49  ;;  %33018 = vmatprep.subr.mxu1 %v35080_v0 }
0x18c5   : > { %32988 = vmatpush3.msra.mxu0 %v37951_v49  ;;  %33026 = vmatprep.mubr.msk.f32.mxu1 %vm35081_vm0, %v35080_v0  ;;  %v38052_v49 = vsub.f32 %v23605_v47, %v38047_v14  ;;  %v23727_v33 = vand.u32 4294901760, %v38045_v21  ;;  %v23748_v42 = vand.u32 4294901760, %v38073_v51 }
0x18c6   : > { %32989 = vmatprep.subr.mxu0 %v37963_v1 }
0x18c7   : > { %32990 = vmatpush3.msra.mxu0 %v37963_v1  ;;  %v23602_v1 = vld [vmem:[#allocation7] sm:$0x1]  ;;  %v23728_v34 = vsub.f32 %v38045_v21, %v23727_v33  ;;  %v23734_v18 = vand.u32 4294901760, %v38052_v49  ;;  %v23749_v7 = vsub.f32 %v38073_v51, %v23748_v42 }
0x18c8   : > { %32991 = vmatprep.subr.mxu0 %v37974_v2  ;;  %v23619_v30 = vsel %vm1515_vm1, %v23602_v1, 0 }
0x18c9   : > { %32992 = vmatpush3.msra.mxu0 %v37974_v2  ;;  %v38062_v2 = vsub.f32 %v23604_v36, %v38055_v19  ;;  %v38068_v62 = vand.u32 4294901760, %v23619_v30  ;;  %v23729_v10 = vand.u32 4294901760, %v23728_v34  ;;  %v23735_v5 = vsub.f32 %v38052_v49, %v23734_v18 }
0x18ca   : > { %32994 = vmatmul.mubr.f32.vlgmr.msra.gmra.mxu0 %v23149_v52  ;;  %33007 = vmatprep.subr.mxu0 %v35080_v0  ;;  %v23750_v26 = vand.u32 4294901760, %v23749_v7  ;;  %v38152_v52 = vand.u32 4294901760, %v38143_v6 }
0x18cb   : > { %33015 = vmatprep.mubr.msk.f32.mxu0 %vm35081_vm0, %v35080_v0  ;;  %33008 = vmatpush3.msra.mxu0 %v38041_v53  ;;  %v23741_v54 = vand.u32 4294901760, %v38062_v2  ;;  %v23691_v35 = vsub.f32 %v23619_v30, %v38068_v62  ;;  %v23736_v37 = vand.u32 4294901760, %v23735_v5 }
0x18cc   : > { %33009 = vmatprep.subr.mxu0 %v35080_v0  ;;  %33019 = vmatpush3.msra.mxu1 %v23729_v10  ;;  %v24256_v31 = vsub.f32 %v38143_v6, %v38152_v52 }
0x18cd   : > { %33010 = vmatpush3.msra.mxu0 %v38047_v14  ;;  %v23742_v25 = vsub.f32 %v38062_v2, %v23741_v54  ;;  %33020 = vmatprep.subr.mxu1 %v35080_v0  ;;  %v23692_v24 = vand.u32 4294901760, %v23691_v35 }
0x18ce   : > { %33011 = vmatprep.subr.mxu0 %v35080_v0  ;;  %33021 = vmatpush3.msra.mxu1 %v23736_v37  ;;  %v24257_v3 = vand.u32 4294901760, %v24256_v31 }
0x18cf   : > { %33012 = vmatpush3.msra.mxu0 %v38055_v19  ;;  %v23743_v60 = vand.u32 4294901760, %v23742_v25  ;;  %33022 = vmatprep.subr.mxu1 %v35080_v0  ;;  %v23693_v17 = vsub.f32 %v23691_v35, %v23692_v24 }
0x18d0   : > { %33013 = vmatprep.subr.mxu0 %v35080_v0 }
0x18d1   : > { %33014 = vmatpush3.msra.mxu0 %v38065_v9  ;;  %33023 = vmatpush3.msra.mxu1 %v23743_v60  ;;  %v23694_v44 = vand.u32 4294901760, %v23693_v17 }
0x18d2   : > { %33029 = vmatprep.subr.mxu0 %v35080_v0  ;;  %33024 = vmatprep.subr.mxu1 %v35080_v0 }
0x18d3   : > { %33025 = vmatpush3.msra.mxu1 %v23750_v26  ;;  %33016 = vmatmul.mubr.f32.vlgmr.msra.gmra.mxu0 %v23694_v44 }
0x18d4   : > { %33040 = vmatprep.subr.mxu1 %v35080_v0  ;;  %33030 = vmatpush3.msra.mxu0 %v38045_v21 }
0x18d5   : > { %33027 = vmatmul.mubr.f32.vlgmr.msra.gmra.mxu1 %v38068_v62  ;;  %33031 = vmatprep.subr.mxu0 %v35080_v0 }
0x18d6   : > { %33041 = vmatpush3.msra.mxu1 %v38041_v53  ;;  %33032 = vmatpush3.msra.mxu0 %v38052_v49 }
0x18d7   : > { %33042 = vmatprep.subr.mxu1 %v35080_v0  ;;  %33033 = vmatprep.subr.mxu0 %v35080_v0 }
0x18d8   : > { %33043 = vmatpush3.msra.mxu1 %v38047_v14  ;;  %33034 = vmatpush3.msra.mxu0 %v38062_v2 }
0x18d9   : > { %33044 = vmatprep.subr.mxu1 %v35080_v0  ;;  %33035 = vmatprep.subr.mxu0 %v35080_v0 }
0x18da   : > { %33045 = vmatpush3.msra.mxu1 %v38055_v19  ;;  %33036 = vmatpush3.msra.mxu0 %v38073_v51 }
0x18db   : > { %33037 = vmatprep.mubr.msk.f32.mxu0 %vm35081_vm0, %v35080_v0  ;;  %33046 = vmatprep.subr.mxu1 %v35080_v0 }
0x18dc   : > { %33051 = vmatprep.subr.mxu0 %v35080_v0  ;;  %33038 = vmatmul.mubr.f32.vlgmr.msra.gmra.mxu0 %v23691_v35 }
0x18dd   : > { %33047 = vmatpush3.msra.mxu1 %v38065_v9  ;;  %33052 = vmatpush3.msra.mxu0 %v23727_v33 }
0x18de   : > { %33048 = vmatprep.mubr.msk.f32.mxu1 %vm35081_vm0, %v35080_v0  ;;  %33053 = vmatprep.subr.mxu0 %v35080_v0 }
0x18df   : > { %33062 = vmatprep.subr.mxu1 %v35080_v0  ;;  %33049 = vmatmul.mubr.f32.vlgmr.msra.gmra.mxu1 %v23692_v24 }
0x18e0   : > { %33054 = vmatpush3.msra.mxu0 %v23734_v18  ;;  %33063 = vmatpush3.msra.mxu1 %v38041_v53 }
0x18e1   : > { %33055 = vmatprep.subr.mxu0 %v35080_v0  ;;  %33064 = vmatprep.subr.mxu1 %v35080_v0 }
0x18e2   : > { %33056 = vmatpush3.msra.mxu0 %v23741_v54  ;;  %33065 = vmatpush3.msra.mxu1 %v38047_v14 }
0x18e3   : > { %33057 = vmatprep.subr.mxu0 %v35080_v0  ;;  %33066 = vmatprep.subr.mxu1 %v35080_v0 }
0x18e4   : > { %33058 = vmatpush3.msra.mxu0 %v23748_v42  ;;  %33059 = vmatprep.mubr.msk.f32.mxu0 %vm35081_vm0, %v35080_v0 }
0x18e5   : > { %33067 = vmatpush3.msra.mxu1 %v38055_v19  ;;  %33060 = vmatmul.mubr.f32.vlgmr.msra.gmra.mxu0 %v38068_v62 }
0x18e6   : > { %33068 = vmatprep.subr.mxu1 %v35080_v0  ;;  %33070 = vmatprep.mubr.msk.f32.mxu1 %vm35081_vm0, %v35080_v0 }
0x18e7   : > { %33069 = vmatpush3.msra.mxu1 %v38065_v9  ;;  %33073 = vmatprep.subr.mxu0 %v38100_v13 }
0x18e8   : > { %33071 = vmatmul.mubr.f32.vlgmr.msra.gmra.mxu1 %v38068_v62  ;;  %33084 = vmatprep.subr.mxu1 %v24236_v57 }
0x18e9   : > { %33085 = vmatpush3.msra.mxu1 %v24236_v57  ;;  %33074 = vmatpush3.msra.mxu0 %v38100_v13 }
0x18ea   : > { %33086 = vmatprep.subr.mxu1 %v24243_v12  ;;  %33075 = vmatprep.subr.mxu0 %v38108_v38 }
0x18eb   : > { %33087 = vmatpush3.msra.mxu1 %v24243_v12  ;;  %33076 = vmatpush3.msra.mxu0 %v38108_v38 }
0x18ec   : > { %33088 = vmatprep.subr.mxu1 %v24250_v32  ;;  %33077 = vmatprep.subr.mxu0 %v38120_v50 }
0x18ed   : > { %33089 = vmatpush3.msra.mxu1 %v24250_v32  ;;  %33078 = vmatpush3.msra.mxu0 %v38120_v50  ;;  %v29924_v32 = vld [vmem:[#allocation46] ss:$0 sm:$0xff] }
0x18ee   : > { %33090 = vmatprep.subr.mxu1 %v24257_v3  ;;  %33079 = vmatprep.subr.mxu0 %v38132_v63 }
0x18ef   : > { %33091 = vmatpush3.msra.mxu1 %v24257_v3  ;;  %33080 = vmatpush3.msra.mxu0 %v38132_v63 }
0x18f0   : > { %33106 = vmatprep.subr.mxu1 %v38100_v13  ;;  %33095 = vmatprep.subr.mxu0 %v38106_v16 }
0x1970   : > { %v32962_v46 = vpop.f32.mrf.mxu1 }
0x1972   : > { %v23246_v53 = vpop.f32.mrf.mxu1 }
0x1978   : > { %v32984_v21 = vpop.f32.mrf.mxu1 }
0x1979   : > { %v32951_v4 = vpop.f32.mrf.mxu0 }
0x197a   : > { %v23156_v29 = vadd.f32 %v32951_v4, %v29923_v61  ;;  %v23416_v19 = vpop.f32.mrf.mxu1 }
0x197b   : > { %v23145_v27 = vpop.f32.mrf.mxu0 }
0x197c   : > { %v23146_v28 = vadd.f32 %v29923_v61, %v23145_v27  ;;  %v23253_v47 = vadd.f32 %v32962_v46, %v23156_v29 }
0x197e   : > { %v23247_v49 = vadd.f32 %v23246_v53, %v23146_v28 }
0x1981   : > { %v32973_v40 = vpop.f32.mrf.mxu0 }
0x1982   : > { %v23340_v36 = vadd.f32 %v32973_v40, %v23253_v47  ;;  %v33006_v8 = vpop.f32.mrf.mxu1 }
0x1983   : > { %v23332_v14 = vpop.f32.mrf.mxu0 }
0x1984   : > { %v23333_v33 = vadd.f32 %v23332_v14, %v23247_v49  ;;  %v23425_v1 = vadd.f32 %v32984_v21, %v23340_v36  ;;  %v23588_v10 = vpop.f32.mrf.mxu1 }
0x1986   : > { %v23417_v2 = vadd.f32 %v23416_v19, %v23333_v33 }
0x198a   : > { %v32995_v30 = vpop.f32.mrf.mxu0 }
0x198b   : > { %v23514_v34 = vadd.f32 %v32995_v30, %v23425_v1 }
0x198c   : > { %v23507_v18 = vpop.f32.mrf.mxu0 }
0x198d   : > { %v23595_v9 = vadd.f32 %v33006_v8, %v23514_v34  ;;  %v23508_v62 = vadd.f32 %v23507_v18, %v23417_v2 }
0x198f   : > { %v23599_v5 = vmax.f32 %v23595_v9, 0.0  ;;  %v23589_v51 = vadd.f32 %v23588_v10, %v23508_v62 }
0x1991   : > { %v23601_v54 = vadd.f32 %v23599_v5, %v37995_v45  ;;  %v23598_v35 = vmax.f32 %v23589_v51, 0.0 }
0x1993   : > { %v24116_v37 = vsel %vm1515_vm1, %v23601_v54, 0  ;;  %v23600_v25 = vadd.f32 %v23598_v35, %v38001_v43 }
0x1994   : > { %v24197_v42 = vand.u32 4294901760, %v24116_v37 }
0x1995   : > { %v24113_v24 = vsel %vm1515_vm1, %v23600_v25, 0  ;;  %v23787_v56 = vpop.f32.mrf.mxu1 }
0x1996   : > { %v24198_v60 = vsub.f32 %v24116_v37, %v24197_v42  ;;  %v24187_v7 = vand.u32 4294901760, %v24113_v24 }
0x1998   : > { %33092 = vmatprep.mubr.f32.mxu1 %v24187_v7  ;;  %v24188_v17 = vsub.f32 %v24113_v24, %v24187_v7  ;;  %v24199_v26 = vand.u32 4294901760, %v24198_v60 }
0x1999   : > { %33093 = vmatmul.mubr.f32.vlgmr.msra.gmra.mxu1 %v24197_v42 }
0x199a   : > { %33107 = vmatpush3.msra.mxu1 %v38100_v13  ;;  %v24189_v44 = vand.u32 4294901760, %v24188_v17  ;;  %v24200_v58 = vsub.f32 %v24198_v60, %v24199_v26 }
0x199b   : > { %33108 = vmatprep.subr.mxu1 %v38108_v38 }
0x199c   : > { %33109 = vmatpush3.msra.mxu1 %v38108_v38  ;;  %33114 = vmatprep.mubr.f32.mxu1 %v24189_v44  ;;  %v24190_v45 = vsub.f32 %v24188_v17, %v24189_v44  ;;  %v24201_v15 = vand.u32 4294901760, %v24200_v58 }
0x199d   : > { %33110 = vmatprep.subr.mxu1 %v38120_v50 }
0x199e   : > { %33111 = vmatpush3.msra.mxu1 %v38120_v50  ;;  %v24191_v43 = vand.u32 4294901760, %v24190_v45 }
0x199f   : > { %33112 = vmatprep.subr.mxu1 %v38132_v63 }
0x19a0   : > { %33113 = vmatpush3.msra.mxu1 %v38132_v63  ;;  %33081 = vmatprep.mubr.f32.mxu0 %v24191_v43 }
0x19a1   : > { %33115 = vmatmul.mubr.f32.vlgmr.msra.gmra.mxu1 %v24199_v26  ;;  %33128 = vmatprep.subr.mxu1 %v38100_v13 }
0x19a2   : > { %33082 = vmatmul.mubr.f32.vlgmr.msra.gmra.mxu0 %v24201_v15  ;;  %33129 = vmatpush3.msra.mxu1 %v38100_v13  ;;  %v23607_v13 = vld [vmem:[#allocation43] sm:$0x1] }
0x19a3   : > { %33096 = vmatpush3.msra.mxu0 %v38106_v16  ;;  %33136 = vmatprep.mubr.f32.mxu1 %v24187_v7  ;;  %v23696_v16 = vpop.f32.mrf.mxu0 }
0x19a4   : > { %33097 = vmatprep.subr.mxu0 %v38118_v41  ;;  %33103 = vmatprep.mubr.f32.mxu0 %v24188_v17 }
0x19a5   : > { %33130 = vmatprep.subr.mxu1 %v38108_v38  ;;  %33098 = vmatpush3.msra.mxu0 %v38118_v41 }
0x19a6   : > { %33131 = vmatpush3.msra.mxu1 %v38108_v38  ;;  %33099 = vmatprep.subr.mxu0 %v38130_v20  ;;  %v23697_v38 = vadd.f32 %v23696_v16, %v23607_v13 }
0x19a7   : > { %33132 = vmatprep.subr.mxu1 %v38120_v50  ;;  %33100 = vmatpush3.msra.mxu0 %v38130_v20 }
0x19a8   : > { %33133 = vmatpush3.msra.mxu1 %v38120_v50  ;;  %33101 = vmatprep.subr.mxu0 %v38143_v6  ;;  %v23788_v41 = vadd.f32 %v23787_v56, %v23697_v38  ;;  %v33028_v50 = vpop.f32.mrf.mxu1 }
0x19a9   : > { %33134 = vmatprep.subr.mxu1 %v38132_v63  ;;  %33102 = vmatpush3.msra.mxu0 %v38143_v6 }
0x19aa   : > { %33135 = vmatpush3.msra.mxu1 %v38132_v63  ;;  %33104 = vmatmul.mubr.f32.vlgmr.msra.gmra.mxu0 %v24198_v60  ;;  %v23944_v20 = vpop.f32.mrf.mxu1 }
0x19ab   : > { %33117 = vmatprep.subr.mxu0 %v38115_v39  ;;  %33137 = vmatmul.mubr.f32.vlgmr.msra.gmra.mxu1 %v24197_v42 }
0x19ac   : > { %33118 = vmatpush3.msra.mxu0 %v38115_v39  ;;  %33125 = vmatprep.mubr.f32.mxu0 %v24187_v7  ;;  %v33017_v39 = vpop.f32.mrf.mxu0  ;;  %v33050_v59 = vpop.f32.mrf.mxu1 }
0x19ad   : > { %33119 = vmatprep.subr.mxu0 %v38127_v55  ;;  %33146 = vmatprep.subr.mxu1 %v35080_v0 }
0x19ae   : > { %33120 = vmatpush3.msra.mxu0 %v38127_v55  ;;  %33150 = vmatprep.mubr.msk.f32.mxu1 %vm35081_vm0, %v35080_v0  ;;  %v23867_v11 = vpop.f32.mrf.mxu0  ;;  %v24102_v57 = vpop.f32.mrf.mxu1 }
0x19af   : > { %33121 = vmatprep.subr.mxu0 %v38140_v48  ;;  %v23868_v23 = vadd.f32 %v23867_v11, %v23788_v41 }
0x19b0   : > { %33122 = vmatpush3.msra.mxu0 %v38140_v48  ;;  %v33039_v55 = vpop.f32.mrf.mxu0  ;;  %v33072_v12 = vpop.f32.mrf.mxu1 }
0x19b1   : > { %33123 = vmatprep.subr.mxu0 %v38152_v52  ;;  %v23945_v63 = vadd.f32 %v23944_v20, %v23868_v23 }
0x19b2   : > { %33124 = vmatpush3.msra.mxu0 %v38152_v52  ;;  %v24027_v48 = vpop.f32.mrf.mxu0 }
0x19b3   : > { %33126 = vmatmul.mubr.f32.vlgmr.msra.gmra.mxu0 %v24197_v42  ;;  %33139 = vmatprep.subr.mxu0 %v35080_v0  ;;  %v24028_v6 = vadd.f32 %v24027_v48, %v23945_v63 }
0x19b4   : > { %33143 = vmatprep.mubr.msk.f32.mxu0 %vm35081_vm0, %v35080_v0  ;;  %v33061_v22 = vpop.f32.mrf.mxu0 }
0x19b5   : > { %v38212_v52 = vadd.f32 %v24102_v57, %v24028_v6 }
0x19b7   : > { %v24670_v40 = vsel %vm2534_vm4, %v38212_v52, 0 }
0x19b8   : > { %v38216_v36 = vand.u32 4294901760, %v24670_v40 }
0x19ba   : > { %v24744_v30 = vsub.f32 %v24670_v40, %v38216_v36 }
0x19bc   : > { %v24745_v54 = vand.u32 4294901760, %v24744_v30 }
0x19be   : > { %v24746_v24 = vsub.f32 %v24744_v30, %v24745_v54 }
0x19c0   : > { %v24747_v44 = vand.u32 4294901760, %v24746_v24 }
0x1a59   : > { %v33094_v3 = vpop.f32.mrf.mxu1 }
0x1a5b   : > { %v24294_v29 = vpop.f32.mrf.mxu1 }
0x1a61   : > { %v33116_v53 = vpop.f32.mrf.mxu1 }
0x1a62   : > { %v33083_v31 = vpop.f32.mrf.mxu0 }
0x1a63   : > { %v24204_v61 = vadd.f32 %v33083_v31, %v29924_v32  ;;  %v24464_v33 = vpop.f32.mrf.mxu1 }
0x1a64   : > { %v24193_v4 = vpop.f32.mrf.mxu0 }
0x1a65   : > { %v24194_v46 = vadd.f32 %v29924_v32, %v24193_v4  ;;  %v24301_v28 = vadd.f32 %v33094_v3, %v24204_v61 }
0x1a67   : > { %v24295_v14 = vadd.f32 %v24294_v29, %v24194_v46 }
0x1a6a   : > { %v33105_v27 = vpop.f32.mrf.mxu0 }
0x1a6b   : > { %v24388_v21 = vadd.f32 %v33105_v27, %v24301_v28  ;;  %v33138_v1 = vpop.f32.mrf.mxu1 }
0x1a6c   : > { %v24380_v47 = vpop.f32.mrf.mxu0 }
0x1a6d   : > { %v24381_v49 = vadd.f32 %v24380_v47, %v24295_v14  ;;  %v24473_v19 = vadd.f32 %v33116_v53, %v24388_v21  ;;  %v24636_v10 = vpop.f32.mrf.mxu1 }
0x1a6f   : > { %v24465_v2 = vadd.f32 %v24464_v33, %v24381_v49 }
0x1a73   : > { %v33127_v8 = vpop.f32.mrf.mxu0 }
0x1a74   : > { %v24562_v34 = vadd.f32 %v33127_v8, %v24473_v19 }
0x1a75   : > { %v24555_v18 = vpop.f32.mrf.mxu0 }
0x1a76   : > { %v38219_v9 = vadd.f32 %v33138_v1, %v24562_v34  ;;  %v24556_v62 = vadd.f32 %v24555_v18, %v24465_v2 }
0x1a78   : > { %v38221_v5 = vadd.f32 %v24636_v10, %v24556_v62  ;;  %24660 = vrot.lane.b32.xlu0 %v38219_v9, %s35082_s18  ;;  %v24674_v51 = vsel %vm2534_vm4, %v38219_v9, 0 }
0x1a79   : > { %v24705_v35 = vand.u32 4294901760, %v24674_v51 }
0x1a7a   : > { %24658 = vrot.lane.b32.xlu1 %v38221_v5, %s35082_s18  ;;  %v24672_v37 = vsel %vm2534_vm4, %v38221_v5, 0 }
0x1a7b   : > { %33140 = vmatpush3.xpose.msra.mxu0 %v24705_v35  ;;  %v24783_v25 = vsub.f32 %v24674_v51, %v24705_v35  ;;  %v24708_v42 = vand.u32 4294901760, %v24672_v37 }
0x1a7c   : > { %24647 = vrot.lane.b32.xlu0 %v38212_v52, %s35082_s18  ;;  %33141 = vmatprep.subr.mxu0 %v35080_v0  ;;  %s29455_s18 = scalar_lea.sflag [#allocation4], %s1487_s0 }
0x1a7d   : > { %v24790_v60 = vsub.f32 %v24672_v37, %v24708_v42  ;;  %v24784_v7 = vand.u32 4294901760, %v24783_v25 }
0x1a7e   : > { %24664 = vrot.lane.b32.xlu1 %v38219_v9, %s35083_s25 }
0x1a7f   : > { %33142 = vmatpush3.xpose.msra.mxu0 %v24708_v42  ;;  %v24785_v17 = vsub.f32 %v24783_v25, %v24784_v7  ;;  %v24791_v26 = vand.u32 4294901760, %v24790_v60 }
0x1a80   : > { %24662 = vrot.lane.b32.xlu0 %v38221_v5, %s35083_s25  ;;  %33153 = vmatprep.subr.mxu0 %v35080_v0 }
0x1a81   : > { %v24786_v45 = vand.u32 4294901760, %v24785_v17  ;;  %v24792_v58 = vsub.f32 %v24790_v60, %v24791_v26 }
0x1a82   : > { %24650 = vrot.lane.b32.xlu1 %v38212_v52, %s35083_s25  ;;  %33144 = vmatmul.mubr.f32.vlgmr.msra.gmra.mxu0 %v24747_v44  ;;  %s34886_s25 = scalar_lea.vmem %s29468_s3, 16 }
0x1a83   : > { %33147 = vmatpush3.xpose.msra.mxu1 %v24786_v45  ;;  %33154 = vmatpush3.xpose.msra.mxu0 %v24783_v25  ;;  %v24793_v43 = vand.u32 4294901760, %v24792_v58  ;;  %p34887_p12 = scmp.ne.s32.totalorder %s29468_s3, %s34886_s25 }
0x1a84   : > { %24668 = vrot.lane.b32.xlu0 %v38219_v9, %s35084_s11  ;;  %33148 = vmatprep.subr.mxu1 %v35080_v0 }
0x1a85   : > { %33155 = vmatprep.subr.mxu0 %v35080_v0  ;;  %33157 = vmatprep.mubr.msk.f32.mxu0 %vm35081_vm0, %v35080_v0  ;;  %p34888_p0 = pnand %p34887_p12, %p38964_p11 }
0x1a86   : > { %24666 = vrot.lane.b32.xlu1 %v38221_v5, %s35084_s11 }
0x1a87   : > { %33149 = vmatpush3.xpose.msra.mxu1 %v24793_v43  ;;  %33156 = vmatpush3.xpose.msra.mxu0 %v24790_v60  ;;  %p34889_p1 = pneg %p34888_p0 }
0x1a88   : > { %24653 = vrot.lane.b32.xlu0 %v38212_v52, %s35084_s11  ;;  %33160 = vmatprep.subr.mxu1 %v35080_v0  ;;  %s35089_s11 = smov [#allocation49]  }
0x1a89   : > { %33167 = vmatprep.subr.mxu0 %v35080_v0 }
0x1a8a   : > { %33151 = vmatmul.mubr.f32.vlgmr.msra.gmra.mxu1 %v38216_v36  ;;  %33158 = vmatmul.mubr.f32.vlgmr.msra.gmra.mxu0 %v24744_v30 }
0x1a8b   : > { %33161 = vmatpush3.xpose.msra.mxu1 %v24705_v35  ;;  %33168 = vmatpush3.xpose.msra.mxu0 %v24784_v7 }
0x1a8c   : > { %33162 = vmatprep.subr.mxu1 %v35080_v0  ;;  %33169 = vmatprep.subr.mxu0 %v35080_v0 }
0x1a8d   : > { %33164 = vmatprep.mubr.msk.f32.mxu1 %vm35081_vm0, %v35080_v0  ;;  %33171 = vmatprep.mubr.msk.f32.mxu0 %vm35081_vm0, %v35080_v0 }
0x1a8f   : > { %33163 = vmatpush3.xpose.msra.mxu1 %v24708_v42  ;;  %33170 = vmatpush3.xpose.msra.mxu0 %v24791_v26 }
0x1a90   : > { %33174 = vmatprep.subr.mxu1 %v35080_v0  ;;  %33181 = vmatprep.subr.mxu0 %v35080_v0 }
0x1a92   : > { %33165 = vmatmul.mubr.f32.vlgmr.msra.gmra.mxu1 %v24745_v54  ;;  %33172 = vmatmul.mubr.f32.vlgmr.msra.gmra.mxu0 %v38216_v36 }
0x1a93   : > { %33175 = vmatpush3.xpose.msra.mxu1 %v24705_v35  ;;  %33178 = vmatprep.mubr.msk.f32.mxu1 %vm35081_vm0, %v35080_v0 }
0x1a94   : > { %33176 = vmatprep.subr.mxu1 %v35080_v0  ;;  %33185 = vmatprep.mubr.msk.f32.mxu0 %vm35081_vm0, %v35080_v0 }
0x1a97   : > { %33177 = vmatpush3.xpose.msra.mxu1 %v24708_v42 }
0x1a98   : > { %33188 = vmatprep.subr.mxu1 %v35080_v0 }
0x1a9a   : > { %33179 = vmatmul.mubr.f32.vlgmr.msra.gmra.mxu1 %v38216_v36 }
0x1a9b   : > { %33192 = vmatprep.mubr.msk.f32.mxu1 %vm35081_vm0, %v35080_v0 }
0x1aea   : > { %v38272_v15 = vpop.permute.xlu0 %24660 }
0x1aeb   : > { %v25139_v13 = vsel %vm2534_vm4, %v38272_v15, 0 }
0x1aec   : > { %v25170_v16 = vand.u32 4294901760, %v25139_v13  ;;  %v38276_v38 = vpop.permute.xlu1 %24658 }
0x1aed   : > { %v25137_v56 = vsel %vm2534_vm4, %v38276_v38, 0 }
0x1aee   : > { %v25248_v39 = vsub.f32 %v25139_v13, %v25170_v16  ;;  %v25173_v41 = vand.u32 4294901760, %v25137_v56  ;;  %v38280_v50 = vpop.permute.xlu0 %24647  ;;  %33182 = vmatpush3.xpose.msra.mxu0 %v25170_v16 }
0x1aef   : > { %v25135_v11 = vsel %vm2534_vm4, %v38280_v50, 0  ;;  %33183 = vmatprep.subr.mxu0 %v35080_v0 }
0x1af0   : > { %v25249_v23 = vand.u32 4294901760, %v25248_v39  ;;  %v25255_v55 = vsub.f32 %v25137_v56, %v25173_v41  ;;  %v38285_v20 = vand.u32 4294901760, %v25135_v11  ;;  %v38289_v57 = vpop.permute.xlu1 %24664 }
0x1af1   : > { %v25604_v4 = vsel %vm2534_vm4, %v38289_v57, 0 }
0x1af2   : > { %v25250_v63 = vsub.f32 %v25248_v39, %v25249_v23  ;;  %v25256_v59 = vand.u32 4294901760, %v25255_v55  ;;  %v25209_v48 = vsub.f32 %v25135_v11, %v38285_v20  ;;  %33184 = vmatpush3.xpose.msra.mxu0 %v25173_v41  ;;  %v38296_v46 = vpop.permute.xlu0 %24662  ;;  %v38300_v27 = vand.u32 4294901760, %v25604_v4 }
0x1af3   : > { %33195 = vmatprep.subr.mxu0 %v35080_v0  ;;  %v25602_v28 = vsel %vm2534_vm4, %v38296_v46, 0 }
0x1af4   : > { %v25210_v6 = vand.u32 4294901760, %v25209_v48  ;;  %v25257_v22 = vsub.f32 %v25255_v55, %v25256_v59  ;;  %v25251_v12 = vand.u32 4294901760, %v25250_v63  ;;  %v38294_v61 = vpop.permute.xlu1 %24650  ;;  %v25713_v53 = vsub.f32 %v25604_v4, %v38300_v27 }
0x1af5   : > { %v25600_v29 = vsel %vm2534_vm4, %v38294_v61, 0  ;;  %v38314_v47 = vand.u32 4294901760, %v25602_v28 }
0x1af6   : > { %v25211_v31 = vsub.f32 %v25209_v48, %v25210_v6  ;;  %33189 = vmatpush3.xpose.msra.mxu1 %v25251_v12  ;;  %v25258_v3 = vand.u32 4294901760, %v25257_v22  ;;  %v38309_v40 = vand.u32 4294901760, %v25600_v29  ;;  %v25714_v14 = vand.u32 4294901760, %v25713_v53  ;;  %v38334_v8 = vpop.permute.xlu0 %24668 }
0x1af7   : > { %33190 = vmatprep.subr.mxu1 %v35080_v0  ;;  %v25720_v36 = vsub.f32 %v25602_v28, %v38314_v47  ;;  %v26069_v62 = vsel %vm2534_vm4, %v38334_v8, 0 }
0x1af8   : > { %v25212_v32 = vand.u32 4294901760, %v25211_v31  ;;  %v38319_v21 = vsub.f32 %v25600_v29, %v38309_v40  ;;  %v25715_v33 = vsub.f32 %v25713_v53, %v25714_v14  ;;  %v38350_v51 = vpop.permute.xlu1 %24666  ;;  %v38354_v54 = vand.u32 4294901760, %v26069_v62 }
0x1af9   : > { %v25721_v19 = vand.u32 4294901760, %v25720_v36  ;;  %v26067_v37 = vsel %vm2534_vm4, %v38350_v51, 0 }
0x1afa   : > { %33186 = vmatmul.mubr.f32.vlgmr.msra.gmra.mxu0 %v25212_v32  ;;  %33191 = vmatpush3.xpose.msra.mxu1 %v25258_v3  ;;  %v25675_v49 = vand.u32 4294901760, %v38319_v21  ;;  %v25716_v34 = vand.u32 4294901760, %v25715_v33  ;;  %v38348_v10 = vpop.permute.xlu0 %24653  ;;  %v26178_v42 = vsub.f32 %v26069_v62, %v38354_v54  ;;  %v26103_v24 = vand.u32 4294901760, %v26067_v37 }
0x1afb   : > { %33196 = vmatpush3.xpose.msra.mxu0 %v25248_v39  ;;  %33202 = vmatprep.subr.mxu1 %v35080_v0  ;;  %v25722_v30 = vsub.f32 %v25720_v36, %v25721_v19  ;;  %v26065_v35 = vsel %vm2534_vm4, %v38348_v10, 0 }
0x1afc   : > { %33197 = vmatprep.subr.mxu0 %v35080_v0  ;;  %33199 = vmatprep.mubr.msk.f32.mxu0 %vm35081_vm0, %v35080_v0  ;;  %v25676_v1 = vsub.f32 %v38319_v21, %v25675_v49  ;;  %v38364_v25 = vand.u32 4294901760, %v26065_v35  ;;  %v26179_v7 = vand.u32 4294901760, %v26178_v42  ;;  %v26185_v17 = vsub.f32 %v26067_v37, %v26103_v24 }
0x1afd   : > { %33193 = vmatmul.mubr.f32.vlgmr.msra.gmra.mxu1 %v38285_v20  ;;  %v25723_v18 = vand.u32 4294901760, %v25722_v30 }
0x1afe   : > { %33203 = vmatpush3.xpose.msra.mxu1 %v25170_v16  ;;  %33206 = vmatprep.mubr.msk.f32.mxu1 %vm35081_vm0, %v35080_v0  ;;  %v25677_v2 = vand.u32 4294901760, %v25676_v1  ;;  %v26139_v60 = vsub.f32 %v26065_v35, %v38364_v25  ;;  %v26180_v44 = vsub.f32 %v26178_v42, %v26179_v7  ;;  %v26186_v45 = vand.u32 4294901760, %v26185_v17 }
0x1aff   : > { %33198 = vmatpush3.xpose.msra.mxu0 %v25255_v55  ;;  %33204 = vmatprep.subr.mxu1 %v35080_v0 }
0x1b00   : > { %33209 = vmatprep.subr.mxu0 %v35080_v0  ;;  %v26140_v26 = vand.u32 4294901760, %v26139_v60  ;;  %v26187_v43 = vsub.f32 %v26185_v17, %v26186_v45  ;;  %v26181_v13 = vand.u32 4294901760, %v26180_v44 }
0x1b02   : > { %33200 = vmatmul.mubr.f32.vlgmr.msra.gmra.mxu0 %v25209_v48  ;;  %33205 = vmatpush3.xpose.msra.mxu1 %v25173_v41  ;;  %v26141_v58 = vsub.f32 %v26139_v60, %v26140_v26  ;;  %v26188_v56 = vand.u32 4294901760, %v26187_v43 }
0x1b03   : > { %33210 = vmatpush3.xpose.msra.mxu0 %v25249_v23  ;;  %33216 = vmatprep.subr.mxu1 %v35080_v0 }
0x1b04   : > { %33211 = vmatprep.subr.mxu0 %v35080_v0  ;;  %33213 = vmatprep.mubr.msk.f32.mxu0 %vm35081_vm0, %v35080_v0 }
0x1b05   : > { %33207 = vmatmul.mubr.f32.vlgmr.msra.gmra.mxu1 %v25210_v6 }
0x1b06   : > { %33217 = vmatpush3.xpose.msra.mxu1 %v25170_v16  ;;  %33220 = vmatprep.mubr.msk.f32.mxu1 %vm35081_vm0, %v35080_v0  ;;  %v26142_v16 = vand.u32 4294901760, %v26141_v58 }
0x1b07   : > { %33212 = vmatpush3.xpose.msra.mxu0 %v25256_v59  ;;  %33218 = vmatprep.subr.mxu1 %v35080_v0 }
0x1b08   : > { %33223 = vmatprep.subr.mxu0 %v35080_v0 }
0x1b0a   : > { %33214 = vmatmul.mubr.f32.vlgmr.msra.gmra.mxu0 %v38285_v20  ;;  %33219 = vmatpush3.xpose.msra.mxu1 %v25173_v41 }
0x1b0b   : > { %33224 = vmatpush3.xpose.msra.mxu0 %v38300_v27  ;;  %33230 = vmatprep.subr.mxu1 %v35080_v0 }
0x1b0c   : > { %33225 = vmatprep.subr.mxu0 %v35080_v0  ;;  %33227 = vmatprep.mubr.msk.f32.mxu0 %vm35081_vm0, %v35080_v0 }
0x1b0d   : > { %33221 = vmatmul.mubr.f32.vlgmr.msra.gmra.mxu1 %v38285_v20 }
0x1b0e   : > { %33231 = vmatpush3.xpose.msra.mxu1 %v25716_v34  ;;  %33234 = vmatprep.mubr.msk.f32.mxu1 %vm35081_vm0, %v35080_v0 }
0x1b0f   : > { %33226 = vmatpush3.xpose.msra.mxu0 %v38314_v47  ;;  %33232 = vmatprep.subr.mxu1 %v35080_v0 }
0x1b10   : > { %33237 = vmatprep.subr.mxu0 %v35080_v0 }
0x1b12   : > { %33228 = vmatmul.mubr.f32.vlgmr.msra.gmra.mxu0 %v25677_v2  ;;  %33233 = vmatpush3.xpose.msra.mxu1 %v25723_v18 }
0x1b13   : > { %33238 = vmatpush3.xpose.msra.mxu0 %v25713_v53  ;;  %33244 = vmatprep.subr.mxu1 %v35080_v0 }
0x1b14   : > { %33239 = vmatprep.subr.mxu0 %v35080_v0  ;;  %33241 = vmatprep.mubr.msk.f32.mxu0 %vm35081_vm0, %v35080_v0 }
0x1b15   : > { %33235 = vmatmul.mubr.f32.vlgmr.msra.gmra.mxu1 %v38309_v40 }
0x1b16   : > { %33245 = vmatpush3.xpose.msra.mxu1 %v38300_v27  ;;  %33248 = vmatprep.mubr.msk.f32.mxu1 %vm35081_vm0, %v35080_v0 }
0x1b17   : > { %33240 = vmatpush3.xpose.msra.mxu0 %v25720_v36  ;;  %33246 = vmatprep.subr.mxu1 %v35080_v0 }
0x1b18   : > { %33251 = vmatprep.subr.mxu0 %v35080_v0 }
0x1b1a   : > { %33242 = vmatmul.mubr.f32.vlgmr.msra.gmra.mxu0 %v38319_v21  ;;  %33247 = vmatpush3.xpose.msra.mxu1 %v38314_v47 }
0x1b1b   : > { %33252 = vmatpush3.xpose.msra.mxu0 %v25714_v14  ;;  %33258 = vmatprep.subr.mxu1 %v35080_v0 }
0x1b1c   : > { %33253 = vmatprep.subr.mxu0 %v35080_v0  ;;  %33255 = vmatprep.mubr.msk.f32.mxu0 %vm35081_vm0, %v35080_v0 }
0x1b1d   : > { %33249 = vmatmul.mubr.f32.vlgmr.msra.gmra.mxu1 %v25675_v49 }
0x1b1e   : > { %33259 = vmatpush3.xpose.msra.mxu1 %v38300_v27  ;;  %33262 = vmatprep.mubr.msk.f32.mxu1 %vm35081_vm0, %v35080_v0 }
0x1b1f   : > { %33254 = vmatpush3.xpose.msra.mxu0 %v25721_v19  ;;  %33260 = vmatprep.subr.mxu1 %v35080_v0 }
0x1b20   : > { %33265 = vmatprep.subr.mxu0 %v35080_v0 }
0x1b22   : > { %33256 = vmatmul.mubr.f32.vlgmr.msra.gmra.mxu0 %v38309_v40  ;;  %33261 = vmatpush3.xpose.msra.mxu1 %v38314_v47 }
0x1b23   : > { %33266 = vmatpush3.xpose.msra.mxu0 %v38354_v54  ;;  %33272 = vmatprep.subr.mxu1 %v35080_v0 }
0x1b24   : > { %33267 = vmatprep.subr.mxu0 %v35080_v0  ;;  %33269 = vmatprep.mubr.msk.f32.mxu0 %vm35081_vm0, %v35080_v0 }
0x1b25   : > { %33263 = vmatmul.mubr.f32.vlgmr.msra.gmra.mxu1 %v38309_v40 }
0x1b26   : > { %33273 = vmatpush3.xpose.msra.mxu1 %v26181_v13  ;;  %33276 = vmatprep.mubr.msk.f32.mxu1 %vm35081_vm0, %v35080_v0 }
0x1b27   : > { %33268 = vmatpush3.xpose.msra.mxu0 %v26103_v24  ;;  %33274 = vmatprep.subr.mxu1 %v35080_v0 }
0x1b28   : > { %33279 = vmatprep.subr.mxu0 %v35080_v0 }
0x1b2a   : > { %33270 = vmatmul.mubr.f32.vlgmr.msra.gmra.mxu0 %v26142_v16  ;;  %33275 = vmatpush3.xpose.msra.mxu1 %v26188_v56 }
0x1b2b   : > { %33280 = vmatpush3.xpose.msra.mxu0 %v26178_v42  ;;  %33286 = vmatprep.subr.mxu1 %v35080_v0 }
0x1b2c   : > { %33281 = vmatprep.subr.mxu0 %v35080_v0  ;;  %33283 = vmatprep.mubr.msk.f32.mxu0 %vm35081_vm0, %v35080_v0 }
0x1b2d   : > { %33277 = vmatmul.mubr.f32.vlgmr.msra.gmra.mxu1 %v38364_v25 }
0x1b2e   : > { %33287 = vmatpush3.xpose.msra.mxu1 %v38354_v54  ;;  %33290 = vmatprep.mubr.msk.f32.mxu1 %vm35081_vm0, %v35080_v0 }
0x1b2f   : > { %33282 = vmatpush3.xpose.msra.mxu0 %v26185_v17  ;;  %33288 = vmatprep.subr.mxu1 %v35080_v0 }
0x1b30   : > { %33293 = vmatprep.subr.mxu0 %v35080_v0 }
0x1b32   : > { %33284 = vmatmul.mubr.f32.vlgmr.msra.gmra.mxu0 %v26139_v60  ;;  %33289 = vmatpush3.xpose.msra.mxu1 %v26103_v24 }
0x1b33   : > { %33294 = vmatpush3.xpose.msra.mxu0 %v26179_v7  ;;  %33300 = vmatprep.subr.mxu1 %v35080_v0 }
0x1b34   : > { %33295 = vmatprep.subr.mxu0 %v35080_v0  ;;  %33297 = vmatprep.mubr.msk.f32.mxu0 %vm35081_vm0, %v35080_v0 }
0x1b35   : > { %33291 = vmatmul.mubr.f32.vlgmr.msra.gmra.mxu1 %v26140_v26 }
0x1b36   : > { %33301 = vmatpush3.xpose.msra.mxu1 %v38354_v54  ;;  %33304 = vmatprep.mubr.msk.f32.mxu1 %vm35081_vm0, %v35080_v0 }
0x1b37   : > { %33296 = vmatpush3.xpose.msra.mxu0 %v26186_v45  ;;  %33302 = vmatprep.subr.mxu1 %v35080_v0 }
0x1b38   : > { %33307 = vmatprep.subr.mxu0 %v35080_v0 }
0x1b3a   : > { %33298 = vmatmul.mubr.f32.vlgmr.msra.gmra.mxu0 %v38364_v25  ;;  %33303 = vmatpush3.xpose.msra.mxu1 %v26103_v24 }
0x1b3b   : > { %33311 = vmatprep.mubr.msk.f32.mxu0 %vm35081_vm0, %v35080_v0  ;;  %33314 = vmatprep.subr.mxu1 %v35080_v0 }
0x1b3d   : > { %33305 = vmatmul.mubr.f32.vlgmr.msra.gmra.mxu1 %v38364_v25 }
0x1b3e   : > { %33318 = vmatprep.mubr.msk.f32.mxu1 %vm35081_vm0, %v35080_v0 }
0x1b42   : > { %v24749_v39 = vpop.f32.mrf.mxu0 }
0x1b44   : > { %v33145_v41 = vpop.f32.mrf.mxu0 }
0x1b4a   : > { %v24830_v11 = vpop.f32.mrf.mxu1  ;;  %v24906_v23 = vpop.f32.mrf.mxu0 }
0x1b4b   : > { %v24831_v63 = vadd.f32 %v24830_v11, %v24749_v39 }
0x1b4c   : > { %v33152_v55 = vpop.f32.mrf.mxu1  ;;  %v33159_v20 = vpop.f32.mrf.mxu0 }
0x1b4d   : > { %v24907_v6 = vadd.f32 %v24906_v23, %v24831_v63 }
0x1b52   : > { %v24981_v59 = vpop.f32.mrf.mxu1  ;;  %v25058_v48 = vpop.f32.mrf.mxu0 }
0x1b53   : > { %v24982_v31 = vadd.f32 %v24981_v59, %v24907_v6 }
0x1b54   : > { %v33166_v22 = vpop.f32.mrf.mxu1  ;;  %v33173_v12 = vpop.f32.mrf.mxu0 }
0x1b55   : > { %v25059_v32 = vadd.f32 %v25058_v48, %v24982_v31 }
0x1b5a   : > { %v25131_v3 = vpop.f32.mrf.mxu1 }
0x1b5b   : > { %v25132_v4 = vadd.f32 %v25131_v3, %v25059_v32 }
0x1b5c   : > { %v33180_v27 = vpop.f32.mrf.mxu1 }
0x1b5d   : > { %v26530_v29 = vmul.f32 0.17677669, %v25132_v4 }
0x1b5f   : > { %v26535_v28 = vsel %vm26534_vm7, %v26530_v29, -inf }
0x1b60   : > { %26536 = vmax.xlane.f32.xlu1 %v26535_v28 }
0x1bba   : > { %v25214_v40 = vpop.f32.mrf.mxu0 }
0x1bbc   : > { %v33187_v53 = vpop.f32.mrf.mxu0 }
0x1bbd   : > { %v25295_v47 = vpop.f32.mrf.mxu1 }
0x1bbe   : > { %v25296_v33 = vadd.f32 %v25295_v47, %v25214_v40 }
0x1bbf   : > { %v33194_v21 = vpop.f32.mrf.mxu1 }
0x1bc2   : > { %v25371_v14 = vpop.f32.mrf.mxu0 }
0x1bc3   : > { %v25372_v1 = vadd.f32 %v25371_v14, %v25296_v33 }
0x1bc4   : > { %v33201_v36 = vpop.f32.mrf.mxu0 }
0x1bc5   : > { %v25446_v49 = vpop.f32.mrf.mxu1 }
0x1bc6   : > { %v25447_v34 = vadd.f32 %v25446_v49, %v25372_v1 }
0x1bc7   : > { %v33208_v19 = vpop.f32.mrf.mxu1 }
0x1bca   : > { %v25523_v30 = vpop.f32.mrf.mxu0 }
0x1bcb   : > { %v25524_v18 = vadd.f32 %v25523_v30, %v25447_v34 }
0x1bcc   : > { %v33215_v2 = vpop.f32.mrf.mxu0 }
0x1bcd   : > { %v25596_v62 = vpop.f32.mrf.mxu1 }
0x1bce   : > { %v25597_v54 = vadd.f32 %v25596_v62, %v25524_v18 }
0x1bcf   : > { %v33222_v35 = vpop.f32.mrf.mxu1 }
0x1bd0   : > { %v26531_v37 = vmul.f32 0.17677669, %v25597_v54 }
0x1bd2   : > { %v25679_v25 = vpop.f32.mrf.mxu0  ;;  %v26538_v42 = vsel %vm26534_vm7, %v26531_v37, -inf }
0x1bd3   : > { %26539 = vmax.xlane.f32.xlu0 %v26538_v42 }
0x1bd4   : > { %v33229_v24 = vpop.f32.mrf.mxu0 }
0x1bd5   : > { %v25760_v60 = vpop.f32.mrf.mxu1 }
0x1bd6   : > { %v25761_v45 = vadd.f32 %v25760_v60, %v25679_v25 }
0x1bd7   : > { %v33236_v7 = vpop.f32.mrf.mxu1 }
0x1bda   : > { %v25836_v17 = vpop.f32.mrf.mxu0 }
0x1bdb   : > { %v25837_v43 = vadd.f32 %v25836_v17, %v25761_v45 }
0x1bdc   : > { %v33243_v26 = vpop.f32.mrf.mxu0 }
0x1bdd   : > { %v25911_v44 = vpop.f32.mrf.mxu1 }
0x1bde   : > { %v25912_v16 = vadd.f32 %v25911_v44, %v25837_v43 }
0x1bdf   : > { %v33250_v58 = vpop.f32.mrf.mxu1 }
0x1be2   : > { %v25988_v13 = vpop.f32.mrf.mxu0 }
0x1be3   : > { %v25989_v39 = vadd.f32 %v25988_v13, %v25912_v16 }
0x1be4   : > { %v33257_v56 = vpop.f32.mrf.mxu0 }
0x1be5   : > { %v26061_v41 = vpop.f32.mrf.mxu1 }
0x1be6   : > { %v26062_v11 = vadd.f32 %v26061_v41, %v25989_v39 }
0x1be7   : > { %v33264_v23 = vpop.f32.mrf.mxu1 }
0x1be8   : > { %v26532_v55 = vmul.f32 0.17677669, %v26062_v11 }
0x1be9   : > { %v26537_v20 = vpop.xlane.xlu1 %26536 }
0x1bea   : > { %v26547_v63 = vsub.f32 %v26530_v29, %v26537_v20  ;;  %v26144_v59 = vpop.f32.mrf.mxu0  ;;  %v26541_v48 = vsel %vm26534_vm7, %v26532_v55, -inf }
0x1beb   : > { %26542 = vmax.xlane.f32.xlu0 %v26541_v48 }
0x1bec   : > { %v26551_v6 = vmul.f32 1.442695, %v26547_v63  ;;  %v33271_v22 = vpop.f32.mrf.mxu0 }
0x1bed   : > { %v26225_v12 = vpop.f32.mrf.mxu1 }
0x1bee   : > { %34090 = vpow2.f32 %v26551_v6  ;;  %v26226_v27 = vadd.f32 %v26225_v12, %v26144_v59 }
0x1bef   : > { %v33278_v31 = vpop.f32.mrf.mxu1 }
0x1bf2   : > { %v26301_v32 = vpop.f32.mrf.mxu0 }
0x1bf3   : > { %v26302_v40 = vadd.f32 %v26301_v32, %v26226_v27 }
0x1bf4   : > { %v33285_v3 = vpop.f32.mrf.mxu0 }
0x1bf5   : > { %v26376_v4 = vpop.f32.mrf.mxu1 }
0x1bf6   : > { %v26377_v21 = vadd.f32 %v26376_v4, %v26302_v40 }
0x1bf7   : > { %v33292_v28 = vpop.f32.mrf.mxu1 }
0x1bfa   : > { %v26453_v53 = vpop.f32.mrf.mxu0 }
0x1bfb   : > { %v34091_v47 = vpop.eup %34090  ;;  %v26454_v36 = vadd.f32 %v26453_v53, %v26377_v21 }
0x1bfc   : > { %v33299_v14 = vpop.f32.mrf.mxu0  ;;  %v26559_v29 = vsel %vm26534_vm7, %v34091_v47, 0.0 }
0x1bfd   : > { %26560 = vadd.xlane.f32.xlu0 %v26559_v29  ;;  %v26526_v49 = vpop.f32.mrf.mxu1 }
0x1bfe   : > { %v26527_v33 = vadd.f32 %v26526_v49, %v26454_v36 }
0x1bff   : > { %v33306_v19 = vpop.f32.mrf.mxu1 }
0x1c00   : > { %v26533_v1 = vmul.f32 0.17677669, %v26527_v33 }
0x1c02   : > { %v26544_v30 = vsel %vm26534_vm7, %v26533_v1, -inf }
0x1c03   : > { %26545 = vmax.xlane.f32.xlu1 %v26544_v30 }
0x1c13   : > { %26579 = vrot.lane.b32.xlu0 %v38221_v5, %s35085_s6 }
0x1c5c   : > { %v26540_v34 = vpop.xlane.xlu0 %26539 }
0x1c5d   : > { %v26548_v2 = vsub.f32 %v26531_v37, %v26540_v34 }
0x1c5f   : > { %v26553_v18 = vmul.f32 1.442695, %v26548_v2 }
0x1c61   : > { %34092 = vpow2.f32 %v26553_v18 }
0x1c6e   : > { %v34093_v62 = vpop.eup %34092 }
0x1c6f   : > { %v26562_v54 = vsel %vm26534_vm7, %v34093_v62, 0.0 }
0x1c70   : > { %26563 = vadd.xlane.f32.xlu1 %v26562_v54 }
0x1c74   : > { %v26543_v35 = vpop.xlane.xlu0 %26542 }
0x1c75   : > { %v26549_v25 = vsub.f32 %v26532_v55, %v26543_v35 }
0x1c77   : > { %v26555_v42 = vmul.f32 1.442695, %v26549_v25 }
0x1c79   : > { %34094 = vpow2.f32 %v26555_v42 }
0x1c81   : > { %26581 = vrot.lane.b32.xlu1 %v38219_v9, %s35085_s6 }
0x1c86   : > { %v38431_v24 = vpop.eup %34094 }
0x1c87   : > { %v26565_v5 = vsel %vm26534_vm7, %v38431_v24, 0.0 }
0x1c88   : > { %26566 = vadd.xlane.f32.xlu0 %v26565_v5 }
0x1c8c   : > { %v26546_v37 = vpop.xlane.xlu1 %26545 }
0x1c8d   : > { %v26550_v60 = vsub.f32 %v26533_v1, %v26546_v37 }
0x1c8f   : > { %v26557_v7 = vmul.f32 1.442695, %v26550_v60 }
0x1c91   : > { %34096 = vpow2.f32 %v26557_v7 }
0x1c9e   : > { %27049 = vrot.lane.b32.xlu0 %v38272_v15, %s35085_s6  ;;  %v38437_v17 = vpop.eup %34096  ;;  %v26561_v15 = vpop.xlane.xlu0 %26560 }
0x1c9f   : > { %v26568_v9 = vsel %vm26534_vm7, %v38437_v17, 0.0  ;;  %34098 = vrcp.f32 %v26561_v15 }
0x1ca2   : > { %27047 = vrot.lane.b32.xlu0 %v38276_v38, %s35085_s6  ;;  %v26580_v58 = vpop.permute.xlu0 %26579 }
0x1ca3   : > { %v26620_v13 = vand.u32 4294901760, %v26580_v58 }
0x1ca5   : > { %26569 = vadd.xlane.f32.xlu1 %v26568_v9 }
0x1ca6   : > { %27517 = vrot.lane.b32.xlu0 %v38289_v57, %s35085_s6 }
0x1caa   : > { %27515 = vrot.lane.b32.xlu0 %v38296_v46, %s35085_s6  ;;  %v26702_v46 = vsub.f32 %v26580_v58, %v26620_v13 }
0x1cac   : > { %v34099_v26 = vpop.eup %34098  ;;  %v26703_v41 = vand.u32 4294901760, %v26702_v46 }
0x1cad   : > { %v26575_v38 = vmul.f32 %v34099_v26, %v34091_v47 }
0x1cae   : > { %27985 = vrot.lane.b32.xlu0 %v38334_v8, %s35085_s6  ;;  %v26704_v55 = vsub.f32 %v26702_v46, %v26703_v41 }
0x1caf   : > { %v26586_v44 = vsel %vm4399_vm5, %v26575_v38, 0 }
0x1cb0   : > { %v26655_v45 = vand.u32 4294901760, %v26586_v44  ;;  %v26705_v48 = vand.u32 4294901760, %v26704_v55 }
0x1cb2   : > { %27983 = vrot.lane.b32.xlu0 %v38350_v51, %s35085_s6  ;;  %v26656_v43 = vsub.f32 %v26586_v44, %v26655_v45  ;;  %s34890_s6 = sshll.u32 %s35089_s11, 4  ;;  %s34891_s6 = int_to_ptr.vmem [resolvable:$false] %s34890_s6 }
0x1cb3   : > { %p34893_p2 = scmp.lt.s32.totalorder %s29468_s3, %s34891_s6 }
0x1cb4   : > { %v26657_v16 = vand.u32 4294901760, %v26656_v43 }
0x1cb6   : > { %v26658_v39 = vsub.f32 %v26656_v43, %v26657_v16 }
0x1cb8   : > { %v26659_v51 = vand.u32 4294901760, %v26658_v39 }
0x1cf9   : > { %v26564_v57 = vpop.xlane.xlu1 %26563 }
0x1cfa   : > { %34100 = vrcp.f32 %v26564_v57 }
0x1cfd   : > { %v26582_v56 = vpop.permute.xlu1 %26581 }
0x1cfe   : > { %v26617_v8 = vand.u32 4294901760, %v26582_v56 }
0x1d00   : > { %v26695_v11 = vsub.f32 %v26582_v56, %v26617_v8  ;;  %33308 = vmatpush3.msra.mxu0 %v26617_v8 }
0x1d01   : > { %33309 = vmatprep.subr.mxu0 %v35080_v0 }
0x1d02   : > { %v26696_v23 = vand.u32 4294901760, %v26695_v11  ;;  %33310 = vmatpush3.msra.mxu0 %v26620_v13 }
0x1d03   : > { %33312 = vmatmul.mubr.f32.vlgmr.msra.gmra.mxu0 %v26659_v51  ;;  %33321 = vmatprep.subr.mxu0 %v35080_v0 }
0x1d04   : > { %v26697_v20 = vsub.f32 %v26695_v11, %v26696_v23  ;;  %33322 = vmatpush3.msra.mxu0 %v26695_v11  ;;  %33325 = vmatprep.mubr.msk.f32.mxu0 %vm35081_vm0, %v35080_v0 }
0x1d05   : > { %33323 = vmatprep.subr.mxu0 %v35080_v0 }
0x1d06   : > { %v26698_v63 = vand.u32 4294901760, %v26697_v20  ;;  %33324 = vmatpush3.msra.mxu0 %v26702_v46 }
0x1d07   : > { %v34101_v59 = vpop.eup %34100  ;;  %33326 = vmatmul.mubr.f32.vlgmr.msra.gmra.mxu0 %v26656_v43  ;;  %33335 = vmatprep.subr.mxu0 %v35080_v0 }
0x1d08   : > { %v26576_v6 = vmul.f32 %v34101_v59, %v34093_v62  ;;  %33315 = vmatpush3.msra.mxu1 %v26698_v63  ;;  %33336 = vmatpush3.msra.mxu0 %v26696_v23 }
0x1d09   : > { %33316 = vmatprep.subr.mxu1 %v35080_v0  ;;  %33337 = vmatprep.subr.mxu0 %v35080_v0 }
0x1d0a   : > { %v27054_v22 = vsel %vm4399_vm5, %v26576_v6, 0  ;;  %33317 = vmatpush3.msra.mxu1 %v26705_v48  ;;  %33338 = vmatpush3.msra.mxu0 %v26703_v41 }
0x1d0b   : > { %v38461_v12 = vand.u32 4294901760, %v27054_v22  ;;  %33339 = vmatprep.mubr.msk.f32.mxu0 %vm35081_vm0, %v35080_v0  ;;  %33319 = vmatmul.mubr.f32.vlgmr.msra.gmra.mxu1 %v26655_v45 }
0x1d0c   : > { %33328 = vmatprep.subr.mxu1 %v35080_v0  ;;  %33340 = vmatmul.mubr.f32.vlgmr.msra.gmra.mxu0 %v26655_v45 }
0x1d0d   : > { %33329 = vmatpush3.msra.mxu1 %v26617_v8  ;;  %33332 = vmatprep.mubr.msk.f32.mxu1 %vm35081_vm0, %v35080_v0  ;;  %v38473_v31 = vsub.f32 %v27054_v22, %v38461_v12 }
0x1d0e   : > { %33330 = vmatprep.subr.mxu1 %v35080_v0  ;;  %33349 = vmatprep.subr.mxu0 %v35080_v0 }
0x1d0f   : > { %33331 = vmatpush3.msra.mxu1 %v26620_v13  ;;  %33353 = vmatprep.mubr.msk.f32.mxu0 %vm35081_vm0, %v35080_v0  ;;  %v27125_v3 = vand.u32 4294901760, %v38473_v31 }
0x1d10   : > { %33333 = vmatmul.mubr.f32.vlgmr.msra.gmra.mxu1 %v26657_v16  ;;  %33342 = vmatprep.subr.mxu1 %v35080_v0 }
0x1d11   : > { %33343 = vmatpush3.msra.mxu1 %v26617_v8  ;;  %v26567_v32 = vpop.xlane.xlu0 %26566  ;;  %33346 = vmatprep.mubr.msk.f32.mxu1 %vm35081_vm0, %v35080_v0  ;;  %v27126_v28 = vsub.f32 %v38473_v31, %v27125_v3 }
0x1d12   : > { %34102 = vrcp.f32 %v26567_v32  ;;  %33344 = vmatprep.subr.mxu1 %v35080_v0 }
0x1d13   : > { %33345 = vmatpush3.msra.mxu1 %v26620_v13  ;;  %v27127_v14 = vand.u32 4294901760, %v27126_v28 }
0x1d14   : > { %33347 = vmatmul.mubr.f32.vlgmr.msra.gmra.mxu1 %v26655_v45  ;;  %33356 = vmatprep.subr.mxu1 %v35080_v0 }
0x1d15   : > { %v27050_v4 = vpop.permute.xlu0 %27049  ;;  %33360 = vmatprep.mubr.msk.f32.mxu1 %vm35081_vm0, %v35080_v0 }
0x1d16   : > { %v38483_v27 = vand.u32 4294901760, %v27050_v4 }
0x1d18   : > { %v27163_v40 = vsub.f32 %v27050_v4, %v38483_v27  ;;  %33350 = vmatpush3.msra.mxu0 %v38483_v27 }
0x1d19   : > { %v27048_v53 = vpop.permute.xlu0 %27047  ;;  %33351 = vmatprep.subr.mxu0 %v35080_v0 }
0x1d1a   : > { %v27164_v47 = vand.u32 4294901760, %v27163_v40  ;;  %v27088_v21 = vand.u32 4294901760, %v27048_v53 }
0x1d1c   : > { %v27165_v29 = vsub.f32 %v27163_v40, %v27164_v47  ;;  %v27170_v36 = vsub.f32 %v27048_v53, %v27088_v21  ;;  %33352 = vmatpush3.msra.mxu0 %v27088_v21 }
0x1d1d   : > { %v27518_v49 = vpop.permute.xlu0 %27517  ;;  %33354 = vmatmul.mubr.f32.vlgmr.msra.gmra.mxu0 %v27127_v14  ;;  %33363 = vmatprep.subr.mxu0 %v35080_v0 }
0x1d1e   : > { %v27166_v33 = vand.u32 4294901760, %v27165_v29  ;;  %v27171_v19 = vand.u32 4294901760, %v27170_v36  ;;  %v38492_v1 = vand.u32 4294901760, %v27518_v49  ;;  %33364 = vmatpush3.msra.mxu0 %v27163_v40  ;;  %33367 = vmatprep.mubr.msk.f32.mxu0 %vm35081_vm0, %v35080_v0 }
0x1d1f   : > { %v34103_v30 = vpop.eup %34102  ;;  %33365 = vmatprep.subr.mxu0 %v35080_v0 }
0x1d20   : > { %v26577_v34 = vmul.f32 %v34103_v30, %v38431_v24  ;;  %v27172_v2 = vsub.f32 %v27170_v36, %v27171_v19  ;;  %33357 = vmatpush3.msra.mxu1 %v27166_v33  ;;  %33366 = vmatpush3.msra.mxu0 %v27170_v36  ;;  %v27631_v35 = vsub.f32 %v27518_v49, %v38492_v1 }
0x1d21   : > { %v27516_v18 = vpop.permute.xlu0 %27515  ;;  %33368 = vmatmul.mubr.f32.vlgmr.msra.gmra.mxu0 %v38473_v31  ;;  %33377 = vmatprep.subr.mxu0 %v35080_v0 }
0x1d22   : > { %v27522_v62 = vsel %vm4399_vm5, %v26577_v34, 0  ;;  %v27173_v54 = vand.u32 4294901760, %v27172_v2  ;;  %v38502_v25 = vand.u32 4294901760, %v27516_v18  ;;  %33378 = vmatpush3.msra.mxu0 %v27164_v47  ;;  %33358 = vmatprep.subr.mxu1 %v35080_v0  ;;  %v27632_v37 = vand.u32 4294901760, %v27631_v35 }
0x1d23   : > { %v38505_v42 = vand.u32 4294901760, %v27522_v62  ;;  %33379 = vmatprep.subr.mxu0 %v35080_v0  ;;  %33381 = vmatprep.mubr.msk.f32.mxu0 %vm35081_vm0, %v35080_v0 }
0x1d24   : > { %v27638_v24 = vsub.f32 %v27516_v18, %v38502_v25  ;;  %33359 = vmatpush3.msra.mxu1 %v27173_v54  ;;  %33380 = vmatpush3.msra.mxu0 %v27171_v19  ;;  %v27633_v26 = vsub.f32 %v27631_v35, %v27632_v37 }
0x1d25   : > { %33361 = vmatmul.mubr.f32.vlgmr.msra.gmra.mxu1 %v38461_v12  ;;  %33370 = vmatprep.subr.mxu1 %v35080_v0  ;;  %v27592_v5 = vsub.f32 %v27522_v62, %v38505_v42  ;;  %v27986_v9 = vpop.permute.xlu0 %27985 }
0x1d26   : > { %33382 = vmatmul.mubr.f32.vlgmr.msra.gmra.mxu0 %v38461_v12  ;;  %33391 = vmatprep.subr.mxu0 %v35080_v0  ;;  %v27639_v7 = vand.u32 4294901760, %v27638_v24  ;;  %v27634_v45 = vand.u32 4294901760, %v27633_v26  ;;  %v38533_v13 = vand.u32 4294901760, %v27986_v9 }
0x1d27   : > { %33371 = vmatpush3.msra.mxu1 %v38483_v27  ;;  %33392 = vmatpush3.msra.mxu0 %v38492_v1  ;;  %v27593_v60 = vand.u32 4294901760, %v27592_v5 }
0x1d28   : > { %33372 = vmatprep.subr.mxu1 %v35080_v0  ;;  %33393 = vmatprep.subr.mxu0 %v35080_v0  ;;  %v27640_v44 = vsub.f32 %v27638_v24, %v27639_v7  ;;  %v38542_v46 = vsub.f32 %v27986_v9, %v38533_v13 }
0x1d29   : > { %33373 = vmatpush3.msra.mxu1 %v27088_v21  ;;  %33374 = vmatprep.mubr.msk.f32.mxu1 %vm35081_vm0, %v35080_v0  ;;  %v27594_v15 = vsub.f32 %v27592_v5, %v27593_v60  ;;  %v27984_v58 = vpop.permute.xlu0 %27983 }
0x1d2a   : > { %33394 = vmatpush3.msra.mxu0 %v38502_v25  ;;  %33375 = vmatmul.mubr.f32.vlgmr.msra.gmra.mxu1 %v27125_v3  ;;  %v27641_v57 = vand.u32 4294901760, %v27640_v44  ;;  %v38537_v16 = vand.u32 4294901760, %v27984_v58  ;;  %v28100_v39 = vand.u32 4294901760, %v38542_v46 }
0x1d2b   : > { %33384 = vmatprep.subr.mxu1 %v35080_v0  ;;  %33388 = vmatprep.mubr.msk.f32.mxu1 %vm35081_vm0, %v35080_v0  ;;  %v27595_v38 = vand.u32 4294901760, %v27594_v15 }
0x1d2c   : > { %33385 = vmatpush3.msra.mxu1 %v38483_v27  ;;  %33395 = vmatprep.mubr.msk.f32.mxu0 %vm35081_vm0, %v35080_v0  ;;  %v38551_v56 = vsub.f32 %v27984_v58, %v38537_v16  ;;  %v28101_v41 = vsub.f32 %v38542_v46, %v28100_v39 }
0x1d2d   : > { %33386 = vmatprep.subr.mxu1 %v35080_v0  ;;  %33405 = vmatprep.subr.mxu0 %v35080_v0 }
0x1d2e   : > { %33387 = vmatpush3.msra.mxu1 %v27088_v21  ;;  %33396 = vmatmul.mubr.f32.vlgmr.msra.gmra.mxu0 %v27595_v38  ;;  %v26570_v43 = vpop.xlane.xlu1 %26569  ;;  %v28107_v8 = vand.u32 4294901760, %v38551_v56  ;;  %v28102_v55 = vand.u32 4294901760, %v28101_v41 }
0x1d2f   : > { %33389 = vmatmul.mubr.f32.vlgmr.msra.gmra.mxu1 %v38461_v12  ;;  %33398 = vmatprep.subr.mxu1 %v35080_v0  ;;  %34104 = vrcp.f32 %v26570_v43 }
0x1d30   : > { %33406 = vmatpush3.msra.mxu0 %v27631_v35  ;;  %33399 = vmatpush3.msra.mxu1 %v27634_v45  ;;  %v28108_v51 = vsub.f32 %v38551_v56, %v28107_v8 }
0x1d31   : > { %33407 = vmatprep.subr.mxu0 %v35080_v0  ;;  %33400 = vmatprep.subr.mxu1 %v35080_v0 }
0x1d32   : > { %33408 = vmatpush3.msra.mxu0 %v27638_v24  ;;  %33401 = vmatpush3.msra.mxu1 %v27641_v57 }
0x1d33   : > { %33402 = vmatprep.mubr.msk.f32.mxu1 %vm35081_vm0, %v35080_v0  ;;  %33409 = vmatprep.mubr.msk.f32.mxu0 %vm35081_vm0, %v35080_v0 }
0x1d34   : > { %33419 = vmatprep.subr.mxu0 %v35080_v0  ;;  %33403 = vmatmul.mubr.f32.vlgmr.msra.gmra.mxu1 %v38505_v42 }
0x1d35   : > { %33410 = vmatmul.mubr.f32.vlgmr.msra.gmra.mxu0 %v27592_v5  ;;  %33412 = vmatprep.subr.mxu1 %v35080_v0 }
0x1d36   : > { %33420 = vmatpush3.msra.mxu0 %v27632_v37  ;;  %33413 = vmatpush3.msra.mxu1 %v38492_v1 }
0x1d37   : > { %33421 = vmatprep.subr.mxu0 %v35080_v0  ;;  %33414 = vmatprep.subr.mxu1 %v35080_v0 }
0x1d38   : > { %33422 = vmatpush3.msra.mxu0 %v27639_v7  ;;  %33415 = vmatpush3.msra.mxu1 %v38502_v25 }
0x1d39   : > { %33416 = vmatprep.mubr.msk.f32.mxu1 %vm35081_vm0, %v35080_v0  ;;  %33423 = vmatprep.mubr.msk.f32.mxu0 %vm35081_vm0, %v35080_v0 }
0x1d3a   : > { %33433 = vmatprep.subr.mxu0 %v35080_v0  ;;  %33417 = vmatmul.mubr.f32.vlgmr.msra.gmra.mxu1 %v27593_v60 }
0x1d3b   : > { %33424 = vmatmul.mubr.f32.vlgmr.msra.gmra.mxu0 %v38505_v42  ;;  %33426 = vmatprep.subr.mxu1 %v35080_v0 }
0x1d3c   : > { %v34105_v11 = vpop.eup %34104  ;;  %33434 = vmatpush3.msra.mxu0 %v38533_v13  ;;  %33427 = vmatpush3.msra.mxu1 %v38492_v1 }
0x1d3d   : > { %v26578_v23 = vmul.f32 %v34105_v11, %v38437_v17  ;;  %33435 = vmatprep.subr.mxu0 %v35080_v0  ;;  %33428 = vmatprep.subr.mxu1 %v35080_v0  ;;  %v28109_v17 = vand.u32 4294901760, %v28108_v51 }
0x1d3e   : > { %33436 = vmatpush3.msra.mxu0 %v38537_v16  ;;  %33429 = vmatpush3.msra.mxu1 %v38502_v25 }
0x1d3f   : > { %33430 = vmatprep.mubr.msk.f32.mxu1 %vm35081_vm0, %v35080_v0  ;;  %33440 = vmatprep.subr.mxu1 %v35080_v0  ;;  %v27990_v20 = vsel %vm4399_vm5, %v26578_v23, 0 }
0x1d40   : > { %33431 = vmatmul.mubr.f32.vlgmr.msra.gmra.mxu1 %v38505_v42  ;;  %v28059_v63 = vand.u32 4294901760, %v27990_v20  ;;  %33437 = vmatprep.mubr.msk.f32.mxu0 %vm35081_vm0, %v35080_v0 }
0x1d41   : > { %33441 = vmatpush3.msra.mxu1 %v28102_v55  ;;  %33444 = vmatprep.mubr.msk.f32.mxu1 %vm35081_vm0, %v35080_v0 }
0x1d42   : > { %33442 = vmatprep.subr.mxu1 %v35080_v0  ;;  %v28060_v59 = vsub.f32 %v27990_v20, %v28059_v63  ;;  %33447 = vmatprep.subr.mxu0 %v35080_v0 }
0x1d43   : > { %33443 = vmatpush3.msra.mxu1 %v28109_v17 }
0x1d44   : > { %33454 = vmatprep.subr.mxu1 %v35080_v0  ;;  %33445 = vmatmul.mubr.f32.vlgmr.msra.gmra.mxu1 %v28059_v63  ;;  %v28061_v48 = vand.u32 4294901760, %v28060_v59 }
0x1d45   : > { %33455 = vmatpush3.msra.mxu1 %v38533_v13  ;;  %33458 = vmatprep.mubr.msk.f32.mxu1 %vm35081_vm0, %v35080_v0 }
0x1d46   : > { %33456 = vmatprep.subr.mxu1 %v35080_v0  ;;  %v28062_v6 = vsub.f32 %v28060_v59, %v28061_v48 }
0x1d47   : > { %33457 = vmatpush3.msra.mxu1 %v38537_v16 }
0x1d48   : > { %33468 = vmatprep.subr.mxu1 %v35080_v0  ;;  %33459 = vmatmul.mubr.f32.vlgmr.msra.gmra.mxu1 %v28061_v48  ;;  %v28063_v22 = vand.u32 4294901760, %v28062_v6 }
0x1d49   : > { %33469 = vmatpush3.msra.mxu1 %v38533_v13  ;;  %33472 = vmatprep.mubr.msk.f32.mxu1 %vm35081_vm0, %v35080_v0 }
0x1d4a   : > { %33470 = vmatprep.subr.mxu1 %v35080_v0  ;;  %33438 = vmatmul.mubr.f32.vlgmr.msra.gmra.mxu0 %v28063_v22 }
0x1d4b   : > { %33471 = vmatpush3.msra.mxu1 %v38537_v16  ;;  %33448 = vmatpush3.msra.mxu0 %v38542_v46  ;;  %v23616_v46 = vld [vmem:[%s38963_s23 + $0x18] sm:$0xff] }
0x1d4c   : > { %33473 = vmatmul.mubr.f32.vlgmr.msra.gmra.mxu1 %v28059_v63  ;;  %33449 = vmatprep.subr.mxu0 %v35080_v0 }
0x1d4d   : > { %33450 = vmatpush3.msra.mxu0 %v38551_v56  ;;  %33451 = vmatprep.mubr.msk.f32.mxu0 %vm35081_vm0, %v35080_v0  ;;  %v23615_v56 = vld [vmem:[%s38963_s23 + $0x10] sm:$0xff] }
0x1d4e   : > { %33461 = vmatprep.subr.mxu0 %v35080_v0  ;;  %33452 = vmatmul.mubr.f32.vlgmr.msra.gmra.mxu0 %v28060_v59 }
0x1d4f   : > { %33462 = vmatpush3.msra.mxu0 %v28100_v39  ;;  %33465 = vmatprep.mubr.msk.f32.mxu0 %vm35081_vm0, %v35080_v0  ;;  %v38620_v39 = vand.u32 4294901760, %v23616_v46 }
0x1d50   : > { %33463 = vmatprep.subr.mxu0 %v35080_v0  ;;  %33486 = vmatprep.subr.mxu1 %v35080_v0 }
0x1d51   : > { %33464 = vmatpush3.msra.mxu0 %v28107_v8  ;;  %33494 = vmatprep.mubr.msk.f32.mxu1 %vm35081_vm0, %v35080_v0  ;;  %v38622_v8 = vand.u32 4294901760, %v23615_v56  ;;  %v38625_v23 = vsub.f32 %v23616_v46, %v38620_v39 }
0x1d52   : > { %33466 = vmatmul.mubr.f32.vlgmr.msra.gmra.mxu0 %v28059_v63  ;;  %33475 = vmatprep.subr.mxu0 %v35080_v0 }
0x1d53   : > { %33483 = vmatprep.mubr.msk.f32.mxu0 %vm35081_vm0, %v35080_v0  ;;  %33476 = vmatpush3.msra.mxu0 %v38620_v39  ;;  %v28579_v17 = vand.u32 4294901760, %v38625_v23 }
0x1d54   : > { %33477 = vmatprep.subr.mxu0 %v35080_v0 }
0x1d55   : > { %33478 = vmatpush3.msra.mxu0 %v38622_v8  ;;  %v28580_v48 = vsub.f32 %v38625_v23, %v28579_v17 }
0x1d56   : > { %33479 = vmatprep.subr.mxu0 %v35080_v0 }
0x1dc3   : > { %v26661_v12 = vpop.f32.mrf.mxu0 }
0x1dc5   : > { %v33313_v31 = vpop.f32.mrf.mxu0 }
0x1dc6   : > { %v28581_v31 = vand.u32 4294901760, %v28580_v48 }
0x1dc7   : > { %v26818_v32 = vpop.f32.mrf.mxu0 }
0x1dc8   : > { %33487 = vmatpush3.msra.mxu1 %v28581_v31 }
0x1dc9   : > { %v33327_v3 = vpop.f32.mrf.mxu0  ;;  %33488 = vmatprep.subr.mxu1 %v35080_v0 }
0x1dcb   : > { %v26742_v4 = vpop.f32.mrf.mxu1 }
0x1dcc   : > { %v26743_v27 = vadd.f32 %v26742_v4, %v26661_v12  ;;  %v26970_v28 = vpop.f32.mrf.mxu0 }
0x1dcd   : > { %v33320_v40 = vpop.f32.mrf.mxu1 }
0x1dce   : > { %v33341_v53 = vpop.f32.mrf.mxu0  ;;  %v26819_v47 = vadd.f32 %v26818_v32, %v26743_v27 }
0x1dcf   : > { %v23614_v53 = vld [vmem:[%s38963_s23 + $0x8] sm:$0xff] }
0x1dd0   : > { %v26893_v21 = vpop.f32.mrf.mxu1 }
0x1dd1   : > { %v26894_v14 = vadd.f32 %v26893_v21, %v26819_v47  ;;  %v38647_v47 = vand.u32 4294901760, %v23614_v53 }
0x1dd2   : > { %v33334_v29 = vpop.f32.mrf.mxu1 }
0x1dd3   : > { %v26971_v36 = vadd.f32 %v26970_v28, %v26894_v14  ;;  %v23613_v29 = vld [vmem:[%s38963_s23] sm:$0xff]  ;;  %33480 = vmatpush3.msra.mxu0 %v38647_v47 }
0x1dd4   : > { %v27043_v49 = vpop.f32.mrf.mxu1  ;;  %33481 = vmatprep.subr.mxu0 %v35080_v0 }
0x1dd5   : > { %v38614_v33 = vadd.f32 %v27043_v49, %v26971_v36  ;;  %v38651_v36 = vsub.f32 %v23614_v53, %v38647_v47 }
0x1dd6   : > { %v33348_v19 = vpop.f32.mrf.mxu1 }
0x1ddd   : > { %v27129_v1 = vpop.f32.mrf.mxu0 }
0x1ddf   : > { %v33355_v30 = vpop.f32.mrf.mxu0 }
0x1de0   : > { %v28593_v30 = vand.u32 4294901760, %v38651_v36 }
0x1de1   : > { %v27286_v34 = vpop.f32.mrf.mxu0 }
0x1de3   : > { %v33369_v2 = vpop.f32.mrf.mxu0 }
0x1de5   : > { %v27210_v18 = vpop.f32.mrf.mxu1 }
0x1de6   : > { %v27211_v62 = vadd.f32 %v27210_v18, %v27129_v1  ;;  %v27438_v54 = vpop.f32.mrf.mxu0 }
0x1de7   : > { %v33362_v35 = vpop.f32.mrf.mxu1 }
0x1de8   : > { %v33383_v25 = vpop.f32.mrf.mxu0  ;;  %v27287_v42 = vadd.f32 %v27286_v34, %v27211_v62 }
0x1dea   : > { %v27361_v24 = vpop.f32.mrf.mxu1 }
0x1deb   : > { %v27362_v5 = vadd.f32 %v27361_v24, %v27287_v42 }
0x1dec   : > { %v33376_v37 = vpop.f32.mrf.mxu1 }
0x1ded   : > { %v27439_v60 = vadd.f32 %v27438_v54, %v27362_v5  ;;  %v28594_v54 = vsub.f32 %v38651_v36, %v28593_v30 }
0x1dee   : > { %v27597_v7 = vpop.f32.mrf.mxu0 }
0x1def   : > { %v27511_v9 = vpop.f32.mrf.mxu1  ;;  %v28595_v24 = vand.u32 4294901760, %v28594_v54 }
0x1df0   : > { %v27512_v15 = vadd.f32 %v27511_v9, %v27439_v60  ;;  %v33397_v26 = vpop.f32.mrf.mxu0 }
0x1df1   : > { %v33390_v38 = vpop.f32.mrf.mxu1 }
0x1df2   : > { %v28452_v44 = vadd.f32 %v27512_v15, %v38280_v50  ;;  %v38628_v50 = vsub.f32 %v23615_v56, %v38622_v8 }
0x1df4   : > { %v27678_v45 = vpop.f32.mrf.mxu1  ;;  %28456 = vrot.lane.b32.xlu0 %v28452_v44, %s35086_s5  ;;  %v28586_v59 = vand.u32 4294901760, %v38628_v50  ;;  %v28451_v44 = vadd.f32 %v38614_v33, %v38212_v52  ;;  %s34892_s5 = scalar_lea.vmem %s34891_s6, 32 }
0x1df5   : > { %v27679_v58 = vadd.f32 %v27678_v45, %v27597_v7  ;;  %v27754_v43 = vpop.f32.mrf.mxu0  ;;  %p34894_p3 = scmp.lt.s32.totalorder %s34892_s5, %s34886_s25 }
0x1df6   : > { %v33404_v13 = vpop.f32.mrf.mxu1  ;;  %v28587_v6 = vsub.f32 %v38628_v50, %v28586_v59 }
0x1df7   : > { %v27755_v57 = vadd.f32 %v27754_v43, %v27679_v58  ;;  %v33411_v16 = vpop.f32.mrf.mxu0  ;;  %p34895_p9 = por %p34894_p3, %p34893_p2 }
0x1df8   : > { %v28588_v32 = vand.u32 4294901760, %v28587_v6 }
0x1df9   : > { %p34896_p4 = pnand %p34895_p9, %p34889_p1 }
0x1dfa   : > { %v27829_v41 = vpop.f32.mrf.mxu1  ;;  %33489 = vmatpush3.msra.mxu1 %v28588_v32 }
0x1dfb   : > { %v27830_v11 = vadd.f32 %v27829_v41, %v27755_v57  ;;  %v27906_v51 = vpop.f32.mrf.mxu0  ;;  %33490 = vmatprep.subr.mxu1 %v35080_v0  ;;  %v28962_v41 = vld [vmem:[#allocation47 + $0x10] sm:$0xff] }
0x1dfc   : > { %v33418_v55 = vpop.f32.mrf.mxu1  ;;  %33491 = vmatpush3.msra.mxu1 %v28595_v24 }
0x1dfd   : > { %v27907_v20 = vadd.f32 %v27906_v51, %v27830_v11  ;;  %v33425_v63 = vpop.f32.mrf.mxu0  ;;  %33492 = vmatprep.subr.mxu1 %v35080_v0  ;;  %v38736_v51 = vand.u32 4294901760, %v28962_v41 }
0x1dfe   : > { %v28960_v63 = vld [vmem:[#allocation47] sm:$0xff] }
0x1dff   : > { %v38742_v55 = vsub.f32 %v28962_v41, %v38736_v51  ;;  %v38755_v6 = vand.u32 4294901760, %v28960_v63 }
0x1e00   : > { %v27979_v22 = vpop.f32.mrf.mxu1 }
0x1e01   : > { %v27980_v12 = vadd.f32 %v27979_v22, %v27907_v20  ;;  %v38764_v32 = vsub.f32 %v28960_v63, %v38755_v6 }
0x1e02   : > { %v33432_v3 = vpop.f32.mrf.mxu1 }
0x1e03   : > { %v28453_v4 = vadd.f32 %v27980_v12, %v38294_v61  ;;  %v38653_v61 = vand.u32 4294901760, %v23613_v29 }
0x1e04   : > { %v28146_v27 = vpop.f32.mrf.mxu1 }
0x1e05   : > { %28460 = vrot.lane.b32.xlu0 %v28453_v4, %s35087_s8  ;;  %v38659_v34 = vsub.f32 %v23613_v29, %v38653_v61  ;;  %33482 = vmatpush3.msra.mxu0 %v38653_v61 }
0x1e06   : > { %v33446_v28 = vpop.f32.mrf.mxu1  ;;  %33497 = vmatprep.subr.mxu0 %v35080_v0 }
0x1e07   : > { %v28600_v35 = vand.u32 4294901760, %v38659_v34 }
0x1e08   : > { %v28297_v40 = vpop.f32.mrf.mxu1 }
0x1e09   : > { %v28601_v5 = vsub.f32 %v38659_v34, %v28600_v35 }
0x1e0a   : > { %v33460_v21 = vpop.f32.mrf.mxu1  ;;  %v28065_v14 = vpop.f32.mrf.mxu0 }
0x1e0b   : > { %v28147_v1 = vadd.f32 %v28146_v27, %v28065_v14  ;;  %v28602_v7 = vand.u32 4294901760, %v28601_v5  ;;  %v29095_v27 = vand.u32 4294901760, %v38764_v32 }
0x1e0c   : > { %v28447_v49 = vpop.f32.mrf.mxu1  ;;  %v33439_v19 = vpop.f32.mrf.mxu0 }
0x1e0d   : > { %33493 = vmatpush3.msra.mxu1 %v28602_v7 }
0x1e0e   : > { %v33474_v2 = vpop.f32.mrf.mxu1  ;;  %v28222_v18 = vpop.f32.mrf.mxu0  ;;  %33508 = vmatprep.subr.mxu1 %v35080_v0 }
0x1e0f   : > { %v28223_v62 = vadd.f32 %v28222_v18, %v28147_v1 }
0x1e10   : > { %v33453_v25 = vpop.f32.mrf.mxu0 }
0x1e11   : > { %v28298_v42 = vadd.f32 %v28297_v40, %v28223_v62  ;;  %v29096_v40 = vsub.f32 %v38764_v32, %v29095_v27 }
0x1e12   : > { %v28374_v37 = vpop.f32.mrf.mxu0 }
0x1e13   : > { %v28375_v60 = vadd.f32 %v28374_v37, %v28298_v42  ;;  %v29097_v53 = vand.u32 4294901760, %v29096_v40 }
0x1e14   : > { %v33467_v9 = vpop.f32.mrf.mxu0 }
0x1e15   : > { %v28448_v15 = vadd.f32 %v28447_v49, %v28375_v60  ;;  %v23617_v49 = vld [vmem:[%s35263_s4] sm:$0x1] }
0x1e17   : > { %v28454_v26 = vadd.f32 %v28448_v15, %v38348_v10 }
0x1e19   : > { %28464 = vrot.lane.b32.xlu1 %v28454_v26, %s35088_s15 }
0x1e66   : > { %v28457_v38 = vpop.permute.xlu0 %28456 }
0x1e67   : > { %v28467_v58 = vsel %vm2534_vm4, %v28451_v44, %v28457_v38 }
0x1e77   : > { %v28461_v45 = vpop.permute.xlu0 %28460 }
0x1e78   : > { %v28468_v43 = vsel %vm4399_vm5, %v28467_v58, %v28461_v45 }
0x1e8b   : > { %v28465_v13 = vpop.permute.xlu1 %28464 }
0x1e8c   : > { %v38679_v57 = vsel %vm6334_vm6, %v28468_v43, %v28465_v13 }
0x1e8d   : > { %v28471_v16 = vsel %vm1515_vm1, %v38679_v57, 0 }
0x1e8e   : > { %v28542_v46 = vand.u32 4294901760, %v28471_v16 }
0x1e90   : > { %v28543_v10 = vsub.f32 %v28471_v16, %v28542_v46  ;;  %33495 = vmatmul.mubr.f32.vlgmr.msra.gmra.mxu1 %v28542_v46  ;;  %v28964_v16 = vld [vmem:[%s35273_s21] sm:$0x1] }
0x1e91   : > { %33509 = vmatpush3.msra.mxu1 %v38620_v39  ;;  %33516 = vmatprep.mubr.msk.f32.mxu1 %vm35081_vm0, %v35080_v0 }
0x1e92   : > { %v28544_v52 = vand.u32 4294901760, %v28543_v10  ;;  %33510 = vmatprep.subr.mxu1 %v35080_v0 }
0x1e93   : > { %33511 = vmatpush3.msra.mxu1 %v38622_v8 }
0x1e94   : > { %v28545_v33 = vsub.f32 %v28543_v10, %v28544_v52  ;;  %33512 = vmatprep.subr.mxu1 %v35080_v0 }
0x1e95   : > { %33513 = vmatpush3.msra.mxu1 %v38647_v47 }
0x1e96   : > { %v28546_v56 = vand.u32 4294901760, %v28545_v33  ;;  %33514 = vmatprep.subr.mxu1 %v35080_v0 }
0x1e97   : > { %33515 = vmatpush3.msra.mxu1 %v38653_v61 }
0x1e98   : > { %33517 = vmatmul.mubr.f32.vlgmr.msra.gmra.mxu1 %v28544_v52  ;;  %33530 = vmatprep.subr.mxu1 %v35080_v0 }
0x1e99   : > { %33484 = vmatmul.mubr.f32.vlgmr.msra.gmra.mxu0 %v28546_v56  ;;  %33531 = vmatpush3.msra.mxu1 %v38620_v39  ;;  %v28963_v39 = vld [vmem:[#allocation47 + $0x18] sm:$0xff] }
0x1e9a   : > { %33498 = vmatpush3.msra.mxu0 %v38625_v23  ;;  %33532 = vmatprep.subr.mxu1 %v35080_v0  ;;  %v28961_v23 = vld [vmem:[#allocation47 + $0x8] sm:$0xff] }
0x1e9b   : > { %33499 = vmatprep.subr.mxu0 %v35080_v0  ;;  %33533 = vmatpush3.msra.mxu1 %v38622_v8  ;;  %v38731_v8 = vand.u32 4294901760, %v28963_v39  ;;  %v38744_v20 = vand.u32 4294901760, %v28961_v23 }
0x1e9c   : > { %33500 = vmatpush3.msra.mxu0 %v38628_v50  ;;  %33534 = vmatprep.subr.mxu1 %v35080_v0 }
0x1e9d   : > { %33501 = vmatprep.subr.mxu0 %v35080_v0  ;;  %33535 = vmatpush3.msra.mxu1 %v38647_v47  ;;  %v38734_v11 = vsub.f32 %v28963_v39, %v38731_v8  ;;  %v38753_v48 = vsub.f32 %v28961_v23, %v38744_v20 }
0x1e9e   : > { %33502 = vmatpush3.msra.mxu0 %v38651_v36  ;;  %33536 = vmatprep.subr.mxu1 %v35080_v0 }
0x1e9f   : > { %33503 = vmatprep.subr.mxu0 %v35080_v0  ;;  %33505 = vmatprep.mubr.msk.f32.mxu0 %vm35081_vm0, %v35080_v0  ;;  %v29074_v50 = vand.u32 4294901760, %v38734_v11  ;;  %v29088_v31 = vand.u32 4294901760, %v38753_v48 }
0x1ea0   : > { %33504 = vmatpush3.msra.mxu0 %v38659_v34  ;;  %33537 = vmatpush3.msra.mxu1 %v38653_v61 }
0x1ea1   : > { %33538 = vmatprep.mubr.msk.f32.mxu1 %vm35081_vm0, %v35080_v0  ;;  %33506 = vmatmul.mubr.f32.vlgmr.msra.gmra.mxu0 %v28543_v10  ;;  %v29089_v4 = vsub.f32 %v38753_v48, %v29088_v31 }
0x1ea2   : > { %33519 = vmatprep.subr.mxu0 %v35080_v0  ;;  %33539 = vmatmul.mubr.f32.vlgmr.msra.gmra.mxu1 %v28542_v46 }
0x1ea3   : > { %33520 = vmatpush3.msra.mxu0 %v28579_v17  ;;  %33527 = vmatprep.mubr.msk.f32.mxu0 %vm35081_vm0, %v35080_v0  ;;  %v29075_v17 = vsub.f32 %v38734_v11, %v29074_v50  ;;  %v29090_v28 = vand.u32 4294901760, %v29089_v4 }
0x1ea4   : > { %33521 = vmatprep.subr.mxu0 %v35080_v0  ;;  %33552 = vmatprep.subr.mxu1 %v35080_v0 }
0x1ea5   : > { %33522 = vmatpush3.msra.mxu0 %v28586_v59  ;;  %33560 = vmatprep.mubr.msk.f32.mxu1 %vm35081_vm0, %v35080_v0  ;;  %v29081_v59 = vand.u32 4294901760, %v38742_v55  ;;  %v29076_v22 = vand.u32 4294901760, %v29075_v17 }
0x1ea6   : > { %33523 = vmatprep.subr.mxu0 %v35080_v0 }
0x1ea7   : > { %33524 = vmatpush3.msra.mxu0 %v28593_v30  ;;  %v29082_v12 = vsub.f32 %v38742_v55, %v29081_v59  ;;  %33553 = vmatpush3.msra.mxu1 %v29076_v22 }
0x1ea8   : > { %33525 = vmatprep.subr.mxu0 %v35080_v0  ;;  %33554 = vmatprep.subr.mxu1 %v35080_v0 }
0x1ea9   : > { %33526 = vmatpush3.msra.mxu0 %v28600_v35  ;;  %v29083_v3 = vand.u32 4294901760, %v29082_v12 }
0x1eaa   : > { %33528 = vmatmul.mubr.f32.vlgmr.msra.gmra.mxu0 %v28542_v46  ;;  %33541 = vmatprep.subr.mxu0 %v35080_v0 }
0x1eab   : > { %33549 = vmatprep.mubr.msk.f32.mxu0 %vm35081_vm0, %v35080_v0  ;;  %33542 = vmatpush3.msra.mxu0 %v38731_v8 }
0x1eac   : > { %33543 = vmatprep.subr.mxu0 %v35080_v0  ;;  %33555 = vmatpush3.msra.mxu1 %v29083_v3 }
0x1ead   : > { %33544 = vmatpush3.msra.mxu0 %v38736_v51  ;;  %33556 = vmatprep.subr.mxu1 %v35080_v0 }
0x1eae   : > { %33545 = vmatprep.subr.mxu0 %v35080_v0  ;;  %33557 = vmatpush3.msra.mxu1 %v29090_v28 }
0x1eaf   : > { %33546 = vmatpush3.msra.mxu0 %v38744_v20  ;;  %33558 = vmatprep.subr.mxu1 %v35080_v0 }
0x1eb0   : > { %33547 = vmatprep.subr.mxu0 %v35080_v0  ;;  %33559 = vmatpush3.msra.mxu1 %v29097_v53 }
0x1eb1   : > { %33548 = vmatpush3.msra.mxu0 %v38755_v6  ;;  %33574 = vmatprep.subr.mxu1 %v35080_v0 }
0x1eb2   : > { %33563 = vmatprep.subr.mxu0 %v35080_v0 }
0x1f50   : > { %v28639_v47 = vpop.f32.mrf.mxu1 }
0x1f52   : > { %v33496_v21 = vpop.f32.mrf.mxu1 }
0x1f58   : > { %v28796_v14 = vpop.f32.mrf.mxu1 }
0x1f59   : > { %v28548_v29 = vpop.f32.mrf.mxu0 }
0x1f5a   : > { %v33518_v36 = vpop.f32.mrf.mxu1  ;;  %v28549_v19 = vadd.f32 %v28548_v29, %v23617_v49 }
0x1f5b   : > { %v33485_v61 = vpop.f32.mrf.mxu0 }
0x1f5c   : > { %v28640_v34 = vadd.f32 %v28639_v47, %v28549_v19 }
0x1f61   : > { %v28719_v1 = vpop.f32.mrf.mxu0 }
0x1f62   : > { %v28954_v30 = vpop.f32.mrf.mxu1  ;;  %v28720_v62 = vadd.f32 %v28719_v1, %v28640_v34 }
0x1f63   : > { %v33507_v2 = vpop.f32.mrf.mxu0 }
0x1f64   : > { %v33540_v18 = vpop.f32.mrf.mxu1  ;;  %v28797_v54 = vadd.f32 %v28796_v14, %v28720_v62 }
0x1f6a   : > { %v28879_v35 = vpop.f32.mrf.mxu0 }
0x1f6b   : > { %v28880_v25 = vadd.f32 %v28879_v35, %v28797_v54 }
0x1f6c   : > { %v33529_v42 = vpop.f32.mrf.mxu0 }
0x1f6d   : > { %v28955_v24 = vadd.f32 %v28954_v30, %v28880_v25 }
0x1f6f   : > { %v28958_v5 = vmax.f32 %v28955_v24, 0.0 }
0x1f71   : > { %v28959_v37 = vadd.f32 %v28958_v5, %v38679_v57 }
0x1f73   : > { %v28966_v60 = vsel %vm1515_vm1, %v28959_v37, 0 }
0x1f74   : > { %v29037_v7 = vand.u32 4294901760, %v28966_v60 }
0x1f76   : > { %v29038_v9 = vsub.f32 %v28966_v60, %v29037_v7  ;;  %33561 = vmatmul.mubr.f32.vlgmr.msra.gmra.mxu1 %v29037_v7 }
0x1f77   : > { %33575 = vmatpush3.msra.mxu1 %v38731_v8  ;;  %33582 = vmatprep.mubr.msk.f32.mxu1 %vm35081_vm0, %v35080_v0 }
0x1f78   : > { %33576 = vmatprep.subr.mxu1 %v35080_v0  ;;  %v29039_v15 = vand.u32 4294901760, %v29038_v9 }
0x1f79   : > { %33577 = vmatpush3.msra.mxu1 %v38736_v51 }
0x1f7a   : > { %33578 = vmatprep.subr.mxu1 %v35080_v0  ;;  %v29040_v26 = vsub.f32 %v29038_v9, %v29039_v15 }
0x1f7b   : > { %33579 = vmatpush3.msra.mxu1 %v38744_v20 }
0x1f7c   : > { %33580 = vmatprep.subr.mxu1 %v35080_v0  ;;  %v29041_v38 = vand.u32 4294901760, %v29040_v26 }
0x1f7d   : > { %33581 = vmatpush3.msra.mxu1 %v38755_v6 }
0x1f7e   : > { %33583 = vmatmul.mubr.f32.vlgmr.msra.gmra.mxu1 %v29039_v15  ;;  %33596 = vmatprep.subr.mxu1 %v35080_v0 }
0x1f7f   : > { %33550 = vmatmul.mubr.f32.vlgmr.msra.gmra.mxu0 %v29041_v38  ;;  %33597 = vmatpush3.msra.mxu1 %v38731_v8 }
0x1f80   : > { %33564 = vmatpush3.msra.mxu0 %v38734_v11  ;;  %33598 = vmatprep.subr.mxu1 %v35080_v0 }
0x1f81   : > { %33565 = vmatprep.subr.mxu0 %v35080_v0  ;;  %33599 = vmatpush3.msra.mxu1 %v38736_v51 }
0x1f82   : > { %33566 = vmatpush3.msra.mxu0 %v38742_v55  ;;  %33600 = vmatprep.subr.mxu1 %v35080_v0 }
0x1f83   : > { %33567 = vmatprep.subr.mxu0 %v35080_v0  ;;  %33601 = vmatpush3.msra.mxu1 %v38744_v20 }
0x1f84   : > { %33568 = vmatpush3.msra.mxu0 %v38753_v48  ;;  %33602 = vmatprep.subr.mxu1 %v35080_v0 }
0x1f85   : > { %33569 = vmatprep.subr.mxu0 %v35080_v0  ;;  %33571 = vmatprep.mubr.msk.f32.mxu0 %vm35081_vm0, %v35080_v0 }
0x1f86   : > { %33570 = vmatpush3.msra.mxu0 %v38764_v32  ;;  %33603 = vmatpush3.msra.mxu1 %v38755_v6 }
0x1f87   : > { %33604 = vmatprep.mubr.msk.f32.mxu1 %vm35081_vm0, %v35080_v0  ;;  %33572 = vmatmul.mubr.f32.vlgmr.msra.gmra.mxu0 %v29038_v9 }
0x1f88   : > { %33585 = vmatprep.subr.mxu0 %v35080_v0  ;;  %33605 = vmatmul.mubr.f32.vlgmr.msra.gmra.mxu1 %v29037_v7 }
0x1f89   : > { %33586 = vmatpush3.msra.mxu0 %v29074_v50  ;;  %33593 = vmatprep.mubr.msk.f32.mxu0 %vm35081_vm0, %v35080_v0 }
0x1f8a   : > { %33587 = vmatprep.subr.mxu0 %v35080_v0 }
0x1f8b   : > { %33588 = vmatpush3.msra.mxu0 %v29081_v59 }
0x1f8c   : > { %33589 = vmatprep.subr.mxu0 %v35080_v0 }
0x1f8d   : > { %33590 = vmatpush3.msra.mxu0 %v29088_v31 }
0x1f8e   : > { %33591 = vmatprep.subr.mxu0 %v35080_v0 }
0x1f8f   : > { %33592 = vmatpush3.msra.mxu0 %v29095_v27 }
0x1f90   : > { %33594 = vmatmul.mubr.f32.vlgmr.msra.gmra.mxu0 %v29037_v7 }
0x2036   : > { %v29134_v44 = vpop.f32.mrf.mxu1 }
0x2038   : > { %v33562_v45 = vpop.f32.mrf.mxu1 }
0x203e   : > { %v29291_v58 = vpop.f32.mrf.mxu1 }
0x203f   : > { %v29043_v43 = vpop.f32.mrf.mxu0 }
0x2040   : > { %v33584_v13 = vpop.f32.mrf.mxu1  ;;  %v29044_v46 = vadd.f32 %v29043_v43, %v28964_v16 }
0x2041   : > { %v33551_v57 = vpop.f32.mrf.mxu0 }
0x2042   : > { %v29135_v33 = vadd.f32 %v29134_v44, %v29044_v46 }
0x2047   : > { %v29214_v10 = vpop.f32.mrf.mxu0 }
0x2048   : > { %v29449_v52 = vpop.f32.mrf.mxu1  ;;  %v29215_v39 = vadd.f32 %v29214_v10, %v29135_v33 }
0x2049   : > { %v33573_v56 = vpop.f32.mrf.mxu0 }
0x204a   : > { %v33606_v0 = vpop.f32.mrf.mxu1  ;;  %v29292_v8 = vadd.f32 %v29291_v58, %v29215_v39 }
0x2050   : > { %v29374_v41 = vpop.f32.mrf.mxu0 }
0x2051   : > { %v29375_v11 = vadd.f32 %v29374_v41, %v29292_v8 }
0x2052   : > { %v33595_v51 = vpop.f32.mrf.mxu0 }
0x2053   : > { %v29450_v23 = vadd.f32 %v29449_v52, %v29375_v11 }
0x2055   : > { %29453 = vst [vmem:[%s1488_s16] sm:$0x1] %v29450_v23 }
0x2056   : > { %34899 = shalt.err (!%p34896_p4)
}
0x2057   : > { %s34900_s7 = scalar_lea.hbm %s29465_s10, 16  ;;  %s34904_s8 = scalar_lea.hbm %s35278_s17, 32 }
0x2058   : > { %p34901_p5 = scmp.ne.s32.totalorder %s29465_s10, %s34900_s7  ;;  %p34905_p10 = scmp.lt.s32.totalorder %s29465_s10, %s35278_s17 }
0x2059   : > { %p34906_p7 = scmp.lt.s32.totalorder %s34904_s8, %s34900_s7 }
0x205a   : > { %p34902_p6 = pnand %p34901_p5, %p38964_p11 }
0x205b   : > { %p34907_p8 = por %p34906_p7, %p34905_p10 }
0x205c   : > { %p34903_p13 = pneg %p34902_p6 }
0x205e   : > { %p34908_p12 = pnand %p34907_p8, %p34903_p13 }
0x2060   : > { %34911 = shalt.err (!%p34908_p12)
}
0x2061   : > { %33727 = dma.vmem_to_hbm [thread:$0]  (%p38964_p11), %s29468_s3, 16, %s29465_s10, %s29455_s18  }
0x2062 PF: > { %s38965_s15 = sld [smem:[#allocation92_spill]]  ;;  %p33884_p0 = scmp.ge.s32.totalorder %s35010_s2, 2 }
0x2063   : > { %s38966_s0 = sld [smem:[#allocation96_spill]] }
0x2068   : > { %s29479_s1 = sand.u32 1, %s38965_s15  }
0x2069   : > { %p38967_p1 = scmp.ne.s32.totalorder %s38966_s0, 0  ;;  %s29480_s16 = scalar_lea.sflag [#allocation4], %s29479_s1 }
0x206b   : > { %p33821_p2 = pnand %p33884_p0, %p38967_p1 }
0x206d   : > { %p33822_p3 = pneg %p33821_p2 }
0x206f   : > { %34993 = dma.done.wait (%p33822_p3), %s29480_s16, 16  }
0x2070   : > { %34995 = vsyncadd (%p33822_p3), %s29480_s16, 4294967280  ;;  %s38968_s2 = sld [smem:[#allocation94_spill]]  ;;  %s38971_s0 = smov %s35002_s28 }
0x2071   : > { %s38969_s25 = sld [smem:[#allocation93_spill]] }
0x2072   : > { %s38970_s1 = sld [smem:[#allocation95_spill]] }
0x2076   : > { %p99_p9 = scmp.ge.s32.totalorder %s38968_s2, 4  }
0x2077   : > { %s38972_s28 = smov %s38969_s25 }
0x2078   :  { %101 = sbr.rel (!%p99_p9) target bundleno = 82 (0x52), region = 356 }
0x207d   :  { %29484 = vsyncpa [#allocation3], 1 }
0x207e   :  { %29486 = vsyncpa [#allocation3 + $0x1], 1 }
0x207f   :  { %29487 = vsyncpa [#allocation6], 1 }
0x2080   :  { %29488 = vsyncpa [#allocation9], 1 }
0x2081   :  { %29489 = vsyncpa [#allocation12], 1 }
0x2082   :  { %29490 = vsyncpa [#allocation15], 1 }
0x2083   :  { %29491 = vsyncpa [#allocation18], 1 }
0x2084   :  { %29492 = vsyncpa [#allocation21], 1 }
0x2085   :  { %29493 = vsyncpa [#allocation24], 1 }
0x2086   :  { %29494 = vsyncpa [#allocation27], 1 }
0x2087   :  { %29495 = vsyncpa [#allocation30], 1 }
0x2088   :  { %29496 = vsyncpa [#allocation33], 1 }
0x2089   :  { %29497 = vsyncpa [#allocation36], 1 }
0x208a   :  { %29498 = vsyncpa [#allocation39], 1 }
0x208b   :  { %29499 = vsyncpa [#allocation42], 1 }
0x208c   :  { %29500 = vsyncpa [#allocation45], 1 }
0x208d   :  { %29501 = vsyncpa [#allocation48], 1 }
0x208e   :  { %29502 = vsyncpa [#allocation4], 1 }
0x208f   :  { %29504 = vsyncpa [#allocation4 + $0x1], 1 }

</bundles_post_ra>
